<compile_context>
chip_gen: v7x
topology: tpu7x:2x2x1
jax: 0.10.0
libtpu: 0.0.40
codegen_flags: <defaults>
</compile_context>

<pallas_src>
import jax
import jax.numpy as jnp
import numpy as np
from jax.experimental import pallas as pl
from jax.experimental.pallas import tpu as pltpu

_NEG_SLOPE = 0.2
# Tap order matches the flattened PyTorch weight layout: t = kh*3 + kw, (dh, dw) = (kh-1, kw-1).
_TAPS = tuple((dh, dw) for dh in (-1, 0, 1) for dw in (-1, 0, 1))


def _tap_masks(H, W, dblk):
    """(9, dblk, H*W) float32 masks: 1.0 where tap (dh, dw) stays inside the image, else 0."""
    m = np.zeros((9, H, W), np.float32)
    for t, (dh, dw) in enumerate(_TAPS):
        m[t, max(0, -dh):H - max(0, dh), max(0, -dw):W - max(0, dw)] = 1.0
    m = m.reshape(9, 1, H * W)
    return jnp.asarray(np.broadcast_to(m, (9, dblk, H * W)).copy())


def _pick_dblk(C, D, HW, itemsize, budget_bytes=1 << 20):
    """Largest divisor of D whose (C, dblk, H*W) block fits a conservative VMEM budget and
    keeps the sublane block dim tiling-legal (== D or a multiple of 8)."""
    ok = [c for c in range(1, D + 1)
          if D % c == 0 and (c == D or c % 8 == 0)
          and C * c * HW * itemsize <= budget_bytes]
    return max(ok) if ok else 1


def _make_kernel(C, dblk, H, W):
    HW = H * W

    def kernel(x_ref, masks_ref, w1_ref, b1_ref, w2_ref, b2_ref, o_ref):
        # Boundary masks: loaded once per grid step, reused by both layers.
        # The center tap (dh=dw=0) never needs masking.
        masks = {t: masks_ref[t]
                 for t, (dh, dw) in enumerate(_TAPS) if not (dh == 0 and dw == 0)}

        def conv_lrelu(x3, w_ref, b_ref):
            # x3: (C, dblk, HW) f32.  One XLU rotation per tap for the whole channel stack.
            taps = [[None] * 9 for _ in range(C)]      # taps[ci][t]: (dblk, HW)
            for t, (dh, dw) in enumerate(_TAPS):
                shift = (-(dh * W + dw)) % HW
                v = x3 if shift == 0 else pltpu.roll(x3, shift, axis=2)
                if t in masks:
                    v = v * masks[t]                   # zero wrap-around / out-of-image taps
                for ci in range(C):
                    taps[ci][t] = v[ci]
            outs = []
            for co in range(C):
                a = jnp.zeros((dblk, HW), jnp.float32)
                for ci in range(C):
                    base = (co * C + ci) * 9
                    for t in range(9):
                        a = a + w_ref[base + t] * taps[ci][t]   # SMEM scalar * vector FMA
                a = a + b_ref[co]
                outs.append(jnp.where(a >= 0.0, a, _NEG_SLOPE * a))  # LeakyReLU(0.2)
            return jnp.stack(outs, axis=0)             # (C, dblk, HW), stays in vregs/VMEM

        x0 = x_ref[...].astype(jnp.float32)
        y1 = conv_lrelu(x0, w1_ref, b1_ref)            # layer-1 output never leaves VMEM
        y2 = conv_lrelu(y1, w2_ref, b2_ref)
        o_ref[...] = y2.astype(o_ref.dtype)

    return kernel


def spatial_conv(fm, w1, b1, w2, b2):
    """Pallas forward pass of SpatialConv.

    fm: (N, C, D, H, W);  w1, w2: (C, C, 1, 3, 3) (PyTorch Conv3d OIDHW);  b1, b2: (C,).
    Returns (N, C, D, H, W).
    """
    N, C, D, H, W = fm.shape
    HW = H * W

    x = fm.reshape(N, C, D, HW)                       # free reshape — no transpose/pad HBM pass
    w1f = jnp.asarray(w1, jnp.float32).reshape(-1)    # (C*C*9,): co-major, then ci, kh, kw
    b1f = jnp.asarray(b1, jnp.float32)
    w2f = jnp.asarray(w2, jnp.float32).reshape(-1)
    b2f = jnp.asarray(b2, jnp.float32)

    dblk = _pick_dblk(C, D, HW, fm.dtype.itemsize)
    masks = _tap_masks(H, W, dblk)

    out = pl.pallas_call(
        _make_kernel(C, dblk, H, W),
        out_shape=jax.ShapeDtypeStruct((N, C, D, HW), fm.dtype),
        grid_spec=pltpu.PrefetchScalarGridSpec(
            num_scalar_prefetch=0,
            grid=(N, D // dblk),
            in_specs=[
                pl.BlockSpec((None, C, dblk, HW), lambda n, d: (n, 0, d, 0)),
                pl.BlockSpec((9, dblk, HW), lambda n, d: (0, 0, 0)),
                pl.BlockSpec(memory_space=pltpu.MemorySpace.SMEM),  # w1 scalars
                pl.BlockSpec(memory_space=pltpu.MemorySpace.SMEM),  # b1
                pl.BlockSpec(memory_space=pltpu.MemorySpace.SMEM),  # w2
                pl.BlockSpec(memory_space=pltpu.MemorySpace.SMEM),  # b2
            ],
            out_specs=pl.BlockSpec((None, C, dblk, HW), lambda n, d: (n, 0, d, 0)),
        ),
        compiler_params=pltpu.CompilerParams(
            dimension_semantics=("parallel", "parallel"),
        ),
    )(x, masks, w1f, b1f, w2f, b2f)
    return out.reshape(N, C, D, H, W)


def _ref_forward(fm, w1, b1, w2, b2):
    """Pure-JAX reference (lax.conv), same math as the PyTorch module."""
    N, C, D, H, W = fm.shape
    x = jnp.transpose(fm, (0, 2, 3, 4, 1)).reshape(N * D, H, W, C)

    def conv(x, w, b):
        w_hwio = jnp.transpose(w[:, :, 0, :, :], (2, 3, 1, 0))   # OIDHW -> HWIO
        y = jax.lax.conv_general_dilated(
            x, w_hwio, window_strides=(1, 1), padding="SAME",
            dimension_numbers=("NHWC", "HWIO", "NHWC"),
        ) + b.reshape(1, 1, 1, -1)
        return jnp.where(y >= 0, y, _NEG_SLOPE * y)

    y = conv(conv(x, w1, b1), w2, b2)
    return jnp.transpose(y.reshape(N, D, H, W, C), (0, 4, 1, 2, 3))


if __name__ == "__main__":
    key = jax.random.PRNGKey(0)
    k0, k1, k2, k3, k4 = jax.random.split(key, 5)

    N, C, D, H, W = 2, 4, 3, 16, 16
    fm = jax.random.normal(k0, (N, C, D, H, W), dtype=jnp.float32)

    # Conv3d params in PyTorch layout: weight (out, in, 1, 3, 3), bias (out,).
    fan_in = C * 3 * 3
    scale = 1.0 / (fan_in ** 0.5)
    w1 = jax.random.uniform(k1, (C, C, 1, 3, 3), jnp.float32, -scale, scale)
    b1 = jax.random.uniform(k2, (C,), jnp.float32, -scale, scale)
    w2 = jax.random.uniform(k3, (C, C, 1, 3, 3), jnp.float32, -scale, scale)
    b2 = jax.random.uniform(k4, (C,), jnp.float32, -scale, scale)

    out = jax.jit(spatial_conv)(fm, w1, b1, w2, b2)
    out = jax.block_until_ready(out)

    ref = _ref_forward(fm, w1, b1, w2, b2)
    assert out.shape == (N, C, D, H, W)
    assert jnp.allclose(out, ref, atol=1e-4, rtol=1e-4), "mismatch vs JAX reference"

    print("KERNEL_OK")
</pallas_src>

<mosaic_0001>
module attributes {stable_mosaic.version = 11 : i64} {
  func.func @kernel(%arg0: i32, %arg1: i32, %arg2: memref<1x4x3x256xf32, #tpu.memory_space<vmem>>, %arg3: memref<9x3x256xf32, #tpu.memory_space<vmem>>, %arg4: memref<144xf32, #tpu.memory_space<smem>>, %arg5: memref<4xf32, #tpu.memory_space<smem>>, %arg6: memref<144xf32, #tpu.memory_space<smem>>, %arg7: memref<4xf32, #tpu.memory_space<smem>>, %arg8: memref<1x4x3x256xf32, #tpu.memory_space<vmem>>) attributes {dimension_semantics = [#tpu.dimension_semantics<parallel>, #tpu.dimension_semantics<parallel>], iteration_bounds = array<i64: 2, 1>, scalar_prefetch = 0 : i64, scratch_operands = 0 : i64, tpu.core_type = #tpu.core_type<tc>, window_params = [{transform_indices = @transform_0, window_bounds = array<i64: 1, 4, 3, 256>}, {pipeline_mode = #tpu.pipeline_mode<synchronous>, transform_indices = @transform_1, window_bounds = array<i64: 9, 3, 256>}, {transform_indices = @transform_2, window_bounds = array<i64: 144>}, {transform_indices = @transform_3, window_bounds = array<i64: 4>}, {transform_indices = @transform_4, window_bounds = array<i64: 144>}, {transform_indices = @transform_5, window_bounds = array<i64: 4>}, {transform_indices = @transform_6, window_bounds = array<i64: 1, 4, 3, 256>}]} {
    %c0 = arith.constant 0 : index
    %c0_0 = arith.constant 0 : index
    %c0_1 = arith.constant 0 : index
    %0 = vector.load %arg3[%c0, %c0_0, %c0_1] : memref<9x3x256xf32, #tpu.memory_space<vmem>>, vector<1x3x256xf32>
    %1 = vector.shape_cast %0 : vector<1x3x256xf32> to vector<3x256xf32>
    %c1 = arith.constant 1 : index
    %c0_2 = arith.constant 0 : index
    %c0_3 = arith.constant 0 : index
    %2 = vector.load %arg3[%c1, %c0_2, %c0_3] : memref<9x3x256xf32, #tpu.memory_space<vmem>>, vector<1x3x256xf32>
    %3 = vector.shape_cast %2 : vector<1x3x256xf32> to vector<3x256xf32>
    %c2 = arith.constant 2 : index
    %c0_4 = arith.constant 0 : index
    %c0_5 = arith.constant 0 : index
    %4 = vector.load %arg3[%c2, %c0_4, %c0_5] : memref<9x3x256xf32, #tpu.memory_space<vmem>>, vector<1x3x256xf32>
    %5 = vector.shape_cast %4 : vector<1x3x256xf32> to vector<3x256xf32>
    %c3 = arith.constant 3 : index
    %c0_6 = arith.constant 0 : index
    %c0_7 = arith.constant 0 : index
    %6 = vector.load %arg3[%c3, %c0_6, %c0_7] : memref<9x3x256xf32, #tpu.memory_space<vmem>>, vector<1x3x256xf32>
    %7 = vector.shape_cast %6 : vector<1x3x256xf32> to vector<3x256xf32>
    %c5 = arith.constant 5 : index
    %c0_8 = arith.constant 0 : index
    %c0_9 = arith.constant 0 : index
    %8 = vector.load %arg3[%c5, %c0_8, %c0_9] : memref<9x3x256xf32, #tpu.memory_space<vmem>>, vector<1x3x256xf32>
    %9 = vector.shape_cast %8 : vector<1x3x256xf32> to vector<3x256xf32>
    %c6 = arith.constant 6 : index
    %c0_10 = arith.constant 0 : index
    %c0_11 = arith.constant 0 : index
    %10 = vector.load %arg3[%c6, %c0_10, %c0_11] : memref<9x3x256xf32, #tpu.memory_space<vmem>>, vector<1x3x256xf32>
    %11 = vector.shape_cast %10 : vector<1x3x256xf32> to vector<3x256xf32>
    %c7 = arith.constant 7 : index
    %c0_12 = arith.constant 0 : index
    %c0_13 = arith.constant 0 : index
    %12 = vector.load %arg3[%c7, %c0_12, %c0_13] : memref<9x3x256xf32, #tpu.memory_space<vmem>>, vector<1x3x256xf32>
    %13 = vector.shape_cast %12 : vector<1x3x256xf32> to vector<3x256xf32>
    %c8 = arith.constant 8 : index
    %c0_14 = arith.constant 0 : index
    %c0_15 = arith.constant 0 : index
    %14 = vector.load %arg3[%c8, %c0_14, %c0_15] : memref<9x3x256xf32, #tpu.memory_space<vmem>>, vector<1x3x256xf32>
    %15 = vector.shape_cast %14 : vector<1x3x256xf32> to vector<3x256xf32>
    %c0_16 = arith.constant 0 : index
    %c0_17 = arith.constant 0 : index
    %c0_18 = arith.constant 0 : index
    %c0_19 = arith.constant 0 : index
    %16 = vector.load %arg2[%c0_16, %c0_17, %c0_18, %c0_19] : memref<1x4x3x256xf32, #tpu.memory_space<vmem>>, vector<1x4x3x256xf32>
    %17 = vector.shape_cast %16 : vector<1x4x3x256xf32> to vector<4x3x256xf32>
    %c17_i32 = arith.constant 17 : i32
    %18 = tpu.dynamic_rotate %17 by %c17_i32 dim 2 : vector<4x3x256xf32>, i32 -> vector<4x3x256xf32>
    %19 = vector.shape_cast %1 : vector<3x256xf32> to vector<1x3x256xf32>
    %20 = vector.broadcast %19 : vector<1x3x256xf32> to vector<4x3x256xf32>
    %21 = arith.mulf %18, %20 : vector<4x3x256xf32>
    %22 = vector.extract_strided_slice %21 {offsets = [0, 0, 0], sizes = [1, 3, 256], strides = [1, 1, 1]} : vector<4x3x256xf32> to vector<1x3x256xf32>
    %23 = vector.shape_cast %22 : vector<1x3x256xf32> to vector<3x256xf32>
    %24 = vector.extract_strided_slice %21 {offsets = [1, 0, 0], sizes = [1, 3, 256], strides = [1, 1, 1]} : vector<4x3x256xf32> to vector<1x3x256xf32>
    %25 = vector.shape_cast %24 : vector<1x3x256xf32> to vector<3x256xf32>
    %26 = vector.extract_strided_slice %21 {offsets = [2, 0, 0], sizes = [1, 3, 256], strides = [1, 1, 1]} : vector<4x3x256xf32> to vector<1x3x256xf32>
    %27 = vector.shape_cast %26 : vector<1x3x256xf32> to vector<3x256xf32>
    %28 = vector.extract_strided_slice %21 {offsets = [3, 0, 0], sizes = [1, 3, 256], strides = [1, 1, 1]} : vector<4x3x256xf32> to vector<1x3x256xf32>
    %29 = vector.shape_cast %28 : vector<1x3x256xf32> to vector<3x256xf32>
    %c16_i32 = arith.constant 16 : i32
    %30 = tpu.dynamic_rotate %17 by %c16_i32 dim 2 : vector<4x3x256xf32>, i32 -> vector<4x3x256xf32>
    %31 = vector.shape_cast %3 : vector<3x256xf32> to vector<1x3x256xf32>
    %32 = vector.broadcast %31 : vector<1x3x256xf32> to vector<4x3x256xf32>
    %33 = arith.mulf %30, %32 : vector<4x3x256xf32>
    %34 = vector.extract_strided_slice %33 {offsets = [0, 0, 0], sizes = [1, 3, 256], strides = [1, 1, 1]} : vector<4x3x256xf32> to vector<1x3x256xf32>
    %35 = vector.shape_cast %34 : vector<1x3x256xf32> to vector<3x256xf32>
    %36 = vector.extract_strided_slice %33 {offsets = [1, 0, 0], sizes = [1, 3, 256], strides = [1, 1, 1]} : vector<4x3x256xf32> to vector<1x3x256xf32>
    %37 = vector.shape_cast %36 : vector<1x3x256xf32> to vector<3x256xf32>
    %38 = vector.extract_strided_slice %33 {offsets = [2, 0, 0], sizes = [1, 3, 256], strides = [1, 1, 1]} : vector<4x3x256xf32> to vector<1x3x256xf32>
    %39 = vector.shape_cast %38 : vector<1x3x256xf32> to vector<3x256xf32>
    %40 = vector.extract_strided_slice %33 {offsets = [3, 0, 0], sizes = [1, 3, 256], strides = [1, 1, 1]} : vector<4x3x256xf32> to vector<1x3x256xf32>
    %41 = vector.shape_cast %40 : vector<1x3x256xf32> to vector<3x256xf32>
    %c15_i32 = arith.constant 15 : i32
    %42 = tpu.dynamic_rotate %17 by %c15_i32 dim 2 : vector<4x3x256xf32>, i32 -> vector<4x3x256xf32>
    %43 = vector.shape_cast %5 : vector<3x256xf32> to vector<1x3x256xf32>
    %44 = vector.broadcast %43 : vector<1x3x256xf32> to vector<4x3x256xf32>
    %45 = arith.mulf %42, %44 : vector<4x3x256xf32>
    %46 = vector.extract_strided_slice %45 {offsets = [0, 0, 0], sizes = [1, 3, 256], strides = [1, 1, 1]} : vector<4x3x256xf32> to vector<1x3x256xf32>
    %47 = vector.shape_cast %46 : vector<1x3x256xf32> to vector<3x256xf32>
    %48 = vector.extract_strided_slice %45 {offsets = [1, 0, 0], sizes = [1, 3, 256], strides = [1, 1, 1]} : vector<4x3x256xf32> to vector<1x3x256xf32>
    %49 = vector.shape_cast %48 : vector<1x3x256xf32> to vector<3x256xf32>
    %50 = vector.extract_strided_slice %45 {offsets = [2, 0, 0], sizes = [1, 3, 256], strides = [1, 1, 1]} : vector<4x3x256xf32> to vector<1x3x256xf32>
    %51 = vector.shape_cast %50 : vector<1x3x256xf32> to vector<3x256xf32>
    %52 = vector.extract_strided_slice %45 {offsets = [3, 0, 0], sizes = [1, 3, 256], strides = [1, 1, 1]} : vector<4x3x256xf32> to vector<1x3x256xf32>
    %53 = vector.shape_cast %52 : vector<1x3x256xf32> to vector<3x256xf32>
    %c1_i32 = arith.constant 1 : i32
    %54 = tpu.dynamic_rotate %17 by %c1_i32 dim 2 : vector<4x3x256xf32>, i32 -> vector<4x3x256xf32>
    %55 = vector.shape_cast %7 : vector<3x256xf32> to vector<1x3x256xf32>
    %56 = vector.broadcast %55 : vector<1x3x256xf32> to vector<4x3x256xf32>
    %57 = arith.mulf %54, %56 : vector<4x3x256xf32>
    %58 = vector.extract_strided_slice %57 {offsets = [0, 0, 0], sizes = [1, 3, 256], strides = [1, 1, 1]} : vector<4x3x256xf32> to vector<1x3x256xf32>
    %59 = vector.shape_cast %58 : vector<1x3x256xf32> to vector<3x256xf32>
    %60 = vector.extract_strided_slice %57 {offsets = [1, 0, 0], sizes = [1, 3, 256], strides = [1, 1, 1]} : vector<4x3x256xf32> to vector<1x3x256xf32>
    %61 = vector.shape_cast %60 : vector<1x3x256xf32> to vector<3x256xf32>
    %62 = vector.extract_strided_slice %57 {offsets = [2, 0, 0], sizes = [1, 3, 256], strides = [1, 1, 1]} : vector<4x3x256xf32> to vector<1x3x256xf32>
    %63 = vector.shape_cast %62 : vector<1x3x256xf32> to vector<3x256xf32>
    %64 = vector.extract_strided_slice %57 {offsets = [3, 0, 0], sizes = [1, 3, 256], strides = [1, 1, 1]} : vector<4x3x256xf32> to vector<1x3x256xf32>
    %65 = vector.shape_cast %64 : vector<1x3x256xf32> to vector<3x256xf32>
    %66 = vector.extract_strided_slice %17 {offsets = [0, 0, 0], sizes = [1, 3, 256], strides = [1, 1, 1]} : vector<4x3x256xf32> to vector<1x3x256xf32>
    %67 = vector.shape_cast %66 : vector<1x3x256xf32> to vector<3x256xf32>
    %68 = vector.extract_strided_slice %17 {offsets = [1, 0, 0], sizes = [1, 3, 256], strides = [1, 1, 1]} : vector<4x3x256xf32> to vector<1x3x256xf32>
    %69 = vector.shape_cast %68 : vector<1x3x256xf32> to vector<3x256xf32>
    %70 = vector.extract_strided_slice %17 {offsets = [2, 0, 0], sizes = [1, 3, 256], strides = [1, 1, 1]} : vector<4x3x256xf32> to vector<1x3x256xf32>
    %71 = vector.shape_cast %70 : vector<1x3x256xf32> to vector<3x256xf32>
    %72 = vector.extract_strided_slice %17 {offsets = [3, 0, 0], sizes = [1, 3, 256], strides = [1, 1, 1]} : vector<4x3x256xf32> to vector<1x3x256xf32>
    %73 = vector.shape_cast %72 : vector<1x3x256xf32> to vector<3x256xf32>
    %c255_i32 = arith.constant 255 : i32
    %74 = tpu.dynamic_rotate %17 by %c255_i32 dim 2 : vector<4x3x256xf32>, i32 -> vector<4x3x256xf32>
    %75 = vector.shape_cast %9 : vector<3x256xf32> to vector<1x3x256xf32>
    %76 = vector.broadcast %75 : vector<1x3x256xf32> to vector<4x3x256xf32>
    %77 = arith.mulf %74, %76 : vector<4x3x256xf32>
    %78 = vector.extract_strided_slice %77 {offsets = [0, 0, 0], sizes = [1, 3, 256], strides = [1, 1, 1]} : vector<4x3x256xf32> to vector<1x3x256xf32>
    %79 = vector.shape_cast %78 : vector<1x3x256xf32> to vector<3x256xf32>
    %80 = vector.extract_strided_slice %77 {offsets = [1, 0, 0], sizes = [1, 3, 256], strides = [1, 1, 1]} : vector<4x3x256xf32> to vector<1x3x256xf32>
    %81 = vector.shape_cast %80 : vector<1x3x256xf32> to vector<3x256xf32>
    %82 = vector.extract_strided_slice %77 {offsets = [2, 0, 0], sizes = [1, 3, 256], strides = [1, 1, 1]} : vector<4x3x256xf32> to vector<1x3x256xf32>
    %83 = vector.shape_cast %82 : vector<1x3x256xf32> to vector<3x256xf32>
    %84 = vector.extract_strided_slice %77 {offsets = [3, 0, 0], sizes = [1, 3, 256], strides = [1, 1, 1]} : vector<4x3x256xf32> to vector<1x3x256xf32>
    %85 = vector.shape_cast %84 : vector<1x3x256xf32> to vector<3x256xf32>
    %c241_i32 = arith.constant 241 : i32
    %86 = tpu.dynamic_rotate %17 by %c241_i32 dim 2 : vector<4x3x256xf32>, i32 -> vector<4x3x256xf32>
    %87 = vector.shape_cast %11 : vector<3x256xf32> to vector<1x3x256xf32>
    %88 = vector.broadcast %87 : vector<1x3x256xf32> to vector<4x3x256xf32>
    %89 = arith.mulf %86, %88 : vector<4x3x256xf32>
    %90 = vector.extract_strided_slice %89 {offsets = [0, 0, 0], sizes = [1, 3, 256], strides = [1, 1, 1]} : vector<4x3x256xf32> to vector<1x3x256xf32>
    %91 = vector.shape_cast %90 : vector<1x3x256xf32> to vector<3x256xf32>
    %92 = vector.extract_strided_slice %89 {offsets = [1, 0, 0], sizes = [1, 3, 256], strides = [1, 1, 1]} : vector<4x3x256xf32> to vector<1x3x256xf32>
    %93 = vector.shape_cast %92 : vector<1x3x256xf32> to vector<3x256xf32>
    %94 = vector.extract_strided_slice %89 {offsets = [2, 0, 0], sizes = [1, 3, 256], strides = [1, 1, 1]} : vector<4x3x256xf32> to vector<1x3x256xf32>
    %95 = vector.shape_cast %94 : vector<1x3x256xf32> to vector<3x256xf32>
    %96 = vector.extract_strided_slice %89 {offsets = [3, 0, 0], sizes = [1, 3, 256], strides = [1, 1, 1]} : vector<4x3x256xf32> to vector<1x3x256xf32>
    %97 = vector.shape_cast %96 : vector<1x3x256xf32> to vector<3x256xf32>
    %c240_i32 = arith.constant 240 : i32
    %98 = tpu.dynamic_rotate %17 by %c240_i32 dim 2 : vector<4x3x256xf32>, i32 -> vector<4x3x256xf32>
    %99 = vector.shape_cast %13 : vector<3x256xf32> to vector<1x3x256xf32>
    %100 = vector.broadcast %99 : vector<1x3x256xf32> to vector<4x3x256xf32>
    %101 = arith.mulf %98, %100 : vector<4x3x256xf32>
    %102 = vector.extract_strided_slice %101 {offsets = [0, 0, 0], sizes = [1, 3, 256], strides = [1, 1, 1]} : vector<4x3x256xf32> to vector<1x3x256xf32>
    %103 = vector.shape_cast %102 : vector<1x3x256xf32> to vector<3x256xf32>
    %104 = vector.extract_strided_slice %101 {offsets = [1, 0, 0], sizes = [1, 3, 256], strides = [1, 1, 1]} : vector<4x3x256xf32> to vector<1x3x256xf32>
    %105 = vector.shape_cast %104 : vector<1x3x256xf32> to vector<3x256xf32>
    %106 = vector.extract_strided_slice %101 {offsets = [2, 0, 0], sizes = [1, 3, 256], strides = [1, 1, 1]} : vector<4x3x256xf32> to vector<1x3x256xf32>
    %107 = vector.shape_cast %106 : vector<1x3x256xf32> to vector<3x256xf32>
    %108 = vector.extract_strided_slice %101 {offsets = [3, 0, 0], sizes = [1, 3, 256], strides = [1, 1, 1]} : vector<4x3x256xf32> to vector<1x3x256xf32>
    %109 = vector.shape_cast %108 : vector<1x3x256xf32> to vector<3x256xf32>
    %c239_i32 = arith.constant 239 : i32
    %110 = tpu.dynamic_rotate %17 by %c239_i32 dim 2 : vector<4x3x256xf32>, i32 -> vector<4x3x256xf32>
    %111 = vector.shape_cast %15 : vector<3x256xf32> to vector<1x3x256xf32>
    %112 = vector.broadcast %111 : vector<1x3x256xf32> to vector<4x3x256xf32>
    %113 = arith.mulf %110, %112 : vector<4x3x256xf32>
    %114 = vector.extract_strided_slice %113 {offsets = [0, 0, 0], sizes = [1, 3, 256], strides = [1, 1, 1]} : vector<4x3x256xf32> to vector<1x3x256xf32>
    %115 = vector.shape_cast %114 : vector<1x3x256xf32> to vector<3x256xf32>
    %116 = vector.extract_strided_slice %113 {offsets = [1, 0, 0], sizes = [1, 3, 256], strides = [1, 1, 1]} : vector<4x3x256xf32> to vector<1x3x256xf32>
    %117 = vector.shape_cast %116 : vector<1x3x256xf32> to vector<3x256xf32>
    %118 = vector.extract_strided_slice %113 {offsets = [2, 0, 0], sizes = [1, 3, 256], strides = [1, 1, 1]} : vector<4x3x256xf32> to vector<1x3x256xf32>
    %119 = vector.shape_cast %118 : vector<1x3x256xf32> to vector<3x256xf32>
    %120 = vector.extract_strided_slice %113 {offsets = [3, 0, 0], sizes = [1, 3, 256], strides = [1, 1, 1]} : vector<4x3x256xf32> to vector<1x3x256xf32>
    %121 = vector.shape_cast %120 : vector<1x3x256xf32> to vector<3x256xf32>
    %cst = arith.constant 0.000000e+00 : f32
    %122 = vector.broadcast %cst : f32 to vector<3x256xf32>
    %c0_20 = arith.constant 0 : index
    %123 = memref.load %arg4[%c0_20] : memref<144xf32, #tpu.memory_space<smem>>
    %124 = vector.broadcast %123 : f32 to vector<3x256xf32>
    %125 = arith.mulf %124, %23 : vector<3x256xf32>
    %126 = arith.addf %122, %125 : vector<3x256xf32>
    %c1_21 = arith.constant 1 : index
    %127 = memref.load %arg4[%c1_21] : memref<144xf32, #tpu.memory_space<smem>>
    %128 = vector.broadcast %127 : f32 to vector<3x256xf32>
    %129 = arith.mulf %128, %35 : vector<3x256xf32>
    %130 = arith.addf %126, %129 : vector<3x256xf32>
    %c2_22 = arith.constant 2 : index
    %131 = memref.load %arg4[%c2_22] : memref<144xf32, #tpu.memory_space<smem>>
    %132 = vector.broadcast %131 : f32 to vector<3x256xf32>
    %133 = arith.mulf %132, %47 : vector<3x256xf32>
    %134 = arith.addf %130, %133 : vector<3x256xf32>
    %c3_23 = arith.constant 3 : index
    %135 = memref.load %arg4[%c3_23] : memref<144xf32, #tpu.memory_space<smem>>
    %136 = vector.broadcast %135 : f32 to vector<3x256xf32>
    %137 = arith.mulf %136, %59 : vector<3x256xf32>
    %138 = arith.addf %134, %137 : vector<3x256xf32>
    %c4 = arith.constant 4 : index
    %139 = memref.load %arg4[%c4] : memref<144xf32, #tpu.memory_space<smem>>
    %140 = vector.broadcast %139 : f32 to vector<3x256xf32>
    %141 = arith.mulf %140, %67 : vector<3x256xf32>
    %142 = arith.addf %138, %141 : vector<3x256xf32>
    %c5_24 = arith.constant 5 : index
    %143 = memref.load %arg4[%c5_24] : memref<144xf32, #tpu.memory_space<smem>>
    %144 = vector.broadcast %143 : f32 to vector<3x256xf32>
    %145 = arith.mulf %144, %79 : vector<3x256xf32>
    %146 = arith.addf %142, %145 : vector<3x256xf32>
    %c6_25 = arith.constant 6 : index
    %147 = memref.load %arg4[%c6_25] : memref<144xf32, #tpu.memory_space<smem>>
    %148 = vector.broadcast %147 : f32 to vector<3x256xf32>
    %149 = arith.mulf %148, %91 : vector<3x256xf32>
    %150 = arith.addf %146, %149 : vector<3x256xf32>
    %c7_26 = arith.constant 7 : index
    %151 = memref.load %arg4[%c7_26] : memref<144xf32, #tpu.memory_space<smem>>
    %152 = vector.broadcast %151 : f32 to vector<3x256xf32>
    %153 = arith.mulf %152, %103 : vector<3x256xf32>
    %154 = arith.addf %150, %153 : vector<3x256xf32>
    %c8_27 = arith.constant 8 : index
    %155 = memref.load %arg4[%c8_27] : memref<144xf32, #tpu.memory_space<smem>>
    %156 = vector.broadcast %155 : f32 to vector<3x256xf32>
    %157 = arith.mulf %156, %115 : vector<3x256xf32>
    %158 = arith.addf %154, %157 : vector<3x256xf32>
    %c9 = arith.constant 9 : index
    %159 = memref.load %arg4[%c9] : memref<144xf32, #tpu.memory_space<smem>>
    %160 = vector.broadcast %159 : f32 to vector<3x256xf32>
    %161 = arith.mulf %160, %25 : vector<3x256xf32>
    %162 = arith.addf %158, %161 : vector<3x256xf32>
    %c10 = arith.constant 10 : index
    %163 = memref.load %arg4[%c10] : memref<144xf32, #tpu.memory_space<smem>>
    %164 = vector.broadcast %163 : f32 to vector<3x256xf32>
    %165 = arith.mulf %164, %37 : vector<3x256xf32>
    %166 = arith.addf %162, %165 : vector<3x256xf32>
    %c11 = arith.constant 11 : index
    %167 = memref.load %arg4[%c11] : memref<144xf32, #tpu.memory_space<smem>>
    %168 = vector.broadcast %167 : f32 to vector<3x256xf32>
    %169 = arith.mulf %168, %49 : vector<3x256xf32>
    %170 = arith.addf %166, %169 : vector<3x256xf32>
    %c12 = arith.constant 12 : index
    %171 = memref.load %arg4[%c12] : memref<144xf32, #tpu.memory_space<smem>>
    %172 = vector.broadcast %171 : f32 to vector<3x256xf32>
    %173 = arith.mulf %172, %61 : vector<3x256xf32>
    %174 = arith.addf %170, %173 : vector<3x256xf32>
    %c13 = arith.constant 13 : index
    %175 = memref.load %arg4[%c13] : memref<144xf32, #tpu.memory_space<smem>>
    %176 = vector.broadcast %175 : f32 to vector<3x256xf32>
    %177 = arith.mulf %176, %69 : vector<3x256xf32>
    %178 = arith.addf %174, %177 : vector<3x256xf32>
    %c14 = arith.constant 14 : index
    %179 = memref.load %arg4[%c14] : memref<144xf32, #tpu.memory_space<smem>>
    %180 = vector.broadcast %179 : f32 to vector<3x256xf32>
    %181 = arith.mulf %180, %81 : vector<3x256xf32>
    %182 = arith.addf %178, %181 : vector<3x256xf32>
    %c15 = arith.constant 15 : index
    %183 = memref.load %arg4[%c15] : memref<144xf32, #tpu.memory_space<smem>>
    %184 = vector.broadcast %183 : f32 to vector<3x256xf32>
    %185 = arith.mulf %184, %93 : vector<3x256xf32>
    %186 = arith.addf %182, %185 : vector<3x256xf32>
    %c16 = arith.constant 16 : index
    %187 = memref.load %arg4[%c16] : memref<144xf32, #tpu.memory_space<smem>>
    %188 = vector.broadcast %187 : f32 to vector<3x256xf32>
    %189 = arith.mulf %188, %105 : vector<3x256xf32>
    %190 = arith.addf %186, %189 : vector<3x256xf32>
    %c17 = arith.constant 17 : index
    %191 = memref.load %arg4[%c17] : memref<144xf32, #tpu.memory_space<smem>>
    %192 = vector.broadcast %191 : f32 to vector<3x256xf32>
    %193 = arith.mulf %192, %117 : vector<3x256xf32>
    %194 = arith.addf %190, %193 : vector<3x256xf32>
    %c18 = arith.constant 18 : index
    %195 = memref.load %arg4[%c18] : memref<144xf32, #tpu.memory_space<smem>>
    %196 = vector.broadcast %195 : f32 to vector<3x256xf32>
    %197 = arith.mulf %196, %27 : vector<3x256xf32>
    %198 = arith.addf %194, %197 : vector<3x256xf32>
    %c19 = arith.constant 19 : index
    %199 = memref.load %arg4[%c19] : memref<144xf32, #tpu.memory_space<smem>>
    %200 = vector.broadcast %199 : f32 to vector<3x256xf32>
    %201 = arith.mulf %200, %39 : vector<3x256xf32>
    %202 = arith.addf %198, %201 : vector<3x256xf32>
    %c20 = arith.constant 20 : index
    %203 = memref.load %arg4[%c20] : memref<144xf32, #tpu.memory_space<smem>>
    %204 = vector.broadcast %203 : f32 to vector<3x256xf32>
    %205 = arith.mulf %204, %51 : vector<3x256xf32>
    %206 = arith.addf %202, %205 : vector<3x256xf32>
    %c21 = arith.constant 21 : index
    %207 = memref.load %arg4[%c21] : memref<144xf32, #tpu.memory_space<smem>>
    %208 = vector.broadcast %207 : f32 to vector<3x256xf32>
    %209 = arith.mulf %208, %63 : vector<3x256xf32>
    %210 = arith.addf %206, %209 : vector<3x256xf32>
    %c22 = arith.constant 22 : index
    %211 = memref.load %arg4[%c22] : memref<144xf32, #tpu.memory_space<smem>>
    %212 = vector.broadcast %211 : f32 to vector<3x256xf32>
    %213 = arith.mulf %212, %71 : vector<3x256xf32>
    %214 = arith.addf %210, %213 : vector<3x256xf32>
    %c23 = arith.constant 23 : index
    %215 = memref.load %arg4[%c23] : memref<144xf32, #tpu.memory_space<smem>>
    %216 = vector.broadcast %215 : f32 to vector<3x256xf32>
    %217 = arith.mulf %216, %83 : vector<3x256xf32>
    %218 = arith.addf %214, %217 : vector<3x256xf32>
    %c24 = arith.constant 24 : index
    %219 = memref.load %arg4[%c24] : memref<144xf32, #tpu.memory_space<smem>>
    %220 = vector.broadcast %219 : f32 to vector<3x256xf32>
    %221 = arith.mulf %220, %95 : vector<3x256xf32>
    %222 = arith.addf %218, %221 : vector<3x256xf32>
    %c25 = arith.constant 25 : index
    %223 = memref.load %arg4[%c25] : memref<144xf32, #tpu.memory_space<smem>>
    %224 = vector.broadcast %223 : f32 to vector<3x256xf32>
    %225 = arith.mulf %224, %107 : vector<3x256xf32>
    %226 = arith.addf %222, %225 : vector<3x256xf32>
    %c26 = arith.constant 26 : index
    %227 = memref.load %arg4[%c26] : memref<144xf32, #tpu.memory_space<smem>>
    %228 = vector.broadcast %227 : f32 to vector<3x256xf32>
    %229 = arith.mulf %228, %119 : vector<3x256xf32>
    %230 = arith.addf %226, %229 : vector<3x256xf32>
    %c27 = arith.constant 27 : index
    %231 = memref.load %arg4[%c27] : memref<144xf32, #tpu.memory_space<smem>>
    %232 = vector.broadcast %231 : f32 to vector<3x256xf32>
    %233 = arith.mulf %232, %29 : vector<3x256xf32>
    %234 = arith.addf %230, %233 : vector<3x256xf32>
    %c28 = arith.constant 28 : index
    %235 = memref.load %arg4[%c28] : memref<144xf32, #tpu.memory_space<smem>>
    %236 = vector.broadcast %235 : f32 to vector<3x256xf32>
    %237 = arith.mulf %236, %41 : vector<3x256xf32>
    %238 = arith.addf %234, %237 : vector<3x256xf32>
    %c29 = arith.constant 29 : index
    %239 = memref.load %arg4[%c29] : memref<144xf32, #tpu.memory_space<smem>>
    %240 = vector.broadcast %239 : f32 to vector<3x256xf32>
    %241 = arith.mulf %240, %53 : vector<3x256xf32>
    %242 = arith.addf %238, %241 : vector<3x256xf32>
    %c30 = arith.constant 30 : index
    %243 = memref.load %arg4[%c30] : memref<144xf32, #tpu.memory_space<smem>>
    %244 = vector.broadcast %243 : f32 to vector<3x256xf32>
    %245 = arith.mulf %244, %65 : vector<3x256xf32>
    %246 = arith.addf %242, %245 : vector<3x256xf32>
    %c31 = arith.constant 31 : index
    %247 = memref.load %arg4[%c31] : memref<144xf32, #tpu.memory_space<smem>>
    %248 = vector.broadcast %247 : f32 to vector<3x256xf32>
    %249 = arith.mulf %248, %73 : vector<3x256xf32>
    %250 = arith.addf %246, %249 : vector<3x256xf32>
    %c32 = arith.constant 32 : index
    %251 = memref.load %arg4[%c32] : memref<144xf32, #tpu.memory_space<smem>>
    %252 = vector.broadcast %251 : f32 to vector<3x256xf32>
    %253 = arith.mulf %252, %85 : vector<3x256xf32>
    %254 = arith.addf %250, %253 : vector<3x256xf32>
    %c33 = arith.constant 33 : index
    %255 = memref.load %arg4[%c33] : memref<144xf32, #tpu.memory_space<smem>>
    %256 = vector.broadcast %255 : f32 to vector<3x256xf32>
    %257 = arith.mulf %256, %97 : vector<3x256xf32>
    %258 = arith.addf %254, %257 : vector<3x256xf32>
    %c34 = arith.constant 34 : index
    %259 = memref.load %arg4[%c34] : memref<144xf32, #tpu.memory_space<smem>>
    %260 = vector.broadcast %259 : f32 to vector<3x256xf32>
    %261 = arith.mulf %260, %109 : vector<3x256xf32>
    %262 = arith.addf %258, %261 : vector<3x256xf32>
    %c35 = arith.constant 35 : index
    %263 = memref.load %arg4[%c35] : memref<144xf32, #tpu.memory_space<smem>>
    %264 = vector.broadcast %263 : f32 to vector<3x256xf32>
    %265 = arith.mulf %264, %121 : vector<3x256xf32>
    %266 = arith.addf %262, %265 : vector<3x256xf32>
    %c0_28 = arith.constant 0 : index
    %267 = memref.load %arg5[%c0_28] : memref<4xf32, #tpu.memory_space<smem>>
    %268 = vector.broadcast %267 : f32 to vector<3x256xf32>
    %269 = arith.addf %266, %268 : vector<3x256xf32>
    %cst_29 = arith.constant 0.000000e+00 : f32
    %270 = vector.broadcast %cst_29 : f32 to vector<3x256xf32>
    %271 = arith.cmpf oge, %269, %270 : vector<3x256xf32>
    %cst_30 = arith.constant 2.000000e-01 : f32
    %272 = vector.broadcast %cst_30 : f32 to vector<3x256xf32>
    %273 = arith.mulf %272, %269 : vector<3x256xf32>
    %274 = arith.select %271, %269, %273 : vector<3x256xi1>, vector<3x256xf32>
    %cst_31 = arith.constant 0.000000e+00 : f32
    %275 = vector.broadcast %cst_31 : f32 to vector<3x256xf32>
    %c36 = arith.constant 36 : index
    %276 = memref.load %arg4[%c36] : memref<144xf32, #tpu.memory_space<smem>>
    %277 = vector.broadcast %276 : f32 to vector<3x256xf32>
    %278 = arith.mulf %277, %23 : vector<3x256xf32>
    %279 = arith.addf %275, %278 : vector<3x256xf32>
    %c37 = arith.constant 37 : index
    %280 = memref.load %arg4[%c37] : memref<144xf32, #tpu.memory_space<smem>>
    %281 = vector.broadcast %280 : f32 to vector<3x256xf32>
    %282 = arith.mulf %281, %35 : vector<3x256xf32>
    %283 = arith.addf %279, %282 : vector<3x256xf32>
    %c38 = arith.constant 38 : index
    %284 = memref.load %arg4[%c38] : memref<144xf32, #tpu.memory_space<smem>>
    %285 = vector.broadcast %284 : f32 to vector<3x256xf32>
    %286 = arith.mulf %285, %47 : vector<3x256xf32>
    %287 = arith.addf %283, %286 : vector<3x256xf32>
    %c39 = arith.constant 39 : index
    %288 = memref.load %arg4[%c39] : memref<144xf32, #tpu.memory_space<smem>>
    %289 = vector.broadcast %288 : f32 to vector<3x256xf32>
    %290 = arith.mulf %289, %59 : vector<3x256xf32>
    %291 = arith.addf %287, %290 : vector<3x256xf32>
    %c40 = arith.constant 40 : index
    %292 = memref.load %arg4[%c40] : memref<144xf32, #tpu.memory_space<smem>>
    %293 = vector.broadcast %292 : f32 to vector<3x256xf32>
    %294 = arith.mulf %293, %67 : vector<3x256xf32>
    %295 = arith.addf %291, %294 : vector<3x256xf32>
    %c41 = arith.constant 41 : index
    %296 = memref.load %arg4[%c41] : memref<144xf32, #tpu.memory_space<smem>>
    %297 = vector.broadcast %296 : f32 to vector<3x256xf32>
    %298 = arith.mulf %297, %79 : vector<3x256xf32>
    %299 = arith.addf %295, %298 : vector<3x256xf32>
    %c42 = arith.constant 42 : index
    %300 = memref.load %arg4[%c42] : memref<144xf32, #tpu.memory_space<smem>>
    %301 = vector.broadcast %300 : f32 to vector<3x256xf32>
    %302 = arith.mulf %301, %91 : vector<3x256xf32>
    %303 = arith.addf %299, %302 : vector<3x256xf32>
    %c43 = arith.constant 43 : index
    %304 = memref.load %arg4[%c43] : memref<144xf32, #tpu.memory_space<smem>>
    %305 = vector.broadcast %304 : f32 to vector<3x256xf32>
    %306 = arith.mulf %305, %103 : vector<3x256xf32>
    %307 = arith.addf %303, %306 : vector<3x256xf32>
    %c44 = arith.constant 44 : index
    %308 = memref.load %arg4[%c44] : memref<144xf32, #tpu.memory_space<smem>>
    %309 = vector.broadcast %308 : f32 to vector<3x256xf32>
    %310 = arith.mulf %309, %115 : vector<3x256xf32>
    %311 = arith.addf %307, %310 : vector<3x256xf32>
    %c45 = arith.constant 45 : index
    %312 = memref.load %arg4[%c45] : memref<144xf32, #tpu.memory_space<smem>>
    %313 = vector.broadcast %312 : f32 to vector<3x256xf32>
    %314 = arith.mulf %313, %25 : vector<3x256xf32>
    %315 = arith.addf %311, %314 : vector<3x256xf32>
    %c46 = arith.constant 46 : index
    %316 = memref.load %arg4[%c46] : memref<144xf32, #tpu.memory_space<smem>>
    %317 = vector.broadcast %316 : f32 to vector<3x256xf32>
    %318 = arith.mulf %317, %37 : vector<3x256xf32>
    %319 = arith.addf %315, %318 : vector<3x256xf32>
    %c47 = arith.constant 47 : index
    %320 = memref.load %arg4[%c47] : memref<144xf32, #tpu.memory_space<smem>>
    %321 = vector.broadcast %320 : f32 to vector<3x256xf32>
    %322 = arith.mulf %321, %49 : vector<3x256xf32>
    %323 = arith.addf %319, %322 : vector<3x256xf32>
    %c48 = arith.constant 48 : index
    %324 = memref.load %arg4[%c48] : memref<144xf32, #tpu.memory_space<smem>>
    %325 = vector.broadcast %324 : f32 to vector<3x256xf32>
    %326 = arith.mulf %325, %61 : vector<3x256xf32>
    %327 = arith.addf %323, %326 : vector<3x256xf32>
    %c49 = arith.constant 49 : index
    %328 = memref.load %arg4[%c49] : memref<144xf32, #tpu.memory_space<smem>>
    %329 = vector.broadcast %328 : f32 to vector<3x256xf32>
    %330 = arith.mulf %329, %69 : vector<3x256xf32>
    %331 = arith.addf %327, %330 : vector<3x256xf32>
    %c50 = arith.constant 50 : index
    %332 = memref.load %arg4[%c50] : memref<144xf32, #tpu.memory_space<smem>>
    %333 = vector.broadcast %332 : f32 to vector<3x256xf32>
    %334 = arith.mulf %333, %81 : vector<3x256xf32>
    %335 = arith.addf %331, %334 : vector<3x256xf32>
    %c51 = arith.constant 51 : index
    %336 = memref.load %arg4[%c51] : memref<144xf32, #tpu.memory_space<smem>>
    %337 = vector.broadcast %336 : f32 to vector<3x256xf32>
    %338 = arith.mulf %337, %93 : vector<3x256xf32>
    %339 = arith.addf %335, %338 : vector<3x256xf32>
    %c52 = arith.constant 52 : index
    %340 = memref.load %arg4[%c52] : memref<144xf32, #tpu.memory_space<smem>>
    %341 = vector.broadcast %340 : f32 to vector<3x256xf32>
    %342 = arith.mulf %341, %105 : vector<3x256xf32>
    %343 = arith.addf %339, %342 : vector<3x256xf32>
    %c53 = arith.constant 53 : index
    %344 = memref.load %arg4[%c53] : memref<144xf32, #tpu.memory_space<smem>>
    %345 = vector.broadcast %344 : f32 to vector<3x256xf32>
    %346 = arith.mulf %345, %117 : vector<3x256xf32>
    %347 = arith.addf %343, %346 : vector<3x256xf32>
    %c54 = arith.constant 54 : index
    %348 = memref.load %arg4[%c54] : memref<144xf32, #tpu.memory_space<smem>>
    %349 = vector.broadcast %348 : f32 to vector<3x256xf32>
    %350 = arith.mulf %349, %27 : vector<3x256xf32>
    %351 = arith.addf %347, %350 : vector<3x256xf32>
    %c55 = arith.constant 55 : index
    %352 = memref.load %arg4[%c55] : memref<144xf32, #tpu.memory_space<smem>>
    %353 = vector.broadcast %352 : f32 to vector<3x256xf32>
    %354 = arith.mulf %353, %39 : vector<3x256xf32>
    %355 = arith.addf %351, %354 : vector<3x256xf32>
    %c56 = arith.constant 56 : index
    %356 = memref.load %arg4[%c56] : memref<144xf32, #tpu.memory_space<smem>>
    %357 = vector.broadcast %356 : f32 to vector<3x256xf32>
    %358 = arith.mulf %357, %51 : vector<3x256xf32>
    %359 = arith.addf %355, %358 : vector<3x256xf32>
    %c57 = arith.constant 57 : index
    %360 = memref.load %arg4[%c57] : memref<144xf32, #tpu.memory_space<smem>>
    %361 = vector.broadcast %360 : f32 to vector<3x256xf32>
    %362 = arith.mulf %361, %63 : vector<3x256xf32>
    %363 = arith.addf %359, %362 : vector<3x256xf32>
    %c58 = arith.constant 58 : index
    %364 = memref.load %arg4[%c58] : memref<144xf32, #tpu.memory_space<smem>>
    %365 = vector.broadcast %364 : f32 to vector<3x256xf32>
    %366 = arith.mulf %365, %71 : vector<3x256xf32>
    %367 = arith.addf %363, %366 : vector<3x256xf32>
    %c59 = arith.constant 59 : index
    %368 = memref.load %arg4[%c59] : memref<144xf32, #tpu.memory_space<smem>>
    %369 = vector.broadcast %368 : f32 to vector<3x256xf32>
    %370 = arith.mulf %369, %83 : vector<3x256xf32>
    %371 = arith.addf %367, %370 : vector<3x256xf32>
    %c60 = arith.constant 60 : index
    %372 = memref.load %arg4[%c60] : memref<144xf32, #tpu.memory_space<smem>>
    %373 = vector.broadcast %372 : f32 to vector<3x256xf32>
    %374 = arith.mulf %373, %95 : vector<3x256xf32>
    %375 = arith.addf %371, %374 : vector<3x256xf32>
    %c61 = arith.constant 61 : index
    %376 = memref.load %arg4[%c61] : memref<144xf32, #tpu.memory_space<smem>>
    %377 = vector.broadcast %376 : f32 to vector<3x256xf32>
    %378 = arith.mulf %377, %107 : vector<3x256xf32>
    %379 = arith.addf %375, %378 : vector<3x256xf32>
    %c62 = arith.constant 62 : index
    %380 = memref.load %arg4[%c62] : memref<144xf32, #tpu.memory_space<smem>>
    %381 = vector.broadcast %380 : f32 to vector<3x256xf32>
    %382 = arith.mulf %381, %119 : vector<3x256xf32>
    %383 = arith.addf %379, %382 : vector<3x256xf32>
    %c63 = arith.constant 63 : index
    %384 = memref.load %arg4[%c63] : memref<144xf32, #tpu.memory_space<smem>>
    %385 = vector.broadcast %384 : f32 to vector<3x256xf32>
    %386 = arith.mulf %385, %29 : vector<3x256xf32>
    %387 = arith.addf %383, %386 : vector<3x256xf32>
    %c64 = arith.constant 64 : index
    %388 = memref.load %arg4[%c64] : memref<144xf32, #tpu.memory_space<smem>>
    %389 = vector.broadcast %388 : f32 to vector<3x256xf32>
    %390 = arith.mulf %389, %41 : vector<3x256xf32>
    %391 = arith.addf %387, %390 : vector<3x256xf32>
    %c65 = arith.constant 65 : index
    %392 = memref.load %arg4[%c65] : memref<144xf32, #tpu.memory_space<smem>>
    %393 = vector.broadcast %392 : f32 to vector<3x256xf32>
    %394 = arith.mulf %393, %53 : vector<3x256xf32>
    %395 = arith.addf %391, %394 : vector<3x256xf32>
    %c66 = arith.constant 66 : index
    %396 = memref.load %arg4[%c66] : memref<144xf32, #tpu.memory_space<smem>>
    %397 = vector.broadcast %396 : f32 to vector<3x256xf32>
    %398 = arith.mulf %397, %65 : vector<3x256xf32>
    %399 = arith.addf %395, %398 : vector<3x256xf32>
    %c67 = arith.constant 67 : index
    %400 = memref.load %arg4[%c67] : memref<144xf32, #tpu.memory_space<smem>>
    %401 = vector.broadcast %400 : f32 to vector<3x256xf32>
    %402 = arith.mulf %401, %73 : vector<3x256xf32>
    %403 = arith.addf %399, %402 : vector<3x256xf32>
    %c68 = arith.constant 68 : index
    %404 = memref.load %arg4[%c68] : memref<144xf32, #tpu.memory_space<smem>>
    %405 = vector.broadcast %404 : f32 to vector<3x256xf32>
    %406 = arith.mulf %405, %85 : vector<3x256xf32>
    %407 = arith.addf %403, %406 : vector<3x256xf32>
    %c69 = arith.constant 69 : index
    %408 = memref.load %arg4[%c69] : memref<144xf32, #tpu.memory_space<smem>>
    %409 = vector.broadcast %408 : f32 to vector<3x256xf32>
    %410 = arith.mulf %409, %97 : vector<3x256xf32>
    %411 = arith.addf %407, %410 : vector<3x256xf32>
    %c70 = arith.constant 70 : index
    %412 = memref.load %arg4[%c70] : memref<144xf32, #tpu.memory_space<smem>>
    %413 = vector.broadcast %412 : f32 to vector<3x256xf32>
    %414 = arith.mulf %413, %109 : vector<3x256xf32>
    %415 = arith.addf %411, %414 : vector<3x256xf32>
    %c71 = arith.constant 71 : index
    %416 = memref.load %arg4[%c71] : memref<144xf32, #tpu.memory_space<smem>>
    %417 = vector.broadcast %416 : f32 to vector<3x256xf32>
    %418 = arith.mulf %417, %121 : vector<3x256xf32>
    %419 = arith.addf %415, %418 : vector<3x256xf32>
    %c1_32 = arith.constant 1 : index
    %420 = memref.load %arg5[%c1_32] : memref<4xf32, #tpu.memory_space<smem>>
    %421 = vector.broadcast %420 : f32 to vector<3x256xf32>
    %422 = arith.addf %419, %421 : vector<3x256xf32>
    %cst_33 = arith.constant 0.000000e+00 : f32
    %423 = vector.broadcast %cst_33 : f32 to vector<3x256xf32>
    %424 = arith.cmpf oge, %422, %423 : vector<3x256xf32>
    %cst_34 = arith.constant 2.000000e-01 : f32
    %425 = vector.broadcast %cst_34 : f32 to vector<3x256xf32>
    %426 = arith.mulf %425, %422 : vector<3x256xf32>
    %427 = arith.select %424, %422, %426 : vector<3x256xi1>, vector<3x256xf32>
    %cst_35 = arith.constant 0.000000e+00 : f32
    %428 = vector.broadcast %cst_35 : f32 to vector<3x256xf32>
    %c72 = arith.constant 72 : index
    %429 = memref.load %arg4[%c72] : memref<144xf32, #tpu.memory_space<smem>>
    %430 = vector.broadcast %429 : f32 to vector<3x256xf32>
    %431 = arith.mulf %430, %23 : vector<3x256xf32>
    %432 = arith.addf %428, %431 : vector<3x256xf32>
    %c73 = arith.constant 73 : index
    %433 = memref.load %arg4[%c73] : memref<144xf32, #tpu.memory_space<smem>>
    %434 = vector.broadcast %433 : f32 to vector<3x256xf32>
    %435 = arith.mulf %434, %35 : vector<3x256xf32>
    %436 = arith.addf %432, %435 : vector<3x256xf32>
    %c74 = arith.constant 74 : index
    %437 = memref.load %arg4[%c74] : memref<144xf32, #tpu.memory_space<smem>>
    %438 = vector.broadcast %437 : f32 to vector<3x256xf32>
    %439 = arith.mulf %438, %47 : vector<3x256xf32>
    %440 = arith.addf %436, %439 : vector<3x256xf32>
    %c75 = arith.constant 75 : index
    %441 = memref.load %arg4[%c75] : memref<144xf32, #tpu.memory_space<smem>>
    %442 = vector.broadcast %441 : f32 to vector<3x256xf32>
    %443 = arith.mulf %442, %59 : vector<3x256xf32>
    %444 = arith.addf %440, %443 : vector<3x256xf32>
    %c76 = arith.constant 76 : index
    %445 = memref.load %arg4[%c76] : memref<144xf32, #tpu.memory_space<smem>>
    %446 = vector.broadcast %445 : f32 to vector<3x256xf32>
    %447 = arith.mulf %446, %67 : vector<3x256xf32>
    %448 = arith.addf %444, %447 : vector<3x256xf32>
    %c77 = arith.constant 77 : index
    %449 = memref.load %arg4[%c77] : memref<144xf32, #tpu.memory_space<smem>>
    %450 = vector.broadcast %449 : f32 to vector<3x256xf32>
    %451 = arith.mulf %450, %79 : vector<3x256xf32>
    %452 = arith.addf %448, %451 : vector<3x256xf32>
    %c78 = arith.constant 78 : index
    %453 = memref.load %arg4[%c78] : memref<144xf32, #tpu.memory_space<smem>>
    %454 = vector.broadcast %453 : f32 to vector<3x256xf32>
    %455 = arith.mulf %454, %91 : vector<3x256xf32>
    %456 = arith.addf %452, %455 : vector<3x256xf32>
    %c79 = arith.constant 79 : index
    %457 = memref.load %arg4[%c79] : memref<144xf32, #tpu.memory_space<smem>>
    %458 = vector.broadcast %457 : f32 to vector<3x256xf32>
    %459 = arith.mulf %458, %103 : vector<3x256xf32>
    %460 = arith.addf %456, %459 : vector<3x256xf32>
    %c80 = arith.constant 80 : index
    %461 = memref.load %arg4[%c80] : memref<144xf32, #tpu.memory_space<smem>>
    %462 = vector.broadcast %461 : f32 to vector<3x256xf32>
    %463 = arith.mulf %462, %115 : vector<3x256xf32>
    %464 = arith.addf %460, %463 : vector<3x256xf32>
    %c81 = arith.constant 81 : index
    %465 = memref.load %arg4[%c81] : memref<144xf32, #tpu.memory_space<smem>>
    %466 = vector.broadcast %465 : f32 to vector<3x256xf32>
    %467 = arith.mulf %466, %25 : vector<3x256xf32>
    %468 = arith.addf %464, %467 : vector<3x256xf32>
    %c82 = arith.constant 82 : index
    %469 = memref.load %arg4[%c82] : memref<144xf32, #tpu.memory_space<smem>>
    %470 = vector.broadcast %469 : f32 to vector<3x256xf32>
    %471 = arith.mulf %470, %37 : vector<3x256xf32>
    %472 = arith.addf %468, %471 : vector<3x256xf32>
    %c83 = arith.constant 83 : index
    %473 = memref.load %arg4[%c83] : memref<144xf32, #tpu.memory_space<smem>>
    %474 = vector.broadcast %473 : f32 to vector<3x256xf32>
    %475 = arith.mulf %474, %49 : vector<3x256xf32>
    %476 = arith.addf %472, %475 : vector<3x256xf32>
    %c84 = arith.constant 84 : index
    %477 = memref.load %arg4[%c84] : memref<144xf32, #tpu.memory_space<smem>>
    %478 = vector.broadcast %477 : f32 to vector<3x256xf32>
    %479 = arith.mulf %478, %61 : vector<3x256xf32>
    %480 = arith.addf %476, %479 : vector<3x256xf32>
    %c85 = arith.constant 85 : index
    %481 = memref.load %arg4[%c85] : memref<144xf32, #tpu.memory_space<smem>>
    %482 = vector.broadcast %481 : f32 to vector<3x256xf32>
    %483 = arith.mulf %482, %69 : vector<3x256xf32>
    %484 = arith.addf %480, %483 : vector<3x256xf32>
    %c86 = arith.constant 86 : index
    %485 = memref.load %arg4[%c86] : memref<144xf32, #tpu.memory_space<smem>>
    %486 = vector.broadcast %485 : f32 to vector<3x256xf32>
    %487 = arith.mulf %486, %81 : vector<3x256xf32>
    %488 = arith.addf %484, %487 : vector<3x256xf32>
    %c87 = arith.constant 87 : index
    %489 = memref.load %arg4[%c87] : memref<144xf32, #tpu.memory_space<smem>>
    %490 = vector.broadcast %489 : f32 to vector<3x256xf32>
    %491 = arith.mulf %490, %93 : vector<3x256xf32>
    %492 = arith.addf %488, %491 : vector<3x256xf32>
    %c88 = arith.constant 88 : index
    %493 = memref.load %arg4[%c88] : memref<144xf32, #tpu.memory_space<smem>>
    %494 = vector.broadcast %493 : f32 to vector<3x256xf32>
    %495 = arith.mulf %494, %105 : vector<3x256xf32>
    %496 = arith.addf %492, %495 : vector<3x256xf32>
    %c89 = arith.constant 89 : index
    %497 = memref.load %arg4[%c89] : memref<144xf32, #tpu.memory_space<smem>>
    %498 = vector.broadcast %497 : f32 to vector<3x256xf32>
    %499 = arith.mulf %498, %117 : vector<3x256xf32>
    %500 = arith.addf %496, %499 : vector<3x256xf32>
    %c90 = arith.constant 90 : index
    %501 = memref.load %arg4[%c90] : memref<144xf32, #tpu.memory_space<smem>>
    %502 = vector.broadcast %501 : f32 to vector<3x256xf32>
    %503 = arith.mulf %502, %27 : vector<3x256xf32>
    %504 = arith.addf %500, %503 : vector<3x256xf32>
    %c91 = arith.constant 91 : index
    %505 = memref.load %arg4[%c91] : memref<144xf32, #tpu.memory_space<smem>>
    %506 = vector.broadcast %505 : f32 to vector<3x256xf32>
    %507 = arith.mulf %506, %39 : vector<3x256xf32>
    %508 = arith.addf %504, %507 : vector<3x256xf32>
    %c92 = arith.constant 92 : index
    %509 = memref.load %arg4[%c92] : memref<144xf32, #tpu.memory_space<smem>>
    %510 = vector.broadcast %509 : f32 to vector<3x256xf32>
    %511 = arith.mulf %510, %51 : vector<3x256xf32>
    %512 = arith.addf %508, %511 : vector<3x256xf32>
    %c93 = arith.constant 93 : index
    %513 = memref.load %arg4[%c93] : memref<144xf32, #tpu.memory_space<smem>>
    %514 = vector.broadcast %513 : f32 to vector<3x256xf32>
    %515 = arith.mulf %514, %63 : vector<3x256xf32>
    %516 = arith.addf %512, %515 : vector<3x256xf32>
    %c94 = arith.constant 94 : index
    %517 = memref.load %arg4[%c94] : memref<144xf32, #tpu.memory_space<smem>>
    %518 = vector.broadcast %517 : f32 to vector<3x256xf32>
    %519 = arith.mulf %518, %71 : vector<3x256xf32>
    %520 = arith.addf %516, %519 : vector<3x256xf32>
    %c95 = arith.constant 95 : index
    %521 = memref.load %arg4[%c95] : memref<144xf32, #tpu.memory_space<smem>>
    %522 = vector.broadcast %521 : f32 to vector<3x256xf32>
    %523 = arith.mulf %522, %83 : vector<3x256xf32>
    %524 = arith.addf %520, %523 : vector<3x256xf32>
    %c96 = arith.constant 96 : index
    %525 = memref.load %arg4[%c96] : memref<144xf32, #tpu.memory_space<smem>>
    %526 = vector.broadcast %525 : f32 to vector<3x256xf32>
    %527 = arith.mulf %526, %95 : vector<3x256xf32>
    %528 = arith.addf %524, %527 : vector<3x256xf32>
    %c97 = arith.constant 97 : index
    %529 = memref.load %arg4[%c97] : memref<144xf32, #tpu.memory_space<smem>>
    %530 = vector.broadcast %529 : f32 to vector<3x256xf32>
    %531 = arith.mulf %530, %107 : vector<3x256xf32>
    %532 = arith.addf %528, %531 : vector<3x256xf32>
    %c98 = arith.constant 98 : index
    %533 = memref.load %arg4[%c98] : memref<144xf32, #tpu.memory_space<smem>>
    %534 = vector.broadcast %533 : f32 to vector<3x256xf32>
    %535 = arith.mulf %534, %119 : vector<3x256xf32>
    %536 = arith.addf %532, %535 : vector<3x256xf32>
    %c99 = arith.constant 99 : index
    %537 = memref.load %arg4[%c99] : memref<144xf32, #tpu.memory_space<smem>>
    %538 = vector.broadcast %537 : f32 to vector<3x256xf32>
    %539 = arith.mulf %538, %29 : vector<3x256xf32>
    %540 = arith.addf %536, %539 : vector<3x256xf32>
    %c100 = arith.constant 100 : index
    %541 = memref.load %arg4[%c100] : memref<144xf32, #tpu.memory_space<smem>>
    %542 = vector.broadcast %541 : f32 to vector<3x256xf32>
    %543 = arith.mulf %542, %41 : vector<3x256xf32>
    %544 = arith.addf %540, %543 : vector<3x256xf32>
    %c101 = arith.constant 101 : index
    %545 = memref.load %arg4[%c101] : memref<144xf32, #tpu.memory_space<smem>>
    %546 = vector.broadcast %545 : f32 to vector<3x256xf32>
    %547 = arith.mulf %546, %53 : vector<3x256xf32>
    %548 = arith.addf %544, %547 : vector<3x256xf32>
    %c102 = arith.constant 102 : index
    %549 = memref.load %arg4[%c102] : memref<144xf32, #tpu.memory_space<smem>>
    %550 = vector.broadcast %549 : f32 to vector<3x256xf32>
    %551 = arith.mulf %550, %65 : vector<3x256xf32>
    %552 = arith.addf %548, %551 : vector<3x256xf32>
    %c103 = arith.constant 103 : index
    %553 = memref.load %arg4[%c103] : memref<144xf32, #tpu.memory_space<smem>>
    %554 = vector.broadcast %553 : f32 to vector<3x256xf32>
    %555 = arith.mulf %554, %73 : vector<3x256xf32>
    %556 = arith.addf %552, %555 : vector<3x256xf32>
    %c104 = arith.constant 104 : index
    %557 = memref.load %arg4[%c104] : memref<144xf32, #tpu.memory_space<smem>>
    %558 = vector.broadcast %557 : f32 to vector<3x256xf32>
    %559 = arith.mulf %558, %85 : vector<3x256xf32>
    %560 = arith.addf %556, %559 : vector<3x256xf32>
    %c105 = arith.constant 105 : index
    %561 = memref.load %arg4[%c105] : memref<144xf32, #tpu.memory_space<smem>>
    %562 = vector.broadcast %561 : f32 to vector<3x256xf32>
    %563 = arith.mulf %562, %97 : vector<3x256xf32>
    %564 = arith.addf %560, %563 : vector<3x256xf32>
    %c106 = arith.constant 106 : index
    %565 = memref.load %arg4[%c106] : memref<144xf32, #tpu.memory_space<smem>>
    %566 = vector.broadcast %565 : f32 to vector<3x256xf32>
    %567 = arith.mulf %566, %109 : vector<3x256xf32>
    %568 = arith.addf %564, %567 : vector<3x256xf32>
    %c107 = arith.constant 107 : index
    %569 = memref.load %arg4[%c107] : memref<144xf32, #tpu.memory_space<smem>>
    %570 = vector.broadcast %569 : f32 to vector<3x256xf32>
    %571 = arith.mulf %570, %121 : vector<3x256xf32>
    %572 = arith.addf %568, %571 : vector<3x256xf32>
    %c2_36 = arith.constant 2 : index
    %573 = memref.load %arg5[%c2_36] : memref<4xf32, #tpu.memory_space<smem>>
    %574 = vector.broadcast %573 : f32 to vector<3x256xf32>
    %575 = arith.addf %572, %574 : vector<3x256xf32>
    %cst_37 = arith.constant 0.000000e+00 : f32
    %576 = vector.broadcast %cst_37 : f32 to vector<3x256xf32>
    %577 = arith.cmpf oge, %575, %576 : vector<3x256xf32>
    %cst_38 = arith.constant 2.000000e-01 : f32
    %578 = vector.broadcast %cst_38 : f32 to vector<3x256xf32>
    %579 = arith.mulf %578, %575 : vector<3x256xf32>
    %580 = arith.select %577, %575, %579 : vector<3x256xi1>, vector<3x256xf32>
    %cst_39 = arith.constant 0.000000e+00 : f32
    %581 = vector.broadcast %cst_39 : f32 to vector<3x256xf32>
    %c108 = arith.constant 108 : index
    %582 = memref.load %arg4[%c108] : memref<144xf32, #tpu.memory_space<smem>>
    %583 = vector.broadcast %582 : f32 to vector<3x256xf32>
    %584 = arith.mulf %583, %23 : vector<3x256xf32>
    %585 = arith.addf %581, %584 : vector<3x256xf32>
    %c109 = arith.constant 109 : index
    %586 = memref.load %arg4[%c109] : memref<144xf32, #tpu.memory_space<smem>>
    %587 = vector.broadcast %586 : f32 to vector<3x256xf32>
    %588 = arith.mulf %587, %35 : vector<3x256xf32>
    %589 = arith.addf %585, %588 : vector<3x256xf32>
    %c110 = arith.constant 110 : index
    %590 = memref.load %arg4[%c110] : memref<144xf32, #tpu.memory_space<smem>>
    %591 = vector.broadcast %590 : f32 to vector<3x256xf32>
    %592 = arith.mulf %591, %47 : vector<3x256xf32>
    %593 = arith.addf %589, %592 : vector<3x256xf32>
    %c111 = arith.constant 111 : index
    %594 = memref.load %arg4[%c111] : memref<144xf32, #tpu.memory_space<smem>>
    %595 = vector.broadcast %594 : f32 to vector<3x256xf32>
    %596 = arith.mulf %595, %59 : vector<3x256xf32>
    %597 = arith.addf %593, %596 : vector<3x256xf32>
    %c112 = arith.constant 112 : index
    %598 = memref.load %arg4[%c112] : memref<144xf32, #tpu.memory_space<smem>>
    %599 = vector.broadcast %598 : f32 to vector<3x256xf32>
    %600 = arith.mulf %599, %67 : vector<3x256xf32>
    %601 = arith.addf %597, %600 : vector<3x256xf32>
    %c113 = arith.constant 113 : index
    %602 = memref.load %arg4[%c113] : memref<144xf32, #tpu.memory_space<smem>>
    %603 = vector.broadcast %602 : f32 to vector<3x256xf32>
    %604 = arith.mulf %603, %79 : vector<3x256xf32>
    %605 = arith.addf %601, %604 : vector<3x256xf32>
    %c114 = arith.constant 114 : index
    %606 = memref.load %arg4[%c114] : memref<144xf32, #tpu.memory_space<smem>>
    %607 = vector.broadcast %606 : f32 to vector<3x256xf32>
    %608 = arith.mulf %607, %91 : vector<3x256xf32>
    %609 = arith.addf %605, %608 : vector<3x256xf32>
    %c115 = arith.constant 115 : index
    %610 = memref.load %arg4[%c115] : memref<144xf32, #tpu.memory_space<smem>>
    %611 = vector.broadcast %610 : f32 to vector<3x256xf32>
    %612 = arith.mulf %611, %103 : vector<3x256xf32>
    %613 = arith.addf %609, %612 : vector<3x256xf32>
    %c116 = arith.constant 116 : index
    %614 = memref.load %arg4[%c116] : memref<144xf32, #tpu.memory_space<smem>>
    %615 = vector.broadcast %614 : f32 to vector<3x256xf32>
    %616 = arith.mulf %615, %115 : vector<3x256xf32>
    %617 = arith.addf %613, %616 : vector<3x256xf32>
    %c117 = arith.constant 117 : index
    %618 = memref.load %arg4[%c117] : memref<144xf32, #tpu.memory_space<smem>>
    %619 = vector.broadcast %618 : f32 to vector<3x256xf32>
    %620 = arith.mulf %619, %25 : vector<3x256xf32>
    %621 = arith.addf %617, %620 : vector<3x256xf32>
    %c118 = arith.constant 118 : index
    %622 = memref.load %arg4[%c118] : memref<144xf32, #tpu.memory_space<smem>>
    %623 = vector.broadcast %622 : f32 to vector<3x256xf32>
    %624 = arith.mulf %623, %37 : vector<3x256xf32>
    %625 = arith.addf %621, %624 : vector<3x256xf32>
    %c119 = arith.constant 119 : index
    %626 = memref.load %arg4[%c119] : memref<144xf32, #tpu.memory_space<smem>>
    %627 = vector.broadcast %626 : f32 to vector<3x256xf32>
    %628 = arith.mulf %627, %49 : vector<3x256xf32>
    %629 = arith.addf %625, %628 : vector<3x256xf32>
    %c120 = arith.constant 120 : index
    %630 = memref.load %arg4[%c120] : memref<144xf32, #tpu.memory_space<smem>>
    %631 = vector.broadcast %630 : f32 to vector<3x256xf32>
    %632 = arith.mulf %631, %61 : vector<3x256xf32>
    %633 = arith.addf %629, %632 : vector<3x256xf32>
    %c121 = arith.constant 121 : index
    %634 = memref.load %arg4[%c121] : memref<144xf32, #tpu.memory_space<smem>>
    %635 = vector.broadcast %634 : f32 to vector<3x256xf32>
    %636 = arith.mulf %635, %69 : vector<3x256xf32>
    %637 = arith.addf %633, %636 : vector<3x256xf32>
    %c122 = arith.constant 122 : index
    %638 = memref.load %arg4[%c122] : memref<144xf32, #tpu.memory_space<smem>>
    %639 = vector.broadcast %638 : f32 to vector<3x256xf32>
    %640 = arith.mulf %639, %81 : vector<3x256xf32>
    %641 = arith.addf %637, %640 : vector<3x256xf32>
    %c123 = arith.constant 123 : index
    %642 = memref.load %arg4[%c123] : memref<144xf32, #tpu.memory_space<smem>>
    %643 = vector.broadcast %642 : f32 to vector<3x256xf32>
    %644 = arith.mulf %643, %93 : vector<3x256xf32>
    %645 = arith.addf %641, %644 : vector<3x256xf32>
    %c124 = arith.constant 124 : index
    %646 = memref.load %arg4[%c124] : memref<144xf32, #tpu.memory_space<smem>>
    %647 = vector.broadcast %646 : f32 to vector<3x256xf32>
    %648 = arith.mulf %647, %105 : vector<3x256xf32>
    %649 = arith.addf %645, %648 : vector<3x256xf32>
    %c125 = arith.constant 125 : index
    %650 = memref.load %arg4[%c125] : memref<144xf32, #tpu.memory_space<smem>>
    %651 = vector.broadcast %650 : f32 to vector<3x256xf32>
    %652 = arith.mulf %651, %117 : vector<3x256xf32>
    %653 = arith.addf %649, %652 : vector<3x256xf32>
    %c126 = arith.constant 126 : index
    %654 = memref.load %arg4[%c126] : memref<144xf32, #tpu.memory_space<smem>>
    %655 = vector.broadcast %654 : f32 to vector<3x256xf32>
    %656 = arith.mulf %655, %27 : vector<3x256xf32>
    %657 = arith.addf %653, %656 : vector<3x256xf32>
    %c127 = arith.constant 127 : index
    %658 = memref.load %arg4[%c127] : memref<144xf32, #tpu.memory_space<smem>>
    %659 = vector.broadcast %658 : f32 to vector<3x256xf32>
    %660 = arith.mulf %659, %39 : vector<3x256xf32>
    %661 = arith.addf %657, %660 : vector<3x256xf32>
    %c128 = arith.constant 128 : index
    %662 = memref.load %arg4[%c128] : memref<144xf32, #tpu.memory_space<smem>>
    %663 = vector.broadcast %662 : f32 to vector<3x256xf32>
    %664 = arith.mulf %663, %51 : vector<3x256xf32>
    %665 = arith.addf %661, %664 : vector<3x256xf32>
    %c129 = arith.constant 129 : index
    %666 = memref.load %arg4[%c129] : memref<144xf32, #tpu.memory_space<smem>>
    %667 = vector.broadcast %666 : f32 to vector<3x256xf32>
    %668 = arith.mulf %667, %63 : vector<3x256xf32>
    %669 = arith.addf %665, %668 : vector<3x256xf32>
    %c130 = arith.constant 130 : index
    %670 = memref.load %arg4[%c130] : memref<144xf32, #tpu.memory_space<smem>>
    %671 = vector.broadcast %670 : f32 to vector<3x256xf32>
    %672 = arith.mulf %671, %71 : vector<3x256xf32>
    %673 = arith.addf %669, %672 : vector<3x256xf32>
    %c131 = arith.constant 131 : index
    %674 = memref.load %arg4[%c131] : memref<144xf32, #tpu.memory_space<smem>>
    %675 = vector.broadcast %674 : f32 to vector<3x256xf32>
    %676 = arith.mulf %675, %83 : vector<3x256xf32>
    %677 = arith.addf %673, %676 : vector<3x256xf32>
    %c132 = arith.constant 132 : index
    %678 = memref.load %arg4[%c132] : memref<144xf32, #tpu.memory_space<smem>>
    %679 = vector.broadcast %678 : f32 to vector<3x256xf32>
    %680 = arith.mulf %679, %95 : vector<3x256xf32>
    %681 = arith.addf %677, %680 : vector<3x256xf32>
    %c133 = arith.constant 133 : index
    %682 = memref.load %arg4[%c133] : memref<144xf32, #tpu.memory_space<smem>>
    %683 = vector.broadcast %682 : f32 to vector<3x256xf32>
    %684 = arith.mulf %683, %107 : vector<3x256xf32>
    %685 = arith.addf %681, %684 : vector<3x256xf32>
    %c134 = arith.constant 134 : index
    %686 = memref.load %arg4[%c134] : memref<144xf32, #tpu.memory_space<smem>>
    %687 = vector.broadcast %686 : f32 to vector<3x256xf32>
    %688 = arith.mulf %687, %119 : vector<3x256xf32>
    %689 = arith.addf %685, %688 : vector<3x256xf32>
    %c135 = arith.constant 135 : index
    %690 = memref.load %arg4[%c135] : memref<144xf32, #tpu.memory_space<smem>>
    %691 = vector.broadcast %690 : f32 to vector<3x256xf32>
    %692 = arith.mulf %691, %29 : vector<3x256xf32>
    %693 = arith.addf %689, %692 : vector<3x256xf32>
    %c136 = arith.constant 136 : index
    %694 = memref.load %arg4[%c136] : memref<144xf32, #tpu.memory_space<smem>>
    %695 = vector.broadcast %694 : f32 to vector<3x256xf32>
    %696 = arith.mulf %695, %41 : vector<3x256xf32>
    %697 = arith.addf %693, %696 : vector<3x256xf32>
    %c137 = arith.constant 137 : index
    %698 = memref.load %arg4[%c137] : memref<144xf32, #tpu.memory_space<smem>>
    %699 = vector.broadcast %698 : f32 to vector<3x256xf32>
    %700 = arith.mulf %699, %53 : vector<3x256xf32>
    %701 = arith.addf %697, %700 : vector<3x256xf32>
    %c138 = arith.constant 138 : index
    %702 = memref.load %arg4[%c138] : memref<144xf32, #tpu.memory_space<smem>>
    %703 = vector.broadcast %702 : f32 to vector<3x256xf32>
    %704 = arith.mulf %703, %65 : vector<3x256xf32>
    %705 = arith.addf %701, %704 : vector<3x256xf32>
    %c139 = arith.constant 139 : index
    %706 = memref.load %arg4[%c139] : memref<144xf32, #tpu.memory_space<smem>>
    %707 = vector.broadcast %706 : f32 to vector<3x256xf32>
    %708 = arith.mulf %707, %73 : vector<3x256xf32>
    %709 = arith.addf %705, %708 : vector<3x256xf32>
    %c140 = arith.constant 140 : index
    %710 = memref.load %arg4[%c140] : memref<144xf32, #tpu.memory_space<smem>>
    %711 = vector.broadcast %710 : f32 to vector<3x256xf32>
    %712 = arith.mulf %711, %85 : vector<3x256xf32>
    %713 = arith.addf %709, %712 : vector<3x256xf32>
    %c141 = arith.constant 141 : index
    %714 = memref.load %arg4[%c141] : memref<144xf32, #tpu.memory_space<smem>>
    %715 = vector.broadcast %714 : f32 to vector<3x256xf32>
    %716 = arith.mulf %715, %97 : vector<3x256xf32>
    %717 = arith.addf %713, %716 : vector<3x256xf32>
    %c142 = arith.constant 142 : index
    %718 = memref.load %arg4[%c142] : memref<144xf32, #tpu.memory_space<smem>>
    %719 = vector.broadcast %718 : f32 to vector<3x256xf32>
    %720 = arith.mulf %719, %109 : vector<3x256xf32>
    %721 = arith.addf %717, %720 : vector<3x256xf32>
    %c143 = arith.constant 143 : index
    %722 = memref.load %arg4[%c143] : memref<144xf32, #tpu.memory_space<smem>>
    %723 = vector.broadcast %722 : f32 to vector<3x256xf32>
    %724 = arith.mulf %723, %121 : vector<3x256xf32>
    %725 = arith.addf %721, %724 : vector<3x256xf32>
    %c3_40 = arith.constant 3 : index
    %726 = memref.load %arg5[%c3_40] : memref<4xf32, #tpu.memory_space<smem>>
    %727 = vector.broadcast %726 : f32 to vector<3x256xf32>
    %728 = arith.addf %725, %727 : vector<3x256xf32>
    %cst_41 = arith.constant 0.000000e+00 : f32
    %729 = vector.broadcast %cst_41 : f32 to vector<3x256xf32>
    %730 = arith.cmpf oge, %728, %729 : vector<3x256xf32>
    %cst_42 = arith.constant 2.000000e-01 : f32
    %731 = vector.broadcast %cst_42 : f32 to vector<3x256xf32>
    %732 = arith.mulf %731, %728 : vector<3x256xf32>
    %733 = arith.select %730, %728, %732 : vector<3x256xi1>, vector<3x256xf32>
    %734 = vector.shape_cast %274 : vector<3x256xf32> to vector<1x3x256xf32>
    %735 = vector.shape_cast %427 : vector<3x256xf32> to vector<1x3x256xf32>
    %736 = vector.shape_cast %580 : vector<3x256xf32> to vector<1x3x256xf32>
    %737 = vector.shape_cast %733 : vector<3x256xf32> to vector<1x3x256xf32>
    %738 = tpu.concatenate %734, %735, %736, %737 in 0 : vector<1x3x256xf32>, vector<1x3x256xf32>, vector<1x3x256xf32>, vector<1x3x256xf32> -> vector<4x3x256xf32>
    %c17_i32_43 = arith.constant 17 : i32
    %739 = tpu.dynamic_rotate %738 by %c17_i32_43 dim 2 : vector<4x3x256xf32>, i32 -> vector<4x3x256xf32>
    %740 = vector.shape_cast %1 : vector<3x256xf32> to vector<1x3x256xf32>
    %741 = vector.broadcast %740 : vector<1x3x256xf32> to vector<4x3x256xf32>
    %742 = arith.mulf %739, %741 : vector<4x3x256xf32>
    %743 = vector.extract_strided_slice %742 {offsets = [0, 0, 0], sizes = [1, 3, 256], strides = [1, 1, 1]} : vector<4x3x256xf32> to vector<1x3x256xf32>
    %744 = vector.shape_cast %743 : vector<1x3x256xf32> to vector<3x256xf32>
    %745 = vector.extract_strided_slice %742 {offsets = [1, 0, 0], sizes = [1, 3, 256], strides = [1, 1, 1]} : vector<4x3x256xf32> to vector<1x3x256xf32>
    %746 = vector.shape_cast %745 : vector<1x3x256xf32> to vector<3x256xf32>
    %747 = vector.extract_strided_slice %742 {offsets = [2, 0, 0], sizes = [1, 3, 256], strides = [1, 1, 1]} : vector<4x3x256xf32> to vector<1x3x256xf32>
    %748 = vector.shape_cast %747 : vector<1x3x256xf32> to vector<3x256xf32>
    %749 = vector.extract_strided_slice %742 {offsets = [3, 0, 0], sizes = [1, 3, 256], strides = [1, 1, 1]} : vector<4x3x256xf32> to vector<1x3x256xf32>
    %750 = vector.shape_cast %749 : vector<1x3x256xf32> to vector<3x256xf32>
    %c16_i32_44 = arith.constant 16 : i32
    %751 = tpu.dynamic_rotate %738 by %c16_i32_44 dim 2 : vector<4x3x256xf32>, i32 -> vector<4x3x256xf32>
    %752 = vector.shape_cast %3 : vector<3x256xf32> to vector<1x3x256xf32>
    %753 = vector.broadcast %752 : vector<1x3x256xf32> to vector<4x3x256xf32>
    %754 = arith.mulf %751, %753 : vector<4x3x256xf32>
    %755 = vector.extract_strided_slice %754 {offsets = [0, 0, 0], sizes = [1, 3, 256], strides = [1, 1, 1]} : vector<4x3x256xf32> to vector<1x3x256xf32>
    %756 = vector.shape_cast %755 : vector<1x3x256xf32> to vector<3x256xf32>
    %757 = vector.extract_strided_slice %754 {offsets = [1, 0, 0], sizes = [1, 3, 256], strides = [1, 1, 1]} : vector<4x3x256xf32> to vector<1x3x256xf32>
    %758 = vector.shape_cast %757 : vector<1x3x256xf32> to vector<3x256xf32>
    %759 = vector.extract_strided_slice %754 {offsets = [2, 0, 0], sizes = [1, 3, 256], strides = [1, 1, 1]} : vector<4x3x256xf32> to vector<1x3x256xf32>
    %760 = vector.shape_cast %759 : vector<1x3x256xf32> to vector<3x256xf32>
    %761 = vector.extract_strided_slice %754 {offsets = [3, 0, 0], sizes = [1, 3, 256], strides = [1, 1, 1]} : vector<4x3x256xf32> to vector<1x3x256xf32>
    %762 = vector.shape_cast %761 : vector<1x3x256xf32> to vector<3x256xf32>
    %c15_i32_45 = arith.constant 15 : i32
    %763 = tpu.dynamic_rotate %738 by %c15_i32_45 dim 2 : vector<4x3x256xf32>, i32 -> vector<4x3x256xf32>
    %764 = vector.shape_cast %5 : vector<3x256xf32> to vector<1x3x256xf32>
    %765 = vector.broadcast %764 : vector<1x3x256xf32> to vector<4x3x256xf32>
    %766 = arith.mulf %763, %765 : vector<4x3x256xf32>
    %767 = vector.extract_strided_slice %766 {offsets = [0, 0, 0], sizes = [1, 3, 256], strides = [1, 1, 1]} : vector<4x3x256xf32> to vector<1x3x256xf32>
    %768 = vector.shape_cast %767 : vector<1x3x256xf32> to vector<3x256xf32>
    %769 = vector.extract_strided_slice %766 {offsets = [1, 0, 0], sizes = [1, 3, 256], strides = [1, 1, 1]} : vector<4x3x256xf32> to vector<1x3x256xf32>
    %770 = vector.shape_cast %769 : vector<1x3x256xf32> to vector<3x256xf32>
    %771 = vector.extract_strided_slice %766 {offsets = [2, 0, 0], sizes = [1, 3, 256], strides = [1, 1, 1]} : vector<4x3x256xf32> to vector<1x3x256xf32>
    %772 = vector.shape_cast %771 : vector<1x3x256xf32> to vector<3x256xf32>
    %773 = vector.extract_strided_slice %766 {offsets = [3, 0, 0], sizes = [1, 3, 256], strides = [1, 1, 1]} : vector<4x3x256xf32> to vector<1x3x256xf32>
    %774 = vector.shape_cast %773 : vector<1x3x256xf32> to vector<3x256xf32>
    %c1_i32_46 = arith.constant 1 : i32
    %775 = tpu.dynamic_rotate %738 by %c1_i32_46 dim 2 : vector<4x3x256xf32>, i32 -> vector<4x3x256xf32>
    %776 = vector.shape_cast %7 : vector<3x256xf32> to vector<1x3x256xf32>
    %777 = vector.broadcast %776 : vector<1x3x256xf32> to vector<4x3x256xf32>
    %778 = arith.mulf %775, %777 : vector<4x3x256xf32>
    %779 = vector.extract_strided_slice %778 {offsets = [0, 0, 0], sizes = [1, 3, 256], strides = [1, 1, 1]} : vector<4x3x256xf32> to vector<1x3x256xf32>
    %780 = vector.shape_cast %779 : vector<1x3x256xf32> to vector<3x256xf32>
    %781 = vector.extract_strided_slice %778 {offsets = [1, 0, 0], sizes = [1, 3, 256], strides = [1, 1, 1]} : vector<4x3x256xf32> to vector<1x3x256xf32>
    %782 = vector.shape_cast %781 : vector<1x3x256xf32> to vector<3x256xf32>
    %783 = vector.extract_strided_slice %778 {offsets = [2, 0, 0], sizes = [1, 3, 256], strides = [1, 1, 1]} : vector<4x3x256xf32> to vector<1x3x256xf32>
    %784 = vector.shape_cast %783 : vector<1x3x256xf32> to vector<3x256xf32>
    %785 = vector.extract_strided_slice %778 {offsets = [3, 0, 0], sizes = [1, 3, 256], strides = [1, 1, 1]} : vector<4x3x256xf32> to vector<1x3x256xf32>
    %786 = vector.shape_cast %785 : vector<1x3x256xf32> to vector<3x256xf32>
    %787 = vector.extract_strided_slice %738 {offsets = [0, 0, 0], sizes = [1, 3, 256], strides = [1, 1, 1]} : vector<4x3x256xf32> to vector<1x3x256xf32>
    %788 = vector.shape_cast %787 : vector<1x3x256xf32> to vector<3x256xf32>
    %789 = vector.extract_strided_slice %738 {offsets = [1, 0, 0], sizes = [1, 3, 256], strides = [1, 1, 1]} : vector<4x3x256xf32> to vector<1x3x256xf32>
    %790 = vector.shape_cast %789 : vector<1x3x256xf32> to vector<3x256xf32>
    %791 = vector.extract_strided_slice %738 {offsets = [2, 0, 0], sizes = [1, 3, 256], strides = [1, 1, 1]} : vector<4x3x256xf32> to vector<1x3x256xf32>
    %792 = vector.shape_cast %791 : vector<1x3x256xf32> to vector<3x256xf32>
    %793 = vector.extract_strided_slice %738 {offsets = [3, 0, 0], sizes = [1, 3, 256], strides = [1, 1, 1]} : vector<4x3x256xf32> to vector<1x3x256xf32>
    %794 = vector.shape_cast %793 : vector<1x3x256xf32> to vector<3x256xf32>
    %c255_i32_47 = arith.constant 255 : i32
    %795 = tpu.dynamic_rotate %738 by %c255_i32_47 dim 2 : vector<4x3x256xf32>, i32 -> vector<4x3x256xf32>
    %796 = vector.shape_cast %9 : vector<3x256xf32> to vector<1x3x256xf32>
    %797 = vector.broadcast %796 : vector<1x3x256xf32> to vector<4x3x256xf32>
    %798 = arith.mulf %795, %797 : vector<4x3x256xf32>
    %799 = vector.extract_strided_slice %798 {offsets = [0, 0, 0], sizes = [1, 3, 256], strides = [1, 1, 1]} : vector<4x3x256xf32> to vector<1x3x256xf32>
    %800 = vector.shape_cast %799 : vector<1x3x256xf32> to vector<3x256xf32>
    %801 = vector.extract_strided_slice %798 {offsets = [1, 0, 0], sizes = [1, 3, 256], strides = [1, 1, 1]} : vector<4x3x256xf32> to vector<1x3x256xf32>
    %802 = vector.shape_cast %801 : vector<1x3x256xf32> to vector<3x256xf32>
    %803 = vector.extract_strided_slice %798 {offsets = [2, 0, 0], sizes = [1, 3, 256], strides = [1, 1, 1]} : vector<4x3x256xf32> to vector<1x3x256xf32>
    %804 = vector.shape_cast %803 : vector<1x3x256xf32> to vector<3x256xf32>
    %805 = vector.extract_strided_slice %798 {offsets = [3, 0, 0], sizes = [1, 3, 256], strides = [1, 1, 1]} : vector<4x3x256xf32> to vector<1x3x256xf32>
    %806 = vector.shape_cast %805 : vector<1x3x256xf32> to vector<3x256xf32>
    %c241_i32_48 = arith.constant 241 : i32
    %807 = tpu.dynamic_rotate %738 by %c241_i32_48 dim 2 : vector<4x3x256xf32>, i32 -> vector<4x3x256xf32>
    %808 = vector.shape_cast %11 : vector<3x256xf32> to vector<1x3x256xf32>
    %809 = vector.broadcast %808 : vector<1x3x256xf32> to vector<4x3x256xf32>
    %810 = arith.mulf %807, %809 : vector<4x3x256xf32>
    %811 = vector.extract_strided_slice %810 {offsets = [0, 0, 0], sizes = [1, 3, 256], strides = [1, 1, 1]} : vector<4x3x256xf32> to vector<1x3x256xf32>
    %812 = vector.shape_cast %811 : vector<1x3x256xf32> to vector<3x256xf32>
    %813 = vector.extract_strided_slice %810 {offsets = [1, 0, 0], sizes = [1, 3, 256], strides = [1, 1, 1]} : vector<4x3x256xf32> to vector<1x3x256xf32>
    %814 = vector.shape_cast %813 : vector<1x3x256xf32> to vector<3x256xf32>
    %815 = vector.extract_strided_slice %810 {offsets = [2, 0, 0], sizes = [1, 3, 256], strides = [1, 1, 1]} : vector<4x3x256xf32> to vector<1x3x256xf32>
    %816 = vector.shape_cast %815 : vector<1x3x256xf32> to vector<3x256xf32>
    %817 = vector.extract_strided_slice %810 {offsets = [3, 0, 0], sizes = [1, 3, 256], strides = [1, 1, 1]} : vector<4x3x256xf32> to vector<1x3x256xf32>
    %818 = vector.shape_cast %817 : vector<1x3x256xf32> to vector<3x256xf32>
    %c240_i32_49 = arith.constant 240 : i32
    %819 = tpu.dynamic_rotate %738 by %c240_i32_49 dim 2 : vector<4x3x256xf32>, i32 -> vector<4x3x256xf32>
    %820 = vector.shape_cast %13 : vector<3x256xf32> to vector<1x3x256xf32>
    %821 = vector.broadcast %820 : vector<1x3x256xf32> to vector<4x3x256xf32>
    %822 = arith.mulf %819, %821 : vector<4x3x256xf32>
    %823 = vector.extract_strided_slice %822 {offsets = [0, 0, 0], sizes = [1, 3, 256], strides = [1, 1, 1]} : vector<4x3x256xf32> to vector<1x3x256xf32>
    %824 = vector.shape_cast %823 : vector<1x3x256xf32> to vector<3x256xf32>
    %825 = vector.extract_strided_slice %822 {offsets = [1, 0, 0], sizes = [1, 3, 256], strides = [1, 1, 1]} : vector<4x3x256xf32> to vector<1x3x256xf32>
    %826 = vector.shape_cast %825 : vector<1x3x256xf32> to vector<3x256xf32>
    %827 = vector.extract_strided_slice %822 {offsets = [2, 0, 0], sizes = [1, 3, 256], strides = [1, 1, 1]} : vector<4x3x256xf32> to vector<1x3x256xf32>
    %828 = vector.shape_cast %827 : vector<1x3x256xf32> to vector<3x256xf32>
    %829 = vector.extract_strided_slice %822 {offsets = [3, 0, 0], sizes = [1, 3, 256], strides = [1, 1, 1]} : vector<4x3x256xf32> to vector<1x3x256xf32>
    %830 = vector.shape_cast %829 : vector<1x3x256xf32> to vector<3x256xf32>
    %c239_i32_50 = arith.constant 239 : i32
    %831 = tpu.dynamic_rotate %738 by %c239_i32_50 dim 2 : vector<4x3x256xf32>, i32 -> vector<4x3x256xf32>
    %832 = vector.shape_cast %15 : vector<3x256xf32> to vector<1x3x256xf32>
    %833 = vector.broadcast %832 : vector<1x3x256xf32> to vector<4x3x256xf32>
    %834 = arith.mulf %831, %833 : vector<4x3x256xf32>
    %835 = vector.extract_strided_slice %834 {offsets = [0, 0, 0], sizes = [1, 3, 256], strides = [1, 1, 1]} : vector<4x3x256xf32> to vector<1x3x256xf32>
    %836 = vector.shape_cast %835 : vector<1x3x256xf32> to vector<3x256xf32>
    %837 = vector.extract_strided_slice %834 {offsets = [1, 0, 0], sizes = [1, 3, 256], strides = [1, 1, 1]} : vector<4x3x256xf32> to vector<1x3x256xf32>
    %838 = vector.shape_cast %837 : vector<1x3x256xf32> to vector<3x256xf32>
    %839 = vector.extract_strided_slice %834 {offsets = [2, 0, 0], sizes = [1, 3, 256], strides = [1, 1, 1]} : vector<4x3x256xf32> to vector<1x3x256xf32>
    %840 = vector.shape_cast %839 : vector<1x3x256xf32> to vector<3x256xf32>
    %841 = vector.extract_strided_slice %834 {offsets = [3, 0, 0], sizes = [1, 3, 256], strides = [1, 1, 1]} : vector<4x3x256xf32> to vector<1x3x256xf32>
    %842 = vector.shape_cast %841 : vector<1x3x256xf32> to vector<3x256xf32>
    %cst_51 = arith.constant 0.000000e+00 : f32
    %843 = vector.broadcast %cst_51 : f32 to vector<3x256xf32>
    %c0_52 = arith.constant 0 : index
    %844 = memref.load %arg6[%c0_52] : memref<144xf32, #tpu.memory_space<smem>>
    %845 = vector.broadcast %844 : f32 to vector<3x256xf32>
    %846 = arith.mulf %845, %744 : vector<3x256xf32>
    %847 = arith.addf %843, %846 : vector<3x256xf32>
    %c1_53 = arith.constant 1 : index
    %848 = memref.load %arg6[%c1_53] : memref<144xf32, #tpu.memory_space<smem>>
    %849 = vector.broadcast %848 : f32 to vector<3x256xf32>
    %850 = arith.mulf %849, %756 : vector<3x256xf32>
    %851 = arith.addf %847, %850 : vector<3x256xf32>
    %c2_54 = arith.constant 2 : index
    %852 = memref.load %arg6[%c2_54] : memref<144xf32, #tpu.memory_space<smem>>
    %853 = vector.broadcast %852 : f32 to vector<3x256xf32>
    %854 = arith.mulf %853, %768 : vector<3x256xf32>
    %855 = arith.addf %851, %854 : vector<3x256xf32>
    %c3_55 = arith.constant 3 : index
    %856 = memref.load %arg6[%c3_55] : memref<144xf32, #tpu.memory_space<smem>>
    %857 = vector.broadcast %856 : f32 to vector<3x256xf32>
    %858 = arith.mulf %857, %780 : vector<3x256xf32>
    %859 = arith.addf %855, %858 : vector<3x256xf32>
    %c4_56 = arith.constant 4 : index
    %860 = memref.load %arg6[%c4_56] : memref<144xf32, #tpu.memory_space<smem>>
    %861 = vector.broadcast %860 : f32 to vector<3x256xf32>
    %862 = arith.mulf %861, %788 : vector<3x256xf32>
    %863 = arith.addf %859, %862 : vector<3x256xf32>
    %c5_57 = arith.constant 5 : index
    %864 = memref.load %arg6[%c5_57] : memref<144xf32, #tpu.memory_space<smem>>
    %865 = vector.broadcast %864 : f32 to vector<3x256xf32>
    %866 = arith.mulf %865, %800 : vector<3x256xf32>
    %867 = arith.addf %863, %866 : vector<3x256xf32>
    %c6_58 = arith.constant 6 : index
    %868 = memref.load %arg6[%c6_58] : memref<144xf32, #tpu.memory_space<smem>>
    %869 = vector.broadcast %868 : f32 to vector<3x256xf32>
    %870 = arith.mulf %869, %812 : vector<3x256xf32>
    %871 = arith.addf %867, %870 : vector<3x256xf32>
    %c7_59 = arith.constant 7 : index
    %872 = memref.load %arg6[%c7_59] : memref<144xf32, #tpu.memory_space<smem>>
    %873 = vector.broadcast %872 : f32 to vector<3x256xf32>
    %874 = arith.mulf %873, %824 : vector<3x256xf32>
    %875 = arith.addf %871, %874 : vector<3x256xf32>
    %c8_60 = arith.constant 8 : index
    %876 = memref.load %arg6[%c8_60] : memref<144xf32, #tpu.memory_space<smem>>
    %877 = vector.broadcast %876 : f32 to vector<3x256xf32>
    %878 = arith.mulf %877, %836 : vector<3x256xf32>
    %879 = arith.addf %875, %878 : vector<3x256xf32>
    %c9_61 = arith.constant 9 : index
    %880 = memref.load %arg6[%c9_61] : memref<144xf32, #tpu.memory_space<smem>>
    %881 = vector.broadcast %880 : f32 to vector<3x256xf32>
    %882 = arith.mulf %881, %746 : vector<3x256xf32>
    %883 = arith.addf %879, %882 : vector<3x256xf32>
    %c10_62 = arith.constant 10 : index
    %884 = memref.load %arg6[%c10_62] : memref<144xf32, #tpu.memory_space<smem>>
    %885 = vector.broadcast %884 : f32 to vector<3x256xf32>
    %886 = arith.mulf %885, %758 : vector<3x256xf32>
    %887 = arith.addf %883, %886 : vector<3x256xf32>
    %c11_63 = arith.constant 11 : index
    %888 = memref.load %arg6[%c11_63] : memref<144xf32, #tpu.memory_space<smem>>
    %889 = vector.broadcast %888 : f32 to vector<3x256xf32>
    %890 = arith.mulf %889, %770 : vector<3x256xf32>
    %891 = arith.addf %887, %890 : vector<3x256xf32>
    %c12_64 = arith.constant 12 : index
    %892 = memref.load %arg6[%c12_64] : memref<144xf32, #tpu.memory_space<smem>>
    %893 = vector.broadcast %892 : f32 to vector<3x256xf32>
    %894 = arith.mulf %893, %782 : vector<3x256xf32>
    %895 = arith.addf %891, %894 : vector<3x256xf32>
    %c13_65 = arith.constant 13 : index
    %896 = memref.load %arg6[%c13_65] : memref<144xf32, #tpu.memory_space<smem>>
    %897 = vector.broadcast %896 : f32 to vector<3x256xf32>
    %898 = arith.mulf %897, %790 : vector<3x256xf32>
    %899 = arith.addf %895, %898 : vector<3x256xf32>
    %c14_66 = arith.constant 14 : index
    %900 = memref.load %arg6[%c14_66] : memref<144xf32, #tpu.memory_space<smem>>
    %901 = vector.broadcast %900 : f32 to vector<3x256xf32>
    %902 = arith.mulf %901, %802 : vector<3x256xf32>
    %903 = arith.addf %899, %902 : vector<3x256xf32>
    %c15_67 = arith.constant 15 : index
    %904 = memref.load %arg6[%c15_67] : memref<144xf32, #tpu.memory_space<smem>>
    %905 = vector.broadcast %904 : f32 to vector<3x256xf32>
    %906 = arith.mulf %905, %814 : vector<3x256xf32>
    %907 = arith.addf %903, %906 : vector<3x256xf32>
    %c16_68 = arith.constant 16 : index
    %908 = memref.load %arg6[%c16_68] : memref<144xf32, #tpu.memory_space<smem>>
    %909 = vector.broadcast %908 : f32 to vector<3x256xf32>
    %910 = arith.mulf %909, %826 : vector<3x256xf32>
    %911 = arith.addf %907, %910 : vector<3x256xf32>
    %c17_69 = arith.constant 17 : index
    %912 = memref.load %arg6[%c17_69] : memref<144xf32, #tpu.memory_space<smem>>
    %913 = vector.broadcast %912 : f32 to vector<3x256xf32>
    %914 = arith.mulf %913, %838 : vector<3x256xf32>
    %915 = arith.addf %911, %914 : vector<3x256xf32>
    %c18_70 = arith.constant 18 : index
    %916 = memref.load %arg6[%c18_70] : memref<144xf32, #tpu.memory_space<smem>>
    %917 = vector.broadcast %916 : f32 to vector<3x256xf32>
    %918 = arith.mulf %917, %748 : vector<3x256xf32>
    %919 = arith.addf %915, %918 : vector<3x256xf32>
    %c19_71 = arith.constant 19 : index
    %920 = memref.load %arg6[%c19_71] : memref<144xf32, #tpu.memory_space<smem>>
    %921 = vector.broadcast %920 : f32 to vector<3x256xf32>
    %922 = arith.mulf %921, %760 : vector<3x256xf32>
    %923 = arith.addf %919, %922 : vector<3x256xf32>
    %c20_72 = arith.constant 20 : index
    %924 = memref.load %arg6[%c20_72] : memref<144xf32, #tpu.memory_space<smem>>
    %925 = vector.broadcast %924 : f32 to vector<3x256xf32>
    %926 = arith.mulf %925, %772 : vector<3x256xf32>
    %927 = arith.addf %923, %926 : vector<3x256xf32>
    %c21_73 = arith.constant 21 : index
    %928 = memref.load %arg6[%c21_73] : memref<144xf32, #tpu.memory_space<smem>>
    %929 = vector.broadcast %928 : f32 to vector<3x256xf32>
    %930 = arith.mulf %929, %784 : vector<3x256xf32>
    %931 = arith.addf %927, %930 : vector<3x256xf32>
    %c22_74 = arith.constant 22 : index
    %932 = memref.load %arg6[%c22_74] : memref<144xf32, #tpu.memory_space<smem>>
    %933 = vector.broadcast %932 : f32 to vector<3x256xf32>
    %934 = arith.mulf %933, %792 : vector<3x256xf32>
    %935 = arith.addf %931, %934 : vector<3x256xf32>
    %c23_75 = arith.constant 23 : index
    %936 = memref.load %arg6[%c23_75] : memref<144xf32, #tpu.memory_space<smem>>
    %937 = vector.broadcast %936 : f32 to vector<3x256xf32>
    %938 = arith.mulf %937, %804 : vector<3x256xf32>
    %939 = arith.addf %935, %938 : vector<3x256xf32>
    %c24_76 = arith.constant 24 : index
    %940 = memref.load %arg6[%c24_76] : memref<144xf32, #tpu.memory_space<smem>>
    %941 = vector.broadcast %940 : f32 to vector<3x256xf32>
    %942 = arith.mulf %941, %816 : vector<3x256xf32>
    %943 = arith.addf %939, %942 : vector<3x256xf32>
    %c25_77 = arith.constant 25 : index
    %944 = memref.load %arg6[%c25_77] : memref<144xf32, #tpu.memory_space<smem>>
    %945 = vector.broadcast %944 : f32 to vector<3x256xf32>
    %946 = arith.mulf %945, %828 : vector<3x256xf32>
    %947 = arith.addf %943, %946 : vector<3x256xf32>
    %c26_78 = arith.constant 26 : index
    %948 = memref.load %arg6[%c26_78] : memref<144xf32, #tpu.memory_space<smem>>
    %949 = vector.broadcast %948 : f32 to vector<3x256xf32>
    %950 = arith.mulf %949, %840 : vector<3x256xf32>
    %951 = arith.addf %947, %950 : vector<3x256xf32>
    %c27_79 = arith.constant 27 : index
    %952 = memref.load %arg6[%c27_79] : memref<144xf32, #tpu.memory_space<smem>>
    %953 = vector.broadcast %952 : f32 to vector<3x256xf32>
    %954 = arith.mulf %953, %750 : vector<3x256xf32>
    %955 = arith.addf %951, %954 : vector<3x256xf32>
    %c28_80 = arith.constant 28 : index
    %956 = memref.load %arg6[%c28_80] : memref<144xf32, #tpu.memory_space<smem>>
    %957 = vector.broadcast %956 : f32 to vector<3x256xf32>
    %958 = arith.mulf %957, %762 : vector<3x256xf32>
    %959 = arith.addf %955, %958 : vector<3x256xf32>
    %c29_81 = arith.constant 29 : index
    %960 = memref.load %arg6[%c29_81] : memref<144xf32, #tpu.memory_space<smem>>
    %961 = vector.broadcast %960 : f32 to vector<3x256xf32>
    %962 = arith.mulf %961, %774 : vector<3x256xf32>
    %963 = arith.addf %959, %962 : vector<3x256xf32>
    %c30_82 = arith.constant 30 : index
    %964 = memref.load %arg6[%c30_82] : memref<144xf32, #tpu.memory_space<smem>>
    %965 = vector.broadcast %964 : f32 to vector<3x256xf32>
    %966 = arith.mulf %965, %786 : vector<3x256xf32>
    %967 = arith.addf %963, %966 : vector<3x256xf32>
    %c31_83 = arith.constant 31 : index
    %968 = memref.load %arg6[%c31_83] : memref<144xf32, #tpu.memory_space<smem>>
    %969 = vector.broadcast %968 : f32 to vector<3x256xf32>
    %970 = arith.mulf %969, %794 : vector<3x256xf32>
    %971 = arith.addf %967, %970 : vector<3x256xf32>
    %c32_84 = arith.constant 32 : index
    %972 = memref.load %arg6[%c32_84] : memref<144xf32, #tpu.memory_space<smem>>
    %973 = vector.broadcast %972 : f32 to vector<3x256xf32>
    %974 = arith.mulf %973, %806 : vector<3x256xf32>
    %975 = arith.addf %971, %974 : vector<3x256xf32>
    %c33_85 = arith.constant 33 : index
    %976 = memref.load %arg6[%c33_85] : memref<144xf32, #tpu.memory_space<smem>>
    %977 = vector.broadcast %976 : f32 to vector<3x256xf32>
    %978 = arith.mulf %977, %818 : vector<3x256xf32>
    %979 = arith.addf %975, %978 : vector<3x256xf32>
    %c34_86 = arith.constant 34 : index
    %980 = memref.load %arg6[%c34_86] : memref<144xf32, #tpu.memory_space<smem>>
    %981 = vector.broadcast %980 : f32 to vector<3x256xf32>
    %982 = arith.mulf %981, %830 : vector<3x256xf32>
    %983 = arith.addf %979, %982 : vector<3x256xf32>
    %c35_87 = arith.constant 35 : index
    %984 = memref.load %arg6[%c35_87] : memref<144xf32, #tpu.memory_space<smem>>
    %985 = vector.broadcast %984 : f32 to vector<3x256xf32>
    %986 = arith.mulf %985, %842 : vector<3x256xf32>
    %987 = arith.addf %983, %986 : vector<3x256xf32>
    %c0_88 = arith.constant 0 : index
    %988 = memref.load %arg7[%c0_88] : memref<4xf32, #tpu.memory_space<smem>>
    %989 = vector.broadcast %988 : f32 to vector<3x256xf32>
    %990 = arith.addf %987, %989 : vector<3x256xf32>
    %cst_89 = arith.constant 0.000000e+00 : f32
    %991 = vector.broadcast %cst_89 : f32 to vector<3x256xf32>
    %992 = arith.cmpf oge, %990, %991 : vector<3x256xf32>
    %cst_90 = arith.constant 2.000000e-01 : f32
    %993 = vector.broadcast %cst_90 : f32 to vector<3x256xf32>
    %994 = arith.mulf %993, %990 : vector<3x256xf32>
    %995 = arith.select %992, %990, %994 : vector<3x256xi1>, vector<3x256xf32>
    %cst_91 = arith.constant 0.000000e+00 : f32
    %996 = vector.broadcast %cst_91 : f32 to vector<3x256xf32>
    %c36_92 = arith.constant 36 : index
    %997 = memref.load %arg6[%c36_92] : memref<144xf32, #tpu.memory_space<smem>>
    %998 = vector.broadcast %997 : f32 to vector<3x256xf32>
    %999 = arith.mulf %998, %744 : vector<3x256xf32>
    %1000 = arith.addf %996, %999 : vector<3x256xf32>
    %c37_93 = arith.constant 37 : index
    %1001 = memref.load %arg6[%c37_93] : memref<144xf32, #tpu.memory_space<smem>>
    %1002 = vector.broadcast %1001 : f32 to vector<3x256xf32>
    %1003 = arith.mulf %1002, %756 : vector<3x256xf32>
    %1004 = arith.addf %1000, %1003 : vector<3x256xf32>
    %c38_94 = arith.constant 38 : index
    %1005 = memref.load %arg6[%c38_94] : memref<144xf32, #tpu.memory_space<smem>>
    %1006 = vector.broadcast %1005 : f32 to vector<3x256xf32>
    %1007 = arith.mulf %1006, %768 : vector<3x256xf32>
    %1008 = arith.addf %1004, %1007 : vector<3x256xf32>
    %c39_95 = arith.constant 39 : index
    %1009 = memref.load %arg6[%c39_95] : memref<144xf32, #tpu.memory_space<smem>>
    %1010 = vector.broadcast %1009 : f32 to vector<3x256xf32>
    %1011 = arith.mulf %1010, %780 : vector<3x256xf32>
    %1012 = arith.addf %1008, %1011 : vector<3x256xf32>
    %c40_96 = arith.constant 40 : index
    %1013 = memref.load %arg6[%c40_96] : memref<144xf32, #tpu.memory_space<smem>>
    %1014 = vector.broadcast %1013 : f32 to vector<3x256xf32>
    %1015 = arith.mulf %1014, %788 : vector<3x256xf32>
    %1016 = arith.addf %1012, %1015 : vector<3x256xf32>
    %c41_97 = arith.constant 41 : index
    %1017 = memref.load %arg6[%c41_97] : memref<144xf32, #tpu.memory_space<smem>>
    %1018 = vector.broadcast %1017 : f32 to vector<3x256xf32>
    %1019 = arith.mulf %1018, %800 : vector<3x256xf32>
    %1020 = arith.addf %1016, %1019 : vector<3x256xf32>
    %c42_98 = arith.constant 42 : index
    %1021 = memref.load %arg6[%c42_98] : memref<144xf32, #tpu.memory_space<smem>>
    %1022 = vector.broadcast %1021 : f32 to vector<3x256xf32>
    %1023 = arith.mulf %1022, %812 : vector<3x256xf32>
    %1024 = arith.addf %1020, %1023 : vector<3x256xf32>
    %c43_99 = arith.constant 43 : index
    %1025 = memref.load %arg6[%c43_99] : memref<144xf32, #tpu.memory_space<smem>>
    %1026 = vector.broadcast %1025 : f32 to vector<3x256xf32>
    %1027 = arith.mulf %1026, %824 : vector<3x256xf32>
    %1028 = arith.addf %1024, %1027 : vector<3x256xf32>
    %c44_100 = arith.constant 44 : index
    %1029 = memref.load %arg6[%c44_100] : memref<144xf32, #tpu.memory_space<smem>>
    %1030 = vector.broadcast %1029 : f32 to vector<3x256xf32>
    %1031 = arith.mulf %1030, %836 : vector<3x256xf32>
    %1032 = arith.addf %1028, %1031 : vector<3x256xf32>
    %c45_101 = arith.constant 45 : index
    %1033 = memref.load %arg6[%c45_101] : memref<144xf32, #tpu.memory_space<smem>>
    %1034 = vector.broadcast %1033 : f32 to vector<3x256xf32>
    %1035 = arith.mulf %1034, %746 : vector<3x256xf32>
    %1036 = arith.addf %1032, %1035 : vector<3x256xf32>
    %c46_102 = arith.constant 46 : index
    %1037 = memref.load %arg6[%c46_102] : memref<144xf32, #tpu.memory_space<smem>>
    %1038 = vector.broadcast %1037 : f32 to vector<3x256xf32>
    %1039 = arith.mulf %1038, %758 : vector<3x256xf32>
    %1040 = arith.addf %1036, %1039 : vector<3x256xf32>
    %c47_103 = arith.constant 47 : index
    %1041 = memref.load %arg6[%c47_103] : memref<144xf32, #tpu.memory_space<smem>>
    %1042 = vector.broadcast %1041 : f32 to vector<3x256xf32>
    %1043 = arith.mulf %1042, %770 : vector<3x256xf32>
    %1044 = arith.addf %1040, %1043 : vector<3x256xf32>
    %c48_104 = arith.constant 48 : index
    %1045 = memref.load %arg6[%c48_104] : memref<144xf32, #tpu.memory_space<smem>>
    %1046 = vector.broadcast %1045 : f32 to vector<3x256xf32>
    %1047 = arith.mulf %1046, %782 : vector<3x256xf32>
    %1048 = arith.addf %1044, %1047 : vector<3x256xf32>
    %c49_105 = arith.constant 49 : index
    %1049 = memref.load %arg6[%c49_105] : memref<144xf32, #tpu.memory_space<smem>>
    %1050 = vector.broadcast %1049 : f32 to vector<3x256xf32>
    %1051 = arith.mulf %1050, %790 : vector<3x256xf32>
    %1052 = arith.addf %1048, %1051 : vector<3x256xf32>
    %c50_106 = arith.constant 50 : index
    %1053 = memref.load %arg6[%c50_106] : memref<144xf32, #tpu.memory_space<smem>>
    %1054 = vector.broadcast %1053 : f32 to vector<3x256xf32>
    %1055 = arith.mulf %1054, %802 : vector<3x256xf32>
    %1056 = arith.addf %1052, %1055 : vector<3x256xf32>
    %c51_107 = arith.constant 51 : index
    %1057 = memref.load %arg6[%c51_107] : memref<144xf32, #tpu.memory_space<smem>>
    %1058 = vector.broadcast %1057 : f32 to vector<3x256xf32>
    %1059 = arith.mulf %1058, %814 : vector<3x256xf32>
    %1060 = arith.addf %1056, %1059 : vector<3x256xf32>
    %c52_108 = arith.constant 52 : index
    %1061 = memref.load %arg6[%c52_108] : memref<144xf32, #tpu.memory_space<smem>>
    %1062 = vector.broadcast %1061 : f32 to vector<3x256xf32>
    %1063 = arith.mulf %1062, %826 : vector<3x256xf32>
    %1064 = arith.addf %1060, %1063 : vector<3x256xf32>
    %c53_109 = arith.constant 53 : index
    %1065 = memref.load %arg6[%c53_109] : memref<144xf32, #tpu.memory_space<smem>>
    %1066 = vector.broadcast %1065 : f32 to vector<3x256xf32>
    %1067 = arith.mulf %1066, %838 : vector<3x256xf32>
    %1068 = arith.addf %1064, %1067 : vector<3x256xf32>
    %c54_110 = arith.constant 54 : index
    %1069 = memref.load %arg6[%c54_110] : memref<144xf32, #tpu.memory_space<smem>>
    %1070 = vector.broadcast %1069 : f32 to vector<3x256xf32>
    %1071 = arith.mulf %1070, %748 : vector<3x256xf32>
    %1072 = arith.addf %1068, %1071 : vector<3x256xf32>
    %c55_111 = arith.constant 55 : index
    %1073 = memref.load %arg6[%c55_111] : memref<144xf32, #tpu.memory_space<smem>>
    %1074 = vector.broadcast %1073 : f32 to vector<3x256xf32>
    %1075 = arith.mulf %1074, %760 : vector<3x256xf32>
    %1076 = arith.addf %1072, %1075 : vector<3x256xf32>
    %c56_112 = arith.constant 56 : index
    %1077 = memref.load %arg6[%c56_112] : memref<144xf32, #tpu.memory_space<smem>>
    %1078 = vector.broadcast %1077 : f32 to vector<3x256xf32>
    %1079 = arith.mulf %1078, %772 : vector<3x256xf32>
    %1080 = arith.addf %1076, %1079 : vector<3x256xf32>
    %c57_113 = arith.constant 57 : index
    %1081 = memref.load %arg6[%c57_113] : memref<144xf32, #tpu.memory_space<smem>>
    %1082 = vector.broadcast %1081 : f32 to vector<3x256xf32>
    %1083 = arith.mulf %1082, %784 : vector<3x256xf32>
    %1084 = arith.addf %1080, %1083 : vector<3x256xf32>
    %c58_114 = arith.constant 58 : index
    %1085 = memref.load %arg6[%c58_114] : memref<144xf32, #tpu.memory_space<smem>>
    %1086 = vector.broadcast %1085 : f32 to vector<3x256xf32>
    %1087 = arith.mulf %1086, %792 : vector<3x256xf32>
    %1088 = arith.addf %1084, %1087 : vector<3x256xf32>
    %c59_115 = arith.constant 59 : index
    %1089 = memref.load %arg6[%c59_115] : memref<144xf32, #tpu.memory_space<smem>>
    %1090 = vector.broadcast %1089 : f32 to vector<3x256xf32>
    %1091 = arith.mulf %1090, %804 : vector<3x256xf32>
    %1092 = arith.addf %1088, %1091 : vector<3x256xf32>
    %c60_116 = arith.constant 60 : index
    %1093 = memref.load %arg6[%c60_116] : memref<144xf32, #tpu.memory_space<smem>>
    %1094 = vector.broadcast %1093 : f32 to vector<3x256xf32>
    %1095 = arith.mulf %1094, %816 : vector<3x256xf32>
    %1096 = arith.addf %1092, %1095 : vector<3x256xf32>
    %c61_117 = arith.constant 61 : index
    %1097 = memref.load %arg6[%c61_117] : memref<144xf32, #tpu.memory_space<smem>>
    %1098 = vector.broadcast %1097 : f32 to vector<3x256xf32>
    %1099 = arith.mulf %1098, %828 : vector<3x256xf32>
    %1100 = arith.addf %1096, %1099 : vector<3x256xf32>
    %c62_118 = arith.constant 62 : index
    %1101 = memref.load %arg6[%c62_118] : memref<144xf32, #tpu.memory_space<smem>>
    %1102 = vector.broadcast %1101 : f32 to vector<3x256xf32>
    %1103 = arith.mulf %1102, %840 : vector<3x256xf32>
    %1104 = arith.addf %1100, %1103 : vector<3x256xf32>
    %c63_119 = arith.constant 63 : index
    %1105 = memref.load %arg6[%c63_119] : memref<144xf32, #tpu.memory_space<smem>>
    %1106 = vector.broadcast %1105 : f32 to vector<3x256xf32>
    %1107 = arith.mulf %1106, %750 : vector<3x256xf32>
    %1108 = arith.addf %1104, %1107 : vector<3x256xf32>
    %c64_120 = arith.constant 64 : index
    %1109 = memref.load %arg6[%c64_120] : memref<144xf32, #tpu.memory_space<smem>>
    %1110 = vector.broadcast %1109 : f32 to vector<3x256xf32>
    %1111 = arith.mulf %1110, %762 : vector<3x256xf32>
    %1112 = arith.addf %1108, %1111 : vector<3x256xf32>
    %c65_121 = arith.constant 65 : index
    %1113 = memref.load %arg6[%c65_121] : memref<144xf32, #tpu.memory_space<smem>>
    %1114 = vector.broadcast %1113 : f32 to vector<3x256xf32>
    %1115 = arith.mulf %1114, %774 : vector<3x256xf32>
    %1116 = arith.addf %1112, %1115 : vector<3x256xf32>
    %c66_122 = arith.constant 66 : index
    %1117 = memref.load %arg6[%c66_122] : memref<144xf32, #tpu.memory_space<smem>>
    %1118 = vector.broadcast %1117 : f32 to vector<3x256xf32>
    %1119 = arith.mulf %1118, %786 : vector<3x256xf32>
    %1120 = arith.addf %1116, %1119 : vector<3x256xf32>
    %c67_123 = arith.constant 67 : index
    %1121 = memref.load %arg6[%c67_123] : memref<144xf32, #tpu.memory_space<smem>>
    %1122 = vector.broadcast %1121 : f32 to vector<3x256xf32>
    %1123 = arith.mulf %1122, %794 : vector<3x256xf32>
    %1124 = arith.addf %1120, %1123 : vector<3x256xf32>
    %c68_124 = arith.constant 68 : index
    %1125 = memref.load %arg6[%c68_124] : memref<144xf32, #tpu.memory_space<smem>>
    %1126 = vector.broadcast %1125 : f32 to vector<3x256xf32>
    %1127 = arith.mulf %1126, %806 : vector<3x256xf32>
    %1128 = arith.addf %1124, %1127 : vector<3x256xf32>
    %c69_125 = arith.constant 69 : index
    %1129 = memref.load %arg6[%c69_125] : memref<144xf32, #tpu.memory_space<smem>>
    %1130 = vector.broadcast %1129 : f32 to vector<3x256xf32>
    %1131 = arith.mulf %1130, %818 : vector<3x256xf32>
    %1132 = arith.addf %1128, %1131 : vector<3x256xf32>
    %c70_126 = arith.constant 70 : index
    %1133 = memref.load %arg6[%c70_126] : memref<144xf32, #tpu.memory_space<smem>>
    %1134 = vector.broadcast %1133 : f32 to vector<3x256xf32>
    %1135 = arith.mulf %1134, %830 : vector<3x256xf32>
    %1136 = arith.addf %1132, %1135 : vector<3x256xf32>
    %c71_127 = arith.constant 71 : index
    %1137 = memref.load %arg6[%c71_127] : memref<144xf32, #tpu.memory_space<smem>>
    %1138 = vector.broadcast %1137 : f32 to vector<3x256xf32>
    %1139 = arith.mulf %1138, %842 : vector<3x256xf32>
    %1140 = arith.addf %1136, %1139 : vector<3x256xf32>
    %c1_128 = arith.constant 1 : index
    %1141 = memref.load %arg7[%c1_128] : memref<4xf32, #tpu.memory_space<smem>>
    %1142 = vector.broadcast %1141 : f32 to vector<3x256xf32>
    %1143 = arith.addf %1140, %1142 : vector<3x256xf32>
    %cst_129 = arith.constant 0.000000e+00 : f32
    %1144 = vector.broadcast %cst_129 : f32 to vector<3x256xf32>
    %1145 = arith.cmpf oge, %1143, %1144 : vector<3x256xf32>
    %cst_130 = arith.constant 2.000000e-01 : f32
    %1146 = vector.broadcast %cst_130 : f32 to vector<3x256xf32>
    %1147 = arith.mulf %1146, %1143 : vector<3x256xf32>
    %1148 = arith.select %1145, %1143, %1147 : vector<3x256xi1>, vector<3x256xf32>
    %cst_131 = arith.constant 0.000000e+00 : f32
    %1149 = vector.broadcast %cst_131 : f32 to vector<3x256xf32>
    %c72_132 = arith.constant 72 : index
    %1150 = memref.load %arg6[%c72_132] : memref<144xf32, #tpu.memory_space<smem>>
    %1151 = vector.broadcast %1150 : f32 to vector<3x256xf32>
    %1152 = arith.mulf %1151, %744 : vector<3x256xf32>
    %1153 = arith.addf %1149, %1152 : vector<3x256xf32>
    %c73_133 = arith.constant 73 : index
    %1154 = memref.load %arg6[%c73_133] : memref<144xf32, #tpu.memory_space<smem>>
    %1155 = vector.broadcast %1154 : f32 to vector<3x256xf32>
    %1156 = arith.mulf %1155, %756 : vector<3x256xf32>
    %1157 = arith.addf %1153, %1156 : vector<3x256xf32>
    %c74_134 = arith.constant 74 : index
    %1158 = memref.load %arg6[%c74_134] : memref<144xf32, #tpu.memory_space<smem>>
    %1159 = vector.broadcast %1158 : f32 to vector<3x256xf32>
    %1160 = arith.mulf %1159, %768 : vector<3x256xf32>
    %1161 = arith.addf %1157, %1160 : vector<3x256xf32>
    %c75_135 = arith.constant 75 : index
    %1162 = memref.load %arg6[%c75_135] : memref<144xf32, #tpu.memory_space<smem>>
    %1163 = vector.broadcast %1162 : f32 to vector<3x256xf32>
    %1164 = arith.mulf %1163, %780 : vector<3x256xf32>
    %1165 = arith.addf %1161, %1164 : vector<3x256xf32>
    %c76_136 = arith.constant 76 : index
    %1166 = memref.load %arg6[%c76_136] : memref<144xf32, #tpu.memory_space<smem>>
    %1167 = vector.broadcast %1166 : f32 to vector<3x256xf32>
    %1168 = arith.mulf %1167, %788 : vector<3x256xf32>
    %1169 = arith.addf %1165, %1168 : vector<3x256xf32>
    %c77_137 = arith.constant 77 : index
    %1170 = memref.load %arg6[%c77_137] : memref<144xf32, #tpu.memory_space<smem>>
    %1171 = vector.broadcast %1170 : f32 to vector<3x256xf32>
    %1172 = arith.mulf %1171, %800 : vector<3x256xf32>
    %1173 = arith.addf %1169, %1172 : vector<3x256xf32>
    %c78_138 = arith.constant 78 : index
    %1174 = memref.load %arg6[%c78_138] : memref<144xf32, #tpu.memory_space<smem>>
    %1175 = vector.broadcast %1174 : f32 to vector<3x256xf32>
    %1176 = arith.mulf %1175, %812 : vector<3x256xf32>
    %1177 = arith.addf %1173, %1176 : vector<3x256xf32>
    %c79_139 = arith.constant 79 : index
    %1178 = memref.load %arg6[%c79_139] : memref<144xf32, #tpu.memory_space<smem>>
    %1179 = vector.broadcast %1178 : f32 to vector<3x256xf32>
    %1180 = arith.mulf %1179, %824 : vector<3x256xf32>
    %1181 = arith.addf %1177, %1180 : vector<3x256xf32>
    %c80_140 = arith.constant 80 : index
    %1182 = memref.load %arg6[%c80_140] : memref<144xf32, #tpu.memory_space<smem>>
    %1183 = vector.broadcast %1182 : f32 to vector<3x256xf32>
    %1184 = arith.mulf %1183, %836 : vector<3x256xf32>
    %1185 = arith.addf %1181, %1184 : vector<3x256xf32>
    %c81_141 = arith.constant 81 : index
    %1186 = memref.load %arg6[%c81_141] : memref<144xf32, #tpu.memory_space<smem>>
    %1187 = vector.broadcast %1186 : f32 to vector<3x256xf32>
    %1188 = arith.mulf %1187, %746 : vector<3x256xf32>
    %1189 = arith.addf %1185, %1188 : vector<3x256xf32>
    %c82_142 = arith.constant 82 : index
    %1190 = memref.load %arg6[%c82_142] : memref<144xf32, #tpu.memory_space<smem>>
    %1191 = vector.broadcast %1190 : f32 to vector<3x256xf32>
    %1192 = arith.mulf %1191, %758 : vector<3x256xf32>
    %1193 = arith.addf %1189, %1192 : vector<3x256xf32>
    %c83_143 = arith.constant 83 : index
    %1194 = memref.load %arg6[%c83_143] : memref<144xf32, #tpu.memory_space<smem>>
    %1195 = vector.broadcast %1194 : f32 to vector<3x256xf32>
    %1196 = arith.mulf %1195, %770 : vector<3x256xf32>
    %1197 = arith.addf %1193, %1196 : vector<3x256xf32>
    %c84_144 = arith.constant 84 : index
    %1198 = memref.load %arg6[%c84_144] : memref<144xf32, #tpu.memory_space<smem>>
    %1199 = vector.broadcast %1198 : f32 to vector<3x256xf32>
    %1200 = arith.mulf %1199, %782 : vector<3x256xf32>
    %1201 = arith.addf %1197, %1200 : vector<3x256xf32>
    %c85_145 = arith.constant 85 : index
    %1202 = memref.load %arg6[%c85_145] : memref<144xf32, #tpu.memory_space<smem>>
    %1203 = vector.broadcast %1202 : f32 to vector<3x256xf32>
    %1204 = arith.mulf %1203, %790 : vector<3x256xf32>
    %1205 = arith.addf %1201, %1204 : vector<3x256xf32>
    %c86_146 = arith.constant 86 : index
    %1206 = memref.load %arg6[%c86_146] : memref<144xf32, #tpu.memory_space<smem>>
    %1207 = vector.broadcast %1206 : f32 to vector<3x256xf32>
    %1208 = arith.mulf %1207, %802 : vector<3x256xf32>
    %1209 = arith.addf %1205, %1208 : vector<3x256xf32>
    %c87_147 = arith.constant 87 : index
    %1210 = memref.load %arg6[%c87_147] : memref<144xf32, #tpu.memory_space<smem>>
    %1211 = vector.broadcast %1210 : f32 to vector<3x256xf32>
    %1212 = arith.mulf %1211, %814 : vector<3x256xf32>
    %1213 = arith.addf %1209, %1212 : vector<3x256xf32>
    %c88_148 = arith.constant 88 : index
    %1214 = memref.load %arg6[%c88_148] : memref<144xf32, #tpu.memory_space<smem>>
    %1215 = vector.broadcast %1214 : f32 to vector<3x256xf32>
    %1216 = arith.mulf %1215, %826 : vector<3x256xf32>
    %1217 = arith.addf %1213, %1216 : vector<3x256xf32>
    %c89_149 = arith.constant 89 : index
    %1218 = memref.load %arg6[%c89_149] : memref<144xf32, #tpu.memory_space<smem>>
    %1219 = vector.broadcast %1218 : f32 to vector<3x256xf32>
    %1220 = arith.mulf %1219, %838 : vector<3x256xf32>
    %1221 = arith.addf %1217, %1220 : vector<3x256xf32>
    %c90_150 = arith.constant 90 : index
    %1222 = memref.load %arg6[%c90_150] : memref<144xf32, #tpu.memory_space<smem>>
    %1223 = vector.broadcast %1222 : f32 to vector<3x256xf32>
    %1224 = arith.mulf %1223, %748 : vector<3x256xf32>
    %1225 = arith.addf %1221, %1224 : vector<3x256xf32>
    %c91_151 = arith.constant 91 : index
    %1226 = memref.load %arg6[%c91_151] : memref<144xf32, #tpu.memory_space<smem>>
    %1227 = vector.broadcast %1226 : f32 to vector<3x256xf32>
    %1228 = arith.mulf %1227, %760 : vector<3x256xf32>
    %1229 = arith.addf %1225, %1228 : vector<3x256xf32>
    %c92_152 = arith.constant 92 : index
    %1230 = memref.load %arg6[%c92_152] : memref<144xf32, #tpu.memory_space<smem>>
    %1231 = vector.broadcast %1230 : f32 to vector<3x256xf32>
    %1232 = arith.mulf %1231, %772 : vector<3x256xf32>
    %1233 = arith.addf %1229, %1232 : vector<3x256xf32>
    %c93_153 = arith.constant 93 : index
    %1234 = memref.load %arg6[%c93_153] : memref<144xf32, #tpu.memory_space<smem>>
    %1235 = vector.broadcast %1234 : f32 to vector<3x256xf32>
    %1236 = arith.mulf %1235, %784 : vector<3x256xf32>
    %1237 = arith.addf %1233, %1236 : vector<3x256xf32>
    %c94_154 = arith.constant 94 : index
    %1238 = memref.load %arg6[%c94_154] : memref<144xf32, #tpu.memory_space<smem>>
    %1239 = vector.broadcast %1238 : f32 to vector<3x256xf32>
    %1240 = arith.mulf %1239, %792 : vector<3x256xf32>
    %1241 = arith.addf %1237, %1240 : vector<3x256xf32>
    %c95_155 = arith.constant 95 : index
    %1242 = memref.load %arg6[%c95_155] : memref<144xf32, #tpu.memory_space<smem>>
    %1243 = vector.broadcast %1242 : f32 to vector<3x256xf32>
    %1244 = arith.mulf %1243, %804 : vector<3x256xf32>
    %1245 = arith.addf %1241, %1244 : vector<3x256xf32>
    %c96_156 = arith.constant 96 : index
    %1246 = memref.load %arg6[%c96_156] : memref<144xf32, #tpu.memory_space<smem>>
    %1247 = vector.broadcast %1246 : f32 to vector<3x256xf32>
    %1248 = arith.mulf %1247, %816 : vector<3x256xf32>
    %1249 = arith.addf %1245, %1248 : vector<3x256xf32>
    %c97_157 = arith.constant 97 : index
    %1250 = memref.load %arg6[%c97_157] : memref<144xf32, #tpu.memory_space<smem>>
    %1251 = vector.broadcast %1250 : f32 to vector<3x256xf32>
    %1252 = arith.mulf %1251, %828 : vector<3x256xf32>
    %1253 = arith.addf %1249, %1252 : vector<3x256xf32>
    %c98_158 = arith.constant 98 : index
    %1254 = memref.load %arg6[%c98_158] : memref<144xf32, #tpu.memory_space<smem>>
    %1255 = vector.broadcast %1254 : f32 to vector<3x256xf32>
    %1256 = arith.mulf %1255, %840 : vector<3x256xf32>
    %1257 = arith.addf %1253, %1256 : vector<3x256xf32>
    %c99_159 = arith.constant 99 : index
    %1258 = memref.load %arg6[%c99_159] : memref<144xf32, #tpu.memory_space<smem>>
    %1259 = vector.broadcast %1258 : f32 to vector<3x256xf32>
    %1260 = arith.mulf %1259, %750 : vector<3x256xf32>
    %1261 = arith.addf %1257, %1260 : vector<3x256xf32>
    %c100_160 = arith.constant 100 : index
    %1262 = memref.load %arg6[%c100_160] : memref<144xf32, #tpu.memory_space<smem>>
    %1263 = vector.broadcast %1262 : f32 to vector<3x256xf32>
    %1264 = arith.mulf %1263, %762 : vector<3x256xf32>
    %1265 = arith.addf %1261, %1264 : vector<3x256xf32>
    %c101_161 = arith.constant 101 : index
    %1266 = memref.load %arg6[%c101_161] : memref<144xf32, #tpu.memory_space<smem>>
    %1267 = vector.broadcast %1266 : f32 to vector<3x256xf32>
    %1268 = arith.mulf %1267, %774 : vector<3x256xf32>
    %1269 = arith.addf %1265, %1268 : vector<3x256xf32>
    %c102_162 = arith.constant 102 : index
    %1270 = memref.load %arg6[%c102_162] : memref<144xf32, #tpu.memory_space<smem>>
    %1271 = vector.broadcast %1270 : f32 to vector<3x256xf32>
    %1272 = arith.mulf %1271, %786 : vector<3x256xf32>
    %1273 = arith.addf %1269, %1272 : vector<3x256xf32>
    %c103_163 = arith.constant 103 : index
    %1274 = memref.load %arg6[%c103_163] : memref<144xf32, #tpu.memory_space<smem>>
    %1275 = vector.broadcast %1274 : f32 to vector<3x256xf32>
    %1276 = arith.mulf %1275, %794 : vector<3x256xf32>
    %1277 = arith.addf %1273, %1276 : vector<3x256xf32>
    %c104_164 = arith.constant 104 : index
    %1278 = memref.load %arg6[%c104_164] : memref<144xf32, #tpu.memory_space<smem>>
    %1279 = vector.broadcast %1278 : f32 to vector<3x256xf32>
    %1280 = arith.mulf %1279, %806 : vector<3x256xf32>
    %1281 = arith.addf %1277, %1280 : vector<3x256xf32>
    %c105_165 = arith.constant 105 : index
    %1282 = memref.load %arg6[%c105_165] : memref<144xf32, #tpu.memory_space<smem>>
    %1283 = vector.broadcast %1282 : f32 to vector<3x256xf32>
    %1284 = arith.mulf %1283, %818 : vector<3x256xf32>
    %1285 = arith.addf %1281, %1284 : vector<3x256xf32>
    %c106_166 = arith.constant 106 : index
    %1286 = memref.load %arg6[%c106_166] : memref<144xf32, #tpu.memory_space<smem>>
    %1287 = vector.broadcast %1286 : f32 to vector<3x256xf32>
    %1288 = arith.mulf %1287, %830 : vector<3x256xf32>
    %1289 = arith.addf %1285, %1288 : vector<3x256xf32>
    %c107_167 = arith.constant 107 : index
    %1290 = memref.load %arg6[%c107_167] : memref<144xf32, #tpu.memory_space<smem>>
    %1291 = vector.broadcast %1290 : f32 to vector<3x256xf32>
    %1292 = arith.mulf %1291, %842 : vector<3x256xf32>
    %1293 = arith.addf %1289, %1292 : vector<3x256xf32>
    %c2_168 = arith.constant 2 : index
    %1294 = memref.load %arg7[%c2_168] : memref<4xf32, #tpu.memory_space<smem>>
    %1295 = vector.broadcast %1294 : f32 to vector<3x256xf32>
    %1296 = arith.addf %1293, %1295 : vector<3x256xf32>
    %cst_169 = arith.constant 0.000000e+00 : f32
    %1297 = vector.broadcast %cst_169 : f32 to vector<3x256xf32>
    %1298 = arith.cmpf oge, %1296, %1297 : vector<3x256xf32>
    %cst_170 = arith.constant 2.000000e-01 : f32
    %1299 = vector.broadcast %cst_170 : f32 to vector<3x256xf32>
    %1300 = arith.mulf %1299, %1296 : vector<3x256xf32>
    %1301 = arith.select %1298, %1296, %1300 : vector<3x256xi1>, vector<3x256xf32>
    %cst_171 = arith.constant 0.000000e+00 : f32
    %1302 = vector.broadcast %cst_171 : f32 to vector<3x256xf32>
    %c108_172 = arith.constant 108 : index
    %1303 = memref.load %arg6[%c108_172] : memref<144xf32, #tpu.memory_space<smem>>
    %1304 = vector.broadcast %1303 : f32 to vector<3x256xf32>
    %1305 = arith.mulf %1304, %744 : vector<3x256xf32>
    %1306 = arith.addf %1302, %1305 : vector<3x256xf32>
    %c109_173 = arith.constant 109 : index
    %1307 = memref.load %arg6[%c109_173] : memref<144xf32, #tpu.memory_space<smem>>
    %1308 = vector.broadcast %1307 : f32 to vector<3x256xf32>
    %1309 = arith.mulf %1308, %756 : vector<3x256xf32>
    %1310 = arith.addf %1306, %1309 : vector<3x256xf32>
    %c110_174 = arith.constant 110 : index
    %1311 = memref.load %arg6[%c110_174] : memref<144xf32, #tpu.memory_space<smem>>
    %1312 = vector.broadcast %1311 : f32 to vector<3x256xf32>
    %1313 = arith.mulf %1312, %768 : vector<3x256xf32>
    %1314 = arith.addf %1310, %1313 : vector<3x256xf32>
    %c111_175 = arith.constant 111 : index
    %1315 = memref.load %arg6[%c111_175] : memref<144xf32, #tpu.memory_space<smem>>
    %1316 = vector.broadcast %1315 : f32 to vector<3x256xf32>
    %1317 = arith.mulf %1316, %780 : vector<3x256xf32>
    %1318 = arith.addf %1314, %1317 : vector<3x256xf32>
    %c112_176 = arith.constant 112 : index
    %1319 = memref.load %arg6[%c112_176] : memref<144xf32, #tpu.memory_space<smem>>
    %1320 = vector.broadcast %1319 : f32 to vector<3x256xf32>
    %1321 = arith.mulf %1320, %788 : vector<3x256xf32>
    %1322 = arith.addf %1318, %1321 : vector<3x256xf32>
    %c113_177 = arith.constant 113 : index
    %1323 = memref.load %arg6[%c113_177] : memref<144xf32, #tpu.memory_space<smem>>
    %1324 = vector.broadcast %1323 : f32 to vector<3x256xf32>
    %1325 = arith.mulf %1324, %800 : vector<3x256xf32>
    %1326 = arith.addf %1322, %1325 : vector<3x256xf32>
    %c114_178 = arith.constant 114 : index
    %1327 = memref.load %arg6[%c114_178] : memref<144xf32, #tpu.memory_space<smem>>
    %1328 = vector.broadcast %1327 : f32 to vector<3x256xf32>
    %1329 = arith.mulf %1328, %812 : vector<3x256xf32>
    %1330 = arith.addf %1326, %1329 : vector<3x256xf32>
    %c115_179 = arith.constant 115 : index
    %1331 = memref.load %arg6[%c115_179] : memref<144xf32, #tpu.memory_space<smem>>
    %1332 = vector.broadcast %1331 : f32 to vector<3x256xf32>
    %1333 = arith.mulf %1332, %824 : vector<3x256xf32>
    %1334 = arith.addf %1330, %1333 : vector<3x256xf32>
    %c116_180 = arith.constant 116 : index
    %1335 = memref.load %arg6[%c116_180] : memref<144xf32, #tpu.memory_space<smem>>
    %1336 = vector.broadcast %1335 : f32 to vector<3x256xf32>
    %1337 = arith.mulf %1336, %836 : vector<3x256xf32>
    %1338 = arith.addf %1334, %1337 : vector<3x256xf32>
    %c117_181 = arith.constant 117 : index
    %1339 = memref.load %arg6[%c117_181] : memref<144xf32, #tpu.memory_space<smem>>
    %1340 = vector.broadcast %1339 : f32 to vector<3x256xf32>
    %1341 = arith.mulf %1340, %746 : vector<3x256xf32>
    %1342 = arith.addf %1338, %1341 : vector<3x256xf32>
    %c118_182 = arith.constant 118 : index
    %1343 = memref.load %arg6[%c118_182] : memref<144xf32, #tpu.memory_space<smem>>
    %1344 = vector.broadcast %1343 : f32 to vector<3x256xf32>
    %1345 = arith.mulf %1344, %758 : vector<3x256xf32>
    %1346 = arith.addf %1342, %1345 : vector<3x256xf32>
    %c119_183 = arith.constant 119 : index
    %1347 = memref.load %arg6[%c119_183] : memref<144xf32, #tpu.memory_space<smem>>
    %1348 = vector.broadcast %1347 : f32 to vector<3x256xf32>
    %1349 = arith.mulf %1348, %770 : vector<3x256xf32>
    %1350 = arith.addf %1346, %1349 : vector<3x256xf32>
    %c120_184 = arith.constant 120 : index
    %1351 = memref.load %arg6[%c120_184] : memref<144xf32, #tpu.memory_space<smem>>
    %1352 = vector.broadcast %1351 : f32 to vector<3x256xf32>
    %1353 = arith.mulf %1352, %782 : vector<3x256xf32>
    %1354 = arith.addf %1350, %1353 : vector<3x256xf32>
    %c121_185 = arith.constant 121 : index
    %1355 = memref.load %arg6[%c121_185] : memref<144xf32, #tpu.memory_space<smem>>
    %1356 = vector.broadcast %1355 : f32 to vector<3x256xf32>
    %1357 = arith.mulf %1356, %790 : vector<3x256xf32>
    %1358 = arith.addf %1354, %1357 : vector<3x256xf32>
    %c122_186 = arith.constant 122 : index
    %1359 = memref.load %arg6[%c122_186] : memref<144xf32, #tpu.memory_space<smem>>
    %1360 = vector.broadcast %1359 : f32 to vector<3x256xf32>
    %1361 = arith.mulf %1360, %802 : vector<3x256xf32>
    %1362 = arith.addf %1358, %1361 : vector<3x256xf32>
    %c123_187 = arith.constant 123 : index
    %1363 = memref.load %arg6[%c123_187] : memref<144xf32, #tpu.memory_space<smem>>
    %1364 = vector.broadcast %1363 : f32 to vector<3x256xf32>
    %1365 = arith.mulf %1364, %814 : vector<3x256xf32>
    %1366 = arith.addf %1362, %1365 : vector<3x256xf32>
    %c124_188 = arith.constant 124 : index
    %1367 = memref.load %arg6[%c124_188] : memref<144xf32, #tpu.memory_space<smem>>
    %1368 = vector.broadcast %1367 : f32 to vector<3x256xf32>
    %1369 = arith.mulf %1368, %826 : vector<3x256xf32>
    %1370 = arith.addf %1366, %1369 : vector<3x256xf32>
    %c125_189 = arith.constant 125 : index
    %1371 = memref.load %arg6[%c125_189] : memref<144xf32, #tpu.memory_space<smem>>
    %1372 = vector.broadcast %1371 : f32 to vector<3x256xf32>
    %1373 = arith.mulf %1372, %838 : vector<3x256xf32>
    %1374 = arith.addf %1370, %1373 : vector<3x256xf32>
    %c126_190 = arith.constant 126 : index
    %1375 = memref.load %arg6[%c126_190] : memref<144xf32, #tpu.memory_space<smem>>
    %1376 = vector.broadcast %1375 : f32 to vector<3x256xf32>
    %1377 = arith.mulf %1376, %748 : vector<3x256xf32>
    %1378 = arith.addf %1374, %1377 : vector<3x256xf32>
    %c127_191 = arith.constant 127 : index
    %1379 = memref.load %arg6[%c127_191] : memref<144xf32, #tpu.memory_space<smem>>
    %1380 = vector.broadcast %1379 : f32 to vector<3x256xf32>
    %1381 = arith.mulf %1380, %760 : vector<3x256xf32>
    %1382 = arith.addf %1378, %1381 : vector<3x256xf32>
    %c128_192 = arith.constant 128 : index
    %1383 = memref.load %arg6[%c128_192] : memref<144xf32, #tpu.memory_space<smem>>
    %1384 = vector.broadcast %1383 : f32 to vector<3x256xf32>
    %1385 = arith.mulf %1384, %772 : vector<3x256xf32>
    %1386 = arith.addf %1382, %1385 : vector<3x256xf32>
    %c129_193 = arith.constant 129 : index
    %1387 = memref.load %arg6[%c129_193] : memref<144xf32, #tpu.memory_space<smem>>
    %1388 = vector.broadcast %1387 : f32 to vector<3x256xf32>
    %1389 = arith.mulf %1388, %784 : vector<3x256xf32>
    %1390 = arith.addf %1386, %1389 : vector<3x256xf32>
    %c130_194 = arith.constant 130 : index
    %1391 = memref.load %arg6[%c130_194] : memref<144xf32, #tpu.memory_space<smem>>
    %1392 = vector.broadcast %1391 : f32 to vector<3x256xf32>
    %1393 = arith.mulf %1392, %792 : vector<3x256xf32>
    %1394 = arith.addf %1390, %1393 : vector<3x256xf32>
    %c131_195 = arith.constant 131 : index
    %1395 = memref.load %arg6[%c131_195] : memref<144xf32, #tpu.memory_space<smem>>
    %1396 = vector.broadcast %1395 : f32 to vector<3x256xf32>
    %1397 = arith.mulf %1396, %804 : vector<3x256xf32>
    %1398 = arith.addf %1394, %1397 : vector<3x256xf32>
    %c132_196 = arith.constant 132 : index
    %1399 = memref.load %arg6[%c132_196] : memref<144xf32, #tpu.memory_space<smem>>
    %1400 = vector.broadcast %1399 : f32 to vector<3x256xf32>
    %1401 = arith.mulf %1400, %816 : vector<3x256xf32>
    %1402 = arith.addf %1398, %1401 : vector<3x256xf32>
    %c133_197 = arith.constant 133 : index
    %1403 = memref.load %arg6[%c133_197] : memref<144xf32, #tpu.memory_space<smem>>
    %1404 = vector.broadcast %1403 : f32 to vector<3x256xf32>
    %1405 = arith.mulf %1404, %828 : vector<3x256xf32>
    %1406 = arith.addf %1402, %1405 : vector<3x256xf32>
    %c134_198 = arith.constant 134 : index
    %1407 = memref.load %arg6[%c134_198] : memref<144xf32, #tpu.memory_space<smem>>
    %1408 = vector.broadcast %1407 : f32 to vector<3x256xf32>
    %1409 = arith.mulf %1408, %840 : vector<3x256xf32>
    %1410 = arith.addf %1406, %1409 : vector<3x256xf32>
    %c135_199 = arith.constant 135 : index
    %1411 = memref.load %arg6[%c135_199] : memref<144xf32, #tpu.memory_space<smem>>
    %1412 = vector.broadcast %1411 : f32 to vector<3x256xf32>
    %1413 = arith.mulf %1412, %750 : vector<3x256xf32>
    %1414 = arith.addf %1410, %1413 : vector<3x256xf32>
    %c136_200 = arith.constant 136 : index
    %1415 = memref.load %arg6[%c136_200] : memref<144xf32, #tpu.memory_space<smem>>
    %1416 = vector.broadcast %1415 : f32 to vector<3x256xf32>
    %1417 = arith.mulf %1416, %762 : vector<3x256xf32>
    %1418 = arith.addf %1414, %1417 : vector<3x256xf32>
    %c137_201 = arith.constant 137 : index
    %1419 = memref.load %arg6[%c137_201] : memref<144xf32, #tpu.memory_space<smem>>
    %1420 = vector.broadcast %1419 : f32 to vector<3x256xf32>
    %1421 = arith.mulf %1420, %774 : vector<3x256xf32>
    %1422 = arith.addf %1418, %1421 : vector<3x256xf32>
    %c138_202 = arith.constant 138 : index
    %1423 = memref.load %arg6[%c138_202] : memref<144xf32, #tpu.memory_space<smem>>
    %1424 = vector.broadcast %1423 : f32 to vector<3x256xf32>
    %1425 = arith.mulf %1424, %786 : vector<3x256xf32>
    %1426 = arith.addf %1422, %1425 : vector<3x256xf32>
    %c139_203 = arith.constant 139 : index
    %1427 = memref.load %arg6[%c139_203] : memref<144xf32, #tpu.memory_space<smem>>
    %1428 = vector.broadcast %1427 : f32 to vector<3x256xf32>
    %1429 = arith.mulf %1428, %794 : vector<3x256xf32>
    %1430 = arith.addf %1426, %1429 : vector<3x256xf32>
    %c140_204 = arith.constant 140 : index
    %1431 = memref.load %arg6[%c140_204] : memref<144xf32, #tpu.memory_space<smem>>
    %1432 = vector.broadcast %1431 : f32 to vector<3x256xf32>
    %1433 = arith.mulf %1432, %806 : vector<3x256xf32>
    %1434 = arith.addf %1430, %1433 : vector<3x256xf32>
    %c141_205 = arith.constant 141 : index
    %1435 = memref.load %arg6[%c141_205] : memref<144xf32, #tpu.memory_space<smem>>
    %1436 = vector.broadcast %1435 : f32 to vector<3x256xf32>
    %1437 = arith.mulf %1436, %818 : vector<3x256xf32>
    %1438 = arith.addf %1434, %1437 : vector<3x256xf32>
    %c142_206 = arith.constant 142 : index
    %1439 = memref.load %arg6[%c142_206] : memref<144xf32, #tpu.memory_space<smem>>
    %1440 = vector.broadcast %1439 : f32 to vector<3x256xf32>
    %1441 = arith.mulf %1440, %830 : vector<3x256xf32>
    %1442 = arith.addf %1438, %1441 : vector<3x256xf32>
    %c143_207 = arith.constant 143 : index
    %1443 = memref.load %arg6[%c143_207] : memref<144xf32, #tpu.memory_space<smem>>
    %1444 = vector.broadcast %1443 : f32 to vector<3x256xf32>
    %1445 = arith.mulf %1444, %842 : vector<3x256xf32>
    %1446 = arith.addf %1442, %1445 : vector<3x256xf32>
    %c3_208 = arith.constant 3 : index
    %1447 = memref.load %arg7[%c3_208] : memref<4xf32, #tpu.memory_space<smem>>
    %1448 = vector.broadcast %1447 : f32 to vector<3x256xf32>
    %1449 = arith.addf %1446, %1448 : vector<3x256xf32>
    %cst_209 = arith.constant 0.000000e+00 : f32
    %1450 = vector.broadcast %cst_209 : f32 to vector<3x256xf32>
    %1451 = arith.cmpf oge, %1449, %1450 : vector<3x256xf32>
    %cst_210 = arith.constant 2.000000e-01 : f32
    %1452 = vector.broadcast %cst_210 : f32 to vector<3x256xf32>
    %1453 = arith.mulf %1452, %1449 : vector<3x256xf32>
    %1454 = arith.select %1451, %1449, %1453 : vector<3x256xi1>, vector<3x256xf32>
    %1455 = vector.shape_cast %995 : vector<3x256xf32> to vector<1x3x256xf32>
    %1456 = vector.shape_cast %1148 : vector<3x256xf32> to vector<1x3x256xf32>
    %1457 = vector.shape_cast %1301 : vector<3x256xf32> to vector<1x3x256xf32>
    %1458 = vector.shape_cast %1454 : vector<3x256xf32> to vector<1x3x256xf32>
    %1459 = tpu.concatenate %1455, %1456, %1457, %1458 in 0 : vector<1x3x256xf32>, vector<1x3x256xf32>, vector<1x3x256xf32>, vector<1x3x256xf32> -> vector<4x3x256xf32>
    %c0_211 = arith.constant 0 : index
    %c0_212 = arith.constant 0 : index
    %c0_213 = arith.constant 0 : index
    %c0_214 = arith.constant 0 : index
    %1460 = vector.load %arg8[%c0_211, %c0_212, %c0_213, %c0_214] : memref<1x4x3x256xf32, #tpu.memory_space<vmem>>, vector<1x4x3x256xf32>
    %1461 = vector.shape_cast %1460 : vector<1x4x3x256xf32> to vector<4x3x256xf32>
    %1462 = vector.shape_cast %1459 : vector<4x3x256xf32> to vector<1x4x3x256xf32>
    tpu.vector_store %arg8[%c0_211, %c0_212, %c0_213, %c0_214], %1462 {strides = array<i32>} : memref<1x4x3x256xf32, #tpu.memory_space<vmem>>, vector<1x4x3x256xf32>,
    return
  }
  func.func @transform_0(%arg0: i32, %arg1: i32) -> (i32, i32, i32, i32) {
    %c0_i32 = arith.constant 0 : i32
    %c0_i32_0 = arith.constant 0 : i32
    %c0_i32_1 = arith.constant 0 : i32
    return %arg0, %c0_i32, %arg1, %c0_i32_0 : i32, i32, i32, i32
  }
  func.func @transform_1(%arg0: i32, %arg1: i32) -> (i32, i32, i32) {
    %c0_i32 = arith.constant 0 : i32
    %c0_i32_0 = arith.constant 0 : i32
    %c0_i32_1 = arith.constant 0 : i32
    %c0_i32_2 = arith.constant 0 : i32
    return %c0_i32, %c0_i32_0, %c0_i32_1 : i32, i32, i32
  }
  func.func @transform_2(%arg0: i32, %arg1: i32) -> i32 {
    %c0_i32 = arith.constant 0 : i32
    %c0_i32_0 = arith.constant 0 : i32
    return %c0_i32 : i32
  }
  func.func @transform_3(%arg0: i32, %arg1: i32) -> i32 {
    %c0_i32 = arith.constant 0 : i32
    %c0_i32_0 = arith.constant 0 : i32
    return %c0_i32 : i32
  }
  func.func @transform_4(%arg0: i32, %arg1: i32) -> i32 {
    %c0_i32 = arith.constant 0 : i32
    %c0_i32_0 = arith.constant 0 : i32
    return %c0_i32 : i32
  }
  func.func @transform_5(%arg0: i32, %arg1: i32) -> i32 {
    %c0_i32 = arith.constant 0 : i32
    %c0_i32_0 = arith.constant 0 : i32
    return %c0_i32 : i32
  }
  func.func @transform_6(%arg0: i32, %arg1: i32) -> (i32, i32, i32, i32) {
    %c0_i32 = arith.constant 0 : i32
    %c0_i32_0 = arith.constant 0 : i32
    %c0_i32_1 = arith.constant 0 : i32
    return %arg0, %c0_i32, %arg1, %c0_i32_0 : i32, i32, i32, i32
  }
}

</mosaic_0001>

<bundles_post_ra>
// kernel: spatial_conv.1
= control target key start
LH: loop header
LB: loop body
LE: loop exit
PB: predicated region body
PF: predicated region fallthrough
CT: control target
= control target key end

     0   :  { %s6675_s0 = inlined_call_operand.vmem [shape: f32[2,4,3,256], index: 0, kind: input, shape index: {}]   ;;  %s6676_s1 = inlined_call_operand.vmem [shape: f32[9,3,256], index: 1, kind: input, shape index: {}]   ;;  %s6677_s2 = inlined_call_operand.vmem [shape: f32[144], index: 2, kind: input, shape index: {}]   ;;  %s6678_s3 = inlined_call_operand.vmem [shape: f32[4], index: 3, kind: input, shape index: {}]   ;;  %s6679_s4 = inlined_call_operand.vmem [shape: f32[144], index: 4, kind: input, shape index: {}]   ;;  %s6680_s5 = inlined_call_operand.vmem [shape: f32[4], index: 5, kind: input, shape index: {}]   ;;  %s6681_s6 = inlined_call_operand.vmem [shape: f32[2,4,3,256], index: 6, kind: output, shape index: {}]  }
   0x1   :  { %6977 = sst [smem:[#allocation119_spill]] %s6675_s0 }
   0x2   :  { %6978 = sst [smem:[#allocation120_spill]] %s6676_s1 }
   0x3   :  { %6979 = sst [smem:[#allocation121_spill]] %s6677_s2 }
   0x4   :  { %6980 = sst [smem:[#allocation122_spill]] %s6678_s3 }
   0x5   :  { %6981 = sst [smem:[#allocation123_spill]] %s6679_s4 }
   0x6   :  { %6982 = sst [smem:[#allocation124_spill]] %s6680_s5 }
   0x7   :  { %6983 = sst [smem:[#allocation125_spill]] %s6681_s6 }
   0x8   :  { %11 = vsyncpa [#allocation3], 0 }
   0x9   :  { %12 = vsyncpa [#allocation5], 0 }
   0xa   :  { %13 = vsyncpa [#allocation8], 0  ;;  %s3485_s21 = smov 0   ;;  %s3487_s22 = smov 0  }
   0xb   :  { %s3489_s23 = smov 0  }
   0xc LB: > { %6984 = sst [smem:[#allocation12_spill]] %s3432_s22  ;;  %s6986_s3 = sld [smem:[#allocation122_spill]]  ;;  %s3436_s23 = sphi %s3489_s23, %s19_s23   ;;  %s3432_s22 = sphi %s3487_s22, %s7825_s22   ;;  %s3428_s21 = sphi %s3485_s21, %s7824_s21  }
   0xd   : > { %6985 = sst [smem:[#allocation13_spill]] %s3436_s23  ;;  %s2911_s27 = sadd.s32 4294967295, %s3436_s23  }
   0xe   : > { %p2913_p0 = scmp.ge.s32.totalorder %s3436_s23, 1  ;;  %p197_p1 = scmp.lt.s32.totalorder %s3436_s23, 3 }
   0xf   : > { %p3506_p2 = scmp.eq.s32.totalorder %s2911_s27, 0  ;;  %s31_s30 = sadd.s32 1, %s3432_s22 }
  0x10   : > { %p3510_p3 = pnand %p2913_p0, %p197_p1  ;;  %s6989_s2 = sld [smem:[#allocation121_spill]] }
  0x11   : > { %s6987_s28 = scalar_select %p3506_p2, 1, 0 }
  0x12   : > { %s224_s26 = sshll.u32 %s6986_s3, 4  ;;  %p3247_p4 = pneg %p3510_p3  ;;  %s225_s26 = int_to_ptr.vmem [resolvable:$true] %s224_s26 }
  0x13   : > { %s6988_s29 = scalar_select %p3510_p3, 1, 0 }
  0x14   : > { %p3522_p5 = pnand %p3506_p2, %p3247_p4  ;;  %p3526_p6 = scmp.ge.s32.totalorder %s31_s30, 2 }
  0x15   : > { %s6992_s4 = sld [smem:[#allocation123_spill]]  ;;  %s3342_s15 = scalar_lea.vmem %s225_s26, 16 }
  0x16   : > { %s213_s9 = sshll.u32 %s6989_s2, 4  ;;  %p3343_p7 = scmp.ne.s32.totalorder %s225_s26, %s3342_s15  ;;  %s214_s9 = int_to_ptr.vmem [resolvable:$true] %s213_s9 }
  0x17   : > { %p3344_p8 = pneg %p3522_p5  ;;  %p3350_p11 = scmp.lt.s32.totalorder %s225_s26, %s225_s26 }
  0x18   : > { %p3351_p12 = scmp.lt.s32.totalorder %s3342_s15, %s3342_s15 }
  0x19   : > { %p3345_p9 = pnand %p3344_p8, %p3343_p7 }
  0x1a   : > { %p3352_p13 = por %p3351_p12, %p3350_p11 }
  0x1b   : > { %s235_s14 = sshll.u32 %s6992_s4, 4  ;;  %p3346_p10 = pneg %p3345_p9  ;;  %s236_s14 = int_to_ptr.vmem [resolvable:$true] %s235_s14 }
  0x1d   : > { %p3353_p0 = pnand %p3352_p13, %p3346_p10 }
  0x1f   : > { %3356 = shalt.err (!%p3353_p0)
}
  0x20   : > { %s3438_s16 = smov [#allocation4]   ;;  %s7827_s30 = smov (%p3526_p6, %s31_s30), 0 }
  0x21   : > { %3253 = dma.vmem_to_smem (!%p3522_p5), %s225_s26, 16, %s3438_s16, [#allocation5]  }
  0x22   : > { %6993 = sst [smem:[#allocation14_spill]] %s7827_s30  ;;  %s3357_s17 = scalar_lea.vmem %s214_s9, 32 }
  0x23   : > { %p3358_p1 = scmp.ne.s32.totalorder %s214_s9, %s3357_s17  ;;  %p3365_p9 = scmp.lt.s32.totalorder %s214_s9, %s214_s9 }
  0x24   : > { %p3366_p2 = scmp.lt.s32.totalorder %s3357_s17, %s3357_s17 }
  0x25   : > { %p3360_p4 = pnand %p3358_p1, %p3344_p8 }
  0x26   : > { %p3367_p11 = por %p3366_p2, %p3365_p9 }
  0x27   : > { %p3361_p7 = pneg %p3360_p4 }
  0x29   : > { %p3368_p10 = pnand %p3367_p11, %p3361_p7 }
  0x2b   : > { %3371 = shalt.err (!%p3368_p10)
}
  0x2c   : > { %s3439_s18 = smov [#allocation2]   ;;  %s3372_s19 = scalar_lea.vmem %s236_s14, 32 }
  0x2d   : > { %3250 = dma.vmem_to_smem (!%p3522_p5), %s214_s9, 32, %s3439_s18, [#allocation3]  }
  0x2e   : > { %p3373_p6 = scmp.ne.s32.totalorder %s236_s14, %s3372_s19  ;;  %p3380_p0 = scmp.lt.s32.totalorder %s236_s14, %s236_s14 }
  0x2f   : > { %p3381_p1 = scmp.lt.s32.totalorder %s3372_s19, %s3372_s19 }
  0x30   : > { %p3375_p12 = pnand %p3373_p6, %p3344_p8 }
  0x31   : > { %p3382_p4 = por %p3381_p1, %p3380_p0 }
  0x32   : > { %p3376_p13 = pneg %p3375_p12 }
  0x34   : > { %p3383_p3 = pnand %p3382_p4, %p3376_p13 }
  0x36   : > { %3386 = shalt.err (!%p3383_p3)
}
  0x37   : > { %s3440_s20 = smov [#allocation6]   ;;  %s6994_s5 = sld [smem:[#allocation124_spill]] }
  0x38   : > { %3256 = dma.vmem_to_smem (!%p3522_p5), %s236_s14, 32, %s3440_s20, [#allocation5]  }
  0x3d   : > { %s246_s26 = sshll.u32 %s6994_s5, 4  ;;  %s247_s26 = int_to_ptr.vmem [resolvable:$true] %s246_s26 }
  0x3e   : > { %s3387_s27 = scalar_lea.vmem %s247_s26, 16  ;;  %p3395_p11 = scmp.lt.s32.totalorder %s247_s26, %s247_s26 }
  0x3f   : > { %p3388_p2 = scmp.ne.s32.totalorder %s247_s26, %s3387_s27  ;;  %p3396_p10 = scmp.lt.s32.totalorder %s3387_s27, %s3387_s27 }
  0x41   : > { %p3390_p7 = pnand %p3388_p2, %p3344_p8  ;;  %p3397_p6 = por %p3396_p10, %p3395_p11 }
  0x43   : > { %p3391_p9 = pneg %p3390_p7 }
  0x45   : > { %p3398_p3 = pnand %p3397_p6, %p3391_p9 }
  0x47   : > { %3401 = shalt.err (!%p3398_p3)
}
  0x48   : > { %s3441_s7 = smov [#allocation7]   ;;  %p6995_p12 = scmp.ne.s32.totalorder %s6988_s29, 0 }
  0x49   : > { %3259 = dma.vmem_to_smem (!%p3522_p5), %s247_s26, 16, %s3441_s7, [#allocation8]  }
  0x4a   : > { %271 = sbr.rel (%p6995_p12) target bundleno = 790 (0x316), region = 44 }
  0x51   : > { %p6996_p13 = scmp.ne.s32.totalorder %s6987_s28, 0 }
  0x53   : > { %3415 = dma.done.wait (%p6996_p13), [#allocation3], 32  }
  0x54   : > { %3417 = vsyncadd (%p6996_p13), [#allocation3], 4294967264 }
  0x55   : > { %3419 = dma.done.wait (%p6996_p13), [#allocation5], 48  }
  0x56   : > { %3421 = vsyncadd (%p6996_p13), [#allocation5], 4294967248 }
  0x57   : > { %3423 = dma.done.wait (%p6996_p13), [#allocation8], 16  }
  0x58   : > { %3425 = vsyncadd (%p6996_p13), [#allocation8], 4294967280 }
  0x59   : > { %289 = sfence }
  0x5a   : > { %p322_p5 = scmp.lt.s32.totalorder %s3428_s21, 1  ;;  %s6998_s0 = sld [smem:[#allocation119_spill]]  ;;  %v387_v8 = vlaneseq }
  0x5b   : > { %s6692_s28 = smov 16   ;;  %s6694_s11 = smov 17  }
  0x5c   : > { %s7829_s21 = smov (!%p322_p5, %s3428_s21), 1  ;;  %s6690_s12 = smov 15   ;;  %v3748_v11 = vand.u32 127, %v387_v8 }
  0x5d   : > { %6997 = sst [smem:[#allocation15_spill]] %s7829_s21  ;;  %s6685_s29 = sshll.u32 %s7829_s21, 5 }
  0x5e   : > { %s6688_s13 = smov 1   ;;  %s6686_s14 = smov 127   ;;  %vm425_vm0 = vcmp.lt.s32.totalorder %v3748_v11, 16  ;;  %vm461_vm1 = vcmp.lt.s32.totalorder %v3748_v11, 15  ;;  %vm389_vm2 = vcmp.lt.s32.totalorder %v3748_v11, 17  ;;  %vm497_vm3 = vcmp.lt.s32.totalorder %v3748_v11, 1 }
  0x5f   : > { %s6696_s15 = smov 113   ;;  %s6701_s16 = smov 112   ;;  %vm533_vm4 = vcmp.lt.s32.totalorder %v3748_v11, 127  ;;  %vm569_vm5 = vcmp.lt.s32.totalorder %v3748_v11, 113  ;;  %vm605_vm6 = vcmp.lt.s32.totalorder %v3748_v11, 112  ;;  %vm641_vm7 = vcmp.lt.s32.totalorder %v3748_v11, 111 }
  0x60   : > { %s3586_s10 = scalar_lea.vmem %s6998_s0, %s6685_s29  ;;  %s6698_s17 = smov 111  }
  0x61   : > { %6999 = sst [smem:[#allocation16_spill]] %s3586_s10  ;;  %v3589_v0 = vld [vmem:[%s3586_s10] sm:$0x77]  ;;  %v3615_v2 = vld [vmem:[%s3586_s10 + $0x8] sm:$0x77]  ;;  %s3657_s18 = sld [smem:[#allocation2 + $0x1]] }
  0x62   : > { %409 = vrot.lane.b32.xlu1 %v3589_v0, %s6692_s28  ;;  %371 = vrot.lane.b32.xlu0 %v3589_v0, %s6694_s11  ;;  %v363_v1 = vcombine.high %v3589_v0, %v3589_v0  ;;  %v364_v3 = vcombine.high %v3615_v2, %v3615_v2  ;;  %v357_v4 = vld [vmem:[%s3586_s10 + $0x10] sm:$0x77]  ;;  %s3659_s19 = sld [smem:[#allocation2 + $0x25]]  ;;  %s3661_s20 = sld [smem:[#allocation2 + $0x49]]  ;;  %v3698_v6 = vld [vmem:[%s3586_s10 + $0x18] sm:$0x77] }
  0x63   : > { %v365_v5 = vcombine.high %v357_v4, %v357_v4  ;;  %s3663_s24 = sld [smem:[#allocation2 + $0x6d]]  ;;  %s3665_s25 = sld [smem:[#allocation2 + $0x2]]  ;;  %v3716_v7 = vcombine.high %v3698_v6, %v3698_v6 }
  0x64   : > { %s3667_s26 = sld [smem:[#allocation2 + $0x26]]  ;;  %s3669_s27 = sld [smem:[#allocation2 + $0x4a]] }
  0x65   : > { %s3671_s7 = sld [smem:[#allocation2 + $0x6e]]  ;;  %s3675_s8 = sld [smem:[#allocation2]] }
  0x66   : > { %445 = vrot.lane.b32.xlu0 %v3589_v0, %s6690_s12  ;;  %417 = vrot.lane.b32.xlu1 %v363_v1, %s6692_s28  ;;  %s3677_s9 = sld [smem:[#allocation2 + $0x24]]  ;;  %s3679_s29 = sld [smem:[#allocation2 + $0x48]] }
  0x67   : > { %7000 = sst [smem:[#allocation17_spill]] %s3657_s18  ;;  %s3700_s0 = sld [smem:[#allocation2 + $0x28]]  ;;  %v668_v14 = vstv %s3657_s18 }
  0x68   : > { %7001 = sst [smem:[#allocation18_spill]] %s3659_s19  ;;  %s3702_s2 = sld [smem:[#allocation2 + $0x29]]  ;;  %v902_v16 = vstv %s3659_s19  ;;  %v1136_v17 = vstv %s3661_s20 }
  0x69   : > { %7002 = sst [smem:[#allocation19_spill]] %s3661_s20  ;;  %s3704_s3 = sld [smem:[#allocation2 + $0x4c]]  ;;  %v1370_v20 = vstv %s3663_s24  ;;  %v674_v22 = vstv %s3665_s25 }
  0x6a   : > { %453 = vrot.lane.b32.xlu1 %v363_v1, %s6690_s12  ;;  %379 = vrot.lane.b32.xlu0 %v363_v1, %s6694_s11  ;;  %7003 = sst [smem:[#allocation20_spill]] %s3663_s24  ;;  %s3706_s4 = sld [smem:[#allocation2 + $0x4d]]  ;;  %v1142_v25 = vstv %s3669_s27 }
  0x6b   : > { %7004 = sst [smem:[#allocation21_spill]] %s3665_s25  ;;  %s3708_s5 = sld [smem:[#allocation2 + $0x70]]  ;;  %v1376_v29 = vstv %s3671_s7  ;;  %v662_v30 = vstv %s3675_s8 }
  0x6c   : > { %7005 = sst [smem:[#allocation22_spill]] %s3667_s26  ;;  %s3710_s30 = sld [smem:[#allocation2 + $0x71]]  ;;  %v896_v33 = vstv %s3677_s9  ;;  %v1130_v34 = vstv %s3679_s29 }
  0x6d   : > { %7006 = sst [smem:[#allocation23_spill]] %s3669_s27  ;;  %s7021_s22 = smov 111   ;;  %v920_v19 = vstv %s3700_s0 }
  0x6e   : > { %489 = vrot.lane.b32.xlu1 %v363_v1, %s6688_s13  ;;  %481 = vrot.lane.b32.xlu0 %v3589_v0, %s6688_s13  ;;  %7007 = sst [smem:[#allocation24_spill]] %s3671_s7  ;;  %s3720_s23 = sld [smem:[#allocation2 + $0x2a]]  ;;  %v3825_v32 = vmul.f32 %v920_v19, %v3589_v0 }
  0x6f   : > { %7008 = sst [smem:[#allocation25_spill]] %s3675_s8  ;;  %s3722_s6 = sld [smem:[#allocation2 + $0x4e]]  ;;  %v1154_v28 = vstv %s3704_s3 }
  0x70   : > { %7009 = sst [smem:[#allocation26_spill]] %s3677_s9  ;;  %s3724_s21 = sld [smem:[#allocation2 + $0x72]]  ;;  %v3850_v40 = vmul.f32 %v1154_v28, %v3589_v0 }
  0x71   : > { %7010 = sst [smem:[#allocation27_spill]] %s3679_s29  ;;  %s7025_s1 = sld [smem:[#allocation120_spill]] }
  0x72   : > { %525 = vrot.lane.b32.xlu1 %v363_v1, %s6686_s14  ;;  %517 = vrot.lane.b32.xlu0 %v3589_v0, %s6686_s14  ;;  %7017 = sst [smem:[#allocation34_spill]] %s3702_s2  ;;  %s3752_s2 = sld [smem:[#allocation2 + $0x2c]] }
  0x73   : > { %7018 = sst [smem:[#allocation35_spill]] %s3706_s4  ;;  %s3750_s4 = sld [smem:[#allocation2 + $0x8]] }
  0x74   : > { %7019 = sst [smem:[#allocation36_spill]] %s3708_s5  ;;  %s3775_s5 = sld [smem:[#allocation2 + $0x2d]] }
  0x75   : > { %7020 = sst [smem:[#allocation37_spill]] %s3710_s30  ;;  %s3733_s30 = sld [smem:[#allocation2 + $0x2b]] }
  0x76   : > { %561 = vrot.lane.b32.xlu1 %v363_v1, %s6696_s15  ;;  %553 = vrot.lane.b32.xlu0 %v3589_v0, %s6696_s15  ;;  %7022 = sst [smem:[#allocation38_spill]] %s3720_s23  ;;  %s3740_s23 = sld [smem:[#allocation2 + $0x4f]] }
  0x77   : > { %7023 = sst [smem:[#allocation39_spill]] %s3722_s6  ;;  %v3729_v9 = vld [vmem:[%s7025_s1 + $0x8] sm:$0x77]  ;;  %v3738_v10 = vld [vmem:[%s7025_s1 + $0x10] sm:$0x77]  ;;  %s7032_s6 = smov 17  }
  0x78   : > { %7024 = sst [smem:[#allocation40_spill]] %s3724_s21  ;;  %7026 = vst [vmem:[#allocation41_spill] sm:$0xff] %v3729_v9  ;;  %7029 = vst [vmem:[#allocation44_spill] sm:$0xff] %v3738_v10  ;;  %s3742_s21 = sld [smem:[#allocation2 + $0x73]]  ;;  %v3757_v12 = vld [vmem:[%s7025_s1] sm:$0x77]  ;;  %v3765_v13 = vcombine.high %v3729_v9, %v3729_v9  ;;  %v3792_v21 = vcombine.high %v3738_v10, %v3738_v10 }
  0x79   : > { %7033 = sst [smem:[#allocation47_spill]] %s3750_s4  ;;  %v3771_v15 = vld [vmem:[%s7025_s1 + $0x18] sm:$0x77]  ;;  %s7041_s18 = smov 16   ;;  %v3797_v23 = vcombine.high %v3757_v12, %v3757_v12  ;;  %v3812_v27 = vld [vmem:[%s7025_s1 + $0x28] sm:$0x77] }
  0x7a   : > { %597 = vrot.lane.b32.xlu1 %v363_v1, %s6701_s16  ;;  %589 = vrot.lane.b32.xlu0 %v3589_v0, %s6701_s16  ;;  %7034 = sst [smem:[#allocation48_spill]] %s3752_s2  ;;  %7036 = vst [vmem:[#allocation50_spill] sm:$0xff] %v3765_v13  ;;  %s3773_s2 = sld [smem:[#allocation2 + $0x9]]  ;;  %7042 = vst [vmem:[#allocation55_spill] sm:$0xff] %v3792_v21  ;;  %v3807_v26 = vcombine.high %v3771_v15, %v3771_v15  ;;  %v3847_v39 = vcombine.high %v3812_v27, %v3812_v27  ;;  %v3877_v49 = vld [vmem:[%s7025_s1 + $0x30] sm:$0x77] }
  0x7b   : > { %7028 = sst [smem:[#allocation43_spill]] %s3733_s30  ;;  %s3781_s10 = sld [smem:[#allocation2 + $0x51]]  ;;  %7043 = vst [vmem:[#allocation56_spill] sm:$0xff] %v3797_v23  ;;  %v3940_v28 = vcombine.high %v3877_v49, %v3877_v49 }
  0x7c   : > { %7030 = sst [smem:[#allocation45_spill]] %s3740_s23  ;;  %s3761_s23 = sld [smem:[#allocation2 + $0x74]] }
  0x7d   : > { %7038 = sst [smem:[#allocation52_spill]] %s3775_s5  ;;  %s3799_s0 = sld [smem:[#allocation2 + $0xa]] }
  0x7e   : > { %633 = vrot.lane.b32.xlu1 %v363_v1, %s6698_s17  ;;  %625 = vrot.lane.b32.xlu0 %v3589_v0, %s6698_s17  ;;  %7031 = sst [smem:[#allocation46_spill]] %s3742_s21  ;;  %s3817_s25 = sld [smem:[#allocation2 + $0x76]] }
  0x7f   : > { %s3759_s21 = sld [smem:[#allocation2 + $0x50]]  ;;  %s3827_s26 = sld [smem:[#allocation2 + $0xd]] }
  0x80   : > { %7037 = sst [smem:[#allocation51_spill]] %s3773_s2  ;;  %s7048_s4 = sld [smem:[#allocation36_spill]] }
  0x81   : > { %7039 = sst [smem:[#allocation53_spill]] %s3781_s10  ;;  %s3835_s7 = sld [smem:[#allocation2 + $0x55]] }
  0x82   : > { %381 = vrot.lane.b32.xlu1 %v364_v3, %s6694_s11  ;;  %373 = vrot.lane.b32.xlu0 %v3615_v2, %s6694_s11  ;;  %7035 = sst [smem:[#allocation49_spill]] %s3761_s23  ;;  %s3783_s23 = sld [smem:[#allocation2 + $0x75]] }
  0x83   : > { %s3837_s8 = sld [smem:[#allocation2 + $0x79]]  ;;  %s7049_s27 = smov 15  }
  0x84   : > { %7046 = sst [smem:[#allocation59_spill]] %s3817_s25  ;;  %s3854_s29 = sld [smem:[#allocation2 + $0x2f]] }
  0x85   : > { %s3883_s24 = sld [smem:[#allocation2 + $0x54]]  ;;  %s3885_s20 = sld [smem:[#allocation2 + $0x78]] }
  0x86   : > { %419 = vrot.lane.b32.xlu1 %v364_v3, %s6692_s28  ;;  %411 = vrot.lane.b32.xlu0 %v3615_v2, %s6692_s28  ;;  %v1388_v44 = vstv %s7048_s4  ;;  %s7064_s3 = sld [smem:[#allocation49_spill]]  ;;  %s3899_s4 = sld [smem:[#allocation2 + $0xe]] }
  0x87   : > { %v3895_v55 = vmul.f32 %v1388_v44, %v3589_v0  ;;  %s3909_s19 = sld [smem:[#allocation2 + $0x7a]]  ;;  %s3915_s30 = sld [smem:[#allocation2 + $0xf]]  ;;  %v1210_v8 = vstv %s3835_s7 }
  0x88   : > { %7040 = sst [smem:[#allocation54_spill]] %s3783_s23  ;;  %s3946_s7 = sld [smem:[#allocation2 + $0x34]]  ;;  %v3970_v61 = vmul.f32 %v1210_v8, %v3615_v2 }
  0x89   : > { %s3963_s10 = sld [smem:[#allocation2 + $0x58]]  ;;  %s3965_s2 = sld [smem:[#allocation2 + $0x7c]] }
  0x8a   : > { %455 = vrot.lane.b32.xlu1 %v364_v3, %s6690_s12  ;;  %447 = vrot.lane.b32.xlu0 %v3615_v2, %s6690_s12  ;;  %7053 = sst [smem:[#allocation36_spill]] %s3854_s29  ;;  %s3928_s29 = sld [smem:[#allocation2 + $0x57]]  ;;  %7078 = vst [vmem:[#allocation68_spill] sm:$0xff] %v3970_v61 }
  0x8b   : > { %s3975_s9 = sld [smem:[#allocation2 + $0x11]]  ;;  %s3985_s25 = sld [smem:[#allocation2 + $0x7d]] }
  0x8d   : > { %7067 = sst [smem:[#allocation49_spill]] %s3915_s30 }
  0x8e   : > { %491 = vrot.lane.b32.xlu1 %v364_v3, %s6688_s13  ;;  %483 = vrot.lane.b32.xlu0 %v3615_v2, %s6688_s13  ;;  %7071 = sst [smem:[#allocation65_spill]] %s3946_s7  ;;  %s7115_s7 = sld [smem:[#allocation34_spill]] }
  0x92   : > { %527 = vrot.lane.b32.xlu1 %v364_v3, %s6686_s14  ;;  %519 = vrot.lane.b32.xlu0 %v3615_v2, %s6686_s14 }
  0x96   : > { %563 = vrot.lane.b32.xlu1 %v364_v3, %s6696_s15  ;;  %555 = vrot.lane.b32.xlu0 %v3615_v2, %s6696_s15 }
  0x9a   : > { %599 = vrot.lane.b32.xlu1 %v364_v3, %s6701_s16  ;;  %591 = vrot.lane.b32.xlu0 %v3615_v2, %s6701_s16 }
  0x9e   : > { %635 = vrot.lane.b32.xlu1 %v364_v3, %s6698_s17  ;;  %627 = vrot.lane.b32.xlu0 %v3615_v2, %s6698_s17  ;;  %s3695_s17 = sld [smem:[#allocation2 + $0x5]]  ;;  %v3922_v3 = vld [vmem:[%s7025_s1 + $0x38] sm:$0x77] }
  0xa2   : > { %383 = vrot.lane.b32.xlu1 %v365_v5, %s6694_s11  ;;  %375 = vrot.lane.b32.xlu0 %v357_v4, %s6694_s11  ;;  %s3689_s11 = sld [smem:[#allocation2 + $0x6f]] }
  0xa4   : > { %7016 = sst [smem:[#allocation33_spill]] %s3695_s17  ;;  %s3944_s17 = sld [smem:[#allocation2 + $0x10]] }
  0xa6   : > { %421 = vrot.lane.b32.xlu1 %v365_v5, %s6692_s28  ;;  %413 = vrot.lane.b32.xlu0 %v357_v4, %s6692_s28  ;;  %s3687_s28 = sld [smem:[#allocation2 + $0x4b]] }
  0xa8   : > { %7015 = sst [smem:[#allocation32_spill]] %s3689_s11  ;;  %s3872_s11 = sld [smem:[#allocation2 + $0x30]] }
  0xaa   : > { %457 = vrot.lane.b32.xlu1 %v365_v5, %s6690_s12  ;;  %449 = vrot.lane.b32.xlu0 %v357_v4, %s6690_s12  ;;  %s3685_s12 = sld [smem:[#allocation2 + $0x27]] }
  0xab   : > { %7070 = sst [smem:[#allocation64_spill]] %s3944_s17  ;;  %s7114_s17 = sld [smem:[#allocation33_spill]] }
  0xac   : > { %7014 = sst [smem:[#allocation31_spill]] %s3687_s28  ;;  %s3862_s28 = sld [smem:[#allocation2 + $0x77]] }
  0xae   : > { %493 = vrot.lane.b32.xlu1 %v365_v5, %s6688_s13  ;;  %485 = vrot.lane.b32.xlu0 %v357_v4, %s6688_s13  ;;  %s3683_s13 = sld [smem:[#allocation2 + $0x3]] }
  0xb0   : > { %7013 = sst [smem:[#allocation30_spill]] %s3685_s12  ;;  %s3870_s12 = sld [smem:[#allocation2 + $0xc]] }
  0xb1   : > { %s7103_s30 = sld [smem:[#allocation30_spill]] }
  0xb2   : > { %529 = vrot.lane.b32.xlu1 %v365_v5, %s6686_s14  ;;  %521 = vrot.lane.b32.xlu0 %v357_v4, %s6686_s14  ;;  %s3681_s14 = sld [smem:[#allocation2 + $0x6c]] }
  0xb3   : > { %7057 = sst [smem:[#allocation61_spill]] %s3862_s28  ;;  %s7060_s28 = sld [smem:[#allocation46_spill]] }
  0xb4   : > { %7012 = sst [smem:[#allocation29_spill]] %s3683_s13  ;;  %s3852_s13 = sld [smem:[#allocation2 + $0xb]] }
  0xb5   : > { %7065 = sst [smem:[#allocation46_spill]] %s3899_s4  ;;  %s7074_s23 = sld [smem:[#allocation61_spill]] }
  0xb6   : > { %565 = vrot.lane.b32.xlu1 %v365_v5, %s6696_s15  ;;  %557 = vrot.lane.b32.xlu0 %v357_v4, %s6696_s15  ;;  %s3693_s15 = sld [smem:[#allocation2 + $0x4]]  ;;  %7058 = sst [smem:[#allocation62_spill]] %s3870_s12 }
  0xb7   : > { %s7063_s12 = smov 1   ;;  %s4131_s4 = sld [smem:[#allocation2 + $0x36]] }
  0xb8   : > { %7011 = sst [smem:[#allocation28_spill]] %s3681_s14  ;;  %v1364_v35 = vstv %s3681_s14  ;;  %s3901_s14 = sld [smem:[#allocation2 + $0x32]] }
  0xba   : > { %601 = vrot.lane.b32.xlu1 %v365_v5, %s6701_s16  ;;  %593 = vrot.lane.b32.xlu0 %v357_v4, %s6701_s16  ;;  %s3718_s16 = sld [smem:[#allocation2 + $0x6]] }
  0xbc   : > { %v686_v18 = vstv %s3693_s15  ;;  %s3829_s15 = sld [smem:[#allocation2 + $0x31]] }
  0xbd   : > { %v3822_v31 = vmul.f32 %v686_v18, %v3589_v0  ;;  %v742_v0 = vstv %s3827_s26  ;;  %v1444_v18 = vstv %s3837_s8  ;;  %s3930_s26 = sld [smem:[#allocation2 + $0x7b]]  ;;  %s7077_s8 = sld [smem:[#allocation62_spill]] }
  0xbe   : > { %637 = vrot.lane.b32.xlu1 %v365_v5, %s7021_s22  ;;  %629 = vrot.lane.b32.xlu0 %v357_v4, %s7021_s22  ;;  %s3731_s22 = sld [smem:[#allocation2 + $0x7]]  ;;  %v3953_v4 = vld [vmem:[%s7025_s1 + $0x40] sm:$0x77]  ;;  %v3958_v5 = vmul.f32 %v742_v0, %v3615_v2  ;;  %v3973_v0 = vmul.f32 %v1444_v18, %v3615_v2  ;;  %s3977_s1 = sld [smem:[#allocation2 + $0x35]] }
  0xbf   : > { %7083 = sst [smem:[#allocation62_spill]] %s3985_s25  ;;  %v3997_v8 = vcombine.high %v3953_v4, %v3953_v4  ;;  %s7105_s25 = sld [smem:[#allocation32_spill]] }
  0xc0   : > { %7075 = vst [vmem:[#allocation66_spill] sm:$0xff] %v3958_v5  ;;  %7079 = vst [vmem:[#allocation69_spill] sm:$0xff] %v3973_v0 }
  0xc2   : > { %385 = vrot.lane.b32.xlu1 %v3716_v7, %s7032_s6  ;;  %377 = vrot.lane.b32.xlu0 %v3698_v6, %s7032_s6  ;;  %s3801_s6 = sld [smem:[#allocation2 + $0x2e]]  ;;  %v976_v1 = vstv %s3829_s15  ;;  %s7069_s15 = smov 127  }
  0xc3   : > { %v3961_v63 = vmul.f32 %v976_v1, %v3615_v2  ;;  %v3993_v2 = vcombine.high %v3922_v3, %v3922_v3 }
  0xc4   : > { %7027 = sst [smem:[#allocation42_spill]] %s3731_s22  ;;  %s3917_s22 = sld [smem:[#allocation2 + $0x33]] }
  0xc5   : > { %7076 = vst [vmem:[#allocation67_spill] sm:$0xff] %v3961_v63  ;;  %7085 = vst [vmem:[#allocation70_spill] sm:$0xff] %v3993_v2 }
  0xc6   : > { %423 = vrot.lane.b32.xlu1 %v3716_v7, %s7041_s18  ;;  %415 = vrot.lane.b32.xlu0 %v3698_v6, %s7041_s18  ;;  %s3815_s18 = sld [smem:[#allocation2 + $0x52]] }
  0xc8   : > { %7044 = sst [smem:[#allocation57_spill]] %s3801_s6  ;;  %s3983_s6 = sld [smem:[#allocation2 + $0x59]] }
  0xca   : > { %459 = vrot.lane.b32.xlu1 %v3716_v7, %s7049_s27  ;;  %451 = vrot.lane.b32.xlu0 %v3698_v6, %s7049_s27  ;;  %s3860_s27 = sld [smem:[#allocation2 + $0x53]]  ;;  %7068 = sst [smem:[#allocation63_spill]] %s3917_s22 }
  0xcb   : > { %s7102_s22 = sld [smem:[#allocation29_spill]] }
  0xcc   : > { %7045 = sst [smem:[#allocation58_spill]] %s3815_s18  ;;  %s7084_s18 = smov 113  }
  0xce   : > { %495 = vrot.lane.b32.xlu1 %v3716_v7, %s7063_s12  ;;  %487 = vrot.lane.b32.xlu0 %v3698_v6, %s7063_s12  ;;  %s3907_s12 = sld [smem:[#allocation2 + $0x56]]  ;;  %7082 = sst [smem:[#allocation61_spill]] %s3983_s6 }
  0xcf   : > { %s4129_s6 = sld [smem:[#allocation2 + $0x12]] }
  0xd0   : > { %7056 = sst [smem:[#allocation60_spill]] %s3860_s27  ;;  %s7061_s27 = sld [smem:[#allocation47_spill]] }
  0xd1   : > { %7066 = sst [smem:[#allocation47_spill]] %s3901_s14  ;;  %s7073_s5 = sld [smem:[#allocation60_spill]] }
  0xd2   : > { %531 = vrot.lane.b32.xlu1 %v3716_v7, %s7069_s15  ;;  %523 = vrot.lane.b32.xlu0 %v3698_v6, %s7069_s15  ;;  %s7072_s15 = sld [smem:[#allocation36_spill]]  ;;  %7081 = sst [smem:[#allocation60_spill]] %s3977_s1 }
  0xd3   : > { %7080 = sst [smem:[#allocation36_spill]] %s3975_s9  ;;  %s7087_s14 = smov 112  }
  0xd4   : > { %v410_v62 = vpop.permute.xlu1 %409  ;;  %v372_v60 = vpop.permute.xlu0 %371  ;;  %s7099_s1 = sld [smem:[#allocation22_spill]]  ;;  %s7116_s9 = sld [smem:[#allocation35_spill]] }
  0xd6   : > { %567 = vrot.lane.b32.xlu1 %v3716_v7, %s7084_s18  ;;  %559 = vrot.lane.b32.xlu0 %v3698_v6, %s7084_s18  ;;  %s7090_s18 = smov 111  }
  0xd8   : > { %v446_v56 = vpop.permute.xlu0 %445  ;;  %v418_v51 = vpop.permute.xlu1 %417 }
  0xd9   : > { %v426_v1 = vsel %vm425_vm0, %v410_v62, %v418_v51  ;;  %v430_v58 = vsel %vm425_vm0, %v418_v51, %v410_v62 }
  0xda   : > { %v437_v52 = vmul.f32 %v3729_v9, %v430_v58  ;;  %v438_v57 = vmul.f32 %v3765_v13, %v426_v1  ;;  %603 = vrot.lane.b32.xlu1 %v3716_v7, %s7087_s14  ;;  %595 = vrot.lane.b32.xlu0 %v3698_v6, %s7087_s14  ;;  %s7104_s14 = sld [smem:[#allocation31_spill]] }
  0xdc   : > { %v454_v50 = vpop.permute.xlu1 %453  ;;  %v380_v58 = vpop.permute.xlu0 %379  ;;  %v669_v42 = vmul.f32 %v668_v14, %v437_v52  ;;  %v670_v19 = vmul.f32 %v668_v14, %v438_v57  ;;  %v1372_v62 = vmul.f32 %v1370_v20, %v438_v57 }
  0xdd   : > { %v462_v53 = vsel %vm461_vm1, %v446_v56, %v454_v50  ;;  %v466_v18 = vsel %vm461_vm1, %v454_v50, %v446_v56  ;;  %v390_v1 = vsel %vm389_vm2, %v372_v60, %v380_v58  ;;  %v394_v43 = vsel %vm389_vm2, %v380_v58, %v372_v60 }
  0xde   : > { %639 = vrot.lane.b32.xlu1 %v3716_v7, %s7090_s18  ;;  %v473_v14 = vmul.f32 %v3738_v10, %v466_v18  ;;  %v474_v50 = vmul.f32 %v3792_v21, %v462_v53  ;;  %v401_v56 = vmul.f32 %v394_v43, %v3757_v12  ;;  %v402_v60 = vmul.f32 %v3797_v23, %v390_v1 }
  0xdf   : > { %631 = vrot.lane.b32.xlu0 %v3698_v6, %s7090_s18  ;;  %v903_v7 = vmul.f32 %v902_v16, %v437_v52  ;;  %v904_v58 = vmul.f32 %v902_v16, %v438_v57  ;;  %v1137_v18 = vmul.f32 %v1136_v17, %v437_v52  ;;  %v1138_v53 = vmul.f32 %v1136_v17, %v438_v57  ;;  %s4546_s18 = sld [smem:[#allocation2 + $0x62]] }
  0xe0   : > { %v490_v43 = vpop.permute.xlu1 %489  ;;  %v482_v1 = vpop.permute.xlu0 %481  ;;  %v1371_v6 = vmul.f32 %v1370_v20, %v437_v52  ;;  %v675_v16 = vmul.f32 %v674_v22, %v473_v14  ;;  %v676_v51 = vmul.f32 %v674_v22, %v474_v50  ;;  %v1143_v54 = vmul.f32 %v1142_v25, %v473_v14 }
  0xe1   : > { %v1144_v17 = vmul.f32 %v1142_v25, %v474_v50  ;;  %v1377_v47 = vmul.f32 %v1376_v29, %v473_v14  ;;  %v1378_v48 = vmul.f32 %v1376_v29, %v474_v50  ;;  %v663_v44 = vmul.f32 %v662_v30, %v401_v56 }
  0xe2   : > { %v664_v59 = vmul.f32 %v662_v30, %v402_v60  ;;  %v897_v52 = vmul.f32 %v896_v33, %v401_v56  ;;  %v898_v20 = vmul.f32 %v896_v33, %v402_v60  ;;  %v1131_v22 = vmul.f32 %v1130_v34, %v401_v56 }
  0xe3   : > { %v1132_v57 = vmul.f32 %v1130_v34, %v402_v60  ;;  %v1365_v25 = vmul.f32 %v1364_v35, %v401_v56  ;;  %v1366_v46 = vmul.f32 %v1364_v35, %v402_v60  ;;  %v671_v41 = vadd.f32 %v669_v42, %v663_v44 }
  0xe4   : > { %v526_v45 = vpop.permute.xlu1 %525  ;;  %v518_v29 = vpop.permute.xlu0 %517  ;;  %v672_v38 = vadd.f32 %v670_v19, %v664_v59  ;;  %v905_v37 = vadd.f32 %v903_v7, %v897_v52  ;;  %v906_v30 = vadd.f32 %v904_v58, %v898_v20  ;;  %v1139_v36 = vadd.f32 %v1137_v18, %v1131_v22 }
  0xe5   : > { %v1140_v24 = vadd.f32 %v1138_v53, %v1132_v57  ;;  %v1373_v0 = vadd.f32 %v1371_v6, %v1365_v25  ;;  %v1374_v61 = vadd.f32 %v1372_v62, %v1366_v46  ;;  %v7100_v33 = vstv %s7099_s1  ;;  %s7118_s1 = sld [smem:[#allocation37_spill]] }
  0xe6   : > { %v909_v63 = vmul.f32 %v7100_v33, %v473_v14  ;;  %v7101_v5 = vmov %v7100_v33  ;;  %v677_v10 = vadd.f32 %v675_v16, %v671_v41  ;;  %v678_v34 = vadd.f32 %v676_v51, %v672_v38 }
  0xe7   : > { %v910_v21 = vmul.f32 %v7101_v5, %v474_v50  ;;  %v1145_v13 = vadd.f32 %v1143_v54, %v1139_v36  ;;  %v1146_v56 = vadd.f32 %v1144_v17, %v1140_v24  ;;  %v1379_v9 = vadd.f32 %v1377_v47, %v1373_v0 }
  0xe8   : > { %v1380_v35 = vadd.f32 %v1378_v48, %v1374_v61  ;;  %v562_v60 = vpop.permute.xlu1 %561  ;;  %v554_v42 = vpop.permute.xlu0 %553  ;;  %v498_v59 = vsel %vm497_vm3, %v482_v1, %v490_v43  ;;  %v502_v46 = vsel %vm497_vm3, %v490_v43, %v482_v1  ;;  %v534_v41 = vsel %vm533_vm4, %v518_v29, %v526_v45 }
  0xe9   : > { %v538_v24 = vsel %vm533_vm4, %v526_v45, %v518_v29  ;;  %v911_v36 = vadd.f32 %v909_v63, %v905_v37  ;;  %v912_v38 = vadd.f32 %v910_v21, %v906_v30  ;;  %v509_v47 = vmul.f32 %v3771_v15, %v502_v46 }
  0xea   : > { %v510_v48 = vmul.f32 %v3807_v26, %v498_v59  ;;  %v545_v54 = vmul.f32 %v3812_v27, %v534_v41  ;;  %v546_v61 = vmul.f32 %v3847_v39, %v538_v24  ;;  %v570_v5 = vsel %vm569_vm5, %v554_v42, %v562_v60 }
  0xeb   : > { %v574_v45 = vsel %vm569_vm5, %v562_v60, %v554_v42  ;;  %v7106_v21 = vstv %s7102_s22  ;;  %v7108_v44 = vstv %s7103_s30  ;;  %v7110_v7 = vstv %s7104_s14  ;;  %s7130_s22 = sld [smem:[#allocation39_spill]]  ;;  %s7131_s30 = sld [smem:[#allocation40_spill]] }
  0xec   : > { %v681_v37 = vmul.f32 %v7106_v21, %v509_v47  ;;  %v7107_v63 = vmov %v7106_v21  ;;  %v915_v0 = vmul.f32 %v7108_v44, %v509_v47  ;;  %v7109_v51 = vmov %v7108_v44  ;;  %v598_v14 = vpop.permute.xlu1 %597  ;;  %v590_v50 = vpop.permute.xlu0 %589  ;;  %s7132_s14 = sld [smem:[#allocation38_spill]] }
  0xed   : > { %v682_v19 = vmul.f32 %v7107_v63, %v510_v48  ;;  %v916_v62 = vmul.f32 %v7109_v51, %v510_v48  ;;  %v1149_v58 = vmul.f32 %v7110_v7, %v509_v47  ;;  %v7111_v18 = vmov %v7110_v7 }
  0xee   : > { %v1150_v53 = vmul.f32 %v7111_v18, %v510_v48  ;;  %v7112_v43 = vstv %s7105_s25  ;;  %v683_v17 = vadd.f32 %v681_v37, %v677_v10  ;;  %v917_v20 = vadd.f32 %v915_v0, %v911_v36  ;;  %s7135_s25 = sld [smem:[#allocation42_spill]] }
  0xef   : > { %v1383_v1 = vmul.f32 %v7112_v43, %v509_v47  ;;  %v7113_v6 = vmov %v7112_v43  ;;  %v684_v52 = vadd.f32 %v682_v19, %v678_v34  ;;  %v918_v22 = vadd.f32 %v916_v62, %v912_v38 }
  0xf0   : > { %v1384_v16 = vmul.f32 %v7113_v6, %v510_v48  ;;  %v1151_v57 = vadd.f32 %v1149_v58, %v1145_v13  ;;  %v1152_v25 = vadd.f32 %v1150_v53, %v1146_v56  ;;  %v691_v33 = vadd.f32 %v3822_v31, %v683_v17  ;;  %v634_v56 = vpop.permute.xlu1 %633  ;;  %v626_v59 = vpop.permute.xlu0 %625 }
  0xf1   : > { %v1385_v29 = vadd.f32 %v1383_v1, %v1379_v9  ;;  %v7117_v60 = vcombine.high %v3822_v31, %v3822_v31  ;;  %v925_v34 = vadd.f32 %v3825_v32, %v917_v20  ;;  %v7119_v13 = vcombine.high %v3825_v32, %v3825_v32 }
  0xf2   : > { %v1386_v30 = vadd.f32 %v1384_v16, %v1380_v35  ;;  %v1159_v9 = vadd.f32 %v3850_v40, %v1151_v57  ;;  %v7120_v35 = vcombine.high %v3850_v40, %v3850_v40  ;;  %v7121_v41 = vcombine.high %v3895_v55, %v3895_v55 }
  0xf3   : > { %v692_v10 = vadd.f32 %v7117_v60, %v684_v52  ;;  %v926_v42 = vadd.f32 %v7119_v13, %v918_v22  ;;  %v1393_v31 = vadd.f32 %v3895_v55, %v1385_v29  ;;  %v7122_v36 = vstv %s7114_s17  ;;  %s7136_s17 = sld [smem:[#allocation43_spill]] }
  0xf4   : > { %v1160_v46 = vadd.f32 %v7120_v35, %v1152_v25  ;;  %v1394_v24 = vadd.f32 %v7121_v41, %v1386_v30  ;;  %v695_v38 = vmul.f32 %v7122_v36, %v545_v54  ;;  %v7123_v32 = vmov %v7122_v36  ;;  %v382_v55 = vpop.permute.xlu1 %381  ;;  %v374_v43 = vpop.permute.xlu0 %373 }
  0xf5   : > { %v696_v47 = vmul.f32 %v7123_v32, %v546_v61  ;;  %v7124_v48 = vstv %s7115_s7  ;;  %v7126_v19 = vstv %s7116_s9  ;;  %v7128_v51 = vstv %s7118_s1  ;;  %s7139_s7 = sld [smem:[#allocation45_spill]]  ;;  %s7158_s9 = sld [smem:[#allocation52_spill]] }
  0xf6   : > { %v929_v21 = vmul.f32 %v7124_v48, %v545_v54  ;;  %v7125_v37 = vmov %v7124_v48  ;;  %v1163_v44 = vmul.f32 %v7126_v19, %v545_v54  ;;  %v7127_v40 = vmov %v7126_v19  ;;  %s7161_s1 = sld [smem:[#allocation53_spill]] }
  0xf7   : > { %v930_v63 = vmul.f32 %v7125_v37, %v546_v61  ;;  %v1164_v0 = vmul.f32 %v7127_v40, %v546_v61  ;;  %v1397_v62 = vmul.f32 %v7128_v51, %v545_v54  ;;  %v7129_v7 = vmov %v7128_v51 }
  0xf8   : > { %v1398_v58 = vmul.f32 %v7129_v7, %v546_v61  ;;  %v697_v18 = vadd.f32 %v695_v38, %v691_v33  ;;  %v698_v53 = vadd.f32 %v696_v47, %v692_v10  ;;  %v1165_v16 = vadd.f32 %v1163_v44, %v1159_v9 }
  0xf9   : > { %v1166_v17 = vadd.f32 %v1164_v0, %v1160_v46  ;;  %v1399_v52 = vadd.f32 %v1397_v62, %v1393_v31  ;;  %v581_v22 = vmul.f32 %v3877_v49, %v570_v5  ;;  %v582_v54 = vmul.f32 %v3940_v28, %v574_v45 }
  0xfa   : > { %v1400_v20 = vadd.f32 %v1398_v58, %v1394_v24  ;;  %v606_v61 = vsel %vm605_vm6, %v590_v50, %v598_v14  ;;  %v610_v57 = vsel %vm605_vm6, %v598_v14, %v590_v50  ;;  %v931_v25 = vadd.f32 %v929_v21, %v925_v34  ;;  %v420_v14 = vpop.permute.xlu1 %419  ;;  %v412_v50 = vpop.permute.xlu0 %411 }
  0xfb   : > { %v932_v29 = vadd.f32 %v930_v63, %v926_v42  ;;  %v617_v30 = vmul.f32 %v3922_v3, %v606_v61  ;;  %v618_v33 = vmul.f32 %v3993_v2, %v610_v57  ;;  %v7133_v60 = vstv %s3718_s16  ;;  %s7155_s16 = sld [smem:[#allocation51_spill]] }
  0xfc   : > { %v701_v5 = vmul.f32 %v7133_v60, %v581_v22  ;;  %v7134_v10 = vmov %v7133_v60  ;;  %v642_v45 = vsel %vm641_vm7, %v626_v59, %v634_v56  ;;  %v646_v9 = vsel %vm641_vm7, %v634_v56, %v626_v59 }
  0xfd   : > { %v702_v13 = vmul.f32 %v7134_v10, %v582_v54  ;;  %v7137_v34 = vstv %s7130_s22  ;;  %v7140_v31 = vstv %s7131_s30  ;;  %v7142_v56 = vstv %s7132_s14  ;;  %s7177_s22 = sld [smem:[#allocation57_spill]]  ;;  %s4342_s30 = sld [smem:[#allocation2 + $0x7f]] }
  0xfe   : > { %v1169_v42 = vmul.f32 %v7137_v34, %v581_v22  ;;  %v7138_v35 = vmov %v7137_v34  ;;  %v1403_v41 = vmul.f32 %v7140_v31, %v581_v22  ;;  %v7141_v24 = vmov %v7140_v31  ;;  %s4356_s14 = sld [smem:[#allocation2 + $0x5c]] }
  0xff   : > { %v1170_v46 = vmul.f32 %v7138_v35, %v582_v54  ;;  %v1404_v36 = vmul.f32 %v7141_v24, %v582_v54  ;;  %v703_v38 = vadd.f32 %v701_v5, %v697_v18  ;;  %v704_v32 = vadd.f32 %v702_v13, %v698_v53 }
 0x100   : > { %v935_v59 = vmul.f32 %v7142_v56, %v581_v22  ;;  %v7143_v47 = vmov %v7142_v56  ;;  %v1171_v21 = vadd.f32 %v1169_v42, %v1165_v16  ;;  %v1405_v63 = vadd.f32 %v1403_v41, %v1399_v52  ;;  %v456_v16 = vpop.permute.xlu1 %455 }
 0x101   : > { %v936_v48 = vmul.f32 %v7143_v47, %v582_v54  ;;  %v1172_v37 = vadd.f32 %v1170_v46, %v1166_v17  ;;  %v1406_v19 = vadd.f32 %v1404_v36, %v1400_v20  ;;  %v7144_v44 = vstv %s7135_s25  ;;  %v448_v17 = vpop.permute.xlu0 %447  ;;  %s4378_s25 = sld [smem:[#allocation2 + $0x3a]] }
 0x102   : > { %v707_v40 = vmul.f32 %v7144_v44, %v617_v30  ;;  %v7145_v0 = vmov %v7144_v44  ;;  %v7146_v62 = vstv %s7136_s17  ;;  %v7148_v57 = vstv %s7139_s7  ;;  %s4388_s17 = sld [smem:[#allocation2 + $0x15]]  ;;  %s4390_s7 = sld [smem:[#allocation2 + $0x39]] }
 0x103   : > { %v708_v51 = vmul.f32 %v7145_v0, %v618_v33  ;;  %v941_v7 = vmul.f32 %v7146_v62, %v617_v30  ;;  %v7147_v58 = vmov %v7146_v62  ;;  %v1175_v60 = vmul.f32 %v7148_v57, %v617_v30 }
 0x104   : > { %v942_v61 = vmul.f32 %v7147_v58, %v618_v33  ;;  %v7149_v18 = vmov %v7148_v57  ;;  %v7150_v5 = vstv %s7060_s28  ;;  %v937_v52 = vadd.f32 %v935_v59, %v931_v25  ;;  %s7152_s28 = sld [smem:[#allocation48_spill]]  ;;  %v492_v44 = vpop.permute.xlu1 %491 }
 0x105   : > { %v1176_v53 = vmul.f32 %v7149_v18, %v618_v33  ;;  %v1409_v22 = vmul.f32 %v7150_v5, %v617_v30  ;;  %v7151_v10 = vmov %v7150_v5  ;;  %v938_v20 = vadd.f32 %v936_v48, %v932_v29 }
 0x106   : > { %v1410_v54 = vmul.f32 %v7151_v10, %v618_v33  ;;  %v709_v13 = vadd.f32 %v707_v40, %v703_v38  ;;  %v710_v34 = vadd.f32 %v708_v51, %v704_v32  ;;  %v1177_v42 = vadd.f32 %v1175_v60, %v1171_v21  ;;  %v484_v40 = vpop.permute.xlu0 %483 }
 0x107   : > { %v1178_v35 = vadd.f32 %v1176_v53, %v1172_v37  ;;  %v1411_v46 = vadd.f32 %v1409_v22, %v1405_v63  ;;  %v653_v30 = vmul.f32 %v3953_v4, %v642_v45  ;;  %v654_v33 = vmul.f32 %v3997_v8, %v646_v9 }
 0x108   : > { %v1412_v31 = vadd.f32 %v1410_v54, %v1406_v19  ;;  %v391_v25 = vsel %vm389_vm2, %v374_v43, %v382_v55  ;;  %v395_v29 = vsel %vm389_vm2, %v382_v55, %v374_v43  ;;  %v943_v41 = vadd.f32 %v941_v7, %v937_v52  ;;  %7213 = sst [smem:[#allocation18_spill]] %s4390_s7  ;;  %s7233_s7 = sld [smem:[#allocation120_spill]] }
 0x109   : > { %v944_v24 = vadd.f32 %v942_v61, %v938_v20  ;;  %v403_v36 = vmul.f32 %v395_v29, %v3757_v12  ;;  %v404_v38 = vmul.f32 %v3797_v23, %v391_v25  ;;  %v7153_v32 = vstv %s7061_s27  ;;  %s7162_s27 = sld [smem:[#allocation54_spill]] }
 0x10a   : > { %v713_v56 = vmul.f32 %v7153_v32, %v653_v30  ;;  %v7154_v59 = vmov %v7153_v32  ;;  %v427_v9 = vsel %vm425_vm0, %v412_v50, %v420_v14  ;;  %v431_v47 = vsel %vm425_vm0, %v420_v14, %v412_v50 }
 0x10b   : > { %v714_v45 = vmul.f32 %v7154_v59, %v654_v33  ;;  %v7156_v55 = vstv %s3759_s21  ;;  %v7159_v12 = vstv %s7064_s3  ;;  %v7163_v14 = vstv %s7152_s28  ;;  %s7173_s21 = sld [smem:[#allocation58_spill]]  ;;  %s7174_s3 = sld [smem:[#allocation59_spill]] }
 0x10c   : > { %v1181_v43 = vmul.f32 %v7156_v55, %v653_v30  ;;  %v7157_v48 = vmov %v7156_v55  ;;  %v1415_v37 = vmul.f32 %v7159_v12, %v653_v30  ;;  %v7160_v63 = vmov %v7159_v12  ;;  %v7175_v12 = vld [vmem:[#allocation41_spill] sm:$0xff]  ;;  %s4402_s28 = sld [smem:[#allocation2 + $0x5e]] }
 0x10d   : > { %v1182_v21 = vmul.f32 %v7157_v48, %v654_v33  ;;  %v1416_v19 = vmul.f32 %v7160_v63, %v654_v33  ;;  %v715_v0 = vadd.f32 %v713_v56, %v709_v13  ;;  %v716_v51 = vadd.f32 %v714_v45, %v710_v34  ;;  %v528_v48 = vpop.permute.xlu1 %527 }
 0x10e   : > { %v947_v50 = vmul.f32 %v7163_v14, %v653_v30  ;;  %v7164_v62 = vmov %v7163_v14  ;;  %v1183_v58 = vadd.f32 %v1181_v43, %v1177_v42  ;;  %v1417_v57 = vadd.f32 %v1415_v37, %v1411_v46  ;;  %v7176_v37 = vld [vmem:[#allocation50_spill] sm:$0xff]  ;;  %v7179_v14 = vld [vmem:[#allocation55_spill] sm:$0xff] }
 0x10f   : > { %v948_v7 = vmul.f32 %v7164_v62, %v654_v33  ;;  %v1184_v61 = vadd.f32 %v1182_v21, %v1178_v35  ;;  %v1418_v60 = vadd.f32 %v1416_v19, %v1412_v31  ;;  %v7165_v18 = vstv %s7155_s16  ;;  %v520_v21 = vpop.permute.xlu0 %519  ;;  %s4404_s16 = sld [smem:[#allocation2 + $0x82]] }
 0x110   : > { %v719_v53 = vmul.f32 %v7165_v18, %v403_v36  ;;  %v7166_v5 = vmov %v7165_v18  ;;  %v7167_v10 = vstv %s7158_s9  ;;  %v7169_v25 = vstv %s7161_s1  ;;  %s7222_s9 = sld [smem:[#allocation16_spill]]  ;;  %s4460_s1 = sld [smem:[#allocation2 + $0x17]] }
 0x111   : > { %v720_v22 = vmul.f32 %v7166_v5, %v404_v38  ;;  %v953_v54 = vmul.f32 %v7167_v10, %v403_v36  ;;  %v7168_v52 = vmov %v7167_v10  ;;  %v1187_v29 = vmul.f32 %v7169_v25, %v403_v36 }
 0x112   : > { %v954_v20 = vmul.f32 %v7168_v52, %v404_v38  ;;  %v7170_v13 = vmov %v7169_v25  ;;  %v7171_v32 = vstv %s7162_s27  ;;  %v949_v42 = vadd.f32 %v947_v50, %v943_v41  ;;  %s4462_s27 = sld [smem:[#allocation2 + $0x3b]] }
 0x113   : > { %v1188_v34 = vmul.f32 %v7170_v13, %v404_v38  ;;  %v1421_v30 = vmul.f32 %v7171_v32, %v403_v36  ;;  %v7172_v56 = vmov %v7171_v32  ;;  %v950_v35 = vadd.f32 %v948_v7, %v944_v24  ;;  %v4292_v32 = vpop.permute.xlu1 %563 }
 0x114   : > { %v1422_v33 = vmul.f32 %v7172_v56, %v404_v38  ;;  %v721_v46 = vadd.f32 %v719_v53, %v715_v0  ;;  %v722_v31 = vadd.f32 %v720_v22, %v716_v51  ;;  %v1189_v59 = vadd.f32 %v1187_v29, %v1183_v58  ;;  %v7178_v0 = vld [vmem:[#allocation44_spill] sm:$0xff] }
 0x115   : > { %v1190_v45 = vadd.f32 %v1188_v34, %v1184_v61  ;;  %v1423_v55 = vadd.f32 %v1421_v30, %v1417_v57  ;;  %v439_v36 = vmul.f32 %v7175_v12, %v431_v47  ;;  %v440_v38 = vmul.f32 %v7176_v37, %v427_v9  ;;  %v4294_v30 = vpop.permute.xlu0 %555 }
 0x116   : > { %v1424_v43 = vadd.f32 %v1422_v33, %v1418_v60  ;;  %v463_v41 = vsel %vm461_vm1, %v448_v17, %v456_v16  ;;  %v467_v24 = vsel %vm461_vm1, %v456_v16, %v448_v17  ;;  %v955_v63 = vadd.f32 %v953_v54, %v949_v42  ;;  %7223 = sst [smem:[#allocation19_spill]] %s4460_s1  ;;  %s4562_s1 = sld [smem:[#allocation2 + $0x63]] }
 0x117   : > { %v956_v19 = vadd.f32 %v954_v20, %v950_v35  ;;  %v475_v51 = vmul.f32 %v7178_v0, %v467_v24  ;;  %v476_v50 = vmul.f32 %v7179_v14, %v463_v41  ;;  %v7180_v62 = vstv %s3799_s0  ;;  %s4330_s0 = sld [smem:[#allocation2 + $0x37]] }
 0x118   : > { %v725_v7 = vmul.f32 %v7180_v62, %v439_v36  ;;  %v7181_v58 = vmov %v7180_v62  ;;  %v499_v9 = vsel %vm497_vm3, %v484_v40, %v492_v44  ;;  %v503_v61 = vsel %vm497_vm3, %v492_v44, %v484_v40  ;;  %7224 = sst [smem:[#allocation20_spill]] %s4462_s27  ;;  %s4544_s27 = sld [smem:[#allocation2 + $0x85]] }
 0x119   : > { %v726_v47 = vmul.f32 %v7181_v58, %v440_v38  ;;  %v7182_v57 = vstv %s7173_s21  ;;  %v7184_v18 = vstv %s7174_s3  ;;  %v7186_v52 = vstv %s7177_s22  ;;  %s4481_s21 = sld [smem:[#allocation2 + $0x18]]  ;;  %s4483_s3 = sld [smem:[#allocation2 + $0x3c]] }
 0x11a   : > { %v1193_v16 = vmul.f32 %v7182_v57, %v439_v36  ;;  %v7183_v17 = vmov %v7182_v57  ;;  %v1427_v53 = vmul.f32 %v7184_v18, %v439_v36  ;;  %v7185_v5 = vmov %v7184_v18  ;;  %s4503_s22 = sld [smem:[#allocation2 + $0x60]] }
 0x11b   : > { %v1194_v60 = vmul.f32 %v7183_v17, %v440_v38  ;;  %v1428_v22 = vmul.f32 %v7185_v5, %v440_v38  ;;  %v727_v10 = vadd.f32 %v725_v7, %v721_v46  ;;  %v728_v54 = vadd.f32 %v726_v47, %v722_v31  ;;  %v592_v5 = vpop.permute.xlu0 %591 }
 0x11c   : > { %v959_v20 = vmul.f32 %v7186_v52, %v439_v36  ;;  %v7187_v44 = vmov %v7186_v52  ;;  %v1195_v25 = vadd.f32 %v1193_v16, %v1189_v59  ;;  %v1429_v13 = vadd.f32 %v1427_v53, %v1423_v55 }
 0x11d   : > { %v960_v40 = vmul.f32 %v7187_v44, %v440_v38  ;;  %v1196_v29 = vadd.f32 %v1194_v60, %v1190_v45  ;;  %v1430_v34 = vadd.f32 %v1428_v22, %v1424_v43  ;;  %v7188_v56 = vstv %s3852_s13  ;;  %s4320_s13 = sld [smem:[#allocation2 + $0x7e]] }
 0x11e   : > { %v731_v33 = vmul.f32 %v7188_v56, %v475_v51  ;;  %v7189_v42 = vmov %v7188_v56  ;;  %v7190_v46 = vstv %s7072_s15  ;;  %v7192_v24 = vstv %s7073_s5  ;;  %s4328_s5 = sld [smem:[#allocation2 + $0x13]] }
 0x11f   : > { %v732_v35 = vmul.f32 %v7189_v42, %v476_v50  ;;  %v965_v12 = vmul.f32 %v7190_v46, %v475_v51  ;;  %v7191_v31 = vmov %v7190_v46  ;;  %v1199_v36 = vmul.f32 %v7192_v24, %v475_v51  ;;  %s4340_s15 = sld [smem:[#allocation2 + $0x5b]]  ;;  %7225 = sst [smem:[#allocation21_spill]] %s4483_s3 }
 0x120   : > { %v966_v41 = vmul.f32 %v7191_v31, %v476_v50  ;;  %v7193_v0 = vmov %v7192_v24  ;;  %v7194_v59 = vstv %s7074_s23  ;;  %v961_v62 = vadd.f32 %v959_v20, %v955_v63  ;;  %s4318_s23 = sld [smem:[#allocation2 + $0x5a]]  ;;  %s7241_s3 = sld [smem:[#allocation49_spill]] }
 0x121   : > { %v1200_v38 = vmul.f32 %v7193_v0, %v476_v50  ;;  %v1433_v45 = vmul.f32 %v7194_v59, %v475_v51  ;;  %v7195_v55 = vmov %v7194_v59  ;;  %v962_v7 = vadd.f32 %v960_v40, %v956_v19  ;;  %v7205_v0 = vld [vmem:[#allocation66_spill] sm:$0xff] }
 0x122   : > { %v1434_v43 = vmul.f32 %v7195_v55, %v476_v50  ;;  %v733_v58 = vadd.f32 %v731_v33, %v727_v10  ;;  %v734_v47 = vadd.f32 %v732_v35, %v728_v54  ;;  %v1201_v57 = vadd.f32 %v1199_v36, %v1195_v25  ;;  %v7207_v55 = vld [vmem:[#allocation67_spill] sm:$0xff] }
 0x123   : > { %v1202_v16 = vadd.f32 %v1200_v38, %v1196_v29  ;;  %v1435_v17 = vadd.f32 %v1433_v45, %v1429_v13  ;;  %v511_v18 = vmul.f32 %v3771_v15, %v503_v61  ;;  %v512_v53 = vmul.f32 %v3807_v26, %v499_v9  ;;  %v600_v61 = vpop.permute.xlu1 %599 }
 0x124   : > { %v1436_v60 = vadd.f32 %v1434_v43, %v1430_v34  ;;  %v535_v51 = vsel %vm533_vm4, %v520_v21, %v528_v48  ;;  %v539_v63 = vsel %vm533_vm4, %v528_v48, %v520_v21  ;;  %v967_v19 = vadd.f32 %v965_v12, %v961_v62 }
 0x125   : > { %v968_v50 = vadd.f32 %v966_v41, %v962_v7  ;;  %v4323_v15 = vmul.f32 %v3812_v27, %v535_v51  ;;  %v4326_v9 = vmul.f32 %v3847_v39, %v539_v63  ;;  %v7196_v48 = vstv %s7077_s8  ;;  %s4352_s8 = sld [smem:[#allocation2 + $0x14]]  ;;  %v628_v63 = vpop.permute.xlu0 %627 }
 0x126   : > { %v737_v21 = vmul.f32 %v7196_v48, %v511_v18  ;;  %v7197_v22 = vmov %v7196_v48  ;;  %v7198_v54 = vstv %s3872_s11  ;;  %v7200_v27 = vstv %s3883_s24  ;;  %s4354_s11 = sld [smem:[#allocation2 + $0x38]] }
 0x127   : > { %v738_v10 = vmul.f32 %v7197_v22, %v512_v53  ;;  %v971_v52 = vmul.f32 %v7198_v54, %v511_v18  ;;  %v7199_v20 = vmov %v7198_v54  ;;  %v1205_v40 = vmul.f32 %v7200_v27, %v511_v18  ;;  %s4358_s24 = sld [smem:[#allocation2 + $0x80]]  ;;  %v636_v51 = vpop.permute.xlu1 %635 }
 0x128   : > { %v972_v44 = vmul.f32 %v7199_v20, %v512_v53  ;;  %v7201_v25 = vmov %v7200_v27  ;;  %v7202_v13 = vstv %s3885_s20  ;;  %v739_v42 = vadd.f32 %v737_v21, %v733_v58  ;;  %s4376_s20 = sld [smem:[#allocation2 + $0x16]]  ;;  %v7209_v58 = vld [vmem:[#allocation68_spill] sm:$0xff] }
 0x129   : > { %v1206_v29 = vmul.f32 %v7201_v25, %v512_v53  ;;  %v1439_v34 = vmul.f32 %v7202_v13, %v511_v18  ;;  %v7203_v56 = vmov %v7202_v13  ;;  %v740_v35 = vadd.f32 %v738_v10, %v734_v47 }
 0x12a   : > { %v1440_v33 = vmul.f32 %v7203_v56, %v512_v53  ;;  %v973_v46 = vadd.f32 %v971_v52, %v967_v19  ;;  %v974_v12 = vadd.f32 %v972_v44, %v968_v50  ;;  %v1207_v31 = vadd.f32 %v1205_v40, %v1201_v57 }
 0x12b   : > { %v1208_v41 = vadd.f32 %v1206_v29, %v1202_v16  ;;  %v1441_v24 = vadd.f32 %v1439_v34, %v1435_v17  ;;  %v4361_v38 = vadd.f32 %v7205_v0, %v739_v42  ;;  %v7206_v59 = vcombine.high %v7205_v0, %v7205_v0  ;;  %v7211_v17 = vld [vmem:[#allocation69_spill] sm:$0xff] }
 0x12c   : > { %7204 = sst [smem:[#allocation17_spill]] %s4354_s11  ;;  %v1442_v36 = vadd.f32 %v1440_v33, %v1436_v60  ;;  %v4369_v43 = vadd.f32 %v7207_v55, %v973_v46  ;;  %v7208_v62 = vcombine.high %v7207_v55, %v7207_v55  ;;  %v1215_v47 = vadd.f32 %v7209_v58, %v1207_v31  ;;  %v384_v31 = vpop.permute.xlu1 %383  ;;  %s4570_s11 = sld [smem:[#allocation2 + $0x64]] }
 0x12d   : > { %v4366_v45 = vadd.f32 %v7206_v59, %v740_v35  ;;  %v7210_v57 = vcombine.high %v7209_v58, %v7209_v58  ;;  %v1449_v60 = vadd.f32 %v7211_v17, %v1441_v24  ;;  %v7212_v18 = vcombine.high %v7211_v17, %v7211_v17 }
 0x12e   : > { %v4374_v7 = vadd.f32 %v7208_v62, %v974_v12  ;;  %v571_v19 = vsel %vm569_vm5, %v4294_v30, %v4292_v32  ;;  %v575_v50 = vsel %vm569_vm5, %v4292_v32, %v4294_v30  ;;  %v1242_v48 = vstv %s4318_s23  ;;  %s5060_s23 = sld [smem:[#allocation2 + $0x69]] }
 0x12f   : > { %v1216_v16 = vadd.f32 %v7210_v57, %v1208_v41  ;;  %v1450_v53 = vadd.f32 %v7212_v18, %v1442_v36  ;;  %v1476_v21 = vstv %s4320_s13  ;;  %v7214_v22 = vstv %s3907_s12  ;;  %s4432_s12 = sld [smem:[#allocation2 + $0x5d]]  ;;  %s4970_s13 = sld [smem:[#allocation2 + $0x66]] }
 0x130   : > { %v1219_v10 = vmul.f32 %v7214_v22, %v4323_v15  ;;  %v7215_v54 = vmov %v7214_v22  ;;  %v7216_v20 = vstv %s3909_s19  ;;  %v1248_v30 = vstv %s4340_s15  ;;  %s4434_s19 = sld [smem:[#allocation2 + $0x81]]  ;;  %s7245_s15 = sld [smem:[#allocation63_spill]] }
 0x131   : > { %v1220_v52 = vmul.f32 %v7215_v54, %v4326_v9  ;;  %v1453_v44 = vmul.f32 %v7216_v20, %v4323_v15  ;;  %v7217_v27 = vmov %v7216_v20  ;;  %v1482_v29 = vstv %s4342_s30  ;;  %s7248_s30 = sld [smem:[#allocation64_spill]] }
 0x132   : > { %v1454_v40 = vmul.f32 %v7217_v27, %v4326_v9  ;;  %v1221_v13 = vadd.f32 %v1219_v10, %v1215_v47  ;;  %v4423_v42 = vmul.f32 %v3877_v49, %v571_v19  ;;  %v4426_v35 = vmul.f32 %v3940_v28, %v575_v50  ;;  %v376_v49 = vpop.permute.xlu0 %375  ;;  %v3316_v27 = vld [vmem:[%s7222_s9 + $0x10] sm:$0x77]  ;;  %s4560_s9 = sld [smem:[#allocation2 + $0x86]] }
 0x133   : > { %v1222_v34 = vadd.f32 %v1220_v52, %v1216_v16  ;;  %v1455_v56 = vadd.f32 %v1453_v44, %v1449_v60  ;;  %v607_v46 = vsel %vm605_vm6, %v592_v5, %v600_v61  ;;  %v611_v12 = vsel %vm605_vm6, %v600_v61, %v592_v5 }
 0x134   : > { %v1456_v33 = vadd.f32 %v1454_v40, %v1450_v53  ;;  %v1254_v36 = vstv %s4356_s14  ;;  %v1488_v0 = vstv %s4358_s24  ;;  %v4441_v59 = vmul.f32 %v3922_v3, %v607_v46  ;;  %s7251_s14 = sld [smem:[#allocation65_spill]]  ;;  %s5019_s24 = sld [smem:[#allocation2 + $0x1f]] }
 0x135   : > { %v4444_v61 = vmul.f32 %v3993_v2, %v611_v12  ;;  %v798_v5 = vstv %s4376_s20  ;;  %v1032_v55 = vstv %s4378_s25  ;;  %v7218_v62 = vstv %s3928_s29  ;;  %s4468_s29 = sld [smem:[#allocation2 + $0x5f]]  ;;  %s7230_s20 = sld [smem:[#allocation61_spill]] }
 0x136   : > { %v1225_v58 = vmul.f32 %v7218_v62, %v4423_v42  ;;  %v7219_v47 = vmov %v7218_v62  ;;  %v7220_v16 = vstv %s3930_s26  ;;  %v1266_v19 = vstv %s4402_s28  ;;  %s4470_s26 = sld [smem:[#allocation2 + $0x83]]  ;;  %s7231_s25 = sld [smem:[#allocation62_spill]] }
 0x137   : > { %v1226_v57 = vmul.f32 %v7219_v47, %v4426_v35  ;;  %v1459_v17 = vmul.f32 %v7220_v16, %v4423_v42  ;;  %v7221_v60 = vmov %v7220_v16  ;;  %v1500_v50 = vstv %s4404_s16  ;;  %s4519_s28 = sld [smem:[#allocation2 + $0x3d]]  ;;  %s4521_s16 = sld [smem:[#allocation2 + $0x61]] }
 0x138   : > { %v1460_v18 = vmul.f32 %v7221_v60, %v4426_v35  ;;  %v1227_v22 = vadd.f32 %v1225_v58, %v1221_v13  ;;  %v643_v20 = vsel %vm641_vm7, %v628_v63, %v636_v51  ;;  %v647_v44 = vsel %vm641_vm7, %v636_v51, %v628_v63  ;;  %v414_v58 = vpop.permute.xlu0 %413 }
 0x139   : > { %v1228_v10 = vadd.f32 %v1226_v57, %v1222_v34  ;;  %v1461_v54 = vadd.f32 %v1459_v17, %v1455_v56  ;;  %v4477_v40 = vmul.f32 %v3316_v27, %v798_v5  ;;  %v4479_v13 = vmul.f32 %v3316_v27, %v1032_v55  ;;  %v422_v5 = vpop.permute.xlu1 %421 }
 0x13a   : > { %v1462_v52 = vadd.f32 %v1460_v18, %v1456_v33  ;;  %v7226_v34 = vstv %s3963_s10  ;;  %v7228_v12 = vstv %s3965_s2  ;;  %v1260_v55 = vstv %s4432_s12  ;;  %s4505_s10 = sld [smem:[#allocation2 + $0x84]]  ;;  %s4507_s2 = sld [smem:[#allocation2 + $0x19]] }
 0x13b   : > { %v1231_v56 = vmul.f32 %v7226_v34, %v4441_v59  ;;  %v7227_v33 = vmov %v7226_v34  ;;  %v1465_v62 = vmul.f32 %v7228_v12, %v4441_v59  ;;  %v7229_v51 = vmov %v7228_v12  ;;  %s7257_s12 = sld [smem:[#allocation60_spill]] }
 0x13c   : > { %v1232_v46 = vmul.f32 %v7227_v33, %v4444_v61  ;;  %v1466_v63 = vmul.f32 %v7229_v51, %v4444_v61  ;;  %v1494_v47 = vstv %s4434_s19  ;;  %v4499_v57 = vmul.f32 %v3316_v27, %v1266_v19  ;;  %s5077_s19 = sld [smem:[#allocation2 + $0x20]] }
 0x13d   : > { %v4501_v16 = vmul.f32 %v3316_v27, %v1500_v50  ;;  %v1233_v17 = vadd.f32 %v1231_v56, %v1227_v22  ;;  %v1467_v18 = vadd.f32 %v1465_v62, %v1461_v54  ;;  %v4510_v33 = vmul.f32 %v3953_v4, %v643_v20  ;;  %7232 = sst [smem:[#allocation23_spill]] %s4519_s28  ;;  %v450_v54 = vpop.permute.xlu0 %449  ;;  %s7240_s28 = sld [smem:[#allocation47_spill]] }
 0x13e   : > { %v1234_v60 = vadd.f32 %v1232_v46, %v1228_v10  ;;  %v1468_v34 = vadd.f32 %v1466_v63, %v1462_v52  ;;  %v4513_v19 = vmul.f32 %v3997_v8, %v647_v44  ;;  %v392_v50 = vsel %vm389_vm2, %v376_v49, %v384_v31  ;;  %v4532_v52 = vld [vmem:[%s7233_s7] sm:$0x77]  ;;  %v458_v10 = vpop.permute.xlu1 %457 }
 0x13f   : > { %v396_v27 = vsel %vm389_vm2, %v384_v31, %v376_v49  ;;  %v4538_v49 = vmul.f32 %v3797_v23, %v392_v50  ;;  %v1269_v20 = vcombine.high %v4499_v57, %v4499_v57  ;;  %v7234_v56 = vstv %s7230_s20  ;;  %s7238_s20 = sld [smem:[#allocation46_spill]] }
 0x140   : > { %v4535_v31 = vmul.f32 %v4532_v52, %v396_v27  ;;  %v1237_v46 = vmul.f32 %v7234_v56, %v4510_v33  ;;  %v7235_v12 = vmov %v7234_v56  ;;  %v7236_v51 = vstv %s7231_s25  ;;  %s4568_s25 = sld [smem:[#allocation2 + $0x87]] }
 0x141   : > { %v1238_v62 = vmul.f32 %v7235_v12, %v4513_v19  ;;  %v1471_v63 = vmul.f32 %v7236_v51, %v4510_v33  ;;  %v7237_v50 = vmov %v7236_v51  ;;  %v428_v3 = vsel %vm425_vm0, %v414_v58, %v422_v5  ;;  %v486_v12 = vpop.permute.xlu0 %485 }
 0x142   : > { %v1472_v27 = vmul.f32 %v7237_v50, %v4513_v19  ;;  %v1239_v50 = vadd.f32 %v1237_v46, %v1233_v17  ;;  %v432_v41 = vsel %vm425_vm0, %v422_v5, %v414_v58  ;;  %v1243_v51 = vmul.f32 %v1242_v48, %v4535_v31  ;;  %v494_v32 = vpop.permute.xlu1 %493 }
 0x143   : > { %v1240_v4 = vadd.f32 %v1238_v62, %v1234_v60  ;;  %v1473_v53 = vadd.f32 %v1471_v63, %v1467_v18  ;;  %v1244_v25 = vmul.f32 %v1242_v48, %v4538_v49  ;;  %v1477_v17 = vmul.f32 %v1476_v21, %v4535_v31 }
 0x144   : > { %v1474_v24 = vadd.f32 %v1472_v27, %v1468_v34  ;;  %v1478_v60 = vmul.f32 %v1476_v21, %v4538_v49  ;;  %v1245_v62 = vadd.f32 %v1243_v51, %v1239_v50  ;;  %v4599_v21 = vld [vmem:[%s7233_s7 + $0x8] sm:$0x77]  ;;  %v7243_v50 = vstv %s7240_s28  ;;  %s7255_s28 = sld [smem:[#allocation36_spill]] }
 0x145   : > { %v7239_v18 = vstv %s7238_s20  ;;  %v1246_v63 = vadd.f32 %v1244_v25, %v1240_v4  ;;  %v1479_v27 = vadd.f32 %v1477_v17, %v1473_v53  ;;  %v4605_v25 = vmul.f32 %v7176_v37, %v428_v3  ;;  %v522_v56 = vpop.permute.xlu0 %521 }
 0x146   : > { %v751_v34 = vmul.f32 %v7239_v18, %v4323_v15  ;;  %v1480_v48 = vadd.f32 %v1478_v60, %v1474_v24  ;;  %v4602_v18 = vmul.f32 %v4599_v21, %v432_v41  ;;  %v464_v24 = vsel %vm461_vm1, %v450_v54, %v458_v10  ;;  %v4618_v41 = vld [vmem:[%s7233_s7 + $0x10] sm:$0x77]  ;;  %v530_v22 = vpop.permute.xlu1 %529 }
 0x147   : > { %v468_v53 = vsel %vm461_vm1, %v458_v10, %v450_v54  ;;  %v4624_v60 = vmul.f32 %v7179_v14, %v464_v24  ;;  %v1250_v5 = vmul.f32 %v1248_v30, %v4605_v25  ;;  %v7242_v24 = vstv %s7238_s20  ;;  %s7317_s20 = sld [smem:[#allocation16_spill]] }
 0x148   : > { %v4621_v3 = vmul.f32 %v4618_v41, %v468_v53  ;;  %v1249_v54 = vmul.f32 %v1248_v30, %v4602_v18  ;;  %v1483_v17 = vmul.f32 %v1482_v29, %v4602_v18  ;;  %v1484_v53 = vmul.f32 %v1482_v29, %v4605_v25 }
 0x149   : > { %v752_v58 = vmul.f32 %v7242_v24, %v4326_v9  ;;  %v753_v10 = vadd.f32 %v751_v34, %v4361_v38  ;;  %v985_v51 = vmul.f32 %v7243_v50, %v4323_v15  ;;  %v7244_v30 = vmov %v7243_v50 }
 0x14a   : > { %v986_v4 = vmul.f32 %v7244_v30, %v4326_v9  ;;  %v1251_v46 = vadd.f32 %v1249_v54, %v1245_v62  ;;  %v1252_v6 = vadd.f32 %v1250_v5, %v1246_v63  ;;  %v1485_v1 = vadd.f32 %v1483_v17, %v1479_v27 }
 0x14b   : > { %v1486_v29 = vadd.f32 %v1484_v53, %v1480_v48  ;;  %v7246_v24 = vstv %s7241_s3  ;;  %v500_v15 = vsel %vm497_vm3, %v486_v12, %v494_v32  ;;  %v504_v9 = vsel %vm497_vm3, %v494_v32, %v486_v12  ;;  %s5034_s3 = sld [smem:[#allocation2 + $0x68]] }
 0x14c   : > { %v757_v44 = vmul.f32 %v7246_v24, %v4423_v42  ;;  %v7247_v38 = vmov %v7246_v24  ;;  %v1255_v5 = vmul.f32 %v1254_v36, %v4621_v3  ;;  %v1256_v62 = vmul.f32 %v1254_v36, %v4624_v60 }
 0x14d   : > { %v758_v34 = vmul.f32 %v7247_v38, %v4426_v35  ;;  %v1489_v63 = vmul.f32 %v1488_v0, %v4621_v3  ;;  %v1490_v27 = vmul.f32 %v1488_v0, %v4624_v60  ;;  %v754_v48 = vadd.f32 %v752_v58, %v4366_v45 }
 0x14e   : > { %v987_v50 = vadd.f32 %v985_v51, %v4369_v43  ;;  %v7249_v17 = vstv %s7245_s15  ;;  %v1257_v53 = vadd.f32 %v1255_v5, %v1251_v46  ;;  %v1258_v30 = vadd.f32 %v1256_v62, %v1252_v6  ;;  %v4687_v43 = vld [vmem:[%s7233_s7 + $0x18] sm:$0x77]  ;;  %v566_v46 = vpop.permute.xlu1 %565  ;;  %s4974_s15 = sld [smem:[#allocation2 + $0x1d]] }
 0x14f   : > { %v991_v54 = vmul.f32 %v7249_v17, %v4423_v42  ;;  %v7250_v32 = vmov %v7249_v17  ;;  %v1491_v36 = vadd.f32 %v1489_v63, %v1485_v1  ;;  %v1492_v24 = vadd.f32 %v1490_v27, %v1486_v29 }
 0x150   : > { %v992_v12 = vmul.f32 %v7250_v32, %v4426_v35  ;;  %v988_v38 = vadd.f32 %v986_v4, %v4374_v7  ;;  %v7252_v0 = vstv %s7248_s30  ;;  %v4690_v6 = vmul.f32 %v4687_v43, %v504_v9  ;;  %v558_v4 = vpop.permute.xlu0 %557  ;;  %s5007_s30 = sld [smem:[#allocation2 + $0x1e]] }
 0x151   : > { %v763_v45 = vmul.f32 %v7252_v0, %v4441_v59  ;;  %v4693_v1 = vmul.f32 %v3807_v26, %v500_v15  ;;  %v759_v42 = vadd.f32 %v757_v44, %v753_v10  ;;  %v760_v7 = vadd.f32 %v758_v34, %v754_v48 }
 0x152   : > { %v536_v35 = vsel %vm533_vm4, %v522_v56, %v530_v22  ;;  %v540_v58 = vsel %vm533_vm4, %v530_v22, %v522_v56  ;;  %v993_v51 = vadd.f32 %v991_v54, %v987_v50  ;;  %v994_v29 = vadd.f32 %v992_v12, %v988_v38 }
 0x153   : > { %v7253_v5 = vmov %v7252_v0  ;;  %v7254_v62 = vstv %s7251_s14  ;;  %v1261_v44 = vmul.f32 %v1260_v55, %v4690_v6  ;;  %v1262_v10 = vmul.f32 %v1260_v55, %v4693_v1  ;;  %s5009_s14 = sld [smem:[#allocation2 + $0x8b]] }
 0x154   : > { %v764_v9 = vmul.f32 %v7253_v5, %v4444_v61  ;;  %v997_v15 = vmul.f32 %v7254_v62, %v4441_v59  ;;  %v1495_v22 = vmul.f32 %v1494_v47, %v4690_v6  ;;  %v1496_v56 = vmul.f32 %v1494_v47, %v4693_v1  ;;  %v4723_v59 = vld [vmem:[%s7233_s7 + $0x28] sm:$0x77] }
 0x155   : > { %v765_v34 = vadd.f32 %v763_v45, %v759_v42  ;;  %v7256_v63 = vmov %v7254_v62  ;;  %v4726_v48 = vmul.f32 %v4723_v59, %v536_v35  ;;  %v4729_v55 = vmul.f32 %v3847_v39, %v540_v58  ;;  %v594_v35 = vpop.permute.xlu0 %593 }
 0x156   : > { %v998_v27 = vmul.f32 %v7256_v63, %v4444_v61  ;;  %v1263_v50 = vadd.f32 %v1261_v44, %v1257_v53  ;;  %v1264_v17 = vadd.f32 %v1262_v10, %v1258_v30  ;;  %v1497_v47 = vadd.f32 %v1495_v22, %v1491_v36 }
 0x157   : > { %v1498_v54 = vadd.f32 %v1496_v56, %v1492_v24  ;;  %v766_v61 = vadd.f32 %v764_v9, %v760_v7  ;;  %v999_v32 = vadd.f32 %v997_v15, %v993_v51  ;;  %v7258_v12 = vstv %s7255_s28  ;;  %v602_v7 = vpop.permute.xlu1 %601  ;;  %s5038_s28 = sld [smem:[#allocation2 + $0x8c]] }
 0x158   : > { %v769_v38 = vmul.f32 %v7258_v12, %v4510_v33  ;;  %v7259_v0 = vmov %v7258_v12  ;;  %v1271_v42 = vadd.f32 %v4499_v57, %v1263_v50  ;;  %v1272_v53 = vadd.f32 %v1269_v20, %v1264_v17 }
 0x159   : > { %v770_v45 = vmul.f32 %v7259_v0, %v4513_v19  ;;  %v1505_v30 = vadd.f32 %v4501_v16, %v1497_v47  ;;  %v7260_v36 = vcombine.high %v4501_v16, %v4501_v16  ;;  %v7261_v58 = vstv %s7257_s12  ;;  %s5062_s12 = sld [smem:[#allocation2 + $0x8d]] }
 0x15a   : > { %v1003_v51 = vmul.f32 %v7261_v58, %v4510_v33  ;;  %v7262_v5 = vmov %v7261_v58  ;;  %v572_v57 = vsel %vm569_vm5, %v558_v4, %v566_v46  ;;  %v576_v20 = vsel %vm569_vm5, %v566_v46, %v558_v4 }
 0x15b   : > { %v1506_v24 = vadd.f32 %v7260_v36, %v1498_v54  ;;  %v1004_v9 = vmul.f32 %v7262_v5, %v4513_v19  ;;  %v7263_v62 = vstv %s4468_s29  ;;  %v7265_v10 = vstv %s4470_s26  ;;  %v4776_v36 = vld [vmem:[%s7233_s7 + $0x30] sm:$0x77]  ;;  %v638_v5 = vpop.permute.xlu1 %637  ;;  %s5083_s29 = sld [smem:[#allocation2 + $0x21]]  ;;  %s5091_s26 = sld [smem:[#allocation2 + $0x3f]] }
 0x15c   : > { %v1275_v15 = vmul.f32 %v7263_v62, %v4726_v48  ;;  %v7264_v16 = vmov %v7263_v62  ;;  %v1509_v22 = vmul.f32 %v7265_v10, %v4726_v48  ;;  %v7266_v33 = vmov %v7265_v10 }
 0x15d   : > { %v1276_v44 = vmul.f32 %v7264_v16, %v4729_v55  ;;  %v1510_v56 = vmul.f32 %v7266_v33, %v4729_v55  ;;  %v1000_v63 = vadd.f32 %v998_v27, %v994_v29  ;;  %v771_v19 = vadd.f32 %v769_v38, %v765_v34 }
 0x15e   : > { %v7267_v50 = vstv %s4129_s6  ;;  %v1277_v47 = vadd.f32 %v1275_v15, %v1271_v42  ;;  %v1511_v12 = vadd.f32 %v1509_v22, %v1505_v30  ;;  %v4779_v29 = vmul.f32 %v4776_v36, %v572_v57  ;;  %v630_v57 = vpop.permute.xlu0 %629  ;;  %s5089_s6 = sld [smem:[#allocation2 + $0x6a]] }
 0x15f   : > { %v775_v17 = vmul.f32 %v7267_v50, %v4535_v31  ;;  %v7268_v46 = vmov %v7267_v50  ;;  %v1278_v54 = vadd.f32 %v1276_v44, %v1272_v53  ;;  %v1512_v0 = vadd.f32 %v1510_v56, %v1506_v24 }
 0x160   : > { %v776_v4 = vmul.f32 %v7268_v46, %v4538_v49  ;;  %v4782_v34 = vmul.f32 %v3940_v28, %v576_v20  ;;  %v608_v27 = vsel %vm605_vm6, %v594_v35, %v602_v7  ;;  %v612_v38 = vsel %vm605_vm6, %v602_v7, %v594_v35  ;;  %v4800_v7 = vld [vmem:[%s7233_s7 + $0x38] sm:$0x77] }
 0x161   : > { %v772_v42 = vadd.f32 %v770_v45, %v766_v61  ;;  %v1005_v53 = vadd.f32 %v1003_v51, %v999_v32  ;;  %v1006_v30 = vadd.f32 %v1004_v9, %v1000_v63  ;;  %v7269_v24 = vstv %s4131_s4  ;;  %s7318_s4 = sld [smem:[#allocation23_spill]] }
 0x162   : > { %v1009_v58 = vmul.f32 %v7269_v24, %v4535_v31  ;;  %v7270_v20 = vstv %s4328_s5  ;;  %v4803_v61 = vmul.f32 %v4800_v7, %v608_v27  ;;  %v4806_v32 = vmul.f32 %v3993_v2, %v612_v38  ;;  %s4820_s5 = sld [smem:[#allocation2 + $0x88]] }
 0x163   : > { %v781_v62 = vmul.f32 %v7270_v20, %v4602_v18  ;;  %v7271_v15 = vmov %v7270_v20  ;;  %v7272_v31 = vstv %s4503_s22  ;;  %v7274_v9 = vstv %s4505_s10  ;;  %s4883_s22 = sld [smem:[#allocation2 + $0x3e]] }
 0x164   : > { %v782_v16 = vmul.f32 %v7271_v15, %v4605_v25  ;;  %v1281_v45 = vmul.f32 %v7272_v31, %v4779_v29  ;;  %v7273_v35 = vmov %v7272_v31  ;;  %v1515_v44 = vmul.f32 %v7274_v9, %v4779_v29  ;;  %s7293_s10 = sld [smem:[#allocation18_spill]] }
 0x165   : > { %v1282_v51 = vmul.f32 %v7273_v35, %v4782_v34  ;;  %v7275_v10 = vmov %v7274_v9  ;;  %v777_v33 = vadd.f32 %v775_v17, %v771_v19  ;;  %v778_v56 = vadd.f32 %v776_v4, %v772_v42 }
 0x166   : > { %v1516_v22 = vmul.f32 %v7275_v10, %v4782_v34  ;;  %v7276_v63 = vmov %v7269_v24  ;;  %v7277_v46 = vstv %s4330_s0  ;;  %v1283_v38 = vadd.f32 %v1281_v45, %v1277_v47 }
 0x167   : > { %v1010_v50 = vmul.f32 %v7276_v63, %v4538_v49  ;;  %v1015_v27 = vmul.f32 %v7277_v46, %v4602_v18  ;;  %v1284_v24 = vadd.f32 %v1282_v51, %v1278_v54  ;;  %v1517_v20 = vadd.f32 %v1515_v44, %v1511_v12 }
 0x168   : > { %v1518_v15 = vadd.f32 %v1516_v22, %v1512_v0  ;;  %v783_v31 = vadd.f32 %v781_v62, %v777_v33  ;;  %v784_v35 = vadd.f32 %v782_v16, %v778_v56  ;;  %v644_v19 = vsel %vm641_vm7, %v630_v57, %v638_v5  ;;  %v386_v62 = vpop.permute.xlu1 %385  ;;  %v378_v16 = vpop.permute.xlu0 %377 }
 0x169   : > { %v648_v17 = vsel %vm641_vm7, %v638_v5, %v630_v57  ;;  %v7278_v49 = vstv %s4521_s16  ;;  %v7280_v47 = vstv %s4544_s27  ;;  %v7282_v45 = vstv %s4352_s8  ;;  %s7287_s8 = sld [smem:[#allocation17_spill]]  ;;  %s7298_s16 = sld [smem:[#allocation19_spill]] }
 0x16a   : > { %v1287_v4 = vmul.f32 %v7278_v49, %v4803_v61  ;;  %v7279_v18 = vmov %v7278_v49  ;;  %v1521_v54 = vmul.f32 %v7280_v47, %v4803_v61  ;;  %v7281_v12 = vmov %v7280_v47  ;;  %v4859_v49 = vld [vmem:[%s7233_s7 + $0x40] sm:$0x77]  ;;  %s5099_s27 = sld [smem:[#allocation2 + $0x40]]  ;;  %s5349_s7 = sld [smem:[#allocation6 + $0x25]] }
 0x16b   : > { %v1288_v42 = vmul.f32 %v7279_v18, %v4806_v32  ;;  %v1522_v0 = vmul.f32 %v7281_v12, %v4806_v32  ;;  %v787_v51 = vmul.f32 %v7282_v45, %v4621_v3  ;;  %v7283_v5 = vmov %v7282_v45 }
 0x16c   : > { %v788_v57 = vmul.f32 %v7283_v5, %v4624_v60  ;;  %v7284_v9 = vstv %s4388_s17  ;;  %v1289_v33 = vadd.f32 %v1287_v4, %v1283_v38  ;;  %v1523_v63 = vadd.f32 %v1521_v54, %v1517_v20  ;;  %s4875_s17 = sld [smem:[#allocation2 + $0x1a]] }
 0x16d   : > { %v793_v44 = vmul.f32 %v7284_v9, %v4690_v6  ;;  %v7285_v10 = vmov %v7284_v9  ;;  %v1290_v56 = vadd.f32 %v1288_v42, %v1284_v24  ;;  %v1524_v46 = vadd.f32 %v1522_v0, %v1518_v15 }
 0x16e   : > { %v794_v22 = vmul.f32 %v7285_v10, %v4693_v1  ;;  %v4862_v18 = vmul.f32 %v4859_v49, %v644_v19  ;;  %v4865_v47 = vmul.f32 %v3997_v8, %v648_v17  ;;  %v393_v38 = vsel %vm389_vm2, %v378_v16, %v386_v62 }
 0x16f   : > { %v397_v24 = vsel %vm389_vm2, %v386_v62, %v378_v16  ;;  %v1011_v20 = vadd.f32 %v1009_v58, %v1005_v53  ;;  %v1012_v15 = vadd.f32 %v1010_v50, %v1006_v30  ;;  %v7286_v4 = vstv %s4330_s0  ;;  %s4897_s0 = sld [smem:[#allocation2 + $0x1b]]  ;;  %v416_v16 = vpop.permute.xlu0 %415 }
 0x170   : > { %v1016_v42 = vmul.f32 %v7286_v4, %v4605_v25  ;;  %v1538_v54 = vstv %s4820_s5  ;;  %v789_v19 = vadd.f32 %v787_v51, %v783_v31  ;;  %v790_v12 = vadd.f32 %v788_v57, %v784_v35  ;;  %s5097_s5 = sld [smem:[#allocation2 + $0x8e]]  ;;  %7343 = sst [smem:[#allocation37_spill]] %s5349_s7 }
 0x171   : > { %v4878_v17 = vmul.f32 %v4532_v52, %v397_v24  ;;  %v4881_v0 = vmul.f32 %v3797_v23, %v393_v38  ;;  %v7288_v53 = vstv %s4546_s18  ;;  %v7290_v50 = vstv %s4560_s9  ;;  %v424_v52 = vpop.permute.xlu1 %423  ;;  %s4930_s18 = sld [smem:[#allocation2 + $0x89]]  ;;  %s4932_s9 = sld [smem:[#allocation2 + $0x1c]] }
 0x172   : > { %v1293_v30 = vmul.f32 %v7288_v53, %v4862_v18  ;;  %v7289_v58 = vmov %v7288_v53  ;;  %v1527_v31 = vmul.f32 %v7290_v50, %v4862_v18  ;;  %v7291_v35 = vmov %v7290_v50  ;;  %s5488_s7 = sld [smem:[#allocation6 + $0x78]] }
 0x173   : > { %v1294_v25 = vmul.f32 %v7289_v58, %v4865_v47  ;;  %v1528_v62 = vmul.f32 %v7291_v35, %v4865_v47  ;;  %v1017_v45 = vadd.f32 %v1015_v27, %v1011_v20  ;;  %v7292_v51 = vstv %s7287_s8  ;;  %s5106_s8 = sld [smem:[#allocation2 + $0x22]] }
 0x174   : > { %v1021_v5 = vmul.f32 %v7292_v51, %v4621_v3  ;;  %v795_v57 = vadd.f32 %v793_v44, %v789_v19  ;;  %v796_v9 = vadd.f32 %v794_v22, %v790_v12  ;;  %v1295_v10 = vadd.f32 %v1293_v30, %v1289_v33 }
 0x175   : > { %v1296_v38 = vadd.f32 %v1294_v25, %v1290_v56  ;;  %v1529_v24 = vadd.f32 %v1527_v31, %v1523_v63  ;;  %v1530_v4 = vadd.f32 %v1528_v62, %v1524_v46  ;;  %v1018_v53 = vadd.f32 %v1016_v42, %v1012_v15 }
 0x176   : > { %v7294_v58 = vmov %v7292_v51  ;;  %v429_v35 = vsel %vm425_vm0, %v416_v16, %v424_v52  ;;  %v433_v27 = vsel %vm425_vm0, %v424_v52, %v416_v16  ;;  %v7295_v20 = vstv %s4562_s1  ;;  %s4928_s1 = sld [smem:[#allocation2 + $0x65]]  ;;  %v452_v16 = vpop.permute.xlu0 %451 }
 0x177   : > { %v1022_v50 = vmul.f32 %v7294_v58, %v4624_v60  ;;  %v1299_v3 = vmul.f32 %v7295_v20, %v4878_v17  ;;  %v7296_v44 = vmov %v7295_v20  ;;  %v7297_v33 = vstv %s4568_s25  ;;  %s7309_s25 = sld [smem:[#allocation20_spill]] }
 0x178   : > { %v1300_v22 = vmul.f32 %v7296_v44, %v4881_v0  ;;  %v1533_v56 = vmul.f32 %v7297_v33, %v4878_v17  ;;  %v7299_v63 = vmov %v7297_v33  ;;  %v1023_v46 = vadd.f32 %v1021_v5, %v1017_v45  ;;  %7390 = sst [smem:[#allocation81_spill]] %s5488_s7  ;;  %s5638_s7 = sld [smem:[#allocation6 + $0x37]] }
 0x179   : > { %v1534_v60 = vmul.f32 %v7299_v63, %v4881_v0  ;;  %v7300_v15 = vstv %s7293_s10  ;;  %v803_v19 = vadd.f32 %v4477_v40, %v795_v57  ;;  %v7301_v12 = vcombine.high %v4477_v40, %v4477_v40  ;;  %s5138_s10 = sld [smem:[#allocation2 + $0x8f]] }
 0x17a   : > { %v1027_v42 = vmul.f32 %v7300_v15, %v4690_v6  ;;  %v1301_v25 = vadd.f32 %v1299_v3, %v1295_v10  ;;  %v1302_v31 = vadd.f32 %v1300_v22, %v1296_v38  ;;  %v1535_v62 = vadd.f32 %v1533_v56, %v1529_v24  ;;  %v460_v6 = vpop.permute.xlu1 %459 }
 0x17b   : > { %v804_v30 = vadd.f32 %v7301_v12, %v796_v9  ;;  %v1536_v52 = vadd.f32 %v1534_v60, %v1530_v4  ;;  %v7302_v40 = vstv %s7298_s16  ;;  %v4941_v57 = vmul.f32 %v4599_v21, %v433_v27  ;;  %s5148_s16 = sld [smem:[#allocation4]] }
 0x17c   : > { %v807_v45 = vmul.f32 %v7302_v40, %v4726_v48  ;;  %v7303_v51 = vmov %v7302_v40  ;;  %v4944_v9 = vmul.f32 %v7176_v37, %v429_v35  ;;  %v1024_v10 = vadd.f32 %v1022_v50, %v1018_v53 }
 0x17d   : > { %v808_v5 = vmul.f32 %v7303_v51, %v4729_v55  ;;  %v824_v38 = vstv %s4875_s17  ;;  %v1058_v24 = vstv %s4883_s22  ;;  %v830_v4 = vstv %s4897_s0  ;;  %s5128_s17 = sld [smem:[#allocation2 + $0x23]]  ;;  %s3002_s22 = sld [smem:[#allocation2 + $0x44]] }
 0x17e   : > { %v7304_v58 = vmov %v7300_v15  ;;  %v1029_v3 = vadd.f32 %v1027_v42, %v1023_v46  ;;  %v465_v44 = vsel %vm461_vm1, %v452_v16, %v460_v6  ;;  %v469_v21 = vsel %vm461_vm1, %v460_v6, %v452_v16  ;;  %s5136_s0 = sld [smem:[#allocation2 + $0x6b]] }
 0x17f   : > { %v1028_v20 = vmul.f32 %v7304_v58, %v4693_v1  ;;  %v7305_v27 = vstv %s4570_s11  ;;  %v1539_v53 = vmul.f32 %v1538_v54, %v4941_v57  ;;  %v1540_v50 = vmul.f32 %v1538_v54, %v4944_v9  ;;  %s4972_s11 = sld [smem:[#allocation2 + $0x8a]]  ;;  %v496_v54 = vpop.permute.xlu1 %495 }
 0x180   : > { %v1305_v22 = vmul.f32 %v7305_v27, %v4941_v57  ;;  %v7306_v35 = vmov %v7305_v27  ;;  %v809_v1 = vadd.f32 %v807_v45, %v803_v19  ;;  %v810_v56 = vadd.f32 %v808_v5, %v804_v30  ;;  %v488_v19 = vpop.permute.xlu0 %487 }
 0x181   : > { %v1306_v33 = vmul.f32 %v7306_v35, %v4944_v9  ;;  %v7307_v63 = vstv %s4481_s21  ;;  %v1541_v6 = vadd.f32 %v1539_v53, %v1535_v62  ;;  %v1542_v16 = vadd.f32 %v1540_v50, %v1536_v52  ;;  %s4993_s21 = sld [smem:[#allocation2 + $0x67]] }
 0x182   : > { %v813_v60 = vmul.f32 %v7307_v63, %v4779_v29  ;;  %v7308_v46 = vmov %v7307_v63  ;;  %v1307_v42 = vadd.f32 %v1305_v22, %v1301_v25  ;;  %v1310_v30 = vstv %s4928_s1  ;;  %s5163_s1 = sld [smem:[#allocation2 + $0x41]] }
 0x183   : > { %v814_v15 = vmul.f32 %v7308_v46, %v4782_v34  ;;  %v1308_v12 = vadd.f32 %v1306_v33, %v1302_v31  ;;  %v1544_v40 = vstv %s4930_s18  ;;  %v4979_v45 = vmul.f32 %v4618_v41, %v469_v21  ;;  %s5184_s18 = sld [smem:[#allocation2 + $0x42]] }
 0x184   : > { %v4982_v51 = vmul.f32 %v7179_v14, %v465_v44  ;;  %v1030_v5 = vadd.f32 %v1028_v20, %v1024_v10  ;;  %v1037_v25 = vadd.f32 %v4479_v13, %v1029_v3  ;;  %v7310_v31 = vstv %s7309_s25  ;;  %s3003_s25 = sld [smem:[#allocation2 + $0x45]] }
 0x185   : > { %v1041_v62 = vmul.f32 %v7310_v31, %v4726_v48  ;;  %v836_v52 = vstv %s4932_s9  ;;  %v815_v58 = vadd.f32 %v813_v60, %v809_v1  ;;  %v816_v27 = vadd.f32 %v814_v15, %v810_v56  ;;  %s5186_s9 = sld [smem:[#allocation2 + $0x43]] }
 0x186   : > { %v501_v22 = vsel %vm497_vm3, %v488_v19, %v496_v54  ;;  %v505_v41 = vsel %vm497_vm3, %v496_v54, %v488_v19  ;;  %v1311_v10 = vmul.f32 %v1310_v30, %v4979_v45  ;;  %v1312_v20 = vmul.f32 %v1310_v30, %v4982_v51 }
 0x187   : > { %v1545_v3 = vmul.f32 %v1544_v40, %v4979_v45  ;;  %v1546_v48 = vmul.f32 %v1544_v40, %v4982_v51  ;;  %v7311_v44 = vstv %s4507_s2  ;;  %v825_v53 = vmul.f32 %v824_v38, %v4862_v18  ;;  %s7313_s2 = sld [smem:[#allocation21_spill]] }
 0x188   : > { %v819_v21 = vmul.f32 %v7311_v44, %v4803_v61  ;;  %v7312_v35 = vmov %v7311_v44  ;;  %v826_v50 = vmul.f32 %v824_v38, %v4865_v47  ;;  %v1313_v1 = vadd.f32 %v1311_v10, %v1307_v42 }
 0x189   : > { %v820_v33 = vmul.f32 %v7312_v35, %v4806_v32  ;;  %v1314_v56 = vadd.f32 %v1312_v20, %v1308_v12  ;;  %v1547_v63 = vadd.f32 %v1545_v3, %v1541_v6  ;;  %v1548_v60 = vadd.f32 %v1546_v48, %v1542_v16  ;;  %v524_v20 = vpop.permute.xlu0 %523 }
 0x18a   : > { %v1316_v46 = vstv %s4970_s13  ;;  %v1550_v15 = vstv %s4972_s11  ;;  %v5014_v54 = vmul.f32 %v4687_v43, %v505_v41  ;;  %v5017_v19 = vmul.f32 %v3807_v26, %v501_v22  ;;  %s7322_s13 = smov 17   ;;  %s3004_s11 = sld [smem:[#allocation2 + $0x46]] }
 0x18b   : > { %v7314_v38 = vcombine.high %v4479_v13, %v4479_v13  ;;  %v7315_v12 = vmov %v7310_v31  ;;  %v5031_v16 = vadd.f32 %v1041_v62, %v1037_v25  ;;  %v842_v43 = vstv %s4974_s15  ;;  %s3005_s15 = sld [smem:[#allocation2 + $0x47]] }
 0x18c   : > { %v5029_v6 = vmul.f32 %v7315_v12, %v4729_v55  ;;  %v821_v30 = vadd.f32 %v819_v21, %v815_v58  ;;  %v822_v40 = vadd.f32 %v820_v33, %v816_v27  ;;  %v831_v31 = vmul.f32 %v830_v4, %v4878_v17 }
 0x18d   : > { %v5024_v42 = vadd.f32 %v7314_v38, %v1030_v5  ;;  %v832_v22 = vmul.f32 %v830_v4, %v4881_v0  ;;  %v1317_v13 = vmul.f32 %v1316_v46, %v5014_v54  ;;  %v1318_v5 = vmul.f32 %v1316_v46, %v5017_v19  ;;  %v532_v4 = vpop.permute.xlu1 %531  ;;  %v5054_v38 = vld [vmem:[%s7317_s20 + $0x18] sm:$0x77]  ;;  %s7329_s20 = smov 111  }
 0x18e   : > { %v1551_v55 = vmul.f32 %v1550_v15, %v5014_v54  ;;  %v1552_v25 = vmul.f32 %v1550_v15, %v5017_v19  ;;  %v7316_v62 = vstv %s7313_s2  ;;  %v827_v27 = vadd.f32 %v825_v53, %v821_v30 }
 0x18f   : > { %v5047_v58 = vmul.f32 %v7316_v62, %v4779_v29  ;;  %v828_v41 = vadd.f32 %v826_v50, %v822_v40  ;;  %v1322_v10 = vstv %s4993_s21  ;;  %v1319_v3 = vadd.f32 %v1317_v13, %v1313_v1  ;;  %s7323_s21 = smov 16  }
 0x190   : > { %v1320_v48 = vadd.f32 %v1318_v5, %v1314_v56  ;;  %v1553_v44 = vadd.f32 %v1551_v55, %v1547_v63  ;;  %v1554_v21 = vadd.f32 %v1552_v25, %v1548_v60  ;;  %v833_v35 = vadd.f32 %v831_v31, %v827_v27 }
 0x191   : > { %v834_v33 = vadd.f32 %v832_v22, %v828_v41  ;;  %v837_v46 = vmul.f32 %v836_v52, %v4941_v57  ;;  %v848_v15 = vstv %s5007_s30  ;;  %v838_v29 = vmul.f32 %v836_v52, %v4944_v9  ;;  %s7324_s30 = smov 15  }
 0x192   : > { %v1323_v53 = vmul.f32 %v5054_v38, %v1322_v10  ;;  %v1556_v50 = vstv %s5009_s14  ;;  %v537_v1 = vsel %vm533_vm4, %v524_v20, %v532_v4  ;;  %v843_v56 = vmul.f32 %v842_v43, %v4979_v45  ;;  %s3006_s14 = sld [smem:[#allocation4 + $0x1]] }
 0x193   : > { %v854_v63 = vstv %s5019_s24  ;;  %v1557_v60 = vmul.f32 %v5054_v38, %v1556_v50  ;;  %v541_v52 = vsel %vm533_vm4, %v532_v4, %v524_v20  ;;  %v1330_v30 = vstv %s5034_s3  ;;  %v568_v50 = vpop.permute.xlu1 %567  ;;  %s7326_s24 = smov 127   ;;  %s7327_s3 = smov 113  }
 0x194   : > { %v1325_v12 = vcombine.high %v1323_v53, %v1323_v53  ;;  %v5071_v40 = vmul.f32 %v4723_v59, %v537_v1  ;;  %v5074_v31 = vmul.f32 %v3847_v39, %v541_v52  ;;  %v844_v22 = vmul.f32 %v842_v43, %v4982_v51  ;;  %v560_v43 = vpop.permute.xlu0 %559 }
 0x195   : > { %v1327_v13 = vadd.f32 %v1323_v53, %v1319_v3  ;;  %v1559_v5 = vcombine.high %v1557_v60, %v1557_v60  ;;  %v1564_v55 = vstv %s5038_s28  ;;  %v839_v25 = vadd.f32 %v837_v46, %v833_v35  ;;  %s7328_s28 = smov 112  }
 0x196   : > { %v840_v62 = vadd.f32 %v838_v29, %v834_v33  ;;  %v1328_v27 = vadd.f32 %v1325_v12, %v1320_v48  ;;  %v1561_v41 = vadd.f32 %v1557_v60, %v1553_v44  ;;  %v849_v4 = vmul.f32 %v848_v15, %v5014_v54 }
 0x197   : > { %v1562_v10 = vadd.f32 %v1559_v5, %v1554_v21  ;;  %v1331_v59 = vmul.f32 %v1330_v30, %v5071_v40  ;;  %v1332_v20 = vmul.f32 %v1330_v30, %v5074_v31  ;;  %v845_v3 = vadd.f32 %v843_v56, %v839_v25 }
 0x198   : > { %v850_v53 = vmul.f32 %v848_v15, %v5017_v19  ;;  %v855_v35 = vmul.f32 %v5054_v38, %v854_v63  ;;  %v1565_v48 = vmul.f32 %v1564_v55, %v5071_v40  ;;  %v846_v44 = vadd.f32 %v844_v22, %v840_v62 }
 0x199   : > { %v1333_v33 = vadd.f32 %v1331_v59, %v1327_v13  ;;  %v1334_v21 = vadd.f32 %v1332_v20, %v1328_v27  ;;  %v1566_v46 = vmul.f32 %v1564_v55, %v5074_v31  ;;  %v1336_v1 = vstv %s5060_s23  ;;  %v604_v59 = vpop.permute.xlu1 %603  ;;  %v596_v20 = vpop.permute.xlu0 %595  ;;  %s3043_s23 = sld [smem:[#allocation4 + $0x2]] }
 0x19a   : > { %v1567_v29 = vadd.f32 %v1565_v48, %v1561_v41  ;;  %v1570_v56 = vstv %s5062_s12  ;;  %v573_v15 = vsel %vm569_vm5, %v560_v43, %v568_v50  ;;  %v851_v63 = vadd.f32 %v849_v4, %v845_v3  ;;  %s5287_s12 = sld [smem:[#allocation4 + $0x3]] }
 0x19b   : > { %v1568_v60 = vadd.f32 %v1566_v46, %v1562_v10  ;;  %v577_v52 = vsel %vm569_vm5, %v568_v50, %v560_v43  ;;  %v5104_v12 = vmul.f32 %v4776_v36, %v573_v15  ;;  %v1044_v30 = vadd.f32 %v5029_v6, %v5024_v42 }
 0x19c   : > { %v852_v22 = vadd.f32 %v850_v53, %v846_v44  ;;  %v857_v13 = vcombine.high %v855_v35, %v855_v35  ;;  %v5111_v5 = vmul.f32 %v3940_v28, %v577_v52  ;;  %v7319_v55 = vstv %s7313_s2  ;;  %s7325_s2 = smov 1  }
 0x19d   : > { %v1048_v25 = vmul.f32 %v7319_v55, %v4782_v34  ;;  %v862_v62 = vstv %s5077_s19  ;;  %v1337_v27 = vmul.f32 %v1336_v1, %v5104_v12  ;;  %v1571_v36 = vmul.f32 %v1570_v56, %v5104_v12  ;;  %s5291_s19 = sld [smem:[#allocation6 + $0x4]] }
 0x19e   : > { %v1049_v41 = vadd.f32 %v5047_v58, %v5031_v16  ;;  %v7320_v4 = vstv %s7318_s4  ;;  %v1338_v6 = vmul.f32 %v1336_v1, %v5111_v5  ;;  %v1572_v10 = vmul.f32 %v1570_v56, %v5111_v5  ;;  %s5305_s4 = sld [smem:[#allocation6 + $0x31]] }
 0x19f   : > { %v1053_v42 = vmul.f32 %v7320_v4, %v4803_v61  ;;  %v859_v50 = vadd.f32 %v855_v35, %v851_v63  ;;  %v868_v34 = vstv %s5083_s29  ;;  %v1339_v43 = vadd.f32 %v1337_v27, %v1333_v33  ;;  %s5293_s29 = sld [smem:[#allocation6 + $0x28]] }
 0x1a0   : > { %v1573_v3 = vadd.f32 %v1571_v36, %v1567_v29  ;;  %v860_v53 = vadd.f32 %v857_v13, %v852_v22  ;;  %v863_v48 = vmul.f32 %v862_v62, %v5071_v40  ;;  %v1340_v16 = vadd.f32 %v1338_v6, %v1334_v21 }
 0x1a1   : > { %v1574_v58 = vadd.f32 %v1572_v10, %v1568_v60  ;;  %v864_v61 = vmul.f32 %v862_v62, %v5074_v31  ;;  %v1342_v44 = vstv %s5089_s6  ;;  %v609_v35 = vsel %vm605_vm6, %v596_v20, %v604_v59  ;;  %s5299_s6 = sld [smem:[#allocation6 + $0x4c]] }
 0x1a2   : > { %v613_v33 = vsel %vm605_vm6, %v604_v59, %v596_v20  ;;  %v869_v21 = vmul.f32 %v868_v34, %v5104_v12  ;;  %v1576_v46 = vstv %s5097_s5  ;;  %v5143_v29 = vmul.f32 %v4800_v7, %v609_v35  ;;  %s5303_s5 = sld [smem:[#allocation6 + $0xd]] }
 0x1a3   : > { %v5146_v1 = vmul.f32 %v3993_v2, %v613_v33  ;;  %v1050_v56 = vadd.f32 %v1048_v25, %v1044_v30  ;;  %v1064_v15 = vstv %s5091_s26  ;;  %v1070_v63 = vstv %s5099_s27  ;;  %v640_v30 = vpop.permute.xlu1 %639  ;;  %v632_v25 = vpop.permute.xlu0 %631  ;;  %s5301_s26 = sld [smem:[#allocation6 + $0x70]]  ;;  %s5307_s27 = sld [smem:[#allocation6 + $0x55]] }
 0x1a4   : > { %v874_v60 = vstv %s5106_s8  ;;  %v7321_v52 = vmov %v7320_v4  ;;  %v1055_v13 = vadd.f32 %v1053_v42, %v1049_v41  ;;  %v865_v55 = vadd.f32 %v863_v48, %v859_v50  ;;  %s5309_s8 = sld [smem:[#allocation6 + $0x79]] }
 0x1a5   : > { %v1054_v22 = vmul.f32 %v7321_v52, %v4806_v32  ;;  %v870_v62 = vmul.f32 %v868_v34, %v5111_v5  ;;  %v1343_v27 = vmul.f32 %v1342_v44, %v5143_v29  ;;  %v1344_v7 = vmul.f32 %v1342_v44, %v5146_v1 }
 0x1a6   : > { %v1577_v36 = vmul.f32 %v1576_v46, %v5143_v29  ;;  %v1578_v4 = vmul.f32 %v1576_v46, %v5146_v1  ;;  %v866_v6 = vadd.f32 %v864_v61, %v860_v53  ;;  %v871_v10 = vadd.f32 %v869_v21, %v865_v55 }
 0x1a7   : > { %v875_v32 = vmul.f32 %v874_v60, %v5143_v29  ;;  %v876_v41 = vmul.f32 %v874_v60, %v5146_v1  ;;  %v1345_v42 = vadd.f32 %v1343_v27, %v1339_v43  ;;  %v1346_v59 = vadd.f32 %v1344_v7, %v1340_v16 }
 0x1a8   : > { %v1579_v20 = vadd.f32 %v1577_v36, %v1573_v3  ;;  %v1580_v50 = vadd.f32 %v1578_v4, %v1574_v58  ;;  %v872_v34 = vadd.f32 %v870_v62, %v866_v6  ;;  %v880_v48 = vstv %s5128_s17  ;;  %s5311_s17 = sld [smem:[#allocation6 + $0x16]] }
 0x1a9   : > { %v645_v44 = vsel %vm641_vm7, %v632_v25, %v640_v30  ;;  %v649_v53 = vsel %vm641_vm7, %v640_v30, %v632_v25  ;;  %v1348_v61 = vstv %s5136_s0  ;;  %v1582_v35 = vstv %s5138_s10  ;;  %s5317_s0 = sld [smem:[#allocation6 + $0x3a]]  ;;  %s5319_s10 = sld [smem:[#allocation6 + $0x5e]] }
 0x1aa   : > { %v5173_v33 = vmul.f32 %v4859_v49, %v645_v44  ;;  %v5176_v21 = vmul.f32 %v3997_v8, %v649_v53  ;;  %v1056_v43 = vadd.f32 %v1054_v22, %v1050_v56  ;;  %v1059_v3 = vmul.f32 %v1058_v24, %v4862_v18 }
 0x1ab   : > { %v1060_v16 = vmul.f32 %v1058_v24, %v4865_v47  ;;  %v886_v58 = vstv %s5148_s16  ;;  %v877_v46 = vadd.f32 %v875_v32, %v871_v10  ;;  %v878_v60 = vadd.f32 %v876_v41, %v872_v34  ;;  %s5321_s16 = sld [smem:[#allocation6 + $0x82]] }
 0x1ac   : > { %v881_v49 = vmul.f32 %v880_v48, %v5173_v33  ;;  %v882_v52 = vmul.f32 %v880_v48, %v5176_v21  ;;  %v1349_v56 = vmul.f32 %v1348_v61, %v5173_v33  ;;  %v1350_v22 = vmul.f32 %v1348_v61, %v5176_v21 }
 0x1ad   : > { %v1583_v18 = vmul.f32 %v1582_v35, %v5173_v33  ;;  %v1584_v47 = vmul.f32 %v1582_v35, %v5176_v21  ;;  %v1065_v24 = vmul.f32 %v1064_v15, %v4878_v17  ;;  %v1066_v55 = vmul.f32 %v1064_v15, %v4881_v0 }
 0x1ae   : > { %v883_v62 = vadd.f32 %v881_v49, %v877_v46  ;;  %v884_v27 = vadd.f32 %v882_v52, %v878_v60  ;;  %v5197_v7 = vadd.f32 %v1349_v56, %v1345_v42  ;;  %v5199_v36 = vadd.f32 %v1350_v22, %v1346_v59  ;;  %7330 = sst [smem:[#allocation24_spill]] %s5311_s17  ;;  %s5373_s17 = sld [smem:[#allocation6 + $0x6f]] }
 0x1af   : > { %v5201_v4 = vadd.f32 %v1583_v18, %v1579_v20  ;;  %v5203_v30 = vadd.f32 %v1584_v47, %v1580_v50  ;;  %v1076_v25 = vstv %s5163_s1  ;;  %v1061_v32 = vadd.f32 %v1059_v3, %v1055_v13  ;;  %7331 = sst [smem:[#allocation25_spill]] %s5317_s0  ;;  %s5323_s1 = sld [smem:[#allocation6 + $0x1f]] }
 0x1b0   : > { %v887_v6 = vadd.f32 %v886_v58, %v883_v62  ;;  %v888_v10 = vadd.f32 %v886_v58, %v884_v27  ;;  %v1062_v41 = vadd.f32 %v1060_v16, %v1056_v43  ;;  %v1071_v17 = vmul.f32 %v1070_v63, %v4941_v57  ;;  %7332 = sst [smem:[#allocation26_spill]] %s5319_s10  ;;  %s5369_s10 = sld [smem:[#allocation6 + $0x27]] }
 0x1b1   : > { %v1072_v0 = vmul.f32 %v1070_v63, %v4944_v9  ;;  %v1067_v59 = vadd.f32 %v1065_v24, %v1061_v32  ;;  %v1082_v20 = vstv %s5184_s18  ;;  %v1088_v48 = vstv %s5186_s9  ;;  %7333 = sst [smem:[#allocation27_spill]] %s5321_s16  ;;  %s5325_s18 = sld [smem:[#allocation6 + $0x43]] }
 0x1b2   : > { %vm889_vm8 = vcmp.ge.f32.partialorder %v887_v6, 0.0  ;;  %vm890_vm9 = vcmp.ge.f32.partialorder %v888_v10, 0.0  ;;  %v891_v15 = vmul.f32 0.2, %v887_v6  ;;  %v892_v42 = vmul.f32 0.2, %v888_v10 }
 0x1b3   : > { %v1068_v34 = vadd.f32 %v1066_v55, %v1062_v41  ;;  %v1077_v50 = vmul.f32 %v1076_v25, %v4979_v45  ;;  %v1078_v44 = vmul.f32 %v1076_v25, %v4982_v51  ;;  %v1073_v57 = vadd.f32 %v1071_v17, %v1067_v59  ;;  %s5327_s9 = sld [smem:[#allocation6 + $0x67]]  ;;  %s5367_s16 = sld [smem:[#allocation6 + $0x3]] }
 0x1b4   : > { %v5212_v53 = vsel %vm889_vm8, %v887_v6, %v891_v15  ;;  %v5214_v13 = vsel %vm890_vm9, %v888_v10, %v892_v42  ;;  %v1083_v63 = vmul.f32 %v1082_v20, %v5014_v54  ;;  %v1084_v61 = vmul.f32 %v1082_v20, %v5017_v19  ;;  %s5371_s0 = sld [smem:[#allocation6 + $0x4b]]  ;;  %7353 = sst [smem:[#allocation53_spill]] %s5373_s17 }
 0x1b5   : > { %1605 = vrot.lane.b32.xlu1 %v5214_v13, %s7322_s13  ;;  %1597 = vrot.lane.b32.xlu0 %v5212_v53, %s7322_s13  ;;  %v1074_v9 = vadd.f32 %v1072_v0, %v1068_v34  ;;  %v1089_v45 = vmul.f32 %v5054_v38, %v1088_v48  ;;  %v1079_v51 = vadd.f32 %v1077_v50, %v1073_v57  ;;  %v1096_v58 = vstv %s3002_s22  ;;  %7334 = sst [smem:[#allocation28_spill]] %s5323_s1  ;;  %s5363_s1 = sld [smem:[#allocation6 + $0x4a]] }
 0x1b6   : > { %v1102_v46 = vstv %s3003_s25  ;;  %v1097_v38 = vmul.f32 %v1096_v58, %v5071_v40  ;;  %v1098_v60 = vmul.f32 %v1096_v58, %v5074_v31  ;;  %v1108_v49 = vstv %s3004_s11  ;;  %s5333_s22 = sld [smem:[#allocation6]]  ;;  %s5335_s25 = sld [smem:[#allocation6 + $0x8b]] }
 0x1b7   : > { %v1080_v35 = vadd.f32 %v1078_v44, %v1074_v9  ;;  %v1085_v43 = vadd.f32 %v1083_v63, %v1079_v51  ;;  %v1091_v16 = vcombine.high %v1089_v45, %v1089_v45  ;;  %v1103_v52 = vmul.f32 %v1102_v46, %v5104_v12  ;;  %7335 = sst [smem:[#allocation22_spill]] %s5325_s18  ;;  %s5341_s11 = sld [smem:[#allocation6 + $0x24]] }
 0x1b8   : > { %v1104_v56 = vmul.f32 %v1102_v46, %v5111_v5  ;;  %v1114_v22 = vstv %s3005_s15  ;;  %v1109_v24 = vmul.f32 %v1108_v49, %v5143_v29  ;;  %v1110_v40 = vmul.f32 %v1108_v49, %v5146_v1  ;;  %s5343_s15 = sld [smem:[#allocation6 + $0x48]]  ;;  %s5355_s18 = sld [smem:[#allocation6 + $0x2]] }
 0x1b9   : > { %1637 = vrot.lane.b32.xlu1 %v5214_v13, %s7323_s21  ;;  %1629 = vrot.lane.b32.xlu0 %v5212_v53, %s7323_s21  ;;  %v1086_v3 = vadd.f32 %v1084_v61, %v1080_v35  ;;  %v1093_v54 = vadd.f32 %v1089_v45, %v1085_v43  ;;  %v1115_v12 = vmul.f32 %v1114_v22, %v5173_v33  ;;  %v1120_v10 = vstv %s3006_s14  ;;  %7336 = sst [smem:[#allocation29_spill]] %s5327_s9  ;;  %s5345_s14 = sld [smem:[#allocation6 + $0x6c]] }
 0x1ba   : > { %v1116_v5 = vmul.f32 %v1114_v22, %v5176_v21  ;;  %v1354_v17 = vstv %s3043_s23  ;;  %s5347_s23 = sld [smem:[#allocation6 + $0x1]]  ;;  %7350 = sst [smem:[#allocation48_spill]] %s5367_s16  ;;  %v1588_v34 = vstv %s5287_s12  ;;  %v1878_v50 = vstv %s5291_s19 }
 0x1bb   : > { %v1094_v19 = vadd.f32 %v1091_v16, %v1086_v3  ;;  %v1099_v18 = vadd.f32 %v1097_v38, %v1093_v54  ;;  %v1355_v0 = vadd.f32 %v1354_v17, %v5197_v7  ;;  %v1356_v15 = vadd.f32 %v1354_v17, %v5199_v36  ;;  %s5351_s9 = sld [smem:[#allocation6 + $0x49]]  ;;  %7348 = sst [smem:[#allocation43_spill]] %s5363_s1 }
 0x1bc   : > { %7337 = sst [smem:[#allocation30_spill]] %s5333_s22  ;;  %s5386_s16 = sld [smem:[#allocation6 + $0x71]]  ;;  %v1589_v20 = vadd.f32 %v1588_v34, %v5201_v4  ;;  %v1590_v48 = vadd.f32 %v1588_v34, %v5203_v30  ;;  %v2104_v44 = vstv %s5293_s29  ;;  %v2330_v57 = vstv %s5299_s6 }
 0x1bd   : > { %1669 = vrot.lane.b32.xlu1 %v5214_v13, %s7324_s30  ;;  %1661 = vrot.lane.b32.xlu0 %v5212_v53, %s7324_s30  ;;  %v1100_v47 = vadd.f32 %v1098_v60, %v1094_v19  ;;  %v1105_v31 = vadd.f32 %v1103_v52, %v1099_v18  ;;  %v1359_v7 = vmul.f32 0.2, %v1355_v0  ;;  %v1360_v36 = vmul.f32 0.2, %v1356_v15  ;;  %7338 = sst [smem:[#allocation31_spill]] %s5335_s25  ;;  %s5353_s25 = sld [smem:[#allocation6 + $0x6d]] }
 0x1be   : > { %vm1357_vm12 = vcmp.ge.f32.partialorder %v1355_v0, 0.0  ;;  %vm1358_vm13 = vcmp.ge.f32.partialorder %v1356_v15, 0.0  ;;  %7339 = sst [smem:[#allocation32_spill]] %s5341_s11  ;;  %s5392_s17 = sld [smem:[#allocation6 + $0x4e]]  ;;  %v1593_v4 = vmul.f32 0.2, %v1589_v20  ;;  %v2556_v9 = vstv %s5301_s26 }
 0x1bf   : > { %v1106_v55 = vadd.f32 %v1104_v56, %v1100_v47  ;;  %v1111_v62 = vadd.f32 %v1109_v24, %v1105_v31  ;;  %v5329_v42 = vsel %vm1357_vm12, %v1355_v0, %v1359_v7  ;;  %v5331_v59 = vsel %vm1358_vm13, %v1356_v15, %v1360_v36  ;;  %7340 = sst [smem:[#allocation33_spill]] %s5343_s15  ;;  %s5395_s12 = sld [smem:[#allocation6 + $0x72]] }
 0x1c0   : > { %7341 = sst [smem:[#allocation34_spill]] %s5345_s14  ;;  %v1594_v30 = vmul.f32 0.2, %v1590_v48  ;;  %vm1591_vm14 = vcmp.ge.f32.partialorder %v1589_v20, 0.0  ;;  %vm1592_vm15 = vcmp.ge.f32.partialorder %v1590_v48, 0.0  ;;  %v1932_v63 = vstv %s5303_s5  ;;  %s5460_s19 = sld [smem:[#allocation6 + $0x2f]] }
 0x1c1   : > { %1701 = vrot.lane.b32.xlu1 %v5214_v13, %s7325_s2  ;;  %1693 = vrot.lane.b32.xlu0 %v5212_v53, %s7325_s2  ;;  %v1112_v27 = vadd.f32 %v1110_v40, %v1106_v55  ;;  %v1117_v25 = vadd.f32 %v1115_v12, %v1111_v62  ;;  %7342 = sst [smem:[#allocation35_spill]] %s5347_s23  ;;  %v2158_v61 = vstv %s5305_s4  ;;  %v2384_v45 = vstv %s5307_s27  ;;  %s5462_s29 = sld [smem:[#allocation6 + $0x53]] }
 0x1c2   : > { %7344 = sst [smem:[#allocation39_spill]] %s5351_s9  ;;  %v2610_v51 = vstv %s5309_s8  ;;  %v5449_v35 = vsel %vm1591_vm14, %v1589_v20, %v1593_v4  ;;  %v5452_v43 = vsel %vm1592_vm15, %v1590_v48, %v1594_v30  ;;  %v1854_v3 = vstv %s5333_s22  ;;  %s5468_s26 = sld [smem:[#allocation6 + $0x77]] }
 0x1c3   : > { %v1118_v6 = vadd.f32 %v1116_v5, %v1112_v27  ;;  %v1121_v29 = vadd.f32 %v1120_v10, %v1117_v25  ;;  %7345 = sst [smem:[#allocation40_spill]] %s5353_s25  ;;  %7379 = vst [vmem:[#allocation41_spill] sm:$0xff] %v5449_v35  ;;  %v2080_v16 = vstv %s5341_s11  ;;  %v2306_v58 = vstv %s5343_s15  ;;  %s5480_s11 = sld [smem:[#allocation6 + $0x30]] }
 0x1c4   : > { %7346 = sst [smem:[#allocation38_spill]] %s5355_s18  ;;  %v2532_v46 = vstv %s5345_s14  ;;  %v1860_v54 = vstv %s5347_s23  ;;  %s5470_s4 = sld [smem:[#allocation6 + $0xc]]  ;;  %v5475_v49 = vmul.f32 %v1878_v50, %v5214_v13  ;;  %v5478_v52 = vmul.f32 %v2104_v44, %v5214_v13 }
 0x1c5   : > { %1733 = vrot.lane.b32.xlu1 %v5214_v13, %s7326_s24  ;;  %1725 = vrot.lane.b32.xlu0 %v5212_v53, %s7326_s24  ;;  %v1122_v1 = vadd.f32 %v1120_v10, %v1118_v6  ;;  %v1125_v33 = vmul.f32 0.2, %v1121_v29  ;;  %vm1123_vm10 = vcmp.ge.f32.partialorder %v1121_v29, 0.0  ;;  %7351 = sst [smem:[#allocation51_spill]] %s5369_s10  ;;  %s5388_s10 = sld [smem:[#allocation6 + $0x6]]  ;;  %v5498_v40 = vmul.f32 %v2330_v57, %v5214_v13 }
 0x1c6   : > { %7352 = sst [smem:[#allocation52_spill]] %s5371_s0  ;;  %s5390_s0 = sld [smem:[#allocation6 + $0x2a]]  ;;  %v5501_v31 = vmul.f32 %v2556_v9, %v5214_v13  ;;  %v5504_v55 = vmul.f32 %v1878_v50, %v5212_v53  ;;  %v5513_v62 = vmul.f32 %v2104_v44, %v5212_v53  ;;  %v5516_v27 = vmul.f32 %v2330_v57, %v5212_v53 }
 0x1c7   : > { %v1126_v21 = vmul.f32 0.2, %v1122_v1  ;;  %vm1124_vm11 = vcmp.ge.f32.partialorder %v1122_v1, 0.0  ;;  %v5259_v32 = vsel %vm1123_vm10, %v1121_v29, %v1125_v33  ;;  %7357 = sst [smem:[#allocation57_spill]] %s5386_s16  ;;  %s5416_s16 = sld [smem:[#allocation6 + $0x74]]  ;;  %v5524_v25 = vmul.f32 %v2556_v9, %v5212_v53 }
 0x1c8   : > { %7360 = sst [smem:[#allocation46_spill]] %s5392_s17  ;;  %s5482_s15 = sld [smem:[#allocation6 + $0x54]]  ;;  %v5527_v6 = vmul.f32 %v1932_v63, %v5259_v32  ;;  %v5556_v17 = vmul.f32 %v2384_v45, %v5259_v32  ;;  %v5573_v34 = vmul.f32 %v2610_v51, %v5259_v32 }
 0x1c9   : > { %1765 = vrot.lane.b32.xlu1 %v5214_v13, %s7327_s3  ;;  %1757 = vrot.lane.b32.xlu0 %v5212_v53, %s7327_s3  ;;  %v5261_v41 = vsel %vm1124_vm11, %v1122_v1, %v1126_v21  ;;  %7361 = sst [smem:[#allocation47_spill]] %s5395_s12  ;;  %s5410_s17 = sld [smem:[#allocation6 + $0x8]] }
 0x1ca   : > { %s5412_s12 = sld [smem:[#allocation6 + $0x2c]]  ;;  %7380 = sst [smem:[#allocation75_spill]] %s5460_s19  ;;  %v5530_v10 = vmul.f32 %v1932_v63, %v5261_v41  ;;  %v5551_v21 = vmul.f32 %v2158_v61, %v5261_v41  ;;  %7409 = vst [vmem:[#allocation50_spill] sm:$0xff] %v5556_v17  ;;  %v5568_v36 = vmul.f32 %v2384_v45, %v5261_v41  ;;  %7413 = vst [vmem:[#allocation44_spill] sm:$0xff] %v5573_v34 }
 0x1cb   : > { %7358 = sst [smem:[#allocation61_spill]] %s5388_s10  ;;  %s5406_s10 = sld [smem:[#allocation6 + $0x4f]]  ;;  %v5584_v4 = vmul.f32 %v2610_v51, %v5261_v41 }
 0x1cc   : > { %7359 = sst [smem:[#allocation62_spill]] %s5390_s0  ;;  %s5408_s0 = sld [smem:[#allocation6 + $0x73]] }
 0x1cd   : > { %1797 = vrot.lane.b32.xlu1 %v5214_v13, %s7328_s28  ;;  %1789 = vrot.lane.b32.xlu0 %v5212_v53, %s7328_s28  ;;  %7369 = sst [smem:[#allocation18_spill]] %s5416_s16  ;;  %s5428_s16 = sld [smem:[#allocation6 + $0x75]] }
 0x1ce   : > { %7381 = sst [smem:[#allocation76_spill]] %s5462_s29  ;;  %s7393_s14 = smov 112  }
 0x1cf   : > { %7366 = sst [smem:[#allocation36_spill]] %s5410_s17  ;;  %s5424_s17 = sld [smem:[#allocation6 + $0x2d]] }
 0x1d0   : > { %7367 = sst [smem:[#allocation60_spill]] %s5412_s12  ;;  %s5426_s12 = sld [smem:[#allocation6 + $0x51]] }
 0x1d1   : > { %1829 = vrot.lane.b32.xlu1 %v5214_v13, %s7329_s20  ;;  %1821 = vrot.lane.b32.xlu0 %v5212_v53, %s7329_s20  ;;  %7364 = sst [smem:[#allocation64_spill]] %s5406_s10  ;;  %s5490_s25 = sld [smem:[#allocation6 + $0xe]]  ;;  %v5539_v53 = vmul.f32 %v2158_v61, %v5259_v32 }
 0x1d2   : > { %7365 = sst [smem:[#allocation65_spill]] %s5408_s0  ;;  %s5506_s1 = sld [smem:[#allocation6 + $0x32]] }
 0x1d3   : > { %7373 = sst [smem:[#allocation16_spill]] %s5428_s16  ;;  %s5518_s5 = sld [smem:[#allocation6 + $0x7a]] }
 0x1d4   : > { %7383 = sst [smem:[#allocation77_spill]] %s5468_s26  ;;  %s7397_s18 = sld [smem:[#allocation24_spill]] }
 0x1d5   : > { %1607 = vrot.lane.b32.xlu1 %v5261_v41, %s7322_s13  ;;  %1599 = vrot.lane.b32.xlu0 %v5259_v32, %s7322_s13  ;;  %7371 = sst [smem:[#allocation20_spill]] %s5424_s17  ;;  %s5438_s17 = sld [smem:[#allocation6 + $0x52]] }
 0x1d6   : > { %7372 = sst [smem:[#allocation21_spill]] %s5426_s12  ;;  %s5440_s12 = sld [smem:[#allocation6 + $0x76]] }
 0x1d7   : > { %7385 = sst [smem:[#allocation78_spill]] %s5470_s4  ;;  %s7400_s23 = sld [smem:[#allocation25_spill]] }
 0x1d8   : > { %7386 = sst [smem:[#allocation79_spill]] %s5480_s11  ;;  %s7401_s22 = sld [smem:[#allocation26_spill]] }
 0x1d9   : > { %1639 = vrot.lane.b32.xlu1 %v5261_v41, %s7323_s21  ;;  %1631 = vrot.lane.b32.xlu0 %v5259_v32, %s7323_s21  ;;  %7388 = sst [smem:[#allocation80_spill]] %s5482_s15  ;;  %s5541_s9 = sld [smem:[#allocation6 + $0x7b]] }
 0x1da   : > { %7392 = sst [smem:[#allocation82_spill]] %s5490_s25  ;;  %v1986_v33 = vstv %s7397_s18  ;;  %s7408_s25 = smov 111  }
 0x1db   : > { %7376 = sst [smem:[#allocation72_spill]] %s5438_s17  ;;  %s5560_s6 = sld [smem:[#allocation6 + $0x58]]  ;;  %v5591_v30 = vmul.f32 %v1986_v33, %v5329_v42 }
 0x1dc   : > { %7377 = sst [smem:[#allocation73_spill]] %s5440_s12  ;;  %s7412_s18 = sld [smem:[#allocation28_spill]] }
 0x1dd   : > { %1671 = vrot.lane.b32.xlu1 %v5261_v41, %s7324_s30  ;;  %1663 = vrot.lane.b32.xlu0 %v5259_v32, %s7324_s30  ;;  %7395 = sst [smem:[#allocation83_spill]] %s5506_s1  ;;  %v2212_v0 = vstv %s7400_s23  ;;  %s7417_s27 = sld [smem:[#allocation22_spill]]  ;;  %7420 = vst [vmem:[#allocation55_spill] sm:$0xff] %v5591_v30 }
 0x1de   : > { %7398 = sst [smem:[#allocation24_spill]] %s5518_s5  ;;  %s5543_s5 = sld [smem:[#allocation6 + $0x10]]  ;;  %v2438_v15 = vstv %s7401_s22  ;;  %v5604_v50 = vmul.f32 %v2212_v0, %v5331_v59 }
 0x1df   : > { %7404 = sst [smem:[#allocation86_spill]] %s5541_s9  ;;  %s5586_s22 = sld [smem:[#allocation6 + $0x35]]  ;;  %v5607_v44 = vmul.f32 %v2438_v15, %v5329_v42  ;;  %v5619_v9 = vmul.f32 %v2438_v15, %v5331_v59 }
 0x1e0   : > { %s5588_s23 = sld [smem:[#allocation6 + $0x59]]  ;;  %s5598_s8 = sld [smem:[#allocation6 + $0x12]]  ;;  %7428 = vst [vmem:[#allocation68_spill] sm:$0xff] %v5604_v50 }
 0x1e1   : > { %1703 = vrot.lane.b32.xlu1 %v5261_v41, %s7325_s2  ;;  %1695 = vrot.lane.b32.xlu0 %v5259_v32, %s7325_s2  ;;  %7411 = sst [smem:[#allocation88_spill]] %s5560_s6  ;;  %7430 = vst [vmem:[#allocation69_spill] sm:$0xff] %v5607_v44  ;;  %7436 = vst [vmem:[#allocation96_spill] sm:$0xff] %v5619_v9  ;;  %s5640_s15 = sld [smem:[#allocation6 + $0x5b]] }
 0x1e2   : > { %v2040_v57 = vstv %s7412_s18  ;;  %s5646_s1 = sld [smem:[#allocation6 + $0x7f]]  ;;  %s5656_s18 = sld [smem:[#allocation6 + $0x38]] }
 0x1e3   : > { %v2266_v61 = vstv %s7417_s27  ;;  %s5678_s0 = sld [smem:[#allocation6 + $0x39]]  ;;  %s7462_s12 = smov 15   ;;  %v5701_v1 = vmul.f32 %v2040_v57, %v5452_v43 }
 0x1e4   : > { %s5696_s29 = sld [smem:[#allocation6 + $0x3b]]  ;;  %s7467_s26 = sld [smem:[#allocation86_spill]]  ;;  %v5706_v7 = vmul.f32 %v2266_v61, %v5449_v35  ;;  %v5745_v15 = vmul.f32 %v2266_v61, %v5452_v43 }
 0x1e5   : > { %1735 = vrot.lane.b32.xlu1 %v5261_v41, %s7326_s24  ;;  %1727 = vrot.lane.b32.xlu0 %v5259_v32, %s7326_s24  ;;  %7416 = sst [smem:[#allocation90_spill]] %s5586_s22  ;;  %s5698_s4 = sld [smem:[#allocation6 + $0x5f]]  ;;  %7470 = vst [vmem:[#allocation107_spill] sm:$0xff] %v5701_v1 }
 0x1e6   : > { %7418 = sst [smem:[#allocation91_spill]] %s5588_s23  ;;  %s7429_s23 = sld [smem:[#allocation31_spill]]  ;;  %7472 = vst [vmem:[#allocation108_spill] sm:$0xff] %v5706_v7  ;;  %7487 = vst [vmem:[#allocation111_spill] sm:$0xff] %v5745_v15 }
 0x1e7   : > { %7426 = sst [smem:[#allocation93_spill]] %s5598_s8  ;;  %s5614_s8 = sld [smem:[#allocation6 + $0x36]] }
 0x1e8   : > { %s5714_s11 = sld [smem:[#allocation6 + $0x18]]  ;;  %s5728_s10 = sld [smem:[#allocation6 + $0x84]] }
 0x1e9   : > { %1767 = vrot.lane.b32.xlu1 %v5261_v41, %s7327_s3  ;;  %1759 = vrot.lane.b32.xlu0 %v5259_v32, %s7327_s3  ;;  %7453 = sst [smem:[#allocation22_spill]] %s5678_s0  ;;  %s7484_s17 = smov 1  }
 0x1ea   : > { %7466 = sst [smem:[#allocation106_spill]] %s5696_s29  ;;  %s5738_s19 = sld [smem:[#allocation6 + $0x3d]] }
 0x1eb   : > { %7468 = sst [smem:[#allocation86_spill]] %s5698_s4  ;;  %s5758_s4 = sld [smem:[#allocation6 + $0x1a]] }
 0x1ec   : > { %v6950_v48 = vstv %s7429_s23  ;;  %s7497_s0 = smov 127   ;;  %s5778_s6 = sld [smem:[#allocation6 + $0x86]] }
 0x1ed   : > { %1799 = vrot.lane.b32.xlu1 %v5261_v41, %s7328_s28  ;;  %1791 = vrot.lane.b32.xlu0 %v5259_v32, %s7328_s28  ;;  %s5375_s28 = sld [smem:[#allocation6 + $0x5]]  ;;  %7434 = sst [smem:[#allocation94_spill]] %s5614_s8 }
 0x1ee   : > { %s5631_s8 = sld [smem:[#allocation6 + $0x13]]  ;;  %7476 = sst [smem:[#allocation110_spill]] %s5714_s11 }
 0x1ef   : > { %s5800_s29 = sld [smem:[#allocation6 + $0x3f]]  ;;  %s5802_s23 = sld [smem:[#allocation6 + $0x63]] }
 0x1f0   : > { %s5823_s22 = sld [smem:[#allocation6 + $0x87]]  ;;  %s5829_s27 = sld [smem:[#allocation6 + $0x1c]] }
 0x1f1   : > { %1831 = vrot.lane.b32.xlu1 %v5261_v41, %s7329_s20  ;;  %1823 = vrot.lane.b32.xlu0 %v5259_v32, %s7329_s20  ;;  %s5365_s20 = sld [smem:[#allocation6 + $0x6e]]  ;;  %v5594_v32 = vmul.f32 %v1986_v33, %v5331_v59  ;;  %v5601_v41 = vmul.f32 %v2212_v0, %v5329_v42  ;;  %v5664_v33 = vmul.f32 %v2040_v57, %v5449_v35  ;;  %7490 = sst [smem:[#allocation114_spill]] %s5758_s4 }
 0x1f2   : > { %s7512_s16 = sld [smem:[#allocation37_spill]]  ;;  %s7521_s4 = smov 111  }
 0x1f3   : > { %7354 = sst [smem:[#allocation54_spill]] %s5375_s28  ;;  %7422 = vst [vmem:[#allocation66_spill] sm:$0xff] %v5594_v32  ;;  %7427 = vst [vmem:[#allocation67_spill] sm:$0xff] %v5601_v41 }
 0x1f4   : > { %s5397_s28 = sld [smem:[#allocation6 + $0x7]]  ;;  %7442 = sst [smem:[#allocation99_spill]] %s5631_s8  ;;  %7449 = vst [vmem:[#allocation101_spill] sm:$0xff] %v5664_v33 }
 0x1f5   : > { %1609 = vrot.lane.b32.xlu1 %v5331_v59, %s7322_s13  ;;  %1601 = vrot.lane.b32.xlu0 %v5329_v42, %s7322_s13  ;;  %s5361_s13 = sld [smem:[#allocation6 + $0x26]]  ;;  %s7505_s8 = smov 113  }
 0x1f7   : > { %7349 = sst [smem:[#allocation45_spill]] %s5365_s20  ;;  %s5384_s20 = sld [smem:[#allocation6 + $0x4d]] }
 0x1f8   : > { %s7526_s11 = sld [smem:[#allocation45_spill]] }
 0x1f9   : > { %1641 = vrot.lane.b32.xlu1 %v5331_v59, %s7323_s21  ;;  %1633 = vrot.lane.b32.xlu0 %v5329_v42, %s7323_s21  ;;  %s5382_s21 = sld [smem:[#allocation6 + $0x29]] }
 0x1fa   : > { %7362 = sst [smem:[#allocation49_spill]] %s5397_s28  ;;  %s5414_s28 = sld [smem:[#allocation6 + $0x50]] }
 0x1fb   : > { %7347 = sst [smem:[#allocation42_spill]] %s5361_s13  ;;  %s5508_s13 = sld [smem:[#allocation6 + $0x56]] }
 0x1fd   : > { %1673 = vrot.lane.b32.xlu1 %v5331_v59, %s7324_s30  ;;  %1665 = vrot.lane.b32.xlu0 %v5329_v42, %s7324_s30  ;;  %7356 = sst [smem:[#allocation59_spill]] %s5384_s20  ;;  %s5404_s30 = sld [smem:[#allocation6 + $0x2b]] }
 0x1fe   : > { %s7419_s20 = sld [smem:[#allocation29_spill]] }
 0x1ff   : > { %7355 = sst [smem:[#allocation58_spill]] %s5382_s21  ;;  %s5558_s21 = sld [smem:[#allocation6 + $0x34]] }
 0x200   : > { %7368 = sst [smem:[#allocation17_spill]] %s5414_s28  ;;  %s5442_s28 = sld [smem:[#allocation6 + $0xb]] }
 0x201   : > { %1705 = vrot.lane.b32.xlu1 %v5331_v59, %s7325_s2  ;;  %1697 = vrot.lane.b32.xlu0 %v5329_v42, %s7325_s2  ;;  %s5418_s2 = sld [smem:[#allocation6 + $0x9]]  ;;  %7396 = sst [smem:[#allocation84_spill]] %s5508_s13 }
 0x202   : > { %s5534_s13 = sld [smem:[#allocation6 + $0x57]] }
 0x203   : > { %7363 = sst [smem:[#allocation63_spill]] %s5404_s30  ;;  %s5680_s30 = sld [smem:[#allocation6 + $0x5d]] }
 0x204   : > { %v2492_v45 = vstv %s7419_s20  ;;  %s5686_s20 = sld [smem:[#allocation6 + $0x81]] }
 0x205   : > { %1737 = vrot.lane.b32.xlu1 %v5331_v59, %s7326_s24  ;;  %1729 = vrot.lane.b32.xlu0 %v5329_v42, %s7326_s24  ;;  %s5436_s24 = sld [smem:[#allocation6 + $0x2e]]  ;;  %7410 = sst [smem:[#allocation87_spill]] %s5558_s21  ;;  %v5750_v13 = vmul.f32 %v2492_v45, %v5449_v35  ;;  %v5783_v0 = vmul.f32 %v2492_v45, %v5452_v43 }
 0x206   : > { %7378 = sst [smem:[#allocation74_spill]] %s5442_s28  ;;  %s7447_s21 = smov 16  }
 0x207   : > { %7370 = sst [smem:[#allocation19_spill]] %s5418_s2  ;;  %s5430_s2 = sld [smem:[#allocation6 + $0xa]]  ;;  %7488 = vst [vmem:[#allocation112_spill] sm:$0xff] %v5750_v13  ;;  %7501 = vst [vmem:[#allocation116_spill] sm:$0xff] %v5783_v0 }
 0x208   : > { %7403 = sst [smem:[#allocation26_spill]] %s5534_s13  ;;  %s5658_s13 = sld [smem:[#allocation6 + $0x5c]] }
 0x209   : > { %1769 = vrot.lane.b32.xlu1 %v5331_v59, %s7327_s3  ;;  %1761 = vrot.lane.b32.xlu0 %v5329_v42, %s7327_s3  ;;  %s5532_s3 = sld [smem:[#allocation6 + $0x33]]  ;;  %7455 = sst [smem:[#allocation103_spill]] %s5680_s30 }
 0x20a   : > { %7459 = sst [smem:[#allocation104_spill]] %s5686_s20  ;;  %s5720_s30 = sld [smem:[#allocation6 + $0x3c]] }
 0x20b   : > { %7375 = sst [smem:[#allocation71_spill]] %s5436_s24  ;;  %s5688_s24 = sld [smem:[#allocation6 + $0x17]] }
 0x20c   : > { %s5730_s28 = sld [smem:[#allocation6 + $0x19]] }
 0x20d   : > { %7374 = sst [smem:[#allocation23_spill]] %s5430_s2  ;;  %1801 = vrot.lane.b32.xlu1 %v5331_v59, %s7393_s14  ;;  %1793 = vrot.lane.b32.xlu0 %v5329_v42, %s7393_s14  ;;  %s5520_s14 = sld [smem:[#allocation6 + $0xf]] }
 0x20e   : > { %s5740_s20 = sld [smem:[#allocation6 + $0x61]]  ;;  %s5766_s2 = sld [smem:[#allocation6 + $0x62]] }
 0x20f   : > { %7402 = sst [smem:[#allocation25_spill]] %s5532_s3 }
 0x210   : > { %s5672_s3 = sld [smem:[#allocation6 + $0x15]] }
 0x211   : > { %1833 = vrot.lane.b32.xlu1 %v5331_v59, %s7408_s25  ;;  %1825 = vrot.lane.b32.xlu0 %v5329_v42, %s7408_s25  ;;  %s5575_s25 = sld [smem:[#allocation6 + $0x7c]]  ;;  %7461 = sst [smem:[#allocation105_spill]] %s5688_s24 }
 0x212   : > { %s5764_s24 = sld [smem:[#allocation6 + $0x3e]] }
 0x213   : > { %7399 = sst [smem:[#allocation85_spill]] %s5520_s14 }
 0x214   : > { %s7405_s14 = sld [smem:[#allocation27_spill]]  ;;  %7486 = sst [smem:[#allocation29_spill]] %s5740_s20 }
 0x215   : > { %7406 = sst [smem:[#allocation27_spill]] %s5543_s5  ;;  %s5577_s5 = sld [smem:[#allocation6 + $0x11]] }
 0x216   : > { %7450 = sst [smem:[#allocation102_spill]] %s5672_s3  ;;  %s5722_s3 = sld [smem:[#allocation6 + $0x60]] }
 0x217   : > { %7414 = sst [smem:[#allocation28_spill]] %s5575_s25  ;;  %s7432_s25 = smov 17  }
 0x218   : > { %1611 = vrot.lane.b32.xlu1 %v5452_v43, %s7432_s25  ;;  %1603 = vrot.lane.b32.xlu0 %v5449_v35, %s7432_s25  ;;  %s5629_s25 = sld [smem:[#allocation6 + $0x7e]]  ;;  %s7491_s9 = sld [smem:[#allocation102_spill]] }
 0x219   : > { %7493 = sst [smem:[#allocation102_spill]] %s5764_s24  ;;  %s7513_s24 = sld [smem:[#allocation39_spill]] }
 0x21a   : > { %v2664_v20 = vstv %s7405_s14  ;;  %s5596_s14 = sld [smem:[#allocation6 + $0x7d]]  ;;  %s7514_s20 = sld [smem:[#allocation40_spill]] }
 0x21b   : > { %7415 = sst [smem:[#allocation89_spill]] %s5577_s5  ;;  %v5622_v63 = vmul.f32 %v2664_v20, %v5329_v42  ;;  %s5648_s5 = sld [smem:[#allocation6 + $0x14]]  ;;  %v5661_v29 = vmul.f32 %v2664_v20, %v5331_v59  ;;  %v5788_v20 = vmul.f32 %v6950_v48, %v5452_v43 }
 0x21c   : > { %1643 = vrot.lane.b32.xlu1 %v5452_v43, %s7447_s21  ;;  %1635 = vrot.lane.b32.xlu0 %v5449_v35, %s7447_s21  ;;  %s5670_s21 = sld [smem:[#allocation6 + $0x80]]  ;;  %7495 = sst [smem:[#allocation115_spill]] %s5766_s2 }
 0x21d   : > { %7437 = vst [vmem:[#allocation97_spill] sm:$0xff] %v5622_v63  ;;  %7448 = vst [vmem:[#allocation100_spill] sm:$0xff] %v5661_v29  ;;  %s7510_s2 = smov 112  }
 0x21e   : > { %7441 = sst [smem:[#allocation98_spill]] %s5629_s25  ;;  %7502 = vst [vmem:[#allocation117_spill] sm:$0xff] %v5788_v20 }
 0x21f   : > { %s7503_s25 = sld [smem:[#allocation120_spill]]  ;;  %v7518_v33 = vstv %s7513_s24 }
 0x220   : > { %7424 = sst [smem:[#allocation92_spill]] %s5596_s14  ;;  %s5616_s14 = sld [smem:[#allocation6 + $0x5a]]  ;;  %1675 = vrot.lane.b32.xlu1 %v5452_v43, %s7462_s12  ;;  %1667 = vrot.lane.b32.xlu0 %v5449_v35, %s7462_s12  ;;  %v7519_v1 = vmov %v7518_v33 }
 0x221   : > { %s5712_s12 = sld [smem:[#allocation6 + $0x83]]  ;;  %s7523_s24 = sld [smem:[#allocation38_spill]] }
 0x224   : > { %1707 = vrot.lane.b32.xlu1 %v5452_v43, %s7484_s17  ;;  %1699 = vrot.lane.b32.xlu0 %v5449_v35, %s7484_s17  ;;  %s5756_s17 = sld [smem:[#allocation6 + $0x85]] }
 0x225   : > { %v5813_v45 = vld [vmem:[%s7503_s25] sm:$0x77] }
 0x226   : > { %7435 = sst [smem:[#allocation95_spill]] %s5616_s14  ;;  %7504 = vst [vmem:[#allocation118_spill] sm:$0xff] %v5813_v45  ;;  %s5831_s14 = sld [smem:[#allocation6 + $0x40]] }
 0x227   : > { %7474 = sst [smem:[#allocation109_spill]] %s5712_s12  ;;  %v1606_v5 = vpop.permute.xlu1 %1605  ;;  %v1598_v59 = vpop.permute.xlu0 %1597  ;;  %s5920_s12 = sld [smem:[#allocation6 + $0x88]] }
 0x228   : > { %1739 = vrot.lane.b32.xlu1 %v5452_v43, %s7497_s0  ;;  %1731 = vrot.lane.b32.xlu0 %v5449_v35, %s7497_s0  ;;  %s5794_s0 = sld [smem:[#allocation6 + $0x1b]]  ;;  %v1613_v48 = vsel %vm389_vm2, %v1598_v59, %v1606_v5  ;;  %v1617_v42 = vsel %vm389_vm2, %v1606_v5, %v1598_v59 }
 0x229   : > { %v1621_v47 = vmul.f32 %v5813_v45, %v1617_v42  ;;  %v1622_v24 = vmul.f32 %v1613_v48, %v3797_v23 }
 0x22a   : > { %7489 = sst [smem:[#allocation113_spill]] %s5756_s17  ;;  %s5922_s17 = sld [smem:[#allocation6 + $0x1d]] }
 0x22b   : > { %v1638_v51 = vpop.permute.xlu1 %1637  ;;  %v1630_v57 = vpop.permute.xlu0 %1629  ;;  %v1855_v56 = vmul.f32 %v1854_v3, %v1621_v47  ;;  %v1856_v12 = vmul.f32 %v1854_v3, %v1622_v24  ;;  %v2081_v61 = vmul.f32 %v2080_v16, %v1621_v47  ;;  %v2082_v48 = vmul.f32 %v2080_v16, %v1622_v24 }
 0x22c   : > { %1771 = vrot.lane.b32.xlu1 %v5452_v43, %s7505_s8  ;;  %1763 = vrot.lane.b32.xlu0 %v5449_v35, %s7505_s8  ;;  %v2307_v42 = vmul.f32 %v2306_v58, %v1621_v47  ;;  %v1645_v60 = vsel %vm425_vm0, %v1630_v57, %v1638_v51  ;;  %v1649_v22 = vsel %vm425_vm0, %v1638_v51, %v1630_v57  ;;  %v5863_v51 = vld [vmem:[%s7503_s25 + $0x8] sm:$0x77]  ;;  %s7525_s8 = sld [smem:[#allocation43_spill]] }
 0x22d   : > { %v2308_v16 = vmul.f32 %v2306_v58, %v1622_v24  ;;  %v2533_v18 = vmul.f32 %v2532_v46, %v1621_v47  ;;  %v1653_v57 = vmul.f32 %v5863_v51, %v1649_v22  ;;  %v1654_v59 = vmul.f32 %v1645_v60, %v7176_v37 }
 0x22e   : > { %v2534_v3 = vmul.f32 %v2532_v46, %v1622_v24  ;;  %v7516_v22 = vstv %s7512_s16  ;;  %v7520_v24 = vstv %s7514_s20  ;;  %s7524_s20 = sld [smem:[#allocation42_spill]]  ;;  %s7532_s16 = sld [smem:[#allocation48_spill]] }
 0x22f   : > { %v1670_v58 = vpop.permute.xlu1 %1669  ;;  %v1662_v5 = vpop.permute.xlu0 %1661  ;;  %v1861_v13 = vmul.f32 %v1860_v54, %v1653_v57  ;;  %v1862_v20 = vmul.f32 %v1860_v54, %v1654_v59  ;;  %v2087_v0 = vmul.f32 %v7516_v22, %v1653_v57  ;;  %v7517_v60 = vmov %v7516_v22 }
 0x230   : > { %1803 = vrot.lane.b32.xlu1 %v5452_v43, %s7510_s2  ;;  %1795 = vrot.lane.b32.xlu0 %v5449_v35, %s7510_s2  ;;  %s5867_s2 = sld [smem:[#allocation6 + $0x64]]  ;;  %v2088_v7 = vmul.f32 %v7517_v60, %v1654_v59  ;;  %v2313_v15 = vmul.f32 %v7518_v33, %v1653_v57  ;;  %v2314_v46 = vmul.f32 %v7519_v1, %v1654_v59 }
 0x231   : > { %v2539_v63 = vmul.f32 %v7520_v24, %v1653_v57  ;;  %v1863_v38 = vadd.f32 %v1861_v13, %v1855_v56  ;;  %v7522_v19 = vmov %v7520_v24  ;;  %v1864_v9 = vadd.f32 %v1862_v20, %v1856_v12  ;;  %7527 = sst [smem:[#allocation32_spill]] %s5922_s17  ;;  %s7571_s17 = sld [smem:[#allocation63_spill]] }
 0x232   : > { %v2540_v29 = vmul.f32 %v7522_v19, %v1654_v59  ;;  %v2089_v60 = vadd.f32 %v2087_v0, %v2081_v61  ;;  %v2090_v44 = vadd.f32 %v2088_v7, %v2082_v48  ;;  %v2315_v33 = vadd.f32 %v2313_v15, %v2307_v42  ;;  %v5908_v7 = vld [vmem:[%s7503_s25 + $0x10] sm:$0x77] }
 0x233   : > { %v1702_v1 = vpop.permute.xlu1 %1701  ;;  %v1694_v50 = vpop.permute.xlu0 %1693  ;;  %v1677_v57 = vsel %vm461_vm1, %v1662_v5, %v1670_v58  ;;  %v2316_v12 = vadd.f32 %v2314_v46, %v2308_v16  ;;  %v2541_v13 = vadd.f32 %v2539_v63, %v2533_v18 }
 0x234   : > { %1835 = vrot.lane.b32.xlu1 %v5452_v43, %s7521_s4  ;;  %1827 = vrot.lane.b32.xlu0 %v5449_v35, %s7521_s4  ;;  %v1681_v43 = vsel %vm461_vm1, %v1670_v58, %v1662_v5  ;;  %v1709_v19 = vsel %vm497_vm3, %v1694_v50, %v1702_v1  ;;  %v1713_v56 = vsel %vm497_vm3, %v1702_v1, %v1694_v50  ;;  %v5915_v50 = vld [vmem:[%s7503_s25 + $0x18] sm:$0x77]  ;;  %v7528_v5 = vstv %s7523_s24  ;;  %s7533_s4 = sld [smem:[#allocation51_spill]]  ;;  %s7539_s24 = sld [smem:[#allocation53_spill]] }
 0x235   : > { %v1685_v0 = vmul.f32 %v5908_v7, %v1681_v43  ;;  %v1686_v15 = vmul.f32 %v1677_v57, %v7179_v14  ;;  %v2542_v20 = vadd.f32 %v2540_v29, %v2534_v3  ;;  %v1717_v18 = vmul.f32 %v5915_v50, %v1713_v56 }
 0x236   : > { %7515 = sst [smem:[#allocation30_spill]] %s5867_s2  ;;  %v1718_v63 = vmul.f32 %v1709_v19, %v3807_v26  ;;  %v7529_v42 = vmov %v7528_v5  ;;  %v7530_v29 = vstv %s7524_s20  ;;  %v7534_v1 = vstv %s7525_s8  ;;  %s7538_s2 = sld [smem:[#allocation52_spill]] }
 0x237   : > { %v1867_v59 = vmul.f32 %v7528_v5, %v1685_v0  ;;  %v1868_v48 = vmul.f32 %v7529_v42, %v1686_v15  ;;  %v2093_v3 = vmul.f32 %v7530_v29, %v1685_v0  ;;  %v7531_v16 = vmov %v7530_v29  ;;  %v1734_v46 = vpop.permute.xlu1 %1733  ;;  %v1726_v24 = vpop.permute.xlu0 %1725  ;;  %s5956_s20 = sld [smem:[#allocation6 + $0x41]]  ;;  %s7549_s8 = sld [smem:[#allocation54_spill]] }
 0x238   : > { %v2094_v58 = vmul.f32 %v7531_v16, %v1686_v15  ;;  %v2319_v57 = vmul.f32 %v7534_v1, %v1685_v0  ;;  %v7535_v43 = vmov %v7534_v1  ;;  %v7536_v56 = vstv %s7526_s11  ;;  %s7551_s11 = sld [smem:[#allocation59_spill]] }
 0x239   : > { %v2320_v19 = vmul.f32 %v7535_v43, %v1686_v15  ;;  %v2545_v61 = vmul.f32 %v7536_v56, %v1685_v0  ;;  %v7537_v22 = vmov %v7536_v56  ;;  %v1869_v42 = vadd.f32 %v1867_v59, %v1863_v38 }
 0x23a   : > { %v2546_v5 = vmul.f32 %v7537_v22, %v1686_v15  ;;  %v1870_v29 = vadd.f32 %v1868_v48, %v1864_v9  ;;  %v2095_v16 = vadd.f32 %v2093_v3, %v2089_v60  ;;  %v2096_v54 = vadd.f32 %v2094_v58, %v2090_v44 }
 0x23b   : > { %v2321_v47 = vadd.f32 %v2319_v57, %v2315_v33  ;;  %v2322_v35 = vadd.f32 %v2320_v19, %v2316_v12  ;;  %v2547_v41 = vadd.f32 %v2545_v61, %v2541_v13  ;;  %v7540_v32 = vstv %s7532_s16  ;;  %v1766_v38 = vpop.permute.xlu1 %1765  ;;  %v1758_v15 = vpop.permute.xlu0 %1757  ;;  %s7552_s16 = sld [smem:[#allocation57_spill]] }
 0x23c   : > { %v2548_v30 = vadd.f32 %v2546_v5, %v2542_v20  ;;  %v1873_v1 = vmul.f32 %v7540_v32, %v1717_v18  ;;  %v7541_v34 = vmov %v7540_v32  ;;  %v7542_v17 = vstv %s7533_s4  ;;  %s7587_s4 = sld [smem:[#allocation17_spill]] }
 0x23d   : > { %v1874_v43 = vmul.f32 %v7541_v34, %v1718_v63  ;;  %v2099_v0 = vmul.f32 %v7542_v17, %v1717_v18  ;;  %v7543_v56 = vmov %v7542_v17  ;;  %v7544_v9 = vstv %s7538_s2  ;;  %7548 = sst [smem:[#allocation33_spill]] %s5956_s20  ;;  %s7550_s2 = sld [smem:[#allocation58_spill]] }
 0x23e   : > { %v2100_v22 = vmul.f32 %v7543_v56, %v1718_v63  ;;  %v2325_v59 = vmul.f32 %v7544_v9, %v1717_v18  ;;  %v7545_v60 = vmov %v7544_v9  ;;  %v7546_v33 = vstv %s7539_s24  ;;  %s7564_s24 = sld [smem:[#allocation47_spill]]  ;;  %s7572_s20 = sld [smem:[#allocation64_spill]] }
 0x23f   : > { %v2326_v44 = vmul.f32 %v7545_v60, %v1718_v63  ;;  %v2551_v12 = vmul.f32 %v7546_v33, %v1717_v18  ;;  %v7547_v13 = vmov %v7546_v33  ;;  %v1875_v32 = vadd.f32 %v1873_v1, %v1869_v42  ;;  %v1798_v42 = vpop.permute.xlu1 %1797 }
 0x240   : > { %v2552_v20 = vmul.f32 %v7547_v13, %v1718_v63  ;;  %v1876_v34 = vadd.f32 %v1874_v43, %v1870_v29  ;;  %v2101_v61 = vadd.f32 %v2099_v0, %v2095_v16  ;;  %v2102_v48 = vadd.f32 %v2100_v22, %v2096_v54  ;;  %v1790_v54 = vpop.permute.xlu0 %1789 }
 0x241   : > { %v2327_v17 = vadd.f32 %v2325_v59, %v2321_v47  ;;  %v2328_v3 = vadd.f32 %v2326_v44, %v2322_v35  ;;  %v2553_v19 = vadd.f32 %v2551_v12, %v2547_v41  ;;  %v1741_v18 = vsel %vm533_vm4, %v1726_v24, %v1734_v46 }
 0x242   : > { %v2554_v5 = vadd.f32 %v2552_v20, %v2548_v30  ;;  %v1745_v63 = vsel %vm533_vm4, %v1734_v46, %v1726_v24  ;;  %v1882_v35 = vadd.f32 %v5475_v49, %v1876_v34  ;;  %v2108_v47 = vadd.f32 %v5478_v52, %v2102_v48  ;;  %v5969_v30 = vld [vmem:[%s7503_s25 + $0x28] sm:$0x77] }
 0x243   : > { %v1749_v41 = vmul.f32 %v5969_v30, %v1741_v18  ;;  %v1750_v29 = vmul.f32 %v1745_v63, %v3847_v39  ;;  %v2334_v46 = vadd.f32 %v5498_v40, %v2328_v3  ;;  %v1881_v24 = vadd.f32 %v5504_v55, %v1875_v32  ;;  %v1830_v20 = vpop.permute.xlu1 %1829 }
 0x244   : > { %v2107_v49 = vadd.f32 %v5513_v62, %v2101_v61  ;;  %v2333_v16 = vadd.f32 %v5516_v27, %v2327_v17  ;;  %v7553_v52 = vstv %s7549_s8  ;;  %v7555_v56 = vstv %s7550_s2  ;;  %v1822_v62 = vpop.permute.xlu0 %1821  ;;  %s7561_s8 = sld [smem:[#allocation61_spill]]  ;;  %s7562_s2 = sld [smem:[#allocation62_spill]] }
 0x245   : > { %v1885_v1 = vmul.f32 %v7553_v52, %v1749_v41  ;;  %v7554_v43 = vmov %v7553_v52  ;;  %v2111_v22 = vmul.f32 %v7555_v56, %v1749_v41  ;;  %v7556_v9 = vmov %v7555_v56 }
 0x246   : > { %v1886_v0 = vmul.f32 %v7554_v43, %v1750_v29  ;;  %v2112_v59 = vmul.f32 %v7556_v9, %v1750_v29  ;;  %v7557_v60 = vstv %s7551_s11  ;;  %v2559_v12 = vadd.f32 %v5524_v25, %v2553_v19  ;;  %s7563_s11 = sld [smem:[#allocation46_spill]] }
 0x247   : > { %v2337_v44 = vmul.f32 %v7557_v60, %v1749_v41  ;;  %v7558_v33 = vmov %v7557_v60  ;;  %v7559_v55 = vstv %s7552_s16  ;;  %v2560_v27 = vadd.f32 %v5501_v31, %v2554_v5  ;;  %s7569_s16 = sld [smem:[#allocation49_spill]] }
 0x248   : > { %v2338_v40 = vmul.f32 %v7558_v33, %v1750_v29  ;;  %v2563_v13 = vmul.f32 %v7559_v55, %v1749_v41  ;;  %v1887_v32 = vadd.f32 %v1885_v1, %v1881_v24  ;;  %v7560_v34 = vmov %v7559_v55 }
 0x249   : > { %v2564_v61 = vmul.f32 %v7560_v34, %v1750_v29  ;;  %v1888_v17 = vadd.f32 %v1886_v0, %v1882_v35  ;;  %v2113_v3 = vadd.f32 %v2111_v22, %v2107_v49  ;;  %v2114_v18 = vadd.f32 %v2112_v59, %v2108_v47  ;;  %v6007_v47 = vld [vmem:[%s7503_s25 + $0x30] sm:$0x77]  ;;  %v1600_v29 = vpop.permute.xlu0 %1599 }
 0x24a   : > { %v2339_v63 = vadd.f32 %v2337_v44, %v2333_v16  ;;  %v1773_v52 = vsel %vm569_vm5, %v1758_v15, %v1766_v38  ;;  %v1777_v25 = vsel %vm569_vm5, %v1766_v38, %v1758_v15  ;;  %v1805_v19 = vsel %vm605_vm6, %v1790_v54, %v1798_v42  ;;  %v1608_v15 = vpop.permute.xlu1 %1607 }
 0x24b   : > { %v1809_v31 = vsel %vm605_vm6, %v1798_v42, %v1790_v54  ;;  %v2340_v5 = vadd.f32 %v2338_v40, %v2334_v46  ;;  %v2565_v35 = vadd.f32 %v2563_v13, %v2559_v12  ;;  %v1781_v41 = vmul.f32 %v6007_v47, %v1773_v52  ;;  %v6014_v42 = vld [vmem:[%s7503_s25 + $0x38] sm:$0x77] }
 0x24c   : > { %v1782_v38 = vmul.f32 %v1777_v25, %v3940_v28  ;;  %v2566_v24 = vadd.f32 %v2564_v61, %v2560_v27  ;;  %v1813_v54 = vmul.f32 %v6014_v42, %v1805_v19  ;;  %v1814_v46 = vmul.f32 %v1809_v31, %v3993_v2 }
 0x24d   : > { %v1837_v49 = vsel %vm641_vm7, %v1822_v62, %v1830_v20  ;;  %v7565_v16 = vstv %s7561_s8  ;;  %v7567_v56 = vstv %s7562_s2  ;;  %v7570_v60 = vstv %s7563_s11  ;;  %s7574_s8 = sld [smem:[#allocation65_spill]]  ;;  %s7586_s11 = sld [smem:[#allocation60_spill]] }
 0x24e   : > { %v1891_v1 = vmul.f32 %v7565_v16, %v1781_v41  ;;  %v7566_v43 = vmov %v7565_v16  ;;  %v2117_v22 = vmul.f32 %v7567_v56, %v1781_v41  ;;  %v7568_v9 = vmov %v7567_v56  ;;  %v1640_v19 = vpop.permute.xlu1 %1639  ;;  %s7585_s2 = sld [smem:[#allocation36_spill]] }
 0x24f   : > { %v1892_v0 = vmul.f32 %v7566_v43, %v1782_v38  ;;  %v2118_v59 = vmul.f32 %v7568_v9, %v1782_v38  ;;  %v2343_v44 = vmul.f32 %v7570_v60, %v1781_v41  ;;  %v1841_v33 = vsel %vm641_vm7, %v1830_v20, %v1822_v62  ;;  %v1632_v20 = vpop.permute.xlu0 %1631 }
 0x250   : > { %v1614_v40 = vsel %vm389_vm2, %v1600_v29, %v1608_v15  ;;  %v1618_v12 = vsel %vm389_vm2, %v1608_v15, %v1600_v29  ;;  %v1893_v55 = vadd.f32 %v1891_v1, %v1887_v32  ;;  %v7573_v13 = vmov %v7570_v60 }
 0x251   : > { %v2344_v27 = vmul.f32 %v7573_v13, %v1782_v38  ;;  %v7575_v34 = vstv %s7564_s24  ;;  %v1894_v62 = vadd.f32 %v1892_v0, %v1888_v17  ;;  %v2119_v31 = vadd.f32 %v2117_v22, %v2113_v3  ;;  %s7610_s24 = sld [smem:[#allocation71_spill]] }
 0x252   : > { %v2569_v61 = vmul.f32 %v7575_v34, %v1781_v41  ;;  %v7576_v52 = vmov %v7575_v34  ;;  %v2120_v16 = vadd.f32 %v2118_v59, %v2114_v18  ;;  %v2345_v43 = vadd.f32 %v2343_v44, %v2339_v63  ;;  %v1672_v0 = vpop.permute.xlu1 %1671 }
 0x253   : > { %v2570_v25 = vmul.f32 %v7576_v52, %v1782_v38  ;;  %v7577_v56 = vstv %s7569_s16  ;;  %v7579_v29 = vstv %s7571_s17  ;;  %v7581_v13 = vstv %s7572_s20  ;;  %v1664_v22 = vpop.permute.xlu0 %1663  ;;  %s7588_s17 = sld [smem:[#allocation18_spill]]  ;;  %s7593_s20 = sld [smem:[#allocation19_spill]] }
 0x254   : > { %v1897_v9 = vmul.f32 %v7577_v56, %v1813_v54  ;;  %v7578_v60 = vmov %v7577_v56  ;;  %v2123_v32 = vmul.f32 %v7579_v29, %v1813_v54  ;;  %v7580_v1 = vmov %v7579_v29  ;;  %s7611_s16 = sld [smem:[#allocation72_spill]] }
 0x255   : > { %v1898_v15 = vmul.f32 %v7578_v60, %v1814_v46  ;;  %v2124_v48 = vmul.f32 %v7580_v1, %v1814_v46  ;;  %v2349_v57 = vmul.f32 %v7581_v13, %v1813_v54  ;;  %v7582_v58 = vmov %v7581_v13 }
 0x256   : > { %v2350_v41 = vmul.f32 %v7582_v58, %v1814_v46  ;;  %v7583_v34 = vstv %s7574_s8  ;;  %v2346_v17 = vadd.f32 %v2344_v27, %v2340_v5  ;;  %v2571_v3 = vadd.f32 %v2569_v61, %v2565_v35  ;;  %v6061_v5 = vld [vmem:[%s7503_s25 + $0x40] sm:$0x77]  ;;  %s7594_s8 = sld [smem:[#allocation20_spill]] }
 0x257   : > { %v2575_v38 = vmul.f32 %v7583_v34, %v1813_v54  ;;  %v7584_v52 = vmov %v7583_v34  ;;  %v2572_v18 = vadd.f32 %v2570_v25, %v2566_v24  ;;  %v1899_v63 = vadd.f32 %v1897_v9, %v1893_v55 }
 0x258   : > { %v2576_v2 = vmul.f32 %v7584_v52, %v1814_v46  ;;  %v1900_v59 = vadd.f32 %v1898_v15, %v1894_v62  ;;  %v2125_v44 = vadd.f32 %v2123_v32, %v2119_v31  ;;  %v2126_v56 = vadd.f32 %v2124_v48, %v2120_v16  ;;  %v1696_v16 = vpop.permute.xlu0 %1695 }
 0x259   : > { %v2351_v60 = vadd.f32 %v2349_v57, %v2345_v43  ;;  %v2352_v58 = vadd.f32 %v2350_v41, %v2346_v17  ;;  %v2577_v29 = vadd.f32 %v2575_v38, %v2571_v3  ;;  %v1845_v35 = vmul.f32 %v6061_v5, %v1837_v49 }
 0x25a   : > { %v1846_v24 = vmul.f32 %v1841_v33, %v3997_v8  ;;  %v2578_v54 = vadd.f32 %v2576_v2, %v2572_v18  ;;  %v1623_v46 = vmul.f32 %v5813_v45, %v1618_v12  ;;  %v1624_v57 = vmul.f32 %v1614_v40, %v3797_v23  ;;  %v1704_v2 = vpop.permute.xlu1 %1703 }
 0x25b   : > { %v1646_v48 = vsel %vm425_vm0, %v1632_v20, %v1640_v19  ;;  %v7589_v55 = vstv %s7585_s2  ;;  %v7591_v62 = vstv %s7586_s11  ;;  %v7595_v12 = vstv %s7587_s4  ;;  %s7596_s2 = sld [smem:[#allocation21_spill]]  ;;  %s7598_s11 = sld [smem:[#allocation16_spill]] }
 0x25c   : > { %v1903_v27 = vmul.f32 %v7589_v55, %v1845_v35  ;;  %v7590_v61 = vmov %v7589_v55  ;;  %v2129_v31 = vmul.f32 %v7591_v62, %v1845_v35  ;;  %v7592_v49 = vmov %v7591_v62  ;;  %s7609_s4 = sld [smem:[#allocation23_spill]] }
 0x25d   : > { %v1904_v25 = vmul.f32 %v7590_v61, %v1846_v24  ;;  %v2130_v33 = vmul.f32 %v7592_v49, %v1846_v24  ;;  %v2355_v43 = vmul.f32 %v7595_v12, %v1845_v35  ;;  %v1650_v40 = vsel %vm425_vm0, %v1640_v19, %v1632_v20 }
 0x25e   : > { %v1678_v9 = vsel %vm461_vm1, %v1664_v22, %v1672_v0  ;;  %v1682_v15 = vsel %vm461_vm1, %v1672_v0, %v1664_v22  ;;  %v1905_v32 = vadd.f32 %v1903_v27, %v1899_v63  ;;  %v7597_v1 = vmov %v7595_v12  ;;  %v1736_v27 = vpop.permute.xlu1 %1735  ;;  %v1728_v12 = vpop.permute.xlu0 %1727 }
 0x25f   : > { %v2356_v13 = vmul.f32 %v7597_v1, %v1846_v24  ;;  %v7599_v41 = vstv %s7588_s17  ;;  %v1906_v17 = vadd.f32 %v1904_v25, %v1900_v59  ;;  %v2131_v3 = vadd.f32 %v2129_v31, %v2125_v44  ;;  %s7612_s17 = sld [smem:[#allocation73_spill]] }
 0x260   : > { %v2581_v34 = vmul.f32 %v7599_v41, %v1845_v35  ;;  %v7600_v38 = vmov %v7599_v41  ;;  %v2132_v19 = vadd.f32 %v2130_v33, %v2126_v56  ;;  %v2357_v20 = vadd.f32 %v2355_v43, %v2351_v60 }
 0x261   : > { %v2582_v52 = vmul.f32 %v7600_v38, %v1846_v24  ;;  %v7601_v18 = vstv %s7593_s20  ;;  %v7603_v49 = vstv %s7594_s8  ;;  %v7605_v1 = vstv %s7596_s2  ;;  %s7615_s20 = sld [smem:[#allocation74_spill]]  ;;  %s7618_s8 = sld [smem:[#allocation75_spill]] }
 0x262   : > { %v1909_v55 = vmul.f32 %v7601_v18, %v1623_v46  ;;  %v7602_v61 = vmov %v7601_v18  ;;  %v2135_v0 = vmul.f32 %v7603_v49, %v1623_v46  ;;  %v7604_v22 = vmov %v7603_v49  ;;  %s7620_s2 = sld [smem:[#allocation76_spill]] }
 0x263   : > { %v1910_v62 = vmul.f32 %v7602_v61, %v1624_v57  ;;  %v2136_v63 = vmul.f32 %v7604_v22, %v1624_v57  ;;  %v2361_v23 = vmul.f32 %v7605_v1, %v1623_v46  ;;  %v7606_v45 = vmov %v7605_v1 }
 0x264   : > { %v2362_v35 = vmul.f32 %v7606_v45, %v1624_v57  ;;  %v7607_v41 = vstv %s7598_s11  ;;  %v2358_v56 = vadd.f32 %v2356_v13, %v2352_v58  ;;  %v2583_v60 = vadd.f32 %v2581_v34, %v2577_v29  ;;  %v6109_v58 = vpop.permute.xlu1 %1767  ;;  %v6111_v29 = vpop.permute.xlu0 %1759  ;;  %s7622_s11 = sld [smem:[#allocation77_spill]] }
 0x265   : > { %v2587_v24 = vmul.f32 %v7607_v41, %v1623_v46  ;;  %v7608_v59 = vmov %v7607_v41  ;;  %v2584_v25 = vadd.f32 %v2582_v52, %v2578_v54  ;;  %v1911_v31 = vadd.f32 %v1909_v55, %v1905_v32 }
 0x266   : > { %v2588_v44 = vmul.f32 %v7608_v59, %v1624_v57  ;;  %v1912_v33 = vadd.f32 %v1910_v62, %v1906_v17  ;;  %v2137_v43 = vadd.f32 %v2135_v0, %v2131_v3  ;;  %v2138_v38 = vadd.f32 %v2136_v63, %v2132_v19 }
 0x267   : > { %v2363_v18 = vadd.f32 %v2361_v23, %v2357_v20  ;;  %v2364_v61 = vadd.f32 %v2362_v35, %v2358_v56  ;;  %v2589_v49 = vadd.f32 %v2587_v24, %v2583_v60  ;;  %v1655_v45 = vmul.f32 %v5863_v51, %v1650_v40 }
 0x268   : > { %v1656_v46 = vmul.f32 %v1646_v48, %v7176_v37  ;;  %v2590_v54 = vadd.f32 %v2588_v44, %v2584_v25  ;;  %v1687_v57 = vmul.f32 %v5908_v7, %v1682_v15  ;;  %v1688_v32 = vmul.f32 %v1678_v9, %v7179_v14 }
 0x269   : > { %v1710_v23 = vsel %vm497_vm3, %v1696_v16, %v1704_v2  ;;  %v7613_v13 = vstv %s7609_s4  ;;  %v7616_v52 = vstv %s7610_s24  ;;  %v7619_v20 = vstv %s7611_s16  ;;  %s7633_s4 = sld [smem:[#allocation78_spill]]  ;;  %s7634_s24 = sld [smem:[#allocation79_spill]] }
 0x26a   : > { %v1915_v34 = vmul.f32 %v7613_v13, %v1655_v45  ;;  %v7614_v40 = vmov %v7613_v13  ;;  %v2141_v17 = vmul.f32 %v7616_v52, %v1655_v45  ;;  %v7617_v3 = vmov %v7616_v52  ;;  %v1792_v52 = vpop.permute.xlu0 %1791  ;;  %s7635_s16 = sld [smem:[#allocation80_spill]] }
 0x26b   : > { %v1916_v48 = vmul.f32 %v7614_v40, %v1656_v46  ;;  %v2142_v19 = vmul.f32 %v7617_v3, %v1656_v46  ;;  %v2367_v55 = vmul.f32 %v7619_v20, %v1655_v45  ;;  %v1714_v9 = vsel %vm497_vm3, %v1704_v2, %v1696_v16 }
 0x26c   : > { %v1742_v15 = vsel %vm533_vm4, %v1728_v12, %v1736_v27  ;;  %v1746_v62 = vsel %vm533_vm4, %v1736_v27, %v1728_v12  ;;  %v1917_v0 = vadd.f32 %v1915_v34, %v1911_v31  ;;  %v7621_v22 = vmov %v7619_v20  ;;  %v1800_v34 = vpop.permute.xlu1 %1799 }
 0x26d   : > { %v2368_v63 = vmul.f32 %v7621_v22, %v1656_v46  ;;  %v7623_v1 = vstv %s7612_s17  ;;  %v1918_v59 = vadd.f32 %v1916_v48, %v1912_v33  ;;  %v2143_v44 = vadd.f32 %v2141_v17, %v2137_v43  ;;  %s7636_s17 = sld [smem:[#allocation81_spill]] }
 0x26e   : > { %v2593_v35 = vmul.f32 %v7623_v1, %v1655_v45  ;;  %v7624_v41 = vmov %v7623_v1  ;;  %v2144_v2 = vadd.f32 %v2142_v19, %v2138_v38  ;;  %v2369_v16 = vadd.f32 %v2367_v55, %v2363_v18 }
 0x26f   : > { %v2594_v24 = vmul.f32 %v7624_v41, %v1656_v46  ;;  %v7625_v56 = vstv %s7615_s20  ;;  %v7627_v40 = vstv %s7618_s8  ;;  %v7629_v3 = vstv %s7620_s2  ;;  %s7642_s20 = sld [smem:[#allocation82_spill]]  ;;  %s7646_s8 = sld [smem:[#allocation83_spill]] }
 0x270   : > { %v1921_v60 = vmul.f32 %v7625_v56, %v1687_v57  ;;  %v7626_v25 = vmov %v7625_v56  ;;  %v2147_v27 = vmul.f32 %v7627_v40, %v1687_v57  ;;  %v7628_v12 = vmov %v7627_v40  ;;  %s7647_s2 = sld [smem:[#allocation84_spill]] }
 0x271   : > { %v1922_v13 = vmul.f32 %v7626_v25, %v1688_v32  ;;  %v2148_v31 = vmul.f32 %v7628_v12, %v1688_v32  ;;  %v2373_v20 = vmul.f32 %v7629_v3, %v1687_v57  ;;  %v7630_v22 = vmov %v7629_v3 }
 0x272   : > { %v2374_v45 = vmul.f32 %v7630_v22, %v1688_v32  ;;  %v7631_v1 = vstv %s7622_s11  ;;  %v2370_v38 = vadd.f32 %v2368_v63, %v2364_v61  ;;  %v2595_v18 = vadd.f32 %v2593_v35, %v2589_v49  ;;  %s7650_s11 = sld [smem:[#allocation24_spill]] }
 0x273   : > { %v2599_v46 = vmul.f32 %v7631_v1, %v1687_v57  ;;  %v7632_v33 = vmov %v7631_v1  ;;  %v2596_v48 = vadd.f32 %v2594_v24, %v2590_v54  ;;  %v1923_v17 = vadd.f32 %v1921_v60, %v1917_v0  ;;  %v6171_v60 = vpop.permute.xlu1 %1831 }
 0x274   : > { %v2600_v43 = vmul.f32 %v7632_v33, %v1688_v32  ;;  %v1924_v19 = vadd.f32 %v1922_v13, %v1918_v59  ;;  %v2149_v55 = vadd.f32 %v2147_v27, %v2143_v44  ;;  %v2150_v41 = vadd.f32 %v2148_v31, %v2144_v2 }
 0x275   : > { %v2375_v56 = vadd.f32 %v2373_v20, %v2369_v16  ;;  %v2376_v25 = vadd.f32 %v2374_v45, %v2370_v38  ;;  %v2601_v40 = vadd.f32 %v2599_v46, %v2595_v18  ;;  %v1719_v57 = vmul.f32 %v5915_v50, %v1714_v9 }
 0x276   : > { %v1720_v61 = vmul.f32 %v1710_v23, %v3807_v26  ;;  %v2602_v49 = vadd.f32 %v2600_v43, %v2596_v48  ;;  %v1751_v54 = vmul.f32 %v5969_v30, %v1742_v15  ;;  %v1752_v32 = vmul.f32 %v1746_v62, %v3847_v39  ;;  %v6173_v23 = vpop.permute.xlu0 %1823 }
 0x277   : > { %v1774_v0 = vsel %vm569_vm5, %v6111_v29, %v6109_v58  ;;  %v7637_v63 = vstv %s7633_s4  ;;  %v7639_v44 = vstv %s7634_s24  ;;  %v7641_v15 = vstv %s7635_s16  ;;  %s7656_s4 = sld [smem:[#allocation85_spill]]  ;;  %s7657_s24 = sld [smem:[#allocation25_spill]] }
 0x278   : > { %v1927_v35 = vmul.f32 %v7637_v63, %v1719_v57  ;;  %v7638_v24 = vmov %v7637_v63  ;;  %v2153_v2 = vmul.f32 %v7639_v44, %v1719_v57  ;;  %v7640_v16 = vmov %v7639_v44  ;;  %s7660_s16 = sld [smem:[#allocation26_spill]] }
 0x279   : > { %v1928_v59 = vmul.f32 %v7638_v24, %v1720_v61  ;;  %v2154_v9 = vmul.f32 %v7640_v16, %v1720_v61  ;;  %v2379_v62 = vmul.f32 %v7641_v15, %v1719_v57  ;;  %v7643_v13 = vmov %v7641_v15 }
 0x27a   : > { %v2380_v27 = vmul.f32 %v7643_v13, %v1720_v61  ;;  %v7644_v12 = vstv %s7636_s17  ;;  %v1929_v22 = vadd.f32 %v1927_v35, %v1923_v17  ;;  %v2155_v1 = vadd.f32 %v2153_v2, %v2149_v55  ;;  %v1602_v35 = vpop.permute.xlu0 %1601  ;;  %v7655_v2 = vld [vmem:[#allocation44_spill] sm:$0xff]  ;;  %s7667_s17 = sld [smem:[#allocation27_spill]] }
 0x27b   : > { %v2605_v31 = vmul.f32 %v7644_v12, %v1719_v57  ;;  %v7645_v3 = vmov %v7644_v12  ;;  %v1930_v45 = vadd.f32 %v1928_v59, %v1924_v19  ;;  %v2156_v46 = vadd.f32 %v2154_v9, %v2150_v41 }
 0x27c   : > { %v2606_v20 = vmul.f32 %v7645_v3, %v1720_v61  ;;  %v2381_v33 = vadd.f32 %v2379_v62, %v2375_v56  ;;  %v2382_v43 = vadd.f32 %v2380_v27, %v2376_v25  ;;  %v1935_v57 = vadd.f32 %v5527_v6, %v1929_v22 }
 0x27d   : > { %v2607_v38 = vadd.f32 %v2605_v31, %v2601_v40  ;;  %v1936_v48 = vadd.f32 %v5530_v10, %v1930_v45  ;;  %v2162_v63 = vadd.f32 %v5551_v21, %v2156_v46  ;;  %v7648_v24 = vstv %s7642_s20  ;;  %v7653_v21 = vld [vmem:[#allocation50_spill] sm:$0xff]  ;;  %s7668_s20 = sld [smem:[#allocation87_spill]] }
 0x27e   : > { %v2608_v18 = vadd.f32 %v2606_v20, %v2602_v49  ;;  %v1939_v44 = vmul.f32 %v7648_v24, %v1751_v54  ;;  %v2388_v17 = vadd.f32 %v5568_v36, %v2382_v43  ;;  %v7649_v55 = vmov %v7648_v24  ;;  %v1610_v36 = vpop.permute.xlu1 %1609 }
 0x27f   : > { %v1940_v41 = vmul.f32 %v7649_v55, %v1752_v32  ;;  %v2161_v56 = vadd.f32 %v5539_v53, %v2155_v1  ;;  %v7651_v25 = vstv %s7646_s8  ;;  %v2387_v49 = vadd.f32 %v7653_v21, %v2381_v33  ;;  %s7671_s8 = sld [smem:[#allocation88_spill]] }
 0x280   : > { %v2614_v19 = vadd.f32 %v5584_v4, %v2608_v18  ;;  %v2165_v40 = vmul.f32 %v7651_v25, %v1751_v54  ;;  %v7652_v10 = vmov %v7651_v25  ;;  %v1778_v6 = vsel %vm569_vm5, %v6109_v58, %v6111_v29  ;;  %v1634_v25 = vpop.permute.xlu0 %1633 }
 0x281   : > { %v2166_v61 = vmul.f32 %v7652_v10, %v1752_v32  ;;  %v7654_v4 = vstv %s7647_s2  ;;  %v2613_v16 = vadd.f32 %v7655_v2, %v2607_v38  ;;  %v1806_v53 = vsel %vm605_vm6, %v1792_v52, %v1800_v34  ;;  %s7672_s2 = sld [smem:[#allocation28_spill]] }
 0x282   : > { %v2391_v59 = vmul.f32 %v7654_v4, %v1751_v54  ;;  %v1810_v9 = vsel %vm605_vm6, %v1800_v34, %v1792_v52  ;;  %v1941_v15 = vadd.f32 %v1939_v44, %v1935_v57  ;;  %v1942_v62 = vadd.f32 %v1940_v41, %v1936_v48  ;;  %v7662_v52 = vld [vmem:[#allocation70_spill] sm:$0xff] }
 0x283   : > { %v7658_v13 = vmov %v7654_v4  ;;  %v7659_v29 = vstv %s7650_s11  ;;  %v2167_v12 = vadd.f32 %v2165_v40, %v2161_v56  ;;  %v1783_v20 = vmul.f32 %v6007_v47, %v1774_v0  ;;  %v1642_v56 = vpop.permute.xlu1 %1641  ;;  %s7684_s11 = sld [smem:[#allocation90_spill]] }
 0x284   : > { %v2392_v58 = vmul.f32 %v7658_v13, %v1752_v32  ;;  %v2617_v27 = vmul.f32 %v7659_v29, %v1751_v54  ;;  %v7661_v31 = vmov %v7659_v29  ;;  %v1784_v22 = vmul.f32 %v1778_v6, %v3940_v28 }
 0x285   : > { %v2618_v3 = vmul.f32 %v7661_v31, %v1752_v32  ;;  %v2168_v45 = vadd.f32 %v2166_v61, %v2162_v63  ;;  %v2393_v1 = vadd.f32 %v2391_v59, %v2387_v49  ;;  %v1815_v34 = vmul.f32 %v6014_v42, %v1806_v53 }
 0x286   : > { %v1816_v46 = vmul.f32 %v1810_v9, %v7662_v52  ;;  %v7663_v33 = vstv %s7656_s4  ;;  %v7665_v18 = vstv %s7657_s24  ;;  %v2394_v0 = vadd.f32 %v2392_v58, %v2388_v17  ;;  %s7685_s4 = sld [smem:[#allocation91_spill]]  ;;  %s7686_s24 = sld [smem:[#allocation92_spill]] }
 0x287   : > { %v1945_v43 = vmul.f32 %v7663_v33, %v1783_v20  ;;  %v7664_v38 = vmov %v7663_v33  ;;  %v2171_v48 = vmul.f32 %v7665_v18, %v1783_v20  ;;  %v7666_v57 = vmov %v7665_v18 }
 0x288   : > { %v1946_v54 = vmul.f32 %v7664_v38, %v1784_v22  ;;  %v2172_v32 = vmul.f32 %v7666_v57, %v1784_v22  ;;  %v2619_v63 = vadd.f32 %v2617_v27, %v2613_v16  ;;  %v7669_v24 = vstv %s7660_s16  ;;  %s7693_s16 = sld [smem:[#allocation93_spill]] }
 0x289   : > { %v2397_v44 = vmul.f32 %v7669_v24, %v1783_v20  ;;  %v7670_v55 = vmov %v7669_v24  ;;  %v2620_v40 = vadd.f32 %v2618_v3, %v2614_v19  ;;  %v1947_v10 = vadd.f32 %v1945_v43, %v1941_v15 }
 0x28a   : > { %v2398_v41 = vmul.f32 %v7670_v55, %v1784_v22  ;;  %v7673_v61 = vstv %s7467_s26  ;;  %v1948_v17 = vadd.f32 %v1946_v54, %v1942_v62  ;;  %v2173_v4 = vadd.f32 %v2171_v48, %v2167_v12  ;;  %s7683_s26 = sld [smem:[#allocation89_spill]] }
 0x28b   : > { %v2623_v21 = vmul.f32 %v7673_v61, %v1783_v20  ;;  %v7674_v49 = vmov %v7673_v61  ;;  %v2174_v59 = vadd.f32 %v2172_v32, %v2168_v45  ;;  %v2399_v2 = vadd.f32 %v2397_v44, %v2393_v1  ;;  %v1674_v32 = vpop.permute.xlu1 %1673  ;;  %v7687_v61 = vld [vmem:[#allocation118_spill] sm:$0xff] }
 0x28c   : > { %v2624_v6 = vmul.f32 %v7674_v49, %v1784_v22  ;;  %v7675_v16 = vstv %s7667_s17  ;;  %v7677_v58 = vstv %s7668_s20  ;;  %v2400_v33 = vadd.f32 %v2398_v41, %v2394_v0  ;;  %v1666_v0 = vpop.permute.xlu0 %1665  ;;  %v7688_v49 = vld [vmem:[#allocation56_spill] sm:$0xff]  ;;  %s7695_s17 = sld [smem:[#allocation94_spill]]  ;;  %s7696_s20 = sld [smem:[#allocation95_spill]] }
 0x28d   : > { %v1951_v53 = vmul.f32 %v7675_v16, %v1815_v34  ;;  %v7676_v9 = vmov %v7675_v16  ;;  %v2177_v29 = vmul.f32 %v7677_v58, %v1815_v34  ;;  %v7678_v27 = vmov %v7677_v58 }
 0x28e   : > { %v1952_v13 = vmul.f32 %v7676_v9, %v1816_v46  ;;  %v2178_v31 = vmul.f32 %v7678_v27, %v1816_v46  ;;  %v7679_v19 = vstv %s7671_s8  ;;  %v7681_v43 = vstv %s7672_s2  ;;  %s7698_s8 = sld [smem:[#allocation98_spill]]  ;;  %s7709_s2 = sld [smem:[#allocation99_spill]] }
 0x28f   : > { %v2403_v15 = vmul.f32 %v7679_v19, %v1815_v34  ;;  %v7680_v3 = vmov %v7679_v19  ;;  %v2629_v22 = vmul.f32 %v7681_v43, %v1815_v34  ;;  %v2625_v38 = vadd.f32 %v2623_v21, %v2619_v63 }
 0x290   : > { %v2404_v20 = vmul.f32 %v7680_v3, %v1816_v46  ;;  %v2626_v62 = vadd.f32 %v2624_v6, %v2620_v40  ;;  %v1953_v12 = vadd.f32 %v1951_v53, %v1947_v10  ;;  %v7682_v45 = vmov %v7681_v43  ;;  %v1706_v43 = vpop.permute.xlu1 %1705 }
 0x291   : > { %v2630_v1 = vmul.f32 %v7682_v45, %v1816_v46  ;;  %v1954_v54 = vadd.f32 %v1952_v13, %v1948_v17  ;;  %v2179_v18 = vadd.f32 %v2177_v29, %v2173_v4  ;;  %v2180_v48 = vadd.f32 %v2178_v31, %v2174_v59 }
 0x292   : > { %v2405_v57 = vadd.f32 %v2403_v15, %v2399_v2  ;;  %v1838_v34 = vsel %vm641_vm7, %v6173_v23, %v6171_v60  ;;  %v1842_v46 = vsel %vm641_vm7, %v6171_v60, %v6173_v23  ;;  %v1615_v63 = vsel %vm389_vm2, %v1602_v35, %v1610_v36 }
 0x293   : > { %v1619_v24 = vsel %vm389_vm2, %v1610_v36, %v1602_v35  ;;  %v2406_v44 = vadd.f32 %v2404_v20, %v2400_v33  ;;  %v2631_v55 = vadd.f32 %v2629_v22, %v2625_v38  ;;  %v1847_v41 = vmul.f32 %v6061_v5, %v1838_v34 }
 0x294   : > { %v1848_v40 = vmul.f32 %v1842_v46, %v3997_v8  ;;  %v2632_v10 = vadd.f32 %v2630_v1, %v2626_v62  ;;  %v1625_v21 = vmul.f32 %v7687_v61, %v1619_v24  ;;  %v1626_v60 = vmul.f32 %v1615_v63, %v7688_v49 }
 0x295   : > { %v1647_v23 = vsel %vm425_vm0, %v1634_v25, %v1642_v56  ;;  %v7689_v6 = vstv %s7683_s26  ;;  %v7691_v4 = vstv %s7684_s11  ;;  %v7694_v53 = vstv %s7685_s4  ;;  %s7764_s26 = sld [smem:[#allocation29_spill]]  ;;  %s7765_s11 = sld [smem:[#allocation113_spill]] }
 0x296   : > { %v1957_v17 = vmul.f32 %v7689_v6, %v1847_v41  ;;  %v7690_v36 = vmov %v7689_v6  ;;  %v2183_v59 = vmul.f32 %v7691_v4, %v1847_v41  ;;  %v7692_v2 = vmov %v7691_v4 }
 0x297   : > { %v1958_v35 = vmul.f32 %v7690_v36, %v1848_v40  ;;  %v2184_v16 = vmul.f32 %v7692_v2, %v1848_v40  ;;  %v2409_v9 = vmul.f32 %v7694_v53, %v1847_v41  ;;  %v1651_v13 = vsel %vm425_vm0, %v1642_v56, %v1634_v25  ;;  %v1698_v56 = vpop.permute.xlu0 %1697 }
 0x298   : > { %v1679_v58 = vsel %vm461_vm1, %v1666_v0, %v1674_v32  ;;  %v1683_v29 = vsel %vm461_vm1, %v1674_v32, %v1666_v0  ;;  %v1959_v27 = vadd.f32 %v1957_v17, %v1953_v12  ;;  %v7697_v31 = vmov %v7694_v53 }
 0x299   : > { %v2410_v33 = vmul.f32 %v7697_v31, %v1848_v40  ;;  %v7699_v19 = vstv %s7686_s24  ;;  %v1960_v25 = vadd.f32 %v1958_v35, %v1954_v54  ;;  %v2185_v22 = vadd.f32 %v2183_v59, %v2179_v18 }
 0x29a   : > { %v2635_v15 = vmul.f32 %v7699_v19, %v1847_v41  ;;  %v7700_v3 = vmov %v7699_v19  ;;  %v2186_v38 = vadd.f32 %v2184_v16, %v2180_v48  ;;  %v2411_v62 = vadd.f32 %v2409_v9, %v2405_v57 }
 0x29b   : > { %v2636_v20 = vmul.f32 %v7700_v3, %v1848_v40  ;;  %v7701_v45 = vstv %s7693_s16  ;;  %v7703_v0 = vstv %s7695_s17  ;;  %v7705_v24 = vstv %s7696_s20  ;;  %s6479_s16 = sld [smem:[#allocation6 + $0x1e]]  ;;  %s6489_s17 = sld [smem:[#allocation6 + $0x42]] }
 0x29c   : > { %v1963_v1 = vmul.f32 %v7701_v45, %v1625_v21  ;;  %v7702_v34 = vmov %v7701_v45  ;;  %v2189_v12 = vmul.f32 %v7703_v0, %v1625_v21  ;;  %v7704_v46 = vmov %v7703_v0  ;;  %s7802_s20 = sld [smem:[#allocation32_spill]] }
 0x29d   : > { %v1964_v32 = vmul.f32 %v7702_v34, %v1626_v60  ;;  %v2190_v63 = vmul.f32 %v7704_v46, %v1626_v60  ;;  %v2415_v61 = vmul.f32 %v7705_v24, %v1625_v21  ;;  %v7706_v6 = vmov %v7705_v24 }
 0x29e   : > { %v2416_v41 = vmul.f32 %v7706_v6, %v1626_v60  ;;  %v7707_v17 = vstv %s7698_s8  ;;  %v2412_v54 = vadd.f32 %v2410_v33, %v2406_v44  ;;  %v2637_v18 = vadd.f32 %v2635_v15, %v2631_v55  ;;  %v1738_v44 = vpop.permute.xlu1 %1737  ;;  %v1730_v55 = vpop.permute.xlu0 %1729  ;;  %s7803_s8 = sld [smem:[#allocation33_spill]] }
 0x29f   : > { %v2641_v40 = vmul.f32 %v7707_v17, %v1625_v21  ;;  %v7708_v36 = vmov %v7707_v17  ;;  %v2638_v48 = vadd.f32 %v2636_v20, %v2632_v10  ;;  %v1965_v57 = vadd.f32 %v1963_v1, %v1959_v27 }
 0x2a0   : > { %v2642_v4 = vmul.f32 %v7708_v36, %v1626_v60  ;;  %v1966_v35 = vadd.f32 %v1964_v32, %v1960_v25  ;;  %v2191_v59 = vadd.f32 %v2189_v12, %v2185_v22  ;;  %v2192_v2 = vadd.f32 %v2190_v63, %v2186_v38 }
 0x2a1   : > { %v2417_v16 = vadd.f32 %v2415_v61, %v2411_v62  ;;  %v2418_v53 = vadd.f32 %v2416_v41, %v2412_v54  ;;  %v2643_v9 = vadd.f32 %v2641_v40, %v2637_v18  ;;  %v1657_v31 = vmul.f32 %v5863_v51, %v1651_v13 }
 0x2a2   : > { %v1658_v21 = vmul.f32 %v1647_v23, %v7176_v37  ;;  %v2644_v10 = vadd.f32 %v2642_v4, %v2638_v48  ;;  %v1689_v60 = vmul.f32 %v5908_v7, %v1683_v29  ;;  %v1690_v27 = vmul.f32 %v1679_v58, %v7179_v14  ;;  %v1770_v54 = vpop.permute.xlu1 %1769  ;;  %v1762_v18 = vpop.permute.xlu0 %1761 }
 0x2a3   : > { %v1711_v33 = vsel %vm497_vm3, %v1698_v56, %v1706_v43  ;;  %v7710_v19 = vstv %s7709_s2  ;;  %v7712_v13 = vstv %s5638_s7  ;;  %v7714_v22 = vstv %s5640_s15  ;;  %s7726_s7 = sld [smem:[#allocation22_spill]]  ;;  %s7734_s15 = sld [smem:[#allocation105_spill]] }
 0x2a4   : > { %v1969_v15 = vmul.f32 %v7710_v19, %v1657_v31  ;;  %v7711_v3 = vmov %v7710_v19  ;;  %v2195_v23 = vmul.f32 %v7712_v13, %v1657_v31  ;;  %v7713_v20 = vmov %v7712_v13  ;;  %s6524_s2 = sld [smem:[#allocation6 + $0x66]] }
 0x2a5   : > { %v1970_v51 = vmul.f32 %v7711_v3, %v1658_v21  ;;  %v2196_v25 = vmul.f32 %v7713_v20, %v1658_v21  ;;  %v2421_v38 = vmul.f32 %v7714_v22, %v1657_v31  ;;  %v1715_v7 = vsel %vm497_vm3, %v1706_v43, %v1698_v56 }
 0x2a6   : > { %v1743_v58 = vsel %vm533_vm4, %v1730_v55, %v1738_v44  ;;  %v1747_v29 = vsel %vm533_vm4, %v1738_v44, %v1730_v55  ;;  %v1971_v62 = vadd.f32 %v1969_v15, %v1965_v57  ;;  %v7715_v45 = vmov %v7714_v22 }
 0x2a7   : > { %v2422_v1 = vmul.f32 %v7715_v45, %v1658_v21  ;;  %v7716_v34 = vstv %s5646_s1  ;;  %v1972_v46 = vadd.f32 %v1970_v51, %v1966_v35  ;;  %v2197_v63 = vadd.f32 %v2195_v23, %v2191_v59  ;;  %s7727_s1 = sld [smem:[#allocation103_spill]] }
 0x2a8   : > { %v2647_v32 = vmul.f32 %v7716_v34, %v1657_v31  ;;  %v7717_v0 = vmov %v7716_v34  ;;  %v2198_v43 = vadd.f32 %v2196_v25, %v2192_v2  ;;  %v2423_v56 = vadd.f32 %v2421_v38, %v2417_v16 }
 0x2a9   : > { %v2648_v12 = vmul.f32 %v7717_v0, %v1658_v21  ;;  %v7718_v24 = vstv %s5648_s5  ;;  %v7720_v17 = vstv %s5656_s18  ;;  %v7722_v48 = vstv %s5658_s13  ;;  %s7728_s13 = sld [smem:[#allocation104_spill]]  ;;  %s7738_s5 = sld [smem:[#allocation106_spill]] }
 0x2aa   : > { %v1975_v61 = vmul.f32 %v7718_v24, %v1689_v60  ;;  %v7719_v6 = vmov %v7718_v24  ;;  %v2201_v40 = vmul.f32 %v7720_v17, %v1689_v60  ;;  %v7721_v36 = vmov %v7720_v17  ;;  %s7741_s18 = sld [smem:[#allocation86_spill]] }
 0x2ab   : > { %v1976_v41 = vmul.f32 %v7719_v6, %v1690_v27  ;;  %v2202_v4 = vmul.f32 %v7721_v36, %v1690_v27  ;;  %v2427_v57 = vmul.f32 %v7722_v48, %v1689_v60  ;;  %v7723_v44 = vmov %v7722_v48 }
 0x2ac   : > { %v2428_v31 = vmul.f32 %v7723_v44, %v1690_v27  ;;  %v7724_v55 = vstv %s5670_s21  ;;  %v2424_v2 = vadd.f32 %v2422_v1, %v2418_v53  ;;  %v2649_v16 = vadd.f32 %v2647_v32, %v2643_v9  ;;  %s7745_s21 = sld [smem:[#allocation109_spill]] }
 0x2ad   : > { %v2653_v21 = vmul.f32 %v7724_v55, %v1689_v60  ;;  %v7725_v35 = vmov %v7724_v55  ;;  %v2650_v19 = vadd.f32 %v2648_v12, %v2644_v10  ;;  %v1977_v15 = vadd.f32 %v1975_v61, %v1971_v62 }
 0x2ae   : > { %v2654_v59 = vmul.f32 %v7725_v35, %v1690_v27  ;;  %v1978_v3 = vadd.f32 %v1976_v41, %v1972_v46  ;;  %v2203_v51 = vadd.f32 %v2201_v40, %v2197_v63  ;;  %v2204_v13 = vadd.f32 %v2202_v4, %v2198_v43  ;;  %v1802_v46 = vpop.permute.xlu1 %1801 }
 0x2af   : > { %v2429_v23 = vadd.f32 %v2427_v57, %v2423_v56  ;;  %v2430_v20 = vadd.f32 %v2428_v31, %v2424_v2  ;;  %v2655_v25 = vadd.f32 %v2653_v21, %v2649_v16  ;;  %v1721_v60 = vmul.f32 %v5915_v50, %v1715_v7  ;;  %v1794_v50 = vpop.permute.xlu0 %1793  ;;  %v7739_v57 = vld [vmem:[#allocation66_spill] sm:$0xff]  ;;  %v7740_v31 = vld [vmem:[#allocation55_spill] sm:$0xff]  ;;  %v7744_v16 = vld [vmem:[#allocation67_spill] sm:$0xff] }
 0x2b0   : > { %v1722_v53 = vmul.f32 %v1711_v33, %v3807_v26  ;;  %v2656_v9 = vadd.f32 %v2654_v59, %v2650_v19  ;;  %v1753_v10 = vmul.f32 %v5969_v30, %v1743_v58  ;;  %v1754_v27 = vmul.f32 %v1747_v29, %v3847_v39 }
 0x2b1   : > { %v1775_v22 = vsel %vm569_vm5, %v1762_v18, %v1770_v54  ;;  %v7729_v38 = vstv %s7491_s9  ;;  %v7731_v34 = vstv %s7726_s7  ;;  %v7733_v7 = vstv %s7727_s1  ;;  %s7752_s9 = sld [smem:[#allocation110_spill]] }
 0x2b2   : > { %v1981_v62 = vmul.f32 %v7729_v38, %v1721_v60  ;;  %v7730_v45 = vmov %v7729_v38  ;;  %v2207_v32 = vmul.f32 %v7731_v34, %v1721_v60  ;;  %v7732_v0 = vmov %v7731_v34  ;;  %v7750_v38 = vld [vmem:[#allocation96_spill] sm:$0xff]  ;;  %s6526_s7 = sld [smem:[#allocation6 + $0x8a]] }
 0x2b3   : > { %v1982_v1 = vmul.f32 %v7730_v45, %v1722_v53  ;;  %v2208_v12 = vmul.f32 %v7732_v0, %v1722_v53  ;;  %v2433_v33 = vmul.f32 %v7733_v7, %v1721_v60  ;;  %v7735_v63 = vmov %v7733_v7  ;;  %v7751_v45 = vld [vmem:[#allocation100_spill] sm:$0xff]  ;;  %v7755_v7 = vld [vmem:[#allocation97_spill] sm:$0xff] }
 0x2b4   : > { %v2434_v30 = vmul.f32 %v7735_v63, %v1722_v53  ;;  %v7736_v58 = vstv %s7728_s13  ;;  %v1983_v24 = vadd.f32 %v1981_v62, %v1977_v15  ;;  %v2209_v6 = vadd.f32 %v2207_v32, %v2203_v51  ;;  %s7822_s13 = sld [smem:[#allocation125_spill]] }
 0x2b5   : > { %v2659_v29 = vmul.f32 %v7736_v58, %v1721_v60  ;;  %v7737_v43 = vmov %v7736_v58  ;;  %v1984_v61 = vadd.f32 %v1982_v1, %v1978_v3  ;;  %v2210_v41 = vadd.f32 %v2208_v12, %v2204_v13 }
 0x2b6   : > { %v2660_v56 = vmul.f32 %v7737_v43, %v1722_v53  ;;  %v2435_v17 = vadd.f32 %v2433_v33, %v2429_v23  ;;  %v2436_v40 = vadd.f32 %v2434_v30, %v2430_v20  ;;  %v1779_v4 = vsel %vm569_vm5, %v1770_v54, %v1762_v18  ;;  %v7746_v18 = vld [vmem:[#allocation68_spill] sm:$0xff]  ;;  %v1834_v53 = vpop.permute.xlu1 %1833 }
 0x2b7   : > { %v2661_v48 = vadd.f32 %v2659_v29, %v2655_v25  ;;  %v1990_v44 = vadd.f32 %v7739_v57, %v1984_v61  ;;  %v1989_v55 = vadd.f32 %v7740_v31, %v1983_v24  ;;  %v7742_v21 = vstv %s7734_s15  ;;  %v7749_v25 = vld [vmem:[#allocation69_spill] sm:$0xff]  ;;  %s6566_s15 = sld [smem:[#allocation6 + $0x8c]] }
 0x2b8   : > { %v2662_v36 = vadd.f32 %v2660_v56, %v2656_v9  ;;  %v1993_v35 = vmul.f32 %v7742_v21, %v1753_v10  ;;  %v7743_v59 = vmov %v7742_v21  ;;  %v2215_v19 = vadd.f32 %v7744_v16, %v2209_v6  ;;  %v1826_v9 = vpop.permute.xlu0 %1825 }
 0x2b9   : > { %v1994_v2 = vmul.f32 %v7743_v59, %v1754_v27  ;;  %v1807_v15 = vsel %vm605_vm6, %v1794_v50, %v1802_v46  ;;  %v1811_v54 = vsel %vm605_vm6, %v1802_v46, %v1794_v50  ;;  %v2216_v3 = vadd.f32 %v7746_v18, %v2210_v41 }
 0x2ba   : > { %v7747_v51 = vstv %s7738_s5  ;;  %v2441_v60 = vadd.f32 %v7749_v25, %v2435_v17  ;;  %v2442_v62 = vadd.f32 %v7750_v38, %v2436_v40  ;;  %v2668_v1 = vadd.f32 %v7751_v45, %v2662_v36  ;;  %s6574_s5 = sld [smem:[#allocation6 + $0x21]] }
 0x2bb   : > { %v2219_v13 = vmul.f32 %v7747_v51, %v1753_v10  ;;  %v7748_v23 = vmov %v7747_v51  ;;  %v1995_v34 = vadd.f32 %v1993_v35, %v1989_v55  ;;  %v7753_v32 = vstv %s7741_s18  ;;  %v1612_v35 = vpop.permute.xlu1 %1611  ;;  %s6576_s18 = sld [smem:[#allocation6 + $0x45]] }
 0x2bc   : > { %v2220_v20 = vmul.f32 %v7748_v23, %v1754_v27  ;;  %v2445_v0 = vmul.f32 %v7753_v32, %v1753_v10  ;;  %v1996_v12 = vadd.f32 %v1994_v2, %v1990_v44  ;;  %v7754_v46 = vmov %v7753_v32  ;;  %v1604_v59 = vpop.permute.xlu0 %1603 }
 0x2bd   : > { %v2446_v50 = vmul.f32 %v7754_v46, %v1754_v27  ;;  %v2667_v33 = vadd.f32 %v7755_v7, %v2661_v48  ;;  %v7756_v63 = vstv %s7745_s21  ;;  %v2221_v58 = vadd.f32 %v2219_v13, %v2215_v19 }
 0x2be   : > { %v2671_v30 = vmul.f32 %v7756_v63, %v1753_v10  ;;  %v7757_v29 = vmov %v7756_v63  ;;  %v1785_v56 = vmul.f32 %v6007_v47, %v1775_v22  ;;  %v1786_v24 = vmul.f32 %v1779_v4, %v3940_v28 }
 0x2bf   : > { %v2672_v43 = vmul.f32 %v7757_v29, %v1754_v27  ;;  %v2222_v61 = vadd.f32 %v2220_v20, %v2216_v3  ;;  %v2447_v6 = vadd.f32 %v2445_v0, %v2441_v60  ;;  %v1817_v41 = vmul.f32 %v6014_v42, %v1807_v15 }
 0x2c0   : > { %v1818_v17 = vmul.f32 %v1811_v54, %v7662_v52  ;;  %v7758_v40 = vstv %s7752_s9  ;;  %v7760_v57 = vstv %s5720_s30  ;;  %v2448_v47 = vadd.f32 %v2446_v50, %v2442_v62  ;;  %s6431_s30 = sld [smem:[#allocation6 + $0x65]] }
 0x2c1   : > { %v1999_v36 = vmul.f32 %v7758_v40, %v1785_v56  ;;  %v7759_v48 = vmov %v7758_v40  ;;  %v2225_v44 = vmul.f32 %v7760_v57, %v1785_v56  ;;  %v7761_v31 = vmov %v7760_v57  ;;  %v1644_v40 = vpop.permute.xlu1 %1643 }
 0x2c2   : > { %v2000_v10 = vmul.f32 %v7759_v48, %v1786_v24  ;;  %v2226_v27 = vmul.f32 %v7761_v31, %v1786_v24  ;;  %v2673_v22 = vadd.f32 %v2671_v30, %v2667_v33  ;;  %v7762_v4 = vstv %s5722_s3  ;;  %s6439_s3 = sld [smem:[#allocation6 + $0x89]] }
 0x2c3   : > { %v2451_v55 = vmul.f32 %v7762_v4, %v1785_v56  ;;  %v7763_v21 = vmov %v7762_v4  ;;  %v2674_v2 = vadd.f32 %v2672_v43, %v2668_v1  ;;  %v2001_v16 = vadd.f32 %v1999_v36, %v1995_v34  ;;  %v1636_v36 = vpop.permute.xlu0 %1635 }
 0x2c4   : > { %v2452_v42 = vmul.f32 %v7763_v21, %v1786_v24  ;;  %v7766_v19 = vstv %s5728_s10  ;;  %v2002_v3 = vadd.f32 %v2000_v10, %v1996_v12  ;;  %v2227_v51 = vadd.f32 %v2225_v44, %v2221_v58  ;;  %s7777_s10 = sld [smem:[#allocation102_spill]] }
 0x2c5   : > { %v2677_v15 = vmul.f32 %v7766_v19, %v1785_v56  ;;  %v7767_v54 = vmov %v7766_v19  ;;  %v2228_v13 = vadd.f32 %v2226_v27, %v2222_v61  ;;  %v2453_v23 = vadd.f32 %v2451_v55, %v2447_v6 }
 0x2c6   : > { %v2678_v18 = vmul.f32 %v7767_v54, %v1786_v24  ;;  %v7768_v20 = vstv %s5730_s28  ;;  %v7770_v62 = vstv %s5738_s19  ;;  %v2454_v1 = vadd.f32 %v2452_v42, %v2448_v47  ;;  %s7776_s28 = sld [smem:[#allocation114_spill]]  ;;  %s7778_s19 = sld [smem:[#allocation115_spill]] }
 0x2c7   : > { %v2005_v25 = vmul.f32 %v7768_v20, %v1817_v41  ;;  %v7769_v60 = vmov %v7768_v20  ;;  %v2231_v45 = vmul.f32 %v7770_v62, %v1817_v41  ;;  %v7771_v32 = vmov %v7770_v62 }
 0x2c8   : > { %v2006_v38 = vmul.f32 %v7769_v60, %v1818_v17  ;;  %v2232_v0 = vmul.f32 %v7771_v32, %v1818_v17  ;;  %v7772_v34 = vstv %s7764_s26  ;;  %v7774_v12 = vstv %s7765_s11  ;;  %s7810_s26 = sld [smem:[#allocation31_spill]]  ;;  %s6582_s11 = sld [smem:[#allocation6 + $0x69]] }
 0x2c9   : > { %v2457_v46 = vmul.f32 %v7772_v34, %v1817_v41  ;;  %v7773_v50 = vmov %v7772_v34  ;;  %v2683_v33 = vmul.f32 %v7774_v12, %v1817_v41  ;;  %v2679_v63 = vadd.f32 %v2677_v15, %v2673_v22 }
 0x2ca   : > { %v2458_v7 = vmul.f32 %v7773_v50, %v1818_v17  ;;  %v2680_v30 = vadd.f32 %v2678_v18, %v2674_v2  ;;  %v2007_v58 = vadd.f32 %v2005_v25, %v2001_v16  ;;  %v7775_v29 = vmov %v7774_v12 }
 0x2cb   : > { %v2684_v43 = vmul.f32 %v7775_v29, %v1818_v17  ;;  %v2008_v56 = vadd.f32 %v2006_v38, %v2002_v3  ;;  %v2233_v24 = vadd.f32 %v2231_v45, %v2227_v51  ;;  %v2234_v61 = vadd.f32 %v2232_v0, %v2228_v13 }
 0x2cc   : > { %v2459_v6 = vadd.f32 %v2457_v46, %v2453_v23  ;;  %v1839_v48 = vsel %vm641_vm7, %v1826_v9, %v1834_v53  ;;  %v1843_v41 = vsel %vm641_vm7, %v1834_v53, %v1826_v9  ;;  %v1616_v17 = vsel %vm389_vm2, %v1604_v59, %v1612_v35  ;;  %v3334_v53 = vld [vmem:[%s7503_s25] sm:$0x77] }
 0x2cd   : > { %v1620_v10 = vsel %vm389_vm2, %v1612_v35, %v1604_v59  ;;  %v2460_v57 = vadd.f32 %v2458_v7, %v2454_v1  ;;  %v2685_v44 = vadd.f32 %v2683_v33, %v2679_v63  ;;  %v1849_v31 = vmul.f32 %v6061_v5, %v1839_v48 }
 0x2ce   : > { %v1850_v27 = vmul.f32 %v1843_v41, %v3997_v8  ;;  %v2686_v47 = vadd.f32 %v2684_v43, %v2680_v30  ;;  %v1627_v9 = vmul.f32 %v3334_v53, %v1620_v10  ;;  %v1628_v22 = vmul.f32 %v1616_v17, %v7688_v49  ;;  %v3335_v53 = vld [vmem:[%s7503_s25 + $0x8] sm:$0x77] }
 0x2cf   : > { %v1648_v4 = vsel %vm425_vm0, %v1636_v36, %v1644_v40  ;;  %v7779_v55 = vstv %s7776_s28  ;;  %v7781_v35 = vstv %s7777_s10  ;;  %v7783_v19 = vstv %s7778_s19  ;;  %s6599_s28 = sld [smem:[#allocation6 + $0x46]]  ;;  %s6601_s10 = sld [smem:[#allocation6 + $0x6a]] }
 0x2d0   : > { %v2011_v21 = vmul.f32 %v7779_v55, %v1849_v31  ;;  %v7780_v42 = vmov %v7779_v55  ;;  %v2237_v59 = vmul.f32 %v7781_v35, %v1849_v31  ;;  %v7782_v2 = vmov %v7781_v35  ;;  %s6603_s19 = sld [smem:[#allocation6 + $0x8e]] }
 0x2d1   : > { %v2012_v5 = vmul.f32 %v7780_v42, %v1850_v27  ;;  %v2238_v16 = vmul.f32 %v7782_v2, %v1850_v27  ;;  %v2463_v15 = vmul.f32 %v7783_v19, %v1849_v31  ;;  %v7784_v54 = vmov %v7783_v19  ;;  %v3336_v42 = vld [vmem:[%s7503_s25 + $0x10] sm:$0x77] }
 0x2d2   : > { %v2464_v18 = vmul.f32 %v7784_v54, %v1850_v27  ;;  %v1652_v49 = vsel %vm425_vm0, %v1644_v40, %v1636_v36  ;;  %v2480_v3 = vstv %s6431_s30  ;;  %v2013_v51 = vadd.f32 %v2011_v21, %v2007_v58  ;;  %s6584_s30 = sld [smem:[#allocation6 + $0x8d]] }
 0x2d3   : > { %v7785_v13 = vstv %s5778_s6  ;;  %v2706_v60 = vstv %s6439_s3  ;;  %v2014_v38 = vadd.f32 %v2012_v5, %v2008_v56  ;;  %v2239_v62 = vadd.f32 %v2237_v59, %v2233_v24  ;;  %s6597_s3 = sld [smem:[#allocation6 + $0x22]]  ;;  %s6625_s6 = sld [smem:[#allocation6 + $0x47]] }
 0x2d4   : > { %v2689_v23 = vmul.f32 %v7785_v13, %v1849_v31  ;;  %v7786_v20 = vmov %v7785_v13  ;;  %v2240_v45 = vadd.f32 %v2238_v16, %v2234_v61  ;;  %v2465_v32 = vadd.f32 %v2463_v15, %v2459_v6  ;;  %v1676_v61 = vpop.permute.xlu1 %1675  ;;  %v1668_v6 = vpop.permute.xlu0 %1667 }
 0x2d5   : > { %v2690_v25 = vmul.f32 %v7786_v20, %v1850_v27  ;;  %v7787_v0 = vstv %s5794_s0  ;;  %v7789_v50 = vstv %s5800_s29  ;;  %v2466_v63 = vadd.f32 %v2464_v18, %v2460_v57  ;;  %s7795_s0 = sld [smem:[#allocation30_spill]] }
 0x2d6   : > { %v2017_v1 = vmul.f32 %v7787_v0, %v1627_v9  ;;  %v7788_v34 = vmov %v7787_v0  ;;  %v2243_v7 = vmul.f32 %v7789_v50, %v1627_v9  ;;  %v7790_v12 = vmov %v7789_v50  ;;  %s6631_s29 = sld [smem:[#allocation7 + $0x2]] }
 0x2d7   : > { %v2018_v46 = vmul.f32 %v7788_v34, %v1628_v22  ;;  %v2244_v33 = vmul.f32 %v7790_v12, %v1628_v22  ;;  %v7791_v30 = vstv %s5802_s23  ;;  %v7793_v56 = vstv %s5823_s22  ;;  %s6627_s23 = sld [smem:[#allocation7 + $0x1]]  ;;  %s6637_s22 = sld [smem:[#allocation6 + $0x8f]] }
 0x2d8   : > { %v2469_v58 = vmul.f32 %v7791_v30, %v1627_v9  ;;  %v7792_v29 = vmov %v7791_v30  ;;  %v2695_v24 = vmul.f32 %v7793_v56, %v1627_v9  ;;  %v2691_v40 = vadd.f32 %v2689_v23, %v2685_v44  ;;  %v1708_v20 = vpop.permute.xlu1 %1707 }
 0x2d9   : > { %v2470_v43 = vmul.f32 %v7792_v29, %v1628_v22  ;;  %v2692_v36 = vadd.f32 %v2690_v25, %v2686_v47  ;;  %v2019_v48 = vadd.f32 %v2017_v1, %v2013_v51  ;;  %v7794_v41 = vmov %v7793_v56 }
 0x2da   : > { %v2696_v17 = vmul.f32 %v7794_v41, %v1628_v22  ;;  %v2020_v10 = vadd.f32 %v2018_v46, %v2014_v38  ;;  %v2245_v31 = vadd.f32 %v2243_v7, %v2239_v62  ;;  %v2246_v57 = vadd.f32 %v2244_v33, %v2240_v45 }
 0x2db   : > { %v2471_v27 = vadd.f32 %v2469_v58, %v2465_v32  ;;  %v1659_v9 = vmul.f32 %v3335_v53, %v1652_v49  ;;  %v1660_v44 = vmul.f32 %v1648_v4, %v7176_v37  ;;  %v1680_v47 = vsel %vm461_vm1, %v1668_v6, %v1676_v61 }
 0x2dc   : > { %v1684_v22 = vsel %vm461_vm1, %v1676_v61, %v1668_v6  ;;  %v2472_v55 = vadd.f32 %v2470_v43, %v2466_v63  ;;  %v2697_v21 = vadd.f32 %v2695_v24, %v2691_v40  ;;  %v1692_v35 = vmul.f32 %v1680_v47, %v7179_v14  ;;  %v1700_v14 = vpop.permute.xlu0 %1699  ;;  %v1740_v53 = vpop.permute.xlu1 %1739 }
 0x2dd   : > { %v1691_v5 = vmul.f32 %v3336_v42, %v1684_v22  ;;  %v7796_v59 = vstv %s5829_s27  ;;  %v7798_v16 = vstv %s5831_s14  ;;  %v2698_v18 = vadd.f32 %v2696_v17, %v2692_v36  ;;  %s6533_s27 = sld [smem:[#allocation6 + $0x20]]  ;;  %s6551_s14 = sld [smem:[#allocation6 + $0x44]] }
 0x2de   : > { %v2023_v37 = vmul.f32 %v7796_v59, %v1659_v9  ;;  %v7797_v4 = vmov %v7796_v59  ;;  %v2249_v19 = vmul.f32 %v7798_v16, %v1659_v9  ;;  %v7799_v15 = vmov %v7798_v16 }
 0x2df   : > { %v2024_v2 = vmul.f32 %v7797_v4, %v1660_v44  ;;  %v2250_v54 = vmul.f32 %v7799_v15, %v1660_v44  ;;  %v7800_v49 = vstv %s7795_s0  ;;  %v2034_v25 = vstv %s6479_s16  ;;  %s6617_s16 = sld [smem:[#allocation6 + $0x23]] }
 0x2e0   : > { %v2475_v51 = vmul.f32 %v7800_v49, %v1659_v9  ;;  %v7801_v13 = vmov %v7800_v49  ;;  %v2025_v38 = vadd.f32 %v2023_v37, %v2019_v48  ;;  %v7804_v62 = vstv %s5920_s12  ;;  %s6553_s12 = sld [smem:[#allocation6 + $0x68]]  ;;  %s6629_s0 = sld [smem:[#allocation6 + $0x6b]] }
 0x2e1   : > { %v2476_v23 = vmul.f32 %v7801_v13, %v1660_v44  ;;  %v2701_v45 = vmul.f32 %v7804_v62, %v1659_v9  ;;  %v7805_v32 = vmov %v7804_v62  ;;  %v2260_v1 = vstv %s6489_s17  ;;  %s6623_s17 = sld [smem:[#allocation7]] }
 0x2e2   : > { %v2702_v0 = vmul.f32 %v7805_v32, %v1660_v44  ;;  %v2026_v34 = vadd.f32 %v2024_v2, %v2020_v10  ;;  %v2251_v46 = vadd.f32 %v2249_v19, %v2245_v31  ;;  %v2252_v50 = vadd.f32 %v2250_v54, %v2246_v57 }
 0x2e3   : > { %v2477_v7 = vadd.f32 %v2475_v51, %v2471_v27  ;;  %v7806_v12 = vstv %s7802_s20  ;;  %v7808_v58 = vstv %s7803_s8  ;;  %v2478_v24 = vadd.f32 %v2476_v23, %v2472_v55 }
 0x2e4   : > { %v2029_v33 = vmul.f32 %v7806_v12, %v1691_v5  ;;  %v7807_v63 = vmov %v7806_v12  ;;  %v2255_v29 = vmul.f32 %v7808_v58, %v1691_v5  ;;  %v7809_v43 = vmov %v7808_v58 }
 0x2e5   : > { %v2030_v30 = vmul.f32 %v7807_v63, %v1692_v35  ;;  %v2256_v56 = vmul.f32 %v7809_v43, %v1692_v35  ;;  %v2481_v61 = vmul.f32 %v2480_v3, %v1691_v5  ;;  %v2482_v6 = vmul.f32 %v2480_v3, %v1692_v35  ;;  %v1732_v3 = vpop.permute.xlu0 %1731 }
 0x2e6   : > { %v2707_v40 = vmul.f32 %v2706_v60, %v1691_v5  ;;  %v2703_v36 = vadd.f32 %v2701_v45, %v2697_v21  ;;  %v2704_v48 = vadd.f32 %v2702_v0, %v2698_v18  ;;  %v2031_v41 = vadd.f32 %v2029_v33, %v2025_v38  ;;  %v3337_v21 = vld [vmem:[%s7503_s25 + $0x18] sm:$0x77]  ;;  %v3338_v0 = vld [vmem:[%s7503_s25 + $0x28] sm:$0x77]  ;;  %v7812_v33 = vld [vmem:[#allocation111_spill] sm:$0xff] }
 0x2e7   : > { %v2708_v17 = vmul.f32 %v2706_v60, %v1692_v35  ;;  %v2032_v10 = vadd.f32 %v2030_v30, %v2026_v34  ;;  %v2257_v31 = vadd.f32 %v2255_v29, %v2251_v46  ;;  %v2258_v57 = vadd.f32 %v2256_v56, %v2252_v50  ;;  %v1772_v46 = vpop.permute.xlu1 %1771  ;;  %v7813_v30 = vld [vmem:[#allocation101_spill] sm:$0xff]  ;;  %v7814_v29 = vld [vmem:[#allocation108_spill] sm:$0xff] }
 0x2e8   : > { %v2483_v27 = vadd.f32 %v2481_v61, %v2477_v7  ;;  %v2484_v9 = vadd.f32 %v2482_v6, %v2478_v24  ;;  %v2709_v44 = vadd.f32 %v2707_v40, %v2703_v36  ;;  %v1712_v47 = vsel %vm497_vm3, %v1700_v14, %v1708_v20  ;;  %v7811_v7 = vld [vmem:[#allocation107_spill] sm:$0xff]  ;;  %v7815_v40 = vld [vmem:[#allocation41_spill] sm:$0xff] }
 0x2e9   : > { %v1716_v22 = vsel %vm497_vm3, %v1708_v20, %v1700_v14  ;;  %v2486_v60 = vstv %s6524_s2  ;;  %v2712_v55 = vstv %s6526_s7  ;;  %v1724_v5 = vmul.f32 %v1712_v47, %v3807_v26  ;;  %v1764_v50 = vpop.permute.xlu0 %1763  ;;  %s6643_s2 = sld [smem:[#allocation7 + $0x3]] }
 0x2ea   : > { %v1723_v42 = vmul.f32 %v3337_v21, %v1716_v22  ;;  %v2710_v35 = vadd.f32 %v2708_v17, %v2704_v48  ;;  %v2046_v59 = vstv %s6533_s27  ;;  %v1744_v37 = vsel %vm533_vm4, %v1732_v3, %v1740_v53 }
 0x2eb   : > { %v1748_v4 = vsel %vm533_vm4, %v1740_v53, %v1732_v3  ;;  %v2036_v16 = vmul.f32 %v2034_v25, %v1724_v5  ;;  %v2262_v15 = vmul.f32 %v2260_v1, %v1724_v5  ;;  %v2488_v18 = vmul.f32 %v2486_v60, %v1724_v5 }
 0x2ec   : > { %v2035_v2 = vmul.f32 %v2034_v25, %v1723_v42  ;;  %v2261_v19 = vmul.f32 %v2260_v1, %v1723_v42  ;;  %v2487_v54 = vmul.f32 %v2486_v60, %v1723_v42  ;;  %v2713_v49 = vmul.f32 %v2712_v55, %v1723_v42  ;;  %v1804_v42 = vpop.permute.xlu1 %1803 }
 0x2ed   : > { %v2714_v26 = vmul.f32 %v2712_v55, %v1724_v5  ;;  %v2038_v13 = vadd.f32 %v2036_v16, %v2032_v10  ;;  %v2264_v20 = vadd.f32 %v2262_v15, %v2258_v57  ;;  %v2490_v38 = vadd.f32 %v2488_v18, %v2484_v9  ;;  %v7818_v10 = vld [vmem:[#allocation117_spill] sm:$0xff]  ;;  %v7819_v57 = vld [vmem:[#allocation112_spill] sm:$0xff]  ;;  %v1796_v5 = vpop.permute.xlu0 %1795 }
 0x2ee   : > { %v2037_v51 = vadd.f32 %v2035_v2, %v2031_v41  ;;  %v2263_v23 = vadd.f32 %v2261_v19, %v2257_v31  ;;  %v2489_v14 = vadd.f32 %v2487_v54, %v2483_v27  ;;  %v2272_v62 = vstv %s6551_s14  ;;  %v7817_v41 = vld [vmem:[#allocation116_spill] sm:$0xff] }
 0x2ef   : > { %v2498_v45 = vstv %s6553_s12  ;;  %v2715_v32 = vadd.f32 %v2713_v49, %v2709_v44  ;;  %v2716_v25 = vadd.f32 %v2714_v26, %v2710_v35  ;;  %v1755_v1 = vmul.f32 %v3338_v0, %v1744_v37  ;;  %v3339_v19 = vld [vmem:[%s7503_s25 + $0x30] sm:$0x77] }
 0x2f0   : > { %v1756_v34 = vmul.f32 %v1748_v4, %v3847_v39  ;;  %v2044_v12 = vadd.f32 %v7811_v7, %v2038_v13  ;;  %v2270_v63 = vadd.f32 %v7812_v33, %v2264_v20  ;;  %v2043_v58 = vadd.f32 %v7813_v30, %v2037_v51 }
 0x2f1   : > { %v2269_v43 = vadd.f32 %v7814_v29, %v2263_v23  ;;  %v2047_v56 = vmul.f32 %v2046_v59, %v1755_v1  ;;  %v2273_v61 = vmul.f32 %v2272_v62, %v1755_v1  ;;  %v7816_v39 = vstv %s7810_s26 }
 0x2f2   : > { %v2048_v24 = vmul.f32 %v2046_v59, %v1756_v34  ;;  %v2274_v6 = vmul.f32 %v2272_v62, %v1756_v34  ;;  %v2719_v36 = vmul.f32 %v7816_v39, %v7815_v40  ;;  %v2724_v48 = vstv %s6566_s15 }
 0x2f3   : > { %v2496_v17 = vadd.f32 %v7817_v41, %v2490_v38  ;;  %v2722_v31 = vadd.f32 %v7818_v10, %v2716_v25  ;;  %v2495_v27 = vadd.f32 %v7819_v57, %v2489_v14  ;;  %v2499_v53 = vmul.f32 %v2498_v45, %v1755_v1 }
 0x2f4   : > { %v2049_v3 = vadd.f32 %v2047_v56, %v2043_v58  ;;  %v2050_v9 = vadd.f32 %v2048_v24, %v2044_v12  ;;  %v2500_v44 = vmul.f32 %v2498_v45, %v1756_v34  ;;  %v2721_v47 = vadd.f32 %v2719_v36, %v2715_v32 }
 0x2f5   : > { %v2275_v22 = vadd.f32 %v2273_v61, %v2269_v43  ;;  %v2276_v60 = vadd.f32 %v2274_v6, %v2270_v63  ;;  %v2725_v55 = vmul.f32 %v2724_v48, %v1755_v1  ;;  %v2726_v21 = vmul.f32 %v2724_v48, %v1756_v34  ;;  %v3340_v63 = vld [vmem:[%s7503_s25 + $0x38] sm:$0x77]  ;;  %v1836_v48 = vpop.permute.xlu1 %1835 }
 0x2f6   : > { %v2052_v35 = vstv %s6574_s5  ;;  %v2278_v59 = vstv %s6576_s18  ;;  %v1776_v37 = vsel %vm569_vm5, %v1764_v50, %v1772_v46  ;;  %v1780_v4 = vsel %vm569_vm5, %v1772_v46, %v1764_v50 }
 0x2f7   : > { %v2504_v2 = vstv %s6582_s11  ;;  %v2730_v16 = vstv %s6584_s30  ;;  %v1787_v15 = vmul.f32 %v3339_v19, %v1776_v37  ;;  %v1788_v54 = vmul.f32 %v1780_v4, %v3940_v28 }
 0x2f8   : > { %v2501_v18 = vadd.f32 %v2499_v53, %v2495_v27  ;;  %v2502_v49 = vadd.f32 %v2500_v44, %v2496_v17  ;;  %v1808_v26 = vsel %vm605_vm6, %v1796_v5, %v1804_v42  ;;  %v1812_v51 = vsel %vm605_vm6, %v1804_v42, %v1796_v5 }
 0x2f9   : > { %v2053_v13 = vmul.f32 %v2052_v35, %v1787_v15  ;;  %v2054_v23 = vmul.f32 %v2052_v35, %v1788_v54  ;;  %v2279_v28 = vmul.f32 %v2278_v59, %v1787_v15  ;;  %v2280_v20 = vmul.f32 %v2278_v59, %v1788_v54  ;;  %v3341_v35 = vld [vmem:[%s7503_s25 + $0x40] sm:$0x77]  ;;  %s7820_s25 = sld [smem:[#allocation15_spill]] }
 0x2fa   : > { %v2505_v14 = vmul.f32 %v2504_v2, %v1787_v15  ;;  %v2506_v38 = vmul.f32 %v2504_v2, %v1788_v54  ;;  %v2731_v62 = vmul.f32 %v2730_v16, %v1787_v15  ;;  %v2732_v45 = vmul.f32 %v2730_v16, %v1788_v54 }
 0x2fb   : > { %v2727_v32 = vadd.f32 %v2725_v55, %v2721_v47  ;;  %v2728_v25 = vadd.f32 %v2726_v21, %v2722_v31  ;;  %v2058_v0 = vstv %s6597_s3  ;;  %v2284_v1 = vstv %s6599_s28 }
 0x2fc   : > { %v2055_v34 = vadd.f32 %v2053_v13, %v2049_v3  ;;  %v2056_v46 = vadd.f32 %v2054_v23, %v2050_v9  ;;  %v2510_v50 = vstv %s6601_s10  ;;  %v2736_v7 = vstv %s6603_s19 }
 0x2fd   : > { %v2281_v12 = vadd.f32 %v2279_v28, %v2275_v22  ;;  %v2282_v33 = vadd.f32 %v2280_v20, %v2276_v60  ;;  %v1819_v30 = vmul.f32 %v3340_v63, %v1808_v26  ;;  %v1820_v58 = vmul.f32 %v1812_v51, %v7662_v52  ;;  %v1828_v52 = vpop.permute.xlu0 %1827 }
 0x2fe   : > { %v2507_v29 = vadd.f32 %v2505_v14, %v2501_v18  ;;  %v2508_v43 = vadd.f32 %v2506_v38, %v2502_v49  ;;  %v2733_v56 = vadd.f32 %v2731_v62, %v2727_v32  ;;  %v2734_v24 = vadd.f32 %v2732_v45, %v2728_v25 }
 0x2ff   : > { %v2059_v61 = vmul.f32 %v2058_v0, %v1819_v30  ;;  %v2060_v6 = vmul.f32 %v2058_v0, %v1820_v58  ;;  %v2285_v40 = vmul.f32 %v2284_v1, %v1819_v30  ;;  %v2286_v39 = vmul.f32 %v2284_v1, %v1820_v58  ;;  %s7821_s14 = sshll.u32 %s7820_s25, 5 }
 0x300   : > { %v2511_v36 = vmul.f32 %v2510_v50, %v1819_v30  ;;  %v2064_v41 = vstv %s6617_s16  ;;  %v2070_v17 = vstv %s6623_s17  ;;  %v2290_v10 = vstv %s6625_s6  ;;  %s339_s15 = scalar_lea.vmem %s7822_s13, %s7821_s14 }
 0x301   : > { %v2512_v31 = vmul.f32 %v2510_v50, %v1820_v58  ;;  %v2737_v57 = vmul.f32 %v2736_v7, %v1819_v30  ;;  %v2738_v27 = vmul.f32 %v2736_v7, %v1820_v58  ;;  %v2296_v53 = vstv %s6627_s23 }
 0x302   : > { %v2061_v3 = vadd.f32 %v2059_v61, %v2055_v34  ;;  %v2062_v9 = vadd.f32 %v2060_v6, %v2056_v46  ;;  %v2516_v44 = vstv %s6629_s0  ;;  %v2522_v47 = vstv %s6631_s29 }
 0x303   : > { %v2287_v22 = vadd.f32 %v2285_v40, %v2281_v12  ;;  %v2288_v60 = vadd.f32 %v2286_v39, %v2282_v33  ;;  %v1840_v55 = vsel %vm641_vm7, %v1828_v52, %v1836_v48  ;;  %v1844_v21 = vsel %vm641_vm7, %v1836_v48, %v1828_v52 }
 0x304   : > { %v2513_v42 = vadd.f32 %v2511_v36, %v2507_v29  ;;  %v2742_v5 = vstv %s6637_s22  ;;  %v1851_v59 = vmul.f32 %v3341_v35, %v1840_v55  ;;  %v1852_v37 = vmul.f32 %v1844_v21, %v3997_v8 }
 0x305   : > { %v2514_v4 = vadd.f32 %v2512_v31, %v2508_v43  ;;  %v2739_v2 = vadd.f32 %v2737_v57, %v2733_v56  ;;  %v2740_v16 = vadd.f32 %v2738_v27, %v2734_v24  ;;  %v2748_v19 = vstv %s6643_s2 }
 0x306   : > { %v2065_v15 = vmul.f32 %v2064_v41, %v1851_v59  ;;  %v2066_v54 = vmul.f32 %v2064_v41, %v1852_v37  ;;  %v2291_v18 = vmul.f32 %v2290_v10, %v1851_v59  ;;  %v2292_v49 = vmul.f32 %v2290_v10, %v1852_v37 }
 0x307   : > { %v2517_v26 = vmul.f32 %v2516_v44, %v1851_v59  ;;  %v2518_v11 = vmul.f32 %v2516_v44, %v1852_v37  ;;  %v2743_v51 = vmul.f32 %v2742_v5, %v1851_v59  ;;  %v2744_v13 = vmul.f32 %v2742_v5, %v1852_v37 }
 0x308   : > { %v2067_v23 = vadd.f32 %v2065_v15, %v2061_v3  ;;  %v2068_v28 = vadd.f32 %v2066_v54, %v2062_v9  ;;  %v2293_v20 = vadd.f32 %v2291_v18, %v2287_v22  ;;  %v2294_v14 = vadd.f32 %v2292_v49, %v2288_v60 }
 0x309   : > { %v2519_v38 = vadd.f32 %v2517_v26, %v2513_v42  ;;  %v2520_v62 = vadd.f32 %v2518_v11, %v2514_v4  ;;  %v2745_v45 = vadd.f32 %v2743_v51, %v2739_v2  ;;  %v2746_v8 = vadd.f32 %v2744_v13, %v2740_v16 }
 0x30a   : > { %v2071_v32 = vadd.f32 %v2070_v17, %v2067_v23  ;;  %v2072_v25 = vadd.f32 %v2070_v17, %v2068_v28  ;;  %v2297_v0 = vadd.f32 %v2296_v53, %v2293_v20  ;;  %v2298_v1 = vadd.f32 %v2296_v53, %v2294_v14 }
 0x30b   : > { %v2523_v34 = vadd.f32 %v2522_v47, %v2519_v38  ;;  %v2524_v46 = vadd.f32 %v2522_v47, %v2520_v62  ;;  %v2749_v50 = vadd.f32 %v2748_v19, %v2745_v45  ;;  %v2750_v7 = vadd.f32 %v2748_v19, %v2746_v8 }
 0x30c   : > { %vm2073_vm0 = vcmp.ge.f32.partialorder %v2071_v32, 0.0  ;;  %vm2074_vm1 = vcmp.ge.f32.partialorder %v2072_v25, 0.0  ;;  %v2075_v12 = vmul.f32 0.2, %v2071_v32  ;;  %v2076_v33 = vmul.f32 0.2, %v2072_v25 }
 0x30d   : > { %vm2299_vm2 = vcmp.ge.f32.partialorder %v2297_v0, 0.0  ;;  %vm2300_vm3 = vcmp.ge.f32.partialorder %v2298_v1, 0.0  ;;  %v2301_v63 = vmul.f32 0.2, %v2297_v0  ;;  %v2302_v30 = vmul.f32 0.2, %v2298_v1 }
 0x30e   : > { %v2077_v58 = vsel %vm2073_vm0, %v2071_v32, %v2075_v12  ;;  %v2078_v29 = vsel %vm2074_vm1, %v2072_v25, %v2076_v33  ;;  %vm2525_vm4 = vcmp.ge.f32.partialorder %v2523_v34, 0.0  ;;  %vm2526_vm5 = vcmp.ge.f32.partialorder %v2524_v46, 0.0 }
 0x30f   : > { %v2303_v43 = vsel %vm2299_vm2, %v2297_v0, %v2301_v63  ;;  %v2304_v56 = vsel %vm2300_vm3, %v2298_v1, %v2302_v30  ;;  %v2527_v24 = vmul.f32 0.2, %v2523_v34  ;;  %v2528_v61 = vmul.f32 0.2, %v2524_v46 }
 0x310   : > { %vm2751_vm6 = vcmp.ge.f32.partialorder %v2749_v50, 0.0  ;;  %vm2752_vm7 = vcmp.ge.f32.partialorder %v2750_v7, 0.0  ;;  %v2753_v6 = vmul.f32 0.2, %v2749_v50  ;;  %v2754_v40 = vmul.f32 0.2, %v2750_v7 }
 0x311   : > { %v2529_v39 = vsel %vm2525_vm4, %v2523_v34, %v2527_v24  ;;  %v2530_v36 = vsel %vm2526_vm5, %v2524_v46, %v2528_v61  ;;  %v2765_v48 = vcombine.low %v2077_v58, %v2078_v29  ;;  %v2766_v41 = vcombine.low %v2303_v43, %v2304_v56 }
 0x312   : > { %v2755_v17 = vsel %vm2751_vm6, %v2749_v50, %v2753_v6  ;;  %v2756_v10 = vsel %vm2752_vm7, %v2750_v7, %v2754_v40  ;;  %v2767_v52 = vcombine.low %v2529_v39, %v2530_v36 }
 0x313   : > { %v2768_v31 = vcombine.low %v2755_v17, %v2756_v10  ;;  %2773 = vst [vmem:[%s339_s15] sm:$0x77] %v2765_v48  ;;  %2774 = vst [vmem:[%s339_s15 + $0x8] sm:$0x77] %v2766_v41 }
 0x314   : > { %2775 = vst [vmem:[%s339_s15 + $0x10] sm:$0x77] %v2767_v52 }
 0x315   : > { %2776 = vst [vmem:[%s339_s15 + $0x18] sm:$0x77] %v2768_v31 }
 0x316 PF: > { %s7823_s5 = sld [smem:[#allocation13_spill]]  ;;  %s7824_s21 = sld [smem:[#allocation12_spill]] }
 0x317   : > { %s7825_s22 = sld [smem:[#allocation14_spill]] }
 0x31c   : > { %s19_s23 = sadd.s32 1, %s7823_s5  }
 0x31d   : > { %p16_p8 = scmp.ge.s32.totalorder %s19_s23, 4  }
 0x31f   :  { %18 = sbr.rel (!%p16_p8) target bundleno = 12 (0xc), region = 98 }
 0x326   :  { %2806 = vsyncpa [#allocation3], 1 }
 0x327   :  { %2808 = vsyncpa [#allocation3 + $0x1], 1 }
 0x328   :  { %2809 = vsyncpa [#allocation5], 1 }
 0x329   :  { %2810 = vsyncpa [#allocation8], 1 }

</bundles_post_ra>
